<compile_context>
chip_gen: v7x
topology: tpu7x:2x2x1
jax: 0.10.0
libtpu: 0.0.40
codegen_flags: <defaults>
</compile_context>

<pallas_src>
import functools
from typing import NamedTuple

import numpy as np
import jax
import jax.numpy as jnp
from jax import lax
from jax.experimental import pallas as pl
from jax.experimental.pallas import tpu as pltpu

BN_EPS = 1e-5
BATCH = 2
IN_CH = 3
IMG = 24            # input spatial size (24 -> 11 -> 9 -> 3 -> 1 -> 3 -> 9 -> 11 -> 24)
HF = IMG            # frame height per batch element
ROWS = BATCH * HF   # 48 frame rows, shared by every layer


class LayerMeta(NamedTuple):
    kh: int          # number of kernel-row taps
    r_off: int       # offset of this layer's taps in the stacked R array
    hout: int
    wout: int
    cout: int
    count: float     # N * Hout * Wout   (BatchNorm population size)
    relu: bool
    bn: bool


# ----------------------------------------------------------------------------- kernel

def _fused_forward_kernel(x_ref, masks_ref, r_ref, bias_ref, gamma_ref, beta_ref,
                          *rest, meta):
    """Whole autoencoder forward in one kernel invocation (grid=(1,))."""
    w_refs = rest[:-1]          # one stacked (KH, Kw, Nw) weight block per layer
    out_ref = rest[-1]

    x = x_ref[...].astype(jnp.bfloat16)          # (ROWS, 72) input frame
    n_layers = len(meta)

    for li, m in enumerate(meta):
        w_ref = w_refs[li]
        nw = m.wout * m.cout

        # ---- convolution / transposed convolution: sum_i (R_i @ X) @ W_i
        acc = None
        for i in range(m.kh):
            sel = r_ref[m.r_off + i]                                   # (ROWS, ROWS)
            xs = jnp.dot(sel, x, preferred_element_type=jnp.float32)
            xs = xs.astype(jnp.bfloat16)                               # exact (0/1 select)
            part = jnp.dot(xs, w_ref[i], preferred_element_type=jnp.float32)
            acc = part if acc is None else acc + part                  # (ROWS, nw) f32

        acc = acc + bias_ref[li][:, :nw]                               # fused bias
        if m.relu:
            acc = jnp.maximum(acc, 0.0)                                # fused ReLU

        # ---- fused train-mode BatchNorm (one-pass stats, folded scale/shift)
        if m.bn:
            c = m.cout
            mask = masks_ref[li]                                       # (ROWS, 1) valid rows
            masked = acc * mask
            s1 = jnp.sum(masked, axis=0, keepdims=True)                # (1, nw)
            s2 = jnp.sum(masked * acc, axis=0, keepdims=True)          # (1, nw)
            # reduce the Wout groups of the lane axis down to per-channel sums
            s1c = s1[:, :c]
            s2c = s2[:, :c]
            for k in range(1, m.wout):
                s1c = s1c + s1[:, k * c:(k + 1) * c]
                s2c = s2c + s2[:, k * c:(k + 1) * c]
            inv_cnt = 1.0 / m.count
            mean = s1c * inv_cnt
            var = jnp.maximum(s2c * inv_cnt - mean * mean, 0.0)        # clamp >= 0
            scale_c = gamma_ref[li][:, :c] * lax.rsqrt(var + BN_EPS)
            shift_c = beta_ref[li][:, :c] - mean * scale_c
            scale_full = jnp.tile(scale_c, (1, m.wout))                # (1, nw)
            shift_full = jnp.tile(shift_c, (1, m.wout))
            acc = acc * scale_full + shift_full

        if li < n_layers - 1:
            x = acc.astype(jnp.bfloat16)      # stays on-chip for the next layer
        else:
            out_ref[...] = acc.astype(out_ref.dtype)


# ----------------------------------------------------------------------------- packing (host, runs once)

def _pack_conv(wgt, stride, hin, win):
    """Conv2d (Cout, Cin, KH, KW), padding=0 -> per-tap (R_i, W_i) matrices."""
    cout, cin, kh, kw = wgt.shape
    hout = (hin - kh) // stride + 1
    wout = (win - kw) // stride + 1
    R = np.zeros((kh, ROWS, ROWS), np.float32)
    Wb = np.zeros((kh, win * cin, wout * cout), np.float32)
    for i in range(kh):
        for n in range(BATCH):
            for oh in range(hout):
                R[i, n * HF + oh, n * HF + stride * oh + i] = 1.0
        for ow in range(wout):
            for j in range(kw):
                wc = stride * ow + j
                Wb[i, wc * cin:(wc + 1) * cin, ow * cout:(ow + 1) * cout] = wgt[:, :, i, j].T
    return R, Wb, hout, wout


def _pack_convt(wgt, stride, hin, win):
    """ConvTranspose2d (Cin, Cout, KH, KW), padding=0, output_padding=0."""
    cin, cout, kh, kw = wgt.shape
    hout = (hin - 1) * stride + kh
    wout = (win - 1) * stride + kw
    R = np.zeros((kh, ROWS, ROWS), np.float32)
    Wb = np.zeros((kh, win * cin, wout * cout), np.float32)
    for i in range(kh):
        for n in range(BATCH):
            for h in range(hin):
                y = stride * h + i
                R[i, n * HF + y, n * HF + h] = 1.0
        for wi in range(win):
            for j in range(kw):
                xc = stride * wi + j
                Wb[i, wi * cin:(wi + 1) * cin, xc * cout:(xc + 1) * cout] = wgt[:, :, i, j]
    return R, Wb, hout, wout


def build_network(key):
    """Initialise weights (PyTorch-layout) and pre-pack everything for the kernel."""
    layer_defs = [
        # kind,   cin, cout, k, s, relu, bn
        ("conv",    3,  20, 4, 2, True,  True),
        ("conv",   20,  40, 3, 1, True,  True),
        ("conv",   40,  60, 4, 2, True,  True),
        ("conv",   60,  70, 3, 1, True,  True),
        ("convt",  70,  60, 3, 1, True,  True),
        ("convt",  60,  40, 5, 2, True,  True),
        ("convt",  40,  20, 3, 1, True,  True),
        ("convt",  20,   3, 4, 2, False, False),
    ]
    n_layers = len(layer_defs)
    keys = jax.random.split(key, n_layers)

    r_blocks, w_blocks, biases, gammas, betas, metas = [], [], [], [], [], []
    masks = np.zeros((n_layers, ROWS, 1), np.float32)
    hin, win = IMG, IMG
    r_off = 0
    max_nw, max_c = 1, 1

    for li, (kind, cin, cout, ksz, stride, relu, bn) in enumerate(layer_defs):
        k1, k2 = jax.random.split(keys[li])
        wshape = (cout, cin, ksz, ksz) if kind == "conv" else (cin, cout, ksz, ksz)
        wgt = np.asarray(jax.random.normal(k1, wshape, jnp.float32) * 0.05)
        bvec = np.asarray(jax.random.normal(k2, (cout,), jnp.float32) * 0.05)

        if kind == "conv":
            R, Wb, hout, wout = _pack_conv(wgt, stride, hin, win)
        else:
            R, Wb, hout, wout = _pack_convt(wgt, stride, hin, win)
        nw = wout * cout
        max_nw = max(max_nw, nw)
        max_c = max(max_c, cout)

        r_blocks.append(R)
        w_blocks.append(Wb)
        biases.append(np.tile(bvec, wout).reshape(1, nw).astype(np.float32))
        gammas.append(np.ones((1, cout), np.float32))   # PyTorch BN default init
        betas.append(np.zeros((1, cout), np.float32))
        for n in range(BATCH):
            masks[li, n * HF:n * HF + hout, 0] = 1.0

        metas.append(LayerMeta(kh=ksz, r_off=r_off, hout=hout, wout=wout, cout=cout,
                               count=float(BATCH * hout * wout), relu=relu, bn=bn))
        r_off += ksz
        hin, win = hout, wout

    r_all = np.concatenate(r_blocks, axis=0)                     # (sum KH, 48, 48)
    bias_all = np.zeros((n_layers, 1, max_nw), np.float32)
    gamma_all = np.zeros((n_layers, 1, max_c), np.float32)
    beta_all = np.zeros((n_layers, 1, max_c), np.float32)
    for li in range(n_layers):
        bias_all[li, :, :biases[li].shape[1]] = biases[li]
        gamma_all[li, :, :gammas[li].shape[1]] = gammas[li]
        beta_all[li, :, :betas[li].shape[1]] = betas[li]

    packed = dict(
        masks=jnp.asarray(masks),
        r_all=jnp.asarray(r_all, jnp.bfloat16),                  # 0/1 -> exact in bf16
        bias_all=jnp.asarray(bias_all),
        gamma_all=jnp.asarray(gamma_all),
        beta_all=jnp.asarray(beta_all),
        w_blocks=[jnp.asarray(w, jnp.bfloat16) for w in w_blocks],
    )
    return packed, tuple(metas)


# ----------------------------------------------------------------------------- forward

def make_forward(packed, meta):
    kernel = functools.partial(_fused_forward_kernel, meta=meta)
    out_nw = meta[-1].wout * meta[-1].cout

    def _full_spec(a):
        nd = a.ndim
        return pl.BlockSpec(a.shape, lambda i, _nd=nd: (0,) * _nd)

    def forward(x_nchw):
        # NCHW -> frame (row = n*24 + h, col = w*C + c)
        xf = jnp.transpose(x_nchw, (0, 2, 3, 1)).reshape(ROWS, IMG * IN_CH)
        operands = [xf, packed["masks"], packed["r_all"], packed["bias_all"],
                    packed["gamma_all"], packed["beta_all"], *packed["w_blocks"]]
        out = pl.pallas_call(
            kernel,
            out_shape=jax.ShapeDtypeStruct((ROWS, out_nw), jnp.float32),
            grid=(1,),
            in_specs=[_full_spec(a) for a in operands],
            out_specs=pl.BlockSpec((ROWS, out_nw), lambda i: (0, 0)),
            compiler_params=pltpu.CompilerParams(
                dimension_semantics=("arbitrary",)),
        )(*operands)
        # TODO(synk): on v7x the single grid step uses one TensorCore; splitting the
        # batch across cores would require a cross-core BN reduction, skipped here.
        out = out.reshape(BATCH, HF, meta[-1].wout, meta[-1].cout)   # (N, H, W, C)
        return jnp.transpose(out, (0, 3, 1, 2))                     # NHWC -> NCHW

    return forward


# ----------------------------------------------------------------------------- main

if __name__ == "__main__":
    key = jax.random.PRNGKey(0)
    pkey, xkey = jax.random.split(key)
    packed, meta = build_network(pkey)

    x = jax.random.normal(xkey, (BATCH, IN_CH, IMG, IMG), jnp.float32)

    fwd = jax.jit(make_forward(packed, meta))
    out = jax.block_until_ready(fwd(x))

    assert out.shape == (BATCH, IN_CH, IMG, IMG), out.shape
    assert out.dtype == jnp.float32
    assert bool(jnp.all(jnp.isfinite(out)))
    print("KERNEL_OK")
</pallas_src>

<mosaic_0001>
module attributes {stable_mosaic.version = 11 : i64} {
  func.func @_fused_forward_kernel(%arg0: i32, %arg1: memref<48x72xf32, #tpu.memory_space<vmem>>, %arg2: memref<8x48x1xf32, #tpu.memory_space<vmem>>, %arg3: memref<29x48x48xbf16, #tpu.memory_space<vmem>>, %arg4: memref<8x1x360xf32, #tpu.memory_space<vmem>>, %arg5: memref<8x1x70xf32, #tpu.memory_space<vmem>>, %arg6: memref<8x1x70xf32, #tpu.memory_space<vmem>>, %arg7: memref<4x72x220xbf16, #tpu.memory_space<vmem>>, %arg8: memref<3x220x360xbf16, #tpu.memory_space<vmem>>, %arg9: memref<4x360x180xbf16, #tpu.memory_space<vmem>>, %arg10: memref<3x180x70xbf16, #tpu.memory_space<vmem>>, %arg11: memref<3x70x180xbf16, #tpu.memory_space<vmem>>, %arg12: memref<5x180x360xbf16, #tpu.memory_space<vmem>>, %arg13: memref<3x360x220xbf16, #tpu.memory_space<vmem>>, %arg14: memref<4x220x72xbf16, #tpu.memory_space<vmem>>, %arg15: memref<48x72xf32, #tpu.memory_space<vmem>>) attributes {dimension_semantics = [#tpu.dimension_semantics<arbitrary>], iteration_bounds = array<i64: 1>, scalar_prefetch = 0 : i64, scratch_operands = 0 : i64, tpu.core_type = #tpu.core_type<tc>, window_params = [{pipeline_mode = #tpu.pipeline_mode<synchronous>, transform_indices = @transform_0, window_bounds = array<i64: 48, 72>}, {pipeline_mode = #tpu.pipeline_mode<synchronous>, transform_indices = @transform_1, window_bounds = array<i64: 8, 48, 1>}, {pipeline_mode = #tpu.pipeline_mode<synchronous>, transform_indices = @transform_2, window_bounds = array<i64: 29, 48, 48>}, {pipeline_mode = #tpu.pipeline_mode<synchronous>, transform_indices = @transform_3, window_bounds = array<i64: 8, 1, 360>}, {pipeline_mode = #tpu.pipeline_mode<synchronous>, transform_indices = @transform_4, window_bounds = array<i64: 8, 1, 70>}, {pipeline_mode = #tpu.pipeline_mode<synchronous>, transform_indices = @transform_5, window_bounds = array<i64: 8, 1, 70>}, {pipeline_mode = #tpu.pipeline_mode<synchronous>, transform_indices = @transform_6, window_bounds = array<i64: 4, 72, 220>}, {pipeline_mode = #tpu.pipeline_mode<synchronous>, transform_indices = @transform_7, window_bounds = array<i64: 3, 220, 360>}, {pipeline_mode = #tpu.pipeline_mode<synchronous>, transform_indices = @transform_8, window_bounds = array<i64: 4, 360, 180>}, {pipeline_mode = #tpu.pipeline_mode<synchronous>, transform_indices = @transform_9, window_bounds = array<i64: 3, 180, 70>}, {pipeline_mode = #tpu.pipeline_mode<synchronous>, transform_indices = @transform_10, window_bounds = array<i64: 3, 70, 180>}, {pipeline_mode = #tpu.pipeline_mode<synchronous>, transform_indices = @transform_11, window_bounds = array<i64: 5, 180, 360>}, {pipeline_mode = #tpu.pipeline_mode<synchronous>, transform_indices = @transform_12, window_bounds = array<i64: 3, 360, 220>}, {pipeline_mode = #tpu.pipeline_mode<synchronous>, transform_indices = @transform_13, window_bounds = array<i64: 4, 220, 72>}, {pipeline_mode = #tpu.pipeline_mode<synchronous>, transform_indices = @transform_14, window_bounds = array<i64: 48, 72>}]} {
    %c0 = arith.constant 0 : index
    %c0_0 = arith.constant 0 : index
    %0 = vector.load %arg1[%c0, %c0_0] : memref<48x72xf32, #tpu.memory_space<vmem>>, vector<48x72xf32>
    %1 = arith.truncf %0 : vector<48x72xf32> to vector<48x72xbf16>
    %c0_1 = arith.constant 0 : index
    %c0_2 = arith.constant 0 : index
    %c0_3 = arith.constant 0 : index
    %2 = vector.load %arg3[%c0_1, %c0_2, %c0_3] : memref<29x48x48xbf16, #tpu.memory_space<vmem>>, vector<1x48x48xbf16>
    %3 = vector.shape_cast %2 : vector<1x48x48xbf16> to vector<48x48xbf16>
    %cst = arith.constant dense<0.000000e+00> : vector<48x72xf32>
    %4 = tpu.matmul %3, %1, %cst {dimension_numbers = #tpu.dot_dimension_numbers<[1], [0], [0], [1], [0, 0, 1, 1], [], []>} : vector<48x48xbf16>, vector<48x72xbf16>, vector<48x72xf32> -> vector<48x72xf32>
    %5 = arith.truncf %4 : vector<48x72xf32> to vector<48x72xbf16>
    %c0_4 = arith.constant 0 : index
    %c0_5 = arith.constant 0 : index
    %c0_6 = arith.constant 0 : index
    %6 = vector.load %arg7[%c0_4, %c0_5, %c0_6] : memref<4x72x220xbf16, #tpu.memory_space<vmem>>, vector<1x72x220xbf16>
    %7 = vector.shape_cast %6 : vector<1x72x220xbf16> to vector<72x220xbf16>
    %cst_7 = arith.constant dense<0.000000e+00> : vector<48x220xf32>
    %8 = tpu.matmul %5, %7, %cst_7 {dimension_numbers = #tpu.dot_dimension_numbers<[1], [0], [0], [1], [0, 0, 1, 1], [], []>} : vector<48x72xbf16>, vector<72x220xbf16>, vector<48x220xf32> -> vector<48x220xf32>
    %c1 = arith.constant 1 : index
    %c0_8 = arith.constant 0 : index
    %c0_9 = arith.constant 0 : index
    %9 = vector.load %arg3[%c1, %c0_8, %c0_9] : memref<29x48x48xbf16, #tpu.memory_space<vmem>>, vector<1x48x48xbf16>
    %10 = vector.shape_cast %9 : vector<1x48x48xbf16> to vector<48x48xbf16>
    %cst_10 = arith.constant dense<0.000000e+00> : vector<48x72xf32>
    %11 = tpu.matmul %10, %1, %cst_10 {dimension_numbers = #tpu.dot_dimension_numbers<[1], [0], [0], [1], [0, 0, 1, 1], [], []>} : vector<48x48xbf16>, vector<48x72xbf16>, vector<48x72xf32> -> vector<48x72xf32>
    %12 = arith.truncf %11 : vector<48x72xf32> to vector<48x72xbf16>
    %c1_11 = arith.constant 1 : index
    %c0_12 = arith.constant 0 : index
    %c0_13 = arith.constant 0 : index
    %13 = vector.load %arg7[%c1_11, %c0_12, %c0_13] : memref<4x72x220xbf16, #tpu.memory_space<vmem>>, vector<1x72x220xbf16>
    %14 = vector.shape_cast %13 : vector<1x72x220xbf16> to vector<72x220xbf16>
    %cst_14 = arith.constant dense<0.000000e+00> : vector<48x220xf32>
    %15 = tpu.matmul %12, %14, %cst_14 {dimension_numbers = #tpu.dot_dimension_numbers<[1], [0], [0], [1], [0, 0, 1, 1], [], []>} : vector<48x72xbf16>, vector<72x220xbf16>, vector<48x220xf32> -> vector<48x220xf32>
    %16 = arith.addf %8, %15 : vector<48x220xf32>
    %c2 = arith.constant 2 : index
    %c0_15 = arith.constant 0 : index
    %c0_16 = arith.constant 0 : index
    %17 = vector.load %arg3[%c2, %c0_15, %c0_16] : memref<29x48x48xbf16, #tpu.memory_space<vmem>>, vector<1x48x48xbf16>
    %18 = vector.shape_cast %17 : vector<1x48x48xbf16> to vector<48x48xbf16>
    %cst_17 = arith.constant dense<0.000000e+00> : vector<48x72xf32>
    %19 = tpu.matmul %18, %1, %cst_17 {dimension_numbers = #tpu.dot_dimension_numbers<[1], [0], [0], [1], [0, 0, 1, 1], [], []>} : vector<48x48xbf16>, vector<48x72xbf16>, vector<48x72xf32> -> vector<48x72xf32>
    %20 = arith.truncf %19 : vector<48x72xf32> to vector<48x72xbf16>
    %c2_18 = arith.constant 2 : index
    %c0_19 = arith.constant 0 : index
    %c0_20 = arith.constant 0 : index
    %21 = vector.load %arg7[%c2_18, %c0_19, %c0_20] : memref<4x72x220xbf16, #tpu.memory_space<vmem>>, vector<1x72x220xbf16>
    %22 = vector.shape_cast %21 : vector<1x72x220xbf16> to vector<72x220xbf16>
    %cst_21 = arith.constant dense<0.000000e+00> : vector<48x220xf32>
    %23 = tpu.matmul %20, %22, %cst_21 {dimension_numbers = #tpu.dot_dimension_numbers<[1], [0], [0], [1], [0, 0, 1, 1], [], []>} : vector<48x72xbf16>, vector<72x220xbf16>, vector<48x220xf32> -> vector<48x220xf32>
    %24 = arith.addf %16, %23 : vector<48x220xf32>
    %c3 = arith.constant 3 : index
    %c0_22 = arith.constant 0 : index
    %c0_23 = arith.constant 0 : index
    %25 = vector.load %arg3[%c3, %c0_22, %c0_23] : memref<29x48x48xbf16, #tpu.memory_space<vmem>>, vector<1x48x48xbf16>
    %26 = vector.shape_cast %25 : vector<1x48x48xbf16> to vector<48x48xbf16>
    %cst_24 = arith.constant dense<0.000000e+00> : vector<48x72xf32>
    %27 = tpu.matmul %26, %1, %cst_24 {dimension_numbers = #tpu.dot_dimension_numbers<[1], [0], [0], [1], [0, 0, 1, 1], [], []>} : vector<48x48xbf16>, vector<48x72xbf16>, vector<48x72xf32> -> vector<48x72xf32>
    %28 = arith.truncf %27 : vector<48x72xf32> to vector<48x72xbf16>
    %c3_25 = arith.constant 3 : index
    %c0_26 = arith.constant 0 : index
    %c0_27 = arith.constant 0 : index
    %29 = vector.load %arg7[%c3_25, %c0_26, %c0_27] : memref<4x72x220xbf16, #tpu.memory_space<vmem>>, vector<1x72x220xbf16>
    %30 = vector.shape_cast %29 : vector<1x72x220xbf16> to vector<72x220xbf16>
    %cst_28 = arith.constant dense<0.000000e+00> : vector<48x220xf32>
    %31 = tpu.matmul %28, %30, %cst_28 {dimension_numbers = #tpu.dot_dimension_numbers<[1], [0], [0], [1], [0, 0, 1, 1], [], []>} : vector<48x72xbf16>, vector<72x220xbf16>, vector<48x220xf32> -> vector<48x220xf32>
    %32 = arith.addf %24, %31 : vector<48x220xf32>
    %c0_29 = arith.constant 0 : index
    %c0_30 = arith.constant 0 : index
    %c0_31 = arith.constant 0 : index
    %33 = vector.load %arg4[%c0_29, %c0_30, %c0_31] : memref<8x1x360xf32, #tpu.memory_space<vmem>>, vector<1x1x360xf32>
    %34 = vector.shape_cast %33 : vector<1x1x360xf32> to vector<1x360xf32>
    %35 = vector.extract_strided_slice %34 {offsets = [0, 0], sizes = [1, 220], strides = [1, 1]} : vector<1x360xf32> to vector<1x220xf32>
    %36 = vector.broadcast %35 : vector<1x220xf32> to vector<48x220xf32>
    %37 = arith.addf %32, %36 : vector<48x220xf32>
    %cst_32 = arith.constant 0.000000e+00 : f32
    %38 = vector.broadcast %cst_32 : f32 to vector<48x220xf32>
    %39 = arith.maximumf %37, %38 : vector<48x220xf32>
    %c0_33 = arith.constant 0 : index
    %c0_34 = arith.constant 0 : index
    %c0_35 = arith.constant 0 : index
    %40 = vector.load %arg2[%c0_33, %c0_34, %c0_35] : memref<8x48x1xf32, #tpu.memory_space<vmem>>, vector<1x48x1xf32>
    %41 = vector.shape_cast %40 : vector<1x48x1xf32> to vector<48x1xf32>
    %42 = vector.broadcast %41 : vector<48x1xf32> to vector<48x220xf32>
    %43 = arith.mulf %39, %42 : vector<48x220xf32>
    %cst_36 = arith.constant dense<0.000000e+00> : vector<220xf32>
    %44 = vector.multi_reduction <add>, %43, %cst_36 [0] : vector<48x220xf32> to vector<220xf32>
    %45 = vector.shape_cast %44 : vector<220xf32> to vector<1x220xf32>
    %46 = arith.mulf %43, %39 : vector<48x220xf32>
    %cst_37 = arith.constant dense<0.000000e+00> : vector<220xf32>
    %47 = vector.multi_reduction <add>, %46, %cst_37 [0] : vector<48x220xf32> to vector<220xf32>
    %48 = vector.shape_cast %47 : vector<220xf32> to vector<1x220xf32>
    %49 = vector.extract_strided_slice %45 {offsets = [0, 0], sizes = [1, 20], strides = [1, 1]} : vector<1x220xf32> to vector<1x20xf32>
    %50 = vector.extract_strided_slice %48 {offsets = [0, 0], sizes = [1, 20], strides = [1, 1]} : vector<1x220xf32> to vector<1x20xf32>
    %51 = vector.extract_strided_slice %45 {offsets = [0, 20], sizes = [1, 20], strides = [1, 1]} : vector<1x220xf32> to vector<1x20xf32>
    %52 = arith.addf %49, %51 : vector<1x20xf32>
    %53 = vector.extract_strided_slice %48 {offsets = [0, 20], sizes = [1, 20], strides = [1, 1]} : vector<1x220xf32> to vector<1x20xf32>
    %54 = arith.addf %50, %53 : vector<1x20xf32>
    %55 = vector.extract_strided_slice %45 {offsets = [0, 40], sizes = [1, 20], strides = [1, 1]} : vector<1x220xf32> to vector<1x20xf32>
    %56 = arith.addf %52, %55 : vector<1x20xf32>
    %57 = vector.extract_strided_slice %48 {offsets = [0, 40], sizes = [1, 20], strides = [1, 1]} : vector<1x220xf32> to vector<1x20xf32>
    %58 = arith.addf %54, %57 : vector<1x20xf32>
    %59 = vector.extract_strided_slice %45 {offsets = [0, 60], sizes = [1, 20], strides = [1, 1]} : vector<1x220xf32> to vector<1x20xf32>
    %60 = arith.addf %56, %59 : vector<1x20xf32>
    %61 = vector.extract_strided_slice %48 {offsets = [0, 60], sizes = [1, 20], strides = [1, 1]} : vector<1x220xf32> to vector<1x20xf32>
    %62 = arith.addf %58, %61 : vector<1x20xf32>
    %63 = vector.extract_strided_slice %45 {offsets = [0, 80], sizes = [1, 20], strides = [1, 1]} : vector<1x220xf32> to vector<1x20xf32>
    %64 = arith.addf %60, %63 : vector<1x20xf32>
    %65 = vector.extract_strided_slice %48 {offsets = [0, 80], sizes = [1, 20], strides = [1, 1]} : vector<1x220xf32> to vector<1x20xf32>
    %66 = arith.addf %62, %65 : vector<1x20xf32>
    %67 = vector.extract_strided_slice %45 {offsets = [0, 100], sizes = [1, 20], strides = [1, 1]} : vector<1x220xf32> to vector<1x20xf32>
    %68 = arith.addf %64, %67 : vector<1x20xf32>
    %69 = vector.extract_strided_slice %48 {offsets = [0, 100], sizes = [1, 20], strides = [1, 1]} : vector<1x220xf32> to vector<1x20xf32>
    %70 = arith.addf %66, %69 : vector<1x20xf32>
    %71 = vector.extract_strided_slice %45 {offsets = [0, 120], sizes = [1, 20], strides = [1, 1]} : vector<1x220xf32> to vector<1x20xf32>
    %72 = arith.addf %68, %71 : vector<1x20xf32>
    %73 = vector.extract_strided_slice %48 {offsets = [0, 120], sizes = [1, 20], strides = [1, 1]} : vector<1x220xf32> to vector<1x20xf32>
    %74 = arith.addf %70, %73 : vector<1x20xf32>
    %75 = vector.extract_strided_slice %45 {offsets = [0, 140], sizes = [1, 20], strides = [1, 1]} : vector<1x220xf32> to vector<1x20xf32>
    %76 = arith.addf %72, %75 : vector<1x20xf32>
    %77 = vector.extract_strided_slice %48 {offsets = [0, 140], sizes = [1, 20], strides = [1, 1]} : vector<1x220xf32> to vector<1x20xf32>
    %78 = arith.addf %74, %77 : vector<1x20xf32>
    %79 = vector.extract_strided_slice %45 {offsets = [0, 160], sizes = [1, 20], strides = [1, 1]} : vector<1x220xf32> to vector<1x20xf32>
    %80 = arith.addf %76, %79 : vector<1x20xf32>
    %81 = vector.extract_strided_slice %48 {offsets = [0, 160], sizes = [1, 20], strides = [1, 1]} : vector<1x220xf32> to vector<1x20xf32>
    %82 = arith.addf %78, %81 : vector<1x20xf32>
    %83 = vector.extract_strided_slice %45 {offsets = [0, 180], sizes = [1, 20], strides = [1, 1]} : vector<1x220xf32> to vector<1x20xf32>
    %84 = arith.addf %80, %83 : vector<1x20xf32>
    %85 = vector.extract_strided_slice %48 {offsets = [0, 180], sizes = [1, 20], strides = [1, 1]} : vector<1x220xf32> to vector<1x20xf32>
    %86 = arith.addf %82, %85 : vector<1x20xf32>
    %87 = vector.extract_strided_slice %45 {offsets = [0, 200], sizes = [1, 20], strides = [1, 1]} : vector<1x220xf32> to vector<1x20xf32>
    %88 = arith.addf %84, %87 : vector<1x20xf32>
    %89 = vector.extract_strided_slice %48 {offsets = [0, 200], sizes = [1, 20], strides = [1, 1]} : vector<1x220xf32> to vector<1x20xf32>
    %90 = arith.addf %86, %89 : vector<1x20xf32>
    %cst_38 = arith.constant 0.00413223123 : f32
    %91 = vector.broadcast %cst_38 : f32 to vector<1x20xf32>
    %92 = arith.mulf %88, %91 : vector<1x20xf32>
    %cst_39 = arith.constant 0.00413223123 : f32
    %93 = vector.broadcast %cst_39 : f32 to vector<1x20xf32>
    %94 = arith.mulf %90, %93 : vector<1x20xf32>
    %95 = arith.mulf %92, %92 : vector<1x20xf32>
    %96 = arith.subf %94, %95 : vector<1x20xf32>
    %cst_40 = arith.constant 0.000000e+00 : f32
    %97 = vector.broadcast %cst_40 : f32 to vector<1x20xf32>
    %98 = arith.maximumf %96, %97 : vector<1x20xf32>
    %c0_41 = arith.constant 0 : index
    %c0_42 = arith.constant 0 : index
    %c0_43 = arith.constant 0 : index
    %99 = vector.load %arg5[%c0_41, %c0_42, %c0_43] : memref<8x1x70xf32, #tpu.memory_space<vmem>>, vector<1x1x70xf32>
    %100 = vector.shape_cast %99 : vector<1x1x70xf32> to vector<1x70xf32>
    %101 = vector.extract_strided_slice %100 {offsets = [0, 0], sizes = [1, 20], strides = [1, 1]} : vector<1x70xf32> to vector<1x20xf32>
    %cst_44 = arith.constant 9.99999974E-6 : f32
    %102 = vector.broadcast %cst_44 : f32 to vector<1x20xf32>
    %103 = arith.addf %98, %102 : vector<1x20xf32>
    %104 = math.rsqrt %103 : vector<1x20xf32>
    %105 = arith.mulf %101, %104 : vector<1x20xf32>
    %c0_45 = arith.constant 0 : index
    %c0_46 = arith.constant 0 : index
    %c0_47 = arith.constant 0 : index
    %106 = vector.load %arg6[%c0_45, %c0_46, %c0_47] : memref<8x1x70xf32, #tpu.memory_space<vmem>>, vector<1x1x70xf32>
    %107 = vector.shape_cast %106 : vector<1x1x70xf32> to vector<1x70xf32>
    %108 = vector.extract_strided_slice %107 {offsets = [0, 0], sizes = [1, 20], strides = [1, 1]} : vector<1x70xf32> to vector<1x20xf32>
    %109 = arith.mulf %92, %105 : vector<1x20xf32>
    %110 = arith.subf %108, %109 : vector<1x20xf32>
    %111 = tpu.concatenate %105, %105, %105, %105, %105, %105, %105, %105, %105, %105, %105 in 1 : vector<1x20xf32>, vector<1x20xf32>, vector<1x20xf32>, vector<1x20xf32>, vector<1x20xf32>, vector<1x20xf32>, vector<1x20xf32>, vector<1x20xf32>, vector<1x20xf32>, vector<1x20xf32>, vector<1x20xf32> -> vector<1x220xf32>
    %112 = tpu.concatenate %110, %110, %110, %110, %110, %110, %110, %110, %110, %110, %110 in 1 : vector<1x20xf32>, vector<1x20xf32>, vector<1x20xf32>, vector<1x20xf32>, vector<1x20xf32>, vector<1x20xf32>, vector<1x20xf32>, vector<1x20xf32>, vector<1x20xf32>, vector<1x20xf32>, vector<1x20xf32> -> vector<1x220xf32>
    %113 = vector.broadcast %111 : vector<1x220xf32> to vector<48x220xf32>
    %114 = arith.mulf %39, %113 : vector<48x220xf32>
    %115 = vector.broadcast %112 : vector<1x220xf32> to vector<48x220xf32>
    %116 = arith.addf %114, %115 : vector<48x220xf32>
    %117 = arith.truncf %116 : vector<48x220xf32> to vector<48x220xbf16>
    %c4 = arith.constant 4 : index
    %c0_48 = arith.constant 0 : index
    %c0_49 = arith.constant 0 : index
    %118 = vector.load %arg3[%c4, %c0_48, %c0_49] : memref<29x48x48xbf16, #tpu.memory_space<vmem>>, vector<1x48x48xbf16>
    %119 = vector.shape_cast %118 : vector<1x48x48xbf16> to vector<48x48xbf16>
    %cst_50 = arith.constant dense<0.000000e+00> : vector<48x220xf32>
    %120 = tpu.matmul %119, %117, %cst_50 {dimension_numbers = #tpu.dot_dimension_numbers<[1], [0], [0], [1], [0, 0, 1, 1], [], []>} : vector<48x48xbf16>, vector<48x220xbf16>, vector<48x220xf32> -> vector<48x220xf32>
    %121 = arith.truncf %120 : vector<48x220xf32> to vector<48x220xbf16>
    %c0_51 = arith.constant 0 : index
    %c0_52 = arith.constant 0 : index
    %c0_53 = arith.constant 0 : index
    %122 = vector.load %arg8[%c0_51, %c0_52, %c0_53] : memref<3x220x360xbf16, #tpu.memory_space<vmem>>, vector<1x220x360xbf16>
    %123 = vector.shape_cast %122 : vector<1x220x360xbf16> to vector<220x360xbf16>
    %cst_54 = arith.constant dense<0.000000e+00> : vector<48x360xf32>
    %124 = tpu.matmul %121, %123, %cst_54 {dimension_numbers = #tpu.dot_dimension_numbers<[1], [0], [0], [1], [0, 0, 1, 1], [], []>} : vector<48x220xbf16>, vector<220x360xbf16>, vector<48x360xf32> -> vector<48x360xf32>
    %c5 = arith.constant 5 : index
    %c0_55 = arith.constant 0 : index
    %c0_56 = arith.constant 0 : index
    %125 = vector.load %arg3[%c5, %c0_55, %c0_56] : memref<29x48x48xbf16, #tpu.memory_space<vmem>>, vector<1x48x48xbf16>
    %126 = vector.shape_cast %125 : vector<1x48x48xbf16> to vector<48x48xbf16>
    %cst_57 = arith.constant dense<0.000000e+00> : vector<48x220xf32>
    %127 = tpu.matmul %126, %117, %cst_57 {dimension_numbers = #tpu.dot_dimension_numbers<[1], [0], [0], [1], [0, 0, 1, 1], [], []>} : vector<48x48xbf16>, vector<48x220xbf16>, vector<48x220xf32> -> vector<48x220xf32>
    %128 = arith.truncf %127 : vector<48x220xf32> to vector<48x220xbf16>
    %c1_58 = arith.constant 1 : index
    %c0_59 = arith.constant 0 : index
    %c0_60 = arith.constant 0 : index
    %129 = vector.load %arg8[%c1_58, %c0_59, %c0_60] : memref<3x220x360xbf16, #tpu.memory_space<vmem>>, vector<1x220x360xbf16>
    %130 = vector.shape_cast %129 : vector<1x220x360xbf16> to vector<220x360xbf16>
    %cst_61 = arith.constant dense<0.000000e+00> : vector<48x360xf32>
    %131 = tpu.matmul %128, %130, %cst_61 {dimension_numbers = #tpu.dot_dimension_numbers<[1], [0], [0], [1], [0, 0, 1, 1], [], []>} : vector<48x220xbf16>, vector<220x360xbf16>, vector<48x360xf32> -> vector<48x360xf32>
    %132 = arith.addf %124, %131 : vector<48x360xf32>
    %c6 = arith.constant 6 : index
    %c0_62 = arith.constant 0 : index
    %c0_63 = arith.constant 0 : index
    %133 = vector.load %arg3[%c6, %c0_62, %c0_63] : memref<29x48x48xbf16, #tpu.memory_space<vmem>>, vector<1x48x48xbf16>
    %134 = vector.shape_cast %133 : vector<1x48x48xbf16> to vector<48x48xbf16>
    %cst_64 = arith.constant dense<0.000000e+00> : vector<48x220xf32>
    %135 = tpu.matmul %134, %117, %cst_64 {dimension_numbers = #tpu.dot_dimension_numbers<[1], [0], [0], [1], [0, 0, 1, 1], [], []>} : vector<48x48xbf16>, vector<48x220xbf16>, vector<48x220xf32> -> vector<48x220xf32>
    %136 = arith.truncf %135 : vector<48x220xf32> to vector<48x220xbf16>
    %c2_65 = arith.constant 2 : index
    %c0_66 = arith.constant 0 : index
    %c0_67 = arith.constant 0 : index
    %137 = vector.load %arg8[%c2_65, %c0_66, %c0_67] : memref<3x220x360xbf16, #tpu.memory_space<vmem>>, vector<1x220x360xbf16>
    %138 = vector.shape_cast %137 : vector<1x220x360xbf16> to vector<220x360xbf16>
    %cst_68 = arith.constant dense<0.000000e+00> : vector<48x360xf32>
    %139 = tpu.matmul %136, %138, %cst_68 {dimension_numbers = #tpu.dot_dimension_numbers<[1], [0], [0], [1], [0, 0, 1, 1], [], []>} : vector<48x220xbf16>, vector<220x360xbf16>, vector<48x360xf32> -> vector<48x360xf32>
    %140 = arith.addf %132, %139 : vector<48x360xf32>
    %c1_69 = arith.constant 1 : index
    %c0_70 = arith.constant 0 : index
    %c0_71 = arith.constant 0 : index
    %141 = vector.load %arg4[%c1_69, %c0_70, %c0_71] : memref<8x1x360xf32, #tpu.memory_space<vmem>>, vector<1x1x360xf32>
    %142 = vector.shape_cast %141 : vector<1x1x360xf32> to vector<1x360xf32>
    %143 = vector.broadcast %142 : vector<1x360xf32> to vector<48x360xf32>
    %144 = arith.addf %140, %143 : vector<48x360xf32>
    %cst_72 = arith.constant 0.000000e+00 : f32
    %145 = vector.broadcast %cst_72 : f32 to vector<48x360xf32>
    %146 = arith.maximumf %144, %145 : vector<48x360xf32>
    %c1_73 = arith.constant 1 : index
    %c0_74 = arith.constant 0 : index
    %c0_75 = arith.constant 0 : index
    %147 = vector.load %arg2[%c1_73, %c0_74, %c0_75] : memref<8x48x1xf32, #tpu.memory_space<vmem>>, vector<1x48x1xf32>
    %148 = vector.shape_cast %147 : vector<1x48x1xf32> to vector<48x1xf32>
    %149 = vector.broadcast %148 : vector<48x1xf32> to vector<48x360xf32>
    %150 = arith.mulf %146, %149 : vector<48x360xf32>
    %cst_76 = arith.constant dense<0.000000e+00> : vector<360xf32>
    %151 = vector.multi_reduction <add>, %150, %cst_76 [0] : vector<48x360xf32> to vector<360xf32>
    %152 = vector.shape_cast %151 : vector<360xf32> to vector<1x360xf32>
    %153 = arith.mulf %150, %146 : vector<48x360xf32>
    %cst_77 = arith.constant dense<0.000000e+00> : vector<360xf32>
    %154 = vector.multi_reduction <add>, %153, %cst_77 [0] : vector<48x360xf32> to vector<360xf32>
    %155 = vector.shape_cast %154 : vector<360xf32> to vector<1x360xf32>
    %156 = vector.extract_strided_slice %152 {offsets = [0, 0], sizes = [1, 40], strides = [1, 1]} : vector<1x360xf32> to vector<1x40xf32>
    %157 = vector.extract_strided_slice %155 {offsets = [0, 0], sizes = [1, 40], strides = [1, 1]} : vector<1x360xf32> to vector<1x40xf32>
    %158 = vector.extract_strided_slice %152 {offsets = [0, 40], sizes = [1, 40], strides = [1, 1]} : vector<1x360xf32> to vector<1x40xf32>
    %159 = arith.addf %156, %158 : vector<1x40xf32>
    %160 = vector.extract_strided_slice %155 {offsets = [0, 40], sizes = [1, 40], strides = [1, 1]} : vector<1x360xf32> to vector<1x40xf32>
    %161 = arith.addf %157, %160 : vector<1x40xf32>
    %162 = vector.extract_strided_slice %152 {offsets = [0, 80], sizes = [1, 40], strides = [1, 1]} : vector<1x360xf32> to vector<1x40xf32>
    %163 = arith.addf %159, %162 : vector<1x40xf32>
    %164 = vector.extract_strided_slice %155 {offsets = [0, 80], sizes = [1, 40], strides = [1, 1]} : vector<1x360xf32> to vector<1x40xf32>
    %165 = arith.addf %161, %164 : vector<1x40xf32>
    %166 = vector.extract_strided_slice %152 {offsets = [0, 120], sizes = [1, 40], strides = [1, 1]} : vector<1x360xf32> to vector<1x40xf32>
    %167 = arith.addf %163, %166 : vector<1x40xf32>
    %168 = vector.extract_strided_slice %155 {offsets = [0, 120], sizes = [1, 40], strides = [1, 1]} : vector<1x360xf32> to vector<1x40xf32>
    %169 = arith.addf %165, %168 : vector<1x40xf32>
    %170 = vector.extract_strided_slice %152 {offsets = [0, 160], sizes = [1, 40], strides = [1, 1]} : vector<1x360xf32> to vector<1x40xf32>
    %171 = arith.addf %167, %170 : vector<1x40xf32>
    %172 = vector.extract_strided_slice %155 {offsets = [0, 160], sizes = [1, 40], strides = [1, 1]} : vector<1x360xf32> to vector<1x40xf32>
    %173 = arith.addf %169, %172 : vector<1x40xf32>
    %174 = vector.extract_strided_slice %152 {offsets = [0, 200], sizes = [1, 40], strides = [1, 1]} : vector<1x360xf32> to vector<1x40xf32>
    %175 = arith.addf %171, %174 : vector<1x40xf32>
    %176 = vector.extract_strided_slice %155 {offsets = [0, 200], sizes = [1, 40], strides = [1, 1]} : vector<1x360xf32> to vector<1x40xf32>
    %177 = arith.addf %173, %176 : vector<1x40xf32>
    %178 = vector.extract_strided_slice %152 {offsets = [0, 240], sizes = [1, 40], strides = [1, 1]} : vector<1x360xf32> to vector<1x40xf32>
    %179 = arith.addf %175, %178 : vector<1x40xf32>
    %180 = vector.extract_strided_slice %155 {offsets = [0, 240], sizes = [1, 40], strides = [1, 1]} : vector<1x360xf32> to vector<1x40xf32>
    %181 = arith.addf %177, %180 : vector<1x40xf32>
    %182 = vector.extract_strided_slice %152 {offsets = [0, 280], sizes = [1, 40], strides = [1, 1]} : vector<1x360xf32> to vector<1x40xf32>
    %183 = arith.addf %179, %182 : vector<1x40xf32>
    %184 = vector.extract_strided_slice %155 {offsets = [0, 280], sizes = [1, 40], strides = [1, 1]} : vector<1x360xf32> to vector<1x40xf32>
    %185 = arith.addf %181, %184 : vector<1x40xf32>
    %186 = vector.extract_strided_slice %152 {offsets = [0, 320], sizes = [1, 40], strides = [1, 1]} : vector<1x360xf32> to vector<1x40xf32>
    %187 = arith.addf %183, %186 : vector<1x40xf32>
    %188 = vector.extract_strided_slice %155 {offsets = [0, 320], sizes = [1, 40], strides = [1, 1]} : vector<1x360xf32> to vector<1x40xf32>
    %189 = arith.addf %185, %188 : vector<1x40xf32>
    %cst_78 = arith.constant 0.00617283955 : f32
    %190 = vector.broadcast %cst_78 : f32 to vector<1x40xf32>
    %191 = arith.mulf %187, %190 : vector<1x40xf32>
    %cst_79 = arith.constant 0.00617283955 : f32
    %192 = vector.broadcast %cst_79 : f32 to vector<1x40xf32>
    %193 = arith.mulf %189, %192 : vector<1x40xf32>
    %194 = arith.mulf %191, %191 : vector<1x40xf32>
    %195 = arith.subf %193, %194 : vector<1x40xf32>
    %cst_80 = arith.constant 0.000000e+00 : f32
    %196 = vector.broadcast %cst_80 : f32 to vector<1x40xf32>
    %197 = arith.maximumf %195, %196 : vector<1x40xf32>
    %c1_81 = arith.constant 1 : index
    %c0_82 = arith.constant 0 : index
    %c0_83 = arith.constant 0 : index
    %198 = vector.load %arg5[%c1_81, %c0_82, %c0_83] : memref<8x1x70xf32, #tpu.memory_space<vmem>>, vector<1x1x70xf32>
    %199 = vector.shape_cast %198 : vector<1x1x70xf32> to vector<1x70xf32>
    %200 = vector.extract_strided_slice %199 {offsets = [0, 0], sizes = [1, 40], strides = [1, 1]} : vector<1x70xf32> to vector<1x40xf32>
    %cst_84 = arith.constant 9.99999974E-6 : f32
    %201 = vector.broadcast %cst_84 : f32 to vector<1x40xf32>
    %202 = arith.addf %197, %201 : vector<1x40xf32>
    %203 = math.rsqrt %202 : vector<1x40xf32>
    %204 = arith.mulf %200, %203 : vector<1x40xf32>
    %c1_85 = arith.constant 1 : index
    %c0_86 = arith.constant 0 : index
    %c0_87 = arith.constant 0 : index
    %205 = vector.load %arg6[%c1_85, %c0_86, %c0_87] : memref<8x1x70xf32, #tpu.memory_space<vmem>>, vector<1x1x70xf32>
    %206 = vector.shape_cast %205 : vector<1x1x70xf32> to vector<1x70xf32>
    %207 = vector.extract_strided_slice %206 {offsets = [0, 0], sizes = [1, 40], strides = [1, 1]} : vector<1x70xf32> to vector<1x40xf32>
    %208 = arith.mulf %191, %204 : vector<1x40xf32>
    %209 = arith.subf %207, %208 : vector<1x40xf32>
    %210 = tpu.concatenate %204, %204, %204, %204, %204, %204, %204, %204, %204 in 1 : vector<1x40xf32>, vector<1x40xf32>, vector<1x40xf32>, vector<1x40xf32>, vector<1x40xf32>, vector<1x40xf32>, vector<1x40xf32>, vector<1x40xf32>, vector<1x40xf32> -> vector<1x360xf32>
    %211 = tpu.concatenate %209, %209, %209, %209, %209, %209, %209, %209, %209 in 1 : vector<1x40xf32>, vector<1x40xf32>, vector<1x40xf32>, vector<1x40xf32>, vector<1x40xf32>, vector<1x40xf32>, vector<1x40xf32>, vector<1x40xf32>, vector<1x40xf32> -> vector<1x360xf32>
    %212 = vector.broadcast %210 : vector<1x360xf32> to vector<48x360xf32>
    %213 = arith.mulf %146, %212 : vector<48x360xf32>
    %214 = vector.broadcast %211 : vector<1x360xf32> to vector<48x360xf32>
    %215 = arith.addf %213, %214 : vector<48x360xf32>
    %216 = arith.truncf %215 : vector<48x360xf32> to vector<48x360xbf16>
    %c7 = arith.constant 7 : index
    %c0_88 = arith.constant 0 : index
    %c0_89 = arith.constant 0 : index
    %217 = vector.load %arg3[%c7, %c0_88, %c0_89] : memref<29x48x48xbf16, #tpu.memory_space<vmem>>, vector<1x48x48xbf16>
    %218 = vector.shape_cast %217 : vector<1x48x48xbf16> to vector<48x48xbf16>
    %cst_90 = arith.constant dense<0.000000e+00> : vector<48x360xf32>
    %219 = tpu.matmul %218, %216, %cst_90 {dimension_numbers = #tpu.dot_dimension_numbers<[1], [0], [0], [1], [0, 0, 1, 1], [], []>} : vector<48x48xbf16>, vector<48x360xbf16>, vector<48x360xf32> -> vector<48x360xf32>
    %220 = arith.truncf %219 : vector<48x360xf32> to vector<48x360xbf16>
    %c0_91 = arith.constant 0 : index
    %c0_92 = arith.constant 0 : index
    %c0_93 = arith.constant 0 : index
    %221 = vector.load %arg9[%c0_91, %c0_92, %c0_93] : memref<4x360x180xbf16, #tpu.memory_space<vmem>>, vector<1x360x180xbf16>
    %222 = vector.shape_cast %221 : vector<1x360x180xbf16> to vector<360x180xbf16>
    %cst_94 = arith.constant dense<0.000000e+00> : vector<48x180xf32>
    %223 = tpu.matmul %220, %222, %cst_94 {dimension_numbers = #tpu.dot_dimension_numbers<[1], [0], [0], [1], [0, 0, 1, 1], [], []>} : vector<48x360xbf16>, vector<360x180xbf16>, vector<48x180xf32> -> vector<48x180xf32>
    %c8 = arith.constant 8 : index
    %c0_95 = arith.constant 0 : index
    %c0_96 = arith.constant 0 : index
    %224 = vector.load %arg3[%c8, %c0_95, %c0_96] : memref<29x48x48xbf16, #tpu.memory_space<vmem>>, vector<1x48x48xbf16>
    %225 = vector.shape_cast %224 : vector<1x48x48xbf16> to vector<48x48xbf16>
    %cst_97 = arith.constant dense<0.000000e+00> : vector<48x360xf32>
    %226 = tpu.matmul %225, %216, %cst_97 {dimension_numbers = #tpu.dot_dimension_numbers<[1], [0], [0], [1], [0, 0, 1, 1], [], []>} : vector<48x48xbf16>, vector<48x360xbf16>, vector<48x360xf32> -> vector<48x360xf32>
    %227 = arith.truncf %226 : vector<48x360xf32> to vector<48x360xbf16>
    %c1_98 = arith.constant 1 : index
    %c0_99 = arith.constant 0 : index
    %c0_100 = arith.constant 0 : index
    %228 = vector.load %arg9[%c1_98, %c0_99, %c0_100] : memref<4x360x180xbf16, #tpu.memory_space<vmem>>, vector<1x360x180xbf16>
    %229 = vector.shape_cast %228 : vector<1x360x180xbf16> to vector<360x180xbf16>
    %cst_101 = arith.constant dense<0.000000e+00> : vector<48x180xf32>
    %230 = tpu.matmul %227, %229, %cst_101 {dimension_numbers = #tpu.dot_dimension_numbers<[1], [0], [0], [1], [0, 0, 1, 1], [], []>} : vector<48x360xbf16>, vector<360x180xbf16>, vector<48x180xf32> -> vector<48x180xf32>
    %231 = arith.addf %223, %230 : vector<48x180xf32>
    %c9 = arith.constant 9 : index
    %c0_102 = arith.constant 0 : index
    %c0_103 = arith.constant 0 : index
    %232 = vector.load %arg3[%c9, %c0_102, %c0_103] : memref<29x48x48xbf16, #tpu.memory_space<vmem>>, vector<1x48x48xbf16>
    %233 = vector.shape_cast %232 : vector<1x48x48xbf16> to vector<48x48xbf16>
    %cst_104 = arith.constant dense<0.000000e+00> : vector<48x360xf32>
    %234 = tpu.matmul %233, %216, %cst_104 {dimension_numbers = #tpu.dot_dimension_numbers<[1], [0], [0], [1], [0, 0, 1, 1], [], []>} : vector<48x48xbf16>, vector<48x360xbf16>, vector<48x360xf32> -> vector<48x360xf32>
    %235 = arith.truncf %234 : vector<48x360xf32> to vector<48x360xbf16>
    %c2_105 = arith.constant 2 : index
    %c0_106 = arith.constant 0 : index
    %c0_107 = arith.constant 0 : index
    %236 = vector.load %arg9[%c2_105, %c0_106, %c0_107] : memref<4x360x180xbf16, #tpu.memory_space<vmem>>, vector<1x360x180xbf16>
    %237 = vector.shape_cast %236 : vector<1x360x180xbf16> to vector<360x180xbf16>
    %cst_108 = arith.constant dense<0.000000e+00> : vector<48x180xf32>
    %238 = tpu.matmul %235, %237, %cst_108 {dimension_numbers = #tpu.dot_dimension_numbers<[1], [0], [0], [1], [0, 0, 1, 1], [], []>} : vector<48x360xbf16>, vector<360x180xbf16>, vector<48x180xf32> -> vector<48x180xf32>
    %239 = arith.addf %231, %238 : vector<48x180xf32>
    %c10 = arith.constant 10 : index
    %c0_109 = arith.constant 0 : index
    %c0_110 = arith.constant 0 : index
    %240 = vector.load %arg3[%c10, %c0_109, %c0_110] : memref<29x48x48xbf16, #tpu.memory_space<vmem>>, vector<1x48x48xbf16>
    %241 = vector.shape_cast %240 : vector<1x48x48xbf16> to vector<48x48xbf16>
    %cst_111 = arith.constant dense<0.000000e+00> : vector<48x360xf32>
    %242 = tpu.matmul %241, %216, %cst_111 {dimension_numbers = #tpu.dot_dimension_numbers<[1], [0], [0], [1], [0, 0, 1, 1], [], []>} : vector<48x48xbf16>, vector<48x360xbf16>, vector<48x360xf32> -> vector<48x360xf32>
    %243 = arith.truncf %242 : vector<48x360xf32> to vector<48x360xbf16>
    %c3_112 = arith.constant 3 : index
    %c0_113 = arith.constant 0 : index
    %c0_114 = arith.constant 0 : index
    %244 = vector.load %arg9[%c3_112, %c0_113, %c0_114] : memref<4x360x180xbf16, #tpu.memory_space<vmem>>, vector<1x360x180xbf16>
    %245 = vector.shape_cast %244 : vector<1x360x180xbf16> to vector<360x180xbf16>
    %cst_115 = arith.constant dense<0.000000e+00> : vector<48x180xf32>
    %246 = tpu.matmul %243, %245, %cst_115 {dimension_numbers = #tpu.dot_dimension_numbers<[1], [0], [0], [1], [0, 0, 1, 1], [], []>} : vector<48x360xbf16>, vector<360x180xbf16>, vector<48x180xf32> -> vector<48x180xf32>
    %247 = arith.addf %239, %246 : vector<48x180xf32>
    %c2_116 = arith.constant 2 : index
    %c0_117 = arith.constant 0 : index
    %c0_118 = arith.constant 0 : index
    %248 = vector.load %arg4[%c2_116, %c0_117, %c0_118] : memref<8x1x360xf32, #tpu.memory_space<vmem>>, vector<1x1x360xf32>
    %249 = vector.shape_cast %248 : vector<1x1x360xf32> to vector<1x360xf32>
    %250 = vector.extract_strided_slice %249 {offsets = [0, 0], sizes = [1, 180], strides = [1, 1]} : vector<1x360xf32> to vector<1x180xf32>
    %251 = vector.broadcast %250 : vector<1x180xf32> to vector<48x180xf32>
    %252 = arith.addf %247, %251 : vector<48x180xf32>
    %cst_119 = arith.constant 0.000000e+00 : f32
    %253 = vector.broadcast %cst_119 : f32 to vector<48x180xf32>
    %254 = arith.maximumf %252, %253 : vector<48x180xf32>
    %c2_120 = arith.constant 2 : index
    %c0_121 = arith.constant 0 : index
    %c0_122 = arith.constant 0 : index
    %255 = vector.load %arg2[%c2_120, %c0_121, %c0_122] : memref<8x48x1xf32, #tpu.memory_space<vmem>>, vector<1x48x1xf32>
    %256 = vector.shape_cast %255 : vector<1x48x1xf32> to vector<48x1xf32>
    %257 = vector.broadcast %256 : vector<48x1xf32> to vector<48x180xf32>
    %258 = arith.mulf %254, %257 : vector<48x180xf32>
    %cst_123 = arith.constant dense<0.000000e+00> : vector<180xf32>
    %259 = vector.multi_reduction <add>, %258, %cst_123 [0] : vector<48x180xf32> to vector<180xf32>
    %260 = vector.shape_cast %259 : vector<180xf32> to vector<1x180xf32>
    %261 = arith.mulf %258, %254 : vector<48x180xf32>
    %cst_124 = arith.constant dense<0.000000e+00> : vector<180xf32>
    %262 = vector.multi_reduction <add>, %261, %cst_124 [0] : vector<48x180xf32> to vector<180xf32>
    %263 = vector.shape_cast %262 : vector<180xf32> to vector<1x180xf32>
    %264 = vector.extract_strided_slice %260 {offsets = [0, 0], sizes = [1, 60], strides = [1, 1]} : vector<1x180xf32> to vector<1x60xf32>
    %265 = vector.extract_strided_slice %263 {offsets = [0, 0], sizes = [1, 60], strides = [1, 1]} : vector<1x180xf32> to vector<1x60xf32>
    %266 = vector.extract_strided_slice %260 {offsets = [0, 60], sizes = [1, 60], strides = [1, 1]} : vector<1x180xf32> to vector<1x60xf32>
    %267 = arith.addf %264, %266 : vector<1x60xf32>
    %268 = vector.extract_strided_slice %263 {offsets = [0, 60], sizes = [1, 60], strides = [1, 1]} : vector<1x180xf32> to vector<1x60xf32>
    %269 = arith.addf %265, %268 : vector<1x60xf32>
    %270 = vector.extract_strided_slice %260 {offsets = [0, 120], sizes = [1, 60], strides = [1, 1]} : vector<1x180xf32> to vector<1x60xf32>
    %271 = arith.addf %267, %270 : vector<1x60xf32>
    %272 = vector.extract_strided_slice %263 {offsets = [0, 120], sizes = [1, 60], strides = [1, 1]} : vector<1x180xf32> to vector<1x60xf32>
    %273 = arith.addf %269, %272 : vector<1x60xf32>
    %cst_125 = arith.constant 0.055555556 : f32
    %274 = vector.broadcast %cst_125 : f32 to vector<1x60xf32>
    %275 = arith.mulf %271, %274 : vector<1x60xf32>
    %cst_126 = arith.constant 0.055555556 : f32
    %276 = vector.broadcast %cst_126 : f32 to vector<1x60xf32>
    %277 = arith.mulf %273, %276 : vector<1x60xf32>
    %278 = arith.mulf %275, %275 : vector<1x60xf32>
    %279 = arith.subf %277, %278 : vector<1x60xf32>
    %cst_127 = arith.constant 0.000000e+00 : f32
    %280 = vector.broadcast %cst_127 : f32 to vector<1x60xf32>
    %281 = arith.maximumf %279, %280 : vector<1x60xf32>
    %c2_128 = arith.constant 2 : index
    %c0_129 = arith.constant 0 : index
    %c0_130 = arith.constant 0 : index
    %282 = vector.load %arg5[%c2_128, %c0_129, %c0_130] : memref<8x1x70xf32, #tpu.memory_space<vmem>>, vector<1x1x70xf32>
    %283 = vector.shape_cast %282 : vector<1x1x70xf32> to vector<1x70xf32>
    %284 = vector.extract_strided_slice %283 {offsets = [0, 0], sizes = [1, 60], strides = [1, 1]} : vector<1x70xf32> to vector<1x60xf32>
    %cst_131 = arith.constant 9.99999974E-6 : f32
    %285 = vector.broadcast %cst_131 : f32 to vector<1x60xf32>
    %286 = arith.addf %281, %285 : vector<1x60xf32>
    %287 = math.rsqrt %286 : vector<1x60xf32>
    %288 = arith.mulf %284, %287 : vector<1x60xf32>
    %c2_132 = arith.constant 2 : index
    %c0_133 = arith.constant 0 : index
    %c0_134 = arith.constant 0 : index
    %289 = vector.load %arg6[%c2_132, %c0_133, %c0_134] : memref<8x1x70xf32, #tpu.memory_space<vmem>>, vector<1x1x70xf32>
    %290 = vector.shape_cast %289 : vector<1x1x70xf32> to vector<1x70xf32>
    %291 = vector.extract_strided_slice %290 {offsets = [0, 0], sizes = [1, 60], strides = [1, 1]} : vector<1x70xf32> to vector<1x60xf32>
    %292 = arith.mulf %275, %288 : vector<1x60xf32>
    %293 = arith.subf %291, %292 : vector<1x60xf32>
    %294 = tpu.concatenate %288, %288, %288 in 1 : vector<1x60xf32>, vector<1x60xf32>, vector<1x60xf32> -> vector<1x180xf32>
    %295 = tpu.concatenate %293, %293, %293 in 1 : vector<1x60xf32>, vector<1x60xf32>, vector<1x60xf32> -> vector<1x180xf32>
    %296 = vector.broadcast %294 : vector<1x180xf32> to vector<48x180xf32>
    %297 = arith.mulf %254, %296 : vector<48x180xf32>
    %298 = vector.broadcast %295 : vector<1x180xf32> to vector<48x180xf32>
    %299 = arith.addf %297, %298 : vector<48x180xf32>
    %300 = arith.truncf %299 : vector<48x180xf32> to vector<48x180xbf16>
    %c11 = arith.constant 11 : index
    %c0_135 = arith.constant 0 : index
    %c0_136 = arith.constant 0 : index
    %301 = vector.load %arg3[%c11, %c0_135, %c0_136] : memref<29x48x48xbf16, #tpu.memory_space<vmem>>, vector<1x48x48xbf16>
    %302 = vector.shape_cast %301 : vector<1x48x48xbf16> to vector<48x48xbf16>
    %cst_137 = arith.constant dense<0.000000e+00> : vector<48x180xf32>
    %303 = tpu.matmul %302, %300, %cst_137 {dimension_numbers = #tpu.dot_dimension_numbers<[1], [0], [0], [1], [0, 0, 1, 1], [], []>} : vector<48x48xbf16>, vector<48x180xbf16>, vector<48x180xf32> -> vector<48x180xf32>
    %304 = arith.truncf %303 : vector<48x180xf32> to vector<48x180xbf16>
    %c0_138 = arith.constant 0 : index
    %c0_139 = arith.constant 0 : index
    %c0_140 = arith.constant 0 : index
    %305 = vector.load %arg10[%c0_138, %c0_139, %c0_140] : memref<3x180x70xbf16, #tpu.memory_space<vmem>>, vector<1x180x70xbf16>
    %306 = vector.shape_cast %305 : vector<1x180x70xbf16> to vector<180x70xbf16>
    %cst_141 = arith.constant dense<0.000000e+00> : vector<48x70xf32>
    %307 = tpu.matmul %304, %306, %cst_141 {dimension_numbers = #tpu.dot_dimension_numbers<[1], [0], [0], [1], [0, 0, 1, 1], [], []>} : vector<48x180xbf16>, vector<180x70xbf16>, vector<48x70xf32> -> vector<48x70xf32>
    %c12 = arith.constant 12 : index
    %c0_142 = arith.constant 0 : index
    %c0_143 = arith.constant 0 : index
    %308 = vector.load %arg3[%c12, %c0_142, %c0_143] : memref<29x48x48xbf16, #tpu.memory_space<vmem>>, vector<1x48x48xbf16>
    %309 = vector.shape_cast %308 : vector<1x48x48xbf16> to vector<48x48xbf16>
    %cst_144 = arith.constant dense<0.000000e+00> : vector<48x180xf32>
    %310 = tpu.matmul %309, %300, %cst_144 {dimension_numbers = #tpu.dot_dimension_numbers<[1], [0], [0], [1], [0, 0, 1, 1], [], []>} : vector<48x48xbf16>, vector<48x180xbf16>, vector<48x180xf32> -> vector<48x180xf32>
    %311 = arith.truncf %310 : vector<48x180xf32> to vector<48x180xbf16>
    %c1_145 = arith.constant 1 : index
    %c0_146 = arith.constant 0 : index
    %c0_147 = arith.constant 0 : index
    %312 = vector.load %arg10[%c1_145, %c0_146, %c0_147] : memref<3x180x70xbf16, #tpu.memory_space<vmem>>, vector<1x180x70xbf16>
    %313 = vector.shape_cast %312 : vector<1x180x70xbf16> to vector<180x70xbf16>
    %cst_148 = arith.constant dense<0.000000e+00> : vector<48x70xf32>
    %314 = tpu.matmul %311, %313, %cst_148 {dimension_numbers = #tpu.dot_dimension_numbers<[1], [0], [0], [1], [0, 0, 1, 1], [], []>} : vector<48x180xbf16>, vector<180x70xbf16>, vector<48x70xf32> -> vector<48x70xf32>
    %315 = arith.addf %307, %314 : vector<48x70xf32>
    %c13 = arith.constant 13 : index
    %c0_149 = arith.constant 0 : index
    %c0_150 = arith.constant 0 : index
    %316 = vector.load %arg3[%c13, %c0_149, %c0_150] : memref<29x48x48xbf16, #tpu.memory_space<vmem>>, vector<1x48x48xbf16>
    %317 = vector.shape_cast %316 : vector<1x48x48xbf16> to vector<48x48xbf16>
    %cst_151 = arith.constant dense<0.000000e+00> : vector<48x180xf32>
    %318 = tpu.matmul %317, %300, %cst_151 {dimension_numbers = #tpu.dot_dimension_numbers<[1], [0], [0], [1], [0, 0, 1, 1], [], []>} : vector<48x48xbf16>, vector<48x180xbf16>, vector<48x180xf32> -> vector<48x180xf32>
    %319 = arith.truncf %318 : vector<48x180xf32> to vector<48x180xbf16>
    %c2_152 = arith.constant 2 : index
    %c0_153 = arith.constant 0 : index
    %c0_154 = arith.constant 0 : index
    %320 = vector.load %arg10[%c2_152, %c0_153, %c0_154] : memref<3x180x70xbf16, #tpu.memory_space<vmem>>, vector<1x180x70xbf16>
    %321 = vector.shape_cast %320 : vector<1x180x70xbf16> to vector<180x70xbf16>
    %cst_155 = arith.constant dense<0.000000e+00> : vector<48x70xf32>
    %322 = tpu.matmul %319, %321, %cst_155 {dimension_numbers = #tpu.dot_dimension_numbers<[1], [0], [0], [1], [0, 0, 1, 1], [], []>} : vector<48x180xbf16>, vector<180x70xbf16>, vector<48x70xf32> -> vector<48x70xf32>
    %323 = arith.addf %315, %322 : vector<48x70xf32>
    %c3_156 = arith.constant 3 : index
    %c0_157 = arith.constant 0 : index
    %c0_158 = arith.constant 0 : index
    %324 = vector.load %arg4[%c3_156, %c0_157, %c0_158] : memref<8x1x360xf32, #tpu.memory_space<vmem>>, vector<1x1x360xf32>
    %325 = vector.shape_cast %324 : vector<1x1x360xf32> to vector<1x360xf32>
    %326 = vector.extract_strided_slice %325 {offsets = [0, 0], sizes = [1, 70], strides = [1, 1]} : vector<1x360xf32> to vector<1x70xf32>
    %327 = vector.broadcast %326 : vector<1x70xf32> to vector<48x70xf32>
    %328 = arith.addf %323, %327 : vector<48x70xf32>
    %cst_159 = arith.constant 0.000000e+00 : f32
    %329 = vector.broadcast %cst_159 : f32 to vector<48x70xf32>
    %330 = arith.maximumf %328, %329 : vector<48x70xf32>
    %c3_160 = arith.constant 3 : index
    %c0_161 = arith.constant 0 : index
    %c0_162 = arith.constant 0 : index
    %331 = vector.load %arg2[%c3_160, %c0_161, %c0_162] : memref<8x48x1xf32, #tpu.memory_space<vmem>>, vector<1x48x1xf32>
    %332 = vector.shape_cast %331 : vector<1x48x1xf32> to vector<48x1xf32>
    %333 = vector.broadcast %332 : vector<48x1xf32> to vector<48x70xf32>
    %334 = arith.mulf %330, %333 : vector<48x70xf32>
    %cst_163 = arith.constant dense<0.000000e+00> : vector<70xf32>
    %335 = vector.multi_reduction <add>, %334, %cst_163 [0] : vector<48x70xf32> to vector<70xf32>
    %336 = vector.shape_cast %335 : vector<70xf32> to vector<1x70xf32>
    %337 = arith.mulf %334, %330 : vector<48x70xf32>
    %cst_164 = arith.constant dense<0.000000e+00> : vector<70xf32>
    %338 = vector.multi_reduction <add>, %337, %cst_164 [0] : vector<48x70xf32> to vector<70xf32>
    %339 = vector.shape_cast %338 : vector<70xf32> to vector<1x70xf32>
    %cst_165 = arith.constant 5.000000e-01 : f32
    %340 = vector.broadcast %cst_165 : f32 to vector<1x70xf32>
    %341 = arith.mulf %336, %340 : vector<1x70xf32>
    %cst_166 = arith.constant 5.000000e-01 : f32
    %342 = vector.broadcast %cst_166 : f32 to vector<1x70xf32>
    %343 = arith.mulf %339, %342 : vector<1x70xf32>
    %344 = arith.mulf %341, %341 : vector<1x70xf32>
    %345 = arith.subf %343, %344 : vector<1x70xf32>
    %cst_167 = arith.constant 0.000000e+00 : f32
    %346 = vector.broadcast %cst_167 : f32 to vector<1x70xf32>
    %347 = arith.maximumf %345, %346 : vector<1x70xf32>
    %c3_168 = arith.constant 3 : index
    %c0_169 = arith.constant 0 : index
    %c0_170 = arith.constant 0 : index
    %348 = vector.load %arg5[%c3_168, %c0_169, %c0_170] : memref<8x1x70xf32, #tpu.memory_space<vmem>>, vector<1x1x70xf32>
    %349 = vector.shape_cast %348 : vector<1x1x70xf32> to vector<1x70xf32>
    %cst_171 = arith.constant 9.99999974E-6 : f32
    %350 = vector.broadcast %cst_171 : f32 to vector<1x70xf32>
    %351 = arith.addf %347, %350 : vector<1x70xf32>
    %352 = math.rsqrt %351 : vector<1x70xf32>
    %353 = arith.mulf %349, %352 : vector<1x70xf32>
    %c3_172 = arith.constant 3 : index
    %c0_173 = arith.constant 0 : index
    %c0_174 = arith.constant 0 : index
    %354 = vector.load %arg6[%c3_172, %c0_173, %c0_174] : memref<8x1x70xf32, #tpu.memory_space<vmem>>, vector<1x1x70xf32>
    %355 = vector.shape_cast %354 : vector<1x1x70xf32> to vector<1x70xf32>
    %356 = arith.mulf %341, %353 : vector<1x70xf32>
    %357 = arith.subf %355, %356 : vector<1x70xf32>
    %358 = vector.broadcast %353 : vector<1x70xf32> to vector<48x70xf32>
    %359 = arith.mulf %330, %358 : vector<48x70xf32>
    %360 = vector.broadcast %357 : vector<1x70xf32> to vector<48x70xf32>
    %361 = arith.addf %359, %360 : vector<48x70xf32>
    %362 = arith.truncf %361 : vector<48x70xf32> to vector<48x70xbf16>
    %c14 = arith.constant 14 : index
    %c0_175 = arith.constant 0 : index
    %c0_176 = arith.constant 0 : index
    %363 = vector.load %arg3[%c14, %c0_175, %c0_176] : memref<29x48x48xbf16, #tpu.memory_space<vmem>>, vector<1x48x48xbf16>
    %364 = vector.shape_cast %363 : vector<1x48x48xbf16> to vector<48x48xbf16>
    %cst_177 = arith.constant dense<0.000000e+00> : vector<48x70xf32>
    %365 = tpu.matmul %364, %362, %cst_177 {dimension_numbers = #tpu.dot_dimension_numbers<[1], [0], [0], [1], [0, 0, 1, 1], [], []>} : vector<48x48xbf16>, vector<48x70xbf16>, vector<48x70xf32> -> vector<48x70xf32>
    %366 = arith.truncf %365 : vector<48x70xf32> to vector<48x70xbf16>
    %c0_178 = arith.constant 0 : index
    %c0_179 = arith.constant 0 : index
    %c0_180 = arith.constant 0 : index
    %367 = vector.load %arg11[%c0_178, %c0_179, %c0_180] : memref<3x70x180xbf16, #tpu.memory_space<vmem>>, vector<1x70x180xbf16>
    %368 = vector.shape_cast %367 : vector<1x70x180xbf16> to vector<70x180xbf16>
    %cst_181 = arith.constant dense<0.000000e+00> : vector<48x180xf32>
    %369 = tpu.matmul %366, %368, %cst_181 {dimension_numbers = #tpu.dot_dimension_numbers<[1], [0], [0], [1], [0, 0, 1, 1], [], []>} : vector<48x70xbf16>, vector<70x180xbf16>, vector<48x180xf32> -> vector<48x180xf32>
    %c15 = arith.constant 15 : index
    %c0_182 = arith.constant 0 : index
    %c0_183 = arith.constant 0 : index
    %370 = vector.load %arg3[%c15, %c0_182, %c0_183] : memref<29x48x48xbf16, #tpu.memory_space<vmem>>, vector<1x48x48xbf16>
    %371 = vector.shape_cast %370 : vector<1x48x48xbf16> to vector<48x48xbf16>
    %cst_184 = arith.constant dense<0.000000e+00> : vector<48x70xf32>
    %372 = tpu.matmul %371, %362, %cst_184 {dimension_numbers = #tpu.dot_dimension_numbers<[1], [0], [0], [1], [0, 0, 1, 1], [], []>} : vector<48x48xbf16>, vector<48x70xbf16>, vector<48x70xf32> -> vector<48x70xf32>
    %373 = arith.truncf %372 : vector<48x70xf32> to vector<48x70xbf16>
    %c1_185 = arith.constant 1 : index
    %c0_186 = arith.constant 0 : index
    %c0_187 = arith.constant 0 : index
    %374 = vector.load %arg11[%c1_185, %c0_186, %c0_187] : memref<3x70x180xbf16, #tpu.memory_space<vmem>>, vector<1x70x180xbf16>
    %375 = vector.shape_cast %374 : vector<1x70x180xbf16> to vector<70x180xbf16>
    %cst_188 = arith.constant dense<0.000000e+00> : vector<48x180xf32>
    %376 = tpu.matmul %373, %375, %cst_188 {dimension_numbers = #tpu.dot_dimension_numbers<[1], [0], [0], [1], [0, 0, 1, 1], [], []>} : vector<48x70xbf16>, vector<70x180xbf16>, vector<48x180xf32> -> vector<48x180xf32>
    %377 = arith.addf %369, %376 : vector<48x180xf32>
    %c16 = arith.constant 16 : index
    %c0_189 = arith.constant 0 : index
    %c0_190 = arith.constant 0 : index
    %378 = vector.load %arg3[%c16, %c0_189, %c0_190] : memref<29x48x48xbf16, #tpu.memory_space<vmem>>, vector<1x48x48xbf16>
    %379 = vector.shape_cast %378 : vector<1x48x48xbf16> to vector<48x48xbf16>
    %cst_191 = arith.constant dense<0.000000e+00> : vector<48x70xf32>
    %380 = tpu.matmul %379, %362, %cst_191 {dimension_numbers = #tpu.dot_dimension_numbers<[1], [0], [0], [1], [0, 0, 1, 1], [], []>} : vector<48x48xbf16>, vector<48x70xbf16>, vector<48x70xf32> -> vector<48x70xf32>
    %381 = arith.truncf %380 : vector<48x70xf32> to vector<48x70xbf16>
    %c2_192 = arith.constant 2 : index
    %c0_193 = arith.constant 0 : index
    %c0_194 = arith.constant 0 : index
    %382 = vector.load %arg11[%c2_192, %c0_193, %c0_194] : memref<3x70x180xbf16, #tpu.memory_space<vmem>>, vector<1x70x180xbf16>
    %383 = vector.shape_cast %382 : vector<1x70x180xbf16> to vector<70x180xbf16>
    %cst_195 = arith.constant dense<0.000000e+00> : vector<48x180xf32>
    %384 = tpu.matmul %381, %383, %cst_195 {dimension_numbers = #tpu.dot_dimension_numbers<[1], [0], [0], [1], [0, 0, 1, 1], [], []>} : vector<48x70xbf16>, vector<70x180xbf16>, vector<48x180xf32> -> vector<48x180xf32>
    %385 = arith.addf %377, %384 : vector<48x180xf32>
    %c4_196 = arith.constant 4 : index
    %c0_197 = arith.constant 0 : index
    %c0_198 = arith.constant 0 : index
    %386 = vector.load %arg4[%c4_196, %c0_197, %c0_198] : memref<8x1x360xf32, #tpu.memory_space<vmem>>, vector<1x1x360xf32>
    %387 = vector.shape_cast %386 : vector<1x1x360xf32> to vector<1x360xf32>
    %388 = vector.extract_strided_slice %387 {offsets = [0, 0], sizes = [1, 180], strides = [1, 1]} : vector<1x360xf32> to vector<1x180xf32>
    %389 = vector.broadcast %388 : vector<1x180xf32> to vector<48x180xf32>
    %390 = arith.addf %385, %389 : vector<48x180xf32>
    %cst_199 = arith.constant 0.000000e+00 : f32
    %391 = vector.broadcast %cst_199 : f32 to vector<48x180xf32>
    %392 = arith.maximumf %390, %391 : vector<48x180xf32>
    %c4_200 = arith.constant 4 : index
    %c0_201 = arith.constant 0 : index
    %c0_202 = arith.constant 0 : index
    %393 = vector.load %arg2[%c4_200, %c0_201, %c0_202] : memref<8x48x1xf32, #tpu.memory_space<vmem>>, vector<1x48x1xf32>
    %394 = vector.shape_cast %393 : vector<1x48x1xf32> to vector<48x1xf32>
    %395 = vector.broadcast %394 : vector<48x1xf32> to vector<48x180xf32>
    %396 = arith.mulf %392, %395 : vector<48x180xf32>
    %cst_203 = arith.constant dense<0.000000e+00> : vector<180xf32>
    %397 = vector.multi_reduction <add>, %396, %cst_203 [0] : vector<48x180xf32> to vector<180xf32>
    %398 = vector.shape_cast %397 : vector<180xf32> to vector<1x180xf32>
    %399 = arith.mulf %396, %392 : vector<48x180xf32>
    %cst_204 = arith.constant dense<0.000000e+00> : vector<180xf32>
    %400 = vector.multi_reduction <add>, %399, %cst_204 [0] : vector<48x180xf32> to vector<180xf32>
    %401 = vector.shape_cast %400 : vector<180xf32> to vector<1x180xf32>
    %402 = vector.extract_strided_slice %398 {offsets = [0, 0], sizes = [1, 60], strides = [1, 1]} : vector<1x180xf32> to vector<1x60xf32>
    %403 = vector.extract_strided_slice %401 {offsets = [0, 0], sizes = [1, 60], strides = [1, 1]} : vector<1x180xf32> to vector<1x60xf32>
    %404 = vector.extract_strided_slice %398 {offsets = [0, 60], sizes = [1, 60], strides = [1, 1]} : vector<1x180xf32> to vector<1x60xf32>
    %405 = arith.addf %402, %404 : vector<1x60xf32>
    %406 = vector.extract_strided_slice %401 {offsets = [0, 60], sizes = [1, 60], strides = [1, 1]} : vector<1x180xf32> to vector<1x60xf32>
    %407 = arith.addf %403, %406 : vector<1x60xf32>
    %408 = vector.extract_strided_slice %398 {offsets = [0, 120], sizes = [1, 60], strides = [1, 1]} : vector<1x180xf32> to vector<1x60xf32>
    %409 = arith.addf %405, %408 : vector<1x60xf32>
    %410 = vector.extract_strided_slice %401 {offsets = [0, 120], sizes = [1, 60], strides = [1, 1]} : vector<1x180xf32> to vector<1x60xf32>
    %411 = arith.addf %407, %410 : vector<1x60xf32>
    %cst_205 = arith.constant 0.055555556 : f32
    %412 = vector.broadcast %cst_205 : f32 to vector<1x60xf32>
    %413 = arith.mulf %409, %412 : vector<1x60xf32>
    %cst_206 = arith.constant 0.055555556 : f32
    %414 = vector.broadcast %cst_206 : f32 to vector<1x60xf32>
    %415 = arith.mulf %411, %414 : vector<1x60xf32>
    %416 = arith.mulf %413, %413 : vector<1x60xf32>
    %417 = arith.subf %415, %416 : vector<1x60xf32>
    %cst_207 = arith.constant 0.000000e+00 : f32
    %418 = vector.broadcast %cst_207 : f32 to vector<1x60xf32>
    %419 = arith.maximumf %417, %418 : vector<1x60xf32>
    %c4_208 = arith.constant 4 : index
    %c0_209 = arith.constant 0 : index
    %c0_210 = arith.constant 0 : index
    %420 = vector.load %arg5[%c4_208, %c0_209, %c0_210] : memref<8x1x70xf32, #tpu.memory_space<vmem>>, vector<1x1x70xf32>
    %421 = vector.shape_cast %420 : vector<1x1x70xf32> to vector<1x70xf32>
    %422 = vector.extract_strided_slice %421 {offsets = [0, 0], sizes = [1, 60], strides = [1, 1]} : vector<1x70xf32> to vector<1x60xf32>
    %cst_211 = arith.constant 9.99999974E-6 : f32
    %423 = vector.broadcast %cst_211 : f32 to vector<1x60xf32>
    %424 = arith.addf %419, %423 : vector<1x60xf32>
    %425 = math.rsqrt %424 : vector<1x60xf32>
    %426 = arith.mulf %422, %425 : vector<1x60xf32>
    %c4_212 = arith.constant 4 : index
    %c0_213 = arith.constant 0 : index
    %c0_214 = arith.constant 0 : index
    %427 = vector.load %arg6[%c4_212, %c0_213, %c0_214] : memref<8x1x70xf32, #tpu.memory_space<vmem>>, vector<1x1x70xf32>
    %428 = vector.shape_cast %427 : vector<1x1x70xf32> to vector<1x70xf32>
    %429 = vector.extract_strided_slice %428 {offsets = [0, 0], sizes = [1, 60], strides = [1, 1]} : vector<1x70xf32> to vector<1x60xf32>
    %430 = arith.mulf %413, %426 : vector<1x60xf32>
    %431 = arith.subf %429, %430 : vector<1x60xf32>
    %432 = tpu.concatenate %426, %426, %426 in 1 : vector<1x60xf32>, vector<1x60xf32>, vector<1x60xf32> -> vector<1x180xf32>
    %433 = tpu.concatenate %431, %431, %431 in 1 : vector<1x60xf32>, vector<1x60xf32>, vector<1x60xf32> -> vector<1x180xf32>
    %434 = vector.broadcast %432 : vector<1x180xf32> to vector<48x180xf32>
    %435 = arith.mulf %392, %434 : vector<48x180xf32>
    %436 = vector.broadcast %433 : vector<1x180xf32> to vector<48x180xf32>
    %437 = arith.addf %435, %436 : vector<48x180xf32>
    %438 = arith.truncf %437 : vector<48x180xf32> to vector<48x180xbf16>
    %c17 = arith.constant 17 : index
    %c0_215 = arith.constant 0 : index
    %c0_216 = arith.constant 0 : index
    %439 = vector.load %arg3[%c17, %c0_215, %c0_216] : memref<29x48x48xbf16, #tpu.memory_space<vmem>>, vector<1x48x48xbf16>
    %440 = vector.shape_cast %439 : vector<1x48x48xbf16> to vector<48x48xbf16>
    %cst_217 = arith.constant dense<0.000000e+00> : vector<48x180xf32>
    %441 = tpu.matmul %440, %438, %cst_217 {dimension_numbers = #tpu.dot_dimension_numbers<[1], [0], [0], [1], [0, 0, 1, 1], [], []>} : vector<48x48xbf16>, vector<48x180xbf16>, vector<48x180xf32> -> vector<48x180xf32>
    %442 = arith.truncf %441 : vector<48x180xf32> to vector<48x180xbf16>
    %c0_218 = arith.constant 0 : index
    %c0_219 = arith.constant 0 : index
    %c0_220 = arith.constant 0 : index
    %443 = vector.load %arg12[%c0_218, %c0_219, %c0_220] : memref<5x180x360xbf16, #tpu.memory_space<vmem>>, vector<1x180x360xbf16>
    %444 = vector.shape_cast %443 : vector<1x180x360xbf16> to vector<180x360xbf16>
    %cst_221 = arith.constant dense<0.000000e+00> : vector<48x360xf32>
    %445 = tpu.matmul %442, %444, %cst_221 {dimension_numbers = #tpu.dot_dimension_numbers<[1], [0], [0], [1], [0, 0, 1, 1], [], []>} : vector<48x180xbf16>, vector<180x360xbf16>, vector<48x360xf32> -> vector<48x360xf32>
    %c18 = arith.constant 18 : index
    %c0_222 = arith.constant 0 : index
    %c0_223 = arith.constant 0 : index
    %446 = vector.load %arg3[%c18, %c0_222, %c0_223] : memref<29x48x48xbf16, #tpu.memory_space<vmem>>, vector<1x48x48xbf16>
    %447 = vector.shape_cast %446 : vector<1x48x48xbf16> to vector<48x48xbf16>
    %cst_224 = arith.constant dense<0.000000e+00> : vector<48x180xf32>
    %448 = tpu.matmul %447, %438, %cst_224 {dimension_numbers = #tpu.dot_dimension_numbers<[1], [0], [0], [1], [0, 0, 1, 1], [], []>} : vector<48x48xbf16>, vector<48x180xbf16>, vector<48x180xf32> -> vector<48x180xf32>
    %449 = arith.truncf %448 : vector<48x180xf32> to vector<48x180xbf16>
    %c1_225 = arith.constant 1 : index
    %c0_226 = arith.constant 0 : index
    %c0_227 = arith.constant 0 : index
    %450 = vector.load %arg12[%c1_225, %c0_226, %c0_227] : memref<5x180x360xbf16, #tpu.memory_space<vmem>>, vector<1x180x360xbf16>
    %451 = vector.shape_cast %450 : vector<1x180x360xbf16> to vector<180x360xbf16>
    %cst_228 = arith.constant dense<0.000000e+00> : vector<48x360xf32>
    %452 = tpu.matmul %449, %451, %cst_228 {dimension_numbers = #tpu.dot_dimension_numbers<[1], [0], [0], [1], [0, 0, 1, 1], [], []>} : vector<48x180xbf16>, vector<180x360xbf16>, vector<48x360xf32> -> vector<48x360xf32>
    %453 = arith.addf %445, %452 : vector<48x360xf32>
    %c19 = arith.constant 19 : index
    %c0_229 = arith.constant 0 : index
    %c0_230 = arith.constant 0 : index
    %454 = vector.load %arg3[%c19, %c0_229, %c0_230] : memref<29x48x48xbf16, #tpu.memory_space<vmem>>, vector<1x48x48xbf16>
    %455 = vector.shape_cast %454 : vector<1x48x48xbf16> to vector<48x48xbf16>
    %cst_231 = arith.constant dense<0.000000e+00> : vector<48x180xf32>
    %456 = tpu.matmul %455, %438, %cst_231 {dimension_numbers = #tpu.dot_dimension_numbers<[1], [0], [0], [1], [0, 0, 1, 1], [], []>} : vector<48x48xbf16>, vector<48x180xbf16>, vector<48x180xf32> -> vector<48x180xf32>
    %457 = arith.truncf %456 : vector<48x180xf32> to vector<48x180xbf16>
    %c2_232 = arith.constant 2 : index
    %c0_233 = arith.constant 0 : index
    %c0_234 = arith.constant 0 : index
    %458 = vector.load %arg12[%c2_232, %c0_233, %c0_234] : memref<5x180x360xbf16, #tpu.memory_space<vmem>>, vector<1x180x360xbf16>
    %459 = vector.shape_cast %458 : vector<1x180x360xbf16> to vector<180x360xbf16>
    %cst_235 = arith.constant dense<0.000000e+00> : vector<48x360xf32>
    %460 = tpu.matmul %457, %459, %cst_235 {dimension_numbers = #tpu.dot_dimension_numbers<[1], [0], [0], [1], [0, 0, 1, 1], [], []>} : vector<48x180xbf16>, vector<180x360xbf16>, vector<48x360xf32> -> vector<48x360xf32>
    %461 = arith.addf %453, %460 : vector<48x360xf32>
    %c20 = arith.constant 20 : index
    %c0_236 = arith.constant 0 : index
    %c0_237 = arith.constant 0 : index
    %462 = vector.load %arg3[%c20, %c0_236, %c0_237] : memref<29x48x48xbf16, #tpu.memory_space<vmem>>, vector<1x48x48xbf16>
    %463 = vector.shape_cast %462 : vector<1x48x48xbf16> to vector<48x48xbf16>
    %cst_238 = arith.constant dense<0.000000e+00> : vector<48x180xf32>
    %464 = tpu.matmul %463, %438, %cst_238 {dimension_numbers = #tpu.dot_dimension_numbers<[1], [0], [0], [1], [0, 0, 1, 1], [], []>} : vector<48x48xbf16>, vector<48x180xbf16>, vector<48x180xf32> -> vector<48x180xf32>
    %465 = arith.truncf %464 : vector<48x180xf32> to vector<48x180xbf16>
    %c3_239 = arith.constant 3 : index
    %c0_240 = arith.constant 0 : index
    %c0_241 = arith.constant 0 : index
    %466 = vector.load %arg12[%c3_239, %c0_240, %c0_241] : memref<5x180x360xbf16, #tpu.memory_space<vmem>>, vector<1x180x360xbf16>
    %467 = vector.shape_cast %466 : vector<1x180x360xbf16> to vector<180x360xbf16>
    %cst_242 = arith.constant dense<0.000000e+00> : vector<48x360xf32>
    %468 = tpu.matmul %465, %467, %cst_242 {dimension_numbers = #tpu.dot_dimension_numbers<[1], [0], [0], [1], [0, 0, 1, 1], [], []>} : vector<48x180xbf16>, vector<180x360xbf16>, vector<48x360xf32> -> vector<48x360xf32>
    %469 = arith.addf %461, %468 : vector<48x360xf32>
    %c21 = arith.constant 21 : index
    %c0_243 = arith.constant 0 : index
    %c0_244 = arith.constant 0 : index
    %470 = vector.load %arg3[%c21, %c0_243, %c0_244] : memref<29x48x48xbf16, #tpu.memory_space<vmem>>, vector<1x48x48xbf16>
    %471 = vector.shape_cast %470 : vector<1x48x48xbf16> to vector<48x48xbf16>
    %cst_245 = arith.constant dense<0.000000e+00> : vector<48x180xf32>
    %472 = tpu.matmul %471, %438, %cst_245 {dimension_numbers = #tpu.dot_dimension_numbers<[1], [0], [0], [1], [0, 0, 1, 1], [], []>} : vector<48x48xbf16>, vector<48x180xbf16>, vector<48x180xf32> -> vector<48x180xf32>
    %473 = arith.truncf %472 : vector<48x180xf32> to vector<48x180xbf16>
    %c4_246 = arith.constant 4 : index
    %c0_247 = arith.constant 0 : index
    %c0_248 = arith.constant 0 : index
    %474 = vector.load %arg12[%c4_246, %c0_247, %c0_248] : memref<5x180x360xbf16, #tpu.memory_space<vmem>>, vector<1x180x360xbf16>
    %475 = vector.shape_cast %474 : vector<1x180x360xbf16> to vector<180x360xbf16>
    %cst_249 = arith.constant dense<0.000000e+00> : vector<48x360xf32>
    %476 = tpu.matmul %473, %475, %cst_249 {dimension_numbers = #tpu.dot_dimension_numbers<[1], [0], [0], [1], [0, 0, 1, 1], [], []>} : vector<48x180xbf16>, vector<180x360xbf16>, vector<48x360xf32> -> vector<48x360xf32>
    %477 = arith.addf %469, %476 : vector<48x360xf32>
    %c5_250 = arith.constant 5 : index
    %c0_251 = arith.constant 0 : index
    %c0_252 = arith.constant 0 : index
    %478 = vector.load %arg4[%c5_250, %c0_251, %c0_252] : memref<8x1x360xf32, #tpu.memory_space<vmem>>, vector<1x1x360xf32>
    %479 = vector.shape_cast %478 : vector<1x1x360xf32> to vector<1x360xf32>
    %480 = vector.broadcast %479 : vector<1x360xf32> to vector<48x360xf32>
    %481 = arith.addf %477, %480 : vector<48x360xf32>
    %cst_253 = arith.constant 0.000000e+00 : f32
    %482 = vector.broadcast %cst_253 : f32 to vector<48x360xf32>
    %483 = arith.maximumf %481, %482 : vector<48x360xf32>
    %c5_254 = arith.constant 5 : index
    %c0_255 = arith.constant 0 : index
    %c0_256 = arith.constant 0 : index
    %484 = vector.load %arg2[%c5_254, %c0_255, %c0_256] : memref<8x48x1xf32, #tpu.memory_space<vmem>>, vector<1x48x1xf32>
    %485 = vector.shape_cast %484 : vector<1x48x1xf32> to vector<48x1xf32>
    %486 = vector.broadcast %485 : vector<48x1xf32> to vector<48x360xf32>
    %487 = arith.mulf %483, %486 : vector<48x360xf32>
    %cst_257 = arith.constant dense<0.000000e+00> : vector<360xf32>
    %488 = vector.multi_reduction <add>, %487, %cst_257 [0] : vector<48x360xf32> to vector<360xf32>
    %489 = vector.shape_cast %488 : vector<360xf32> to vector<1x360xf32>
    %490 = arith.mulf %487, %483 : vector<48x360xf32>
    %cst_258 = arith.constant dense<0.000000e+00> : vector<360xf32>
    %491 = vector.multi_reduction <add>, %490, %cst_258 [0] : vector<48x360xf32> to vector<360xf32>
    %492 = vector.shape_cast %491 : vector<360xf32> to vector<1x360xf32>
    %493 = vector.extract_strided_slice %489 {offsets = [0, 0], sizes = [1, 40], strides = [1, 1]} : vector<1x360xf32> to vector<1x40xf32>
    %494 = vector.extract_strided_slice %492 {offsets = [0, 0], sizes = [1, 40], strides = [1, 1]} : vector<1x360xf32> to vector<1x40xf32>
    %495 = vector.extract_strided_slice %489 {offsets = [0, 40], sizes = [1, 40], strides = [1, 1]} : vector<1x360xf32> to vector<1x40xf32>
    %496 = arith.addf %493, %495 : vector<1x40xf32>
    %497 = vector.extract_strided_slice %492 {offsets = [0, 40], sizes = [1, 40], strides = [1, 1]} : vector<1x360xf32> to vector<1x40xf32>
    %498 = arith.addf %494, %497 : vector<1x40xf32>
    %499 = vector.extract_strided_slice %489 {offsets = [0, 80], sizes = [1, 40], strides = [1, 1]} : vector<1x360xf32> to vector<1x40xf32>
    %500 = arith.addf %496, %499 : vector<1x40xf32>
    %501 = vector.extract_strided_slice %492 {offsets = [0, 80], sizes = [1, 40], strides = [1, 1]} : vector<1x360xf32> to vector<1x40xf32>
    %502 = arith.addf %498, %501 : vector<1x40xf32>
    %503 = vector.extract_strided_slice %489 {offsets = [0, 120], sizes = [1, 40], strides = [1, 1]} : vector<1x360xf32> to vector<1x40xf32>
    %504 = arith.addf %500, %503 : vector<1x40xf32>
    %505 = vector.extract_strided_slice %492 {offsets = [0, 120], sizes = [1, 40], strides = [1, 1]} : vector<1x360xf32> to vector<1x40xf32>
    %506 = arith.addf %502, %505 : vector<1x40xf32>
    %507 = vector.extract_strided_slice %489 {offsets = [0, 160], sizes = [1, 40], strides = [1, 1]} : vector<1x360xf32> to vector<1x40xf32>
    %508 = arith.addf %504, %507 : vector<1x40xf32>
    %509 = vector.extract_strided_slice %492 {offsets = [0, 160], sizes = [1, 40], strides = [1, 1]} : vector<1x360xf32> to vector<1x40xf32>
    %510 = arith.addf %506, %509 : vector<1x40xf32>
    %511 = vector.extract_strided_slice %489 {offsets = [0, 200], sizes = [1, 40], strides = [1, 1]} : vector<1x360xf32> to vector<1x40xf32>
    %512 = arith.addf %508, %511 : vector<1x40xf32>
    %513 = vector.extract_strided_slice %492 {offsets = [0, 200], sizes = [1, 40], strides = [1, 1]} : vector<1x360xf32> to vector<1x40xf32>
    %514 = arith.addf %510, %513 : vector<1x40xf32>
    %515 = vector.extract_strided_slice %489 {offsets = [0, 240], sizes = [1, 40], strides = [1, 1]} : vector<1x360xf32> to vector<1x40xf32>
    %516 = arith.addf %512, %515 : vector<1x40xf32>
    %517 = vector.extract_strided_slice %492 {offsets = [0, 240], sizes = [1, 40], strides = [1, 1]} : vector<1x360xf32> to vector<1x40xf32>
    %518 = arith.addf %514, %517 : vector<1x40xf32>
    %519 = vector.extract_strided_slice %489 {offsets = [0, 280], sizes = [1, 40], strides = [1, 1]} : vector<1x360xf32> to vector<1x40xf32>
    %520 = arith.addf %516, %519 : vector<1x40xf32>
    %521 = vector.extract_strided_slice %492 {offsets = [0, 280], sizes = [1, 40], strides = [1, 1]} : vector<1x360xf32> to vector<1x40xf32>
    %522 = arith.addf %518, %521 : vector<1x40xf32>
    %523 = vector.extract_strided_slice %489 {offsets = [0, 320], sizes = [1, 40], strides = [1, 1]} : vector<1x360xf32> to vector<1x40xf32>
    %524 = arith.addf %520, %523 : vector<1x40xf32>
    %525 = vector.extract_strided_slice %492 {offsets = [0, 320], sizes = [1, 40], strides = [1, 1]} : vector<1x360xf32> to vector<1x40xf32>
    %526 = arith.addf %522, %525 : vector<1x40xf32>
    %cst_259 = arith.constant 0.00617283955 : f32
    %527 = vector.broadcast %cst_259 : f32 to vector<1x40xf32>
    %528 = arith.mulf %524, %527 : vector<1x40xf32>
    %cst_260 = arith.constant 0.00617283955 : f32
    %529 = vector.broadcast %cst_260 : f32 to vector<1x40xf32>
    %530 = arith.mulf %526, %529 : vector<1x40xf32>
    %531 = arith.mulf %528, %528 : vector<1x40xf32>
    %532 = arith.subf %530, %531 : vector<1x40xf32>
    %cst_261 = arith.constant 0.000000e+00 : f32
    %533 = vector.broadcast %cst_261 : f32 to vector<1x40xf32>
    %534 = arith.maximumf %532, %533 : vector<1x40xf32>
    %c5_262 = arith.constant 5 : index
    %c0_263 = arith.constant 0 : index
    %c0_264 = arith.constant 0 : index
    %535 = vector.load %arg5[%c5_262, %c0_263, %c0_264] : memref<8x1x70xf32, #tpu.memory_space<vmem>>, vector<1x1x70xf32>
    %536 = vector.shape_cast %535 : vector<1x1x70xf32> to vector<1x70xf32>
    %537 = vector.extract_strided_slice %536 {offsets = [0, 0], sizes = [1, 40], strides = [1, 1]} : vector<1x70xf32> to vector<1x40xf32>
    %cst_265 = arith.constant 9.99999974E-6 : f32
    %538 = vector.broadcast %cst_265 : f32 to vector<1x40xf32>
    %539 = arith.addf %534, %538 : vector<1x40xf32>
    %540 = math.rsqrt %539 : vector<1x40xf32>
    %541 = arith.mulf %537, %540 : vector<1x40xf32>
    %c5_266 = arith.constant 5 : index
    %c0_267 = arith.constant 0 : index
    %c0_268 = arith.constant 0 : index
    %542 = vector.load %arg6[%c5_266, %c0_267, %c0_268] : memref<8x1x70xf32, #tpu.memory_space<vmem>>, vector<1x1x70xf32>
    %543 = vector.shape_cast %542 : vector<1x1x70xf32> to vector<1x70xf32>
    %544 = vector.extract_strided_slice %543 {offsets = [0, 0], sizes = [1, 40], strides = [1, 1]} : vector<1x70xf32> to vector<1x40xf32>
    %545 = arith.mulf %528, %541 : vector<1x40xf32>
    %546 = arith.subf %544, %545 : vector<1x40xf32>
    %547 = tpu.concatenate %541, %541, %541, %541, %541, %541, %541, %541, %541 in 1 : vector<1x40xf32>, vector<1x40xf32>, vector<1x40xf32>, vector<1x40xf32>, vector<1x40xf32>, vector<1x40xf32>, vector<1x40xf32>, vector<1x40xf32>, vector<1x40xf32> -> vector<1x360xf32>
    %548 = tpu.concatenate %546, %546, %546, %546, %546, %546, %546, %546, %546 in 1 : vector<1x40xf32>, vector<1x40xf32>, vector<1x40xf32>, vector<1x40xf32>, vector<1x40xf32>, vector<1x40xf32>, vector<1x40xf32>, vector<1x40xf32>, vector<1x40xf32> -> vector<1x360xf32>
    %549 = vector.broadcast %547 : vector<1x360xf32> to vector<48x360xf32>
    %550 = arith.mulf %483, %549 : vector<48x360xf32>
    %551 = vector.broadcast %548 : vector<1x360xf32> to vector<48x360xf32>
    %552 = arith.addf %550, %551 : vector<48x360xf32>
    %553 = arith.truncf %552 : vector<48x360xf32> to vector<48x360xbf16>
    %c22 = arith.constant 22 : index
    %c0_269 = arith.constant 0 : index
    %c0_270 = arith.constant 0 : index
    %554 = vector.load %arg3[%c22, %c0_269, %c0_270] : memref<29x48x48xbf16, #tpu.memory_space<vmem>>, vector<1x48x48xbf16>
    %555 = vector.shape_cast %554 : vector<1x48x48xbf16> to vector<48x48xbf16>
    %cst_271 = arith.constant dense<0.000000e+00> : vector<48x360xf32>
    %556 = tpu.matmul %555, %553, %cst_271 {dimension_numbers = #tpu.dot_dimension_numbers<[1], [0], [0], [1], [0, 0, 1, 1], [], []>} : vector<48x48xbf16>, vector<48x360xbf16>, vector<48x360xf32> -> vector<48x360xf32>
    %557 = arith.truncf %556 : vector<48x360xf32> to vector<48x360xbf16>
    %c0_272 = arith.constant 0 : index
    %c0_273 = arith.constant 0 : index
    %c0_274 = arith.constant 0 : index
    %558 = vector.load %arg13[%c0_272, %c0_273, %c0_274] : memref<3x360x220xbf16, #tpu.memory_space<vmem>>, vector<1x360x220xbf16>
    %559 = vector.shape_cast %558 : vector<1x360x220xbf16> to vector<360x220xbf16>
    %cst_275 = arith.constant dense<0.000000e+00> : vector<48x220xf32>
    %560 = tpu.matmul %557, %559, %cst_275 {dimension_numbers = #tpu.dot_dimension_numbers<[1], [0], [0], [1], [0, 0, 1, 1], [], []>} : vector<48x360xbf16>, vector<360x220xbf16>, vector<48x220xf32> -> vector<48x220xf32>
    %c23 = arith.constant 23 : index
    %c0_276 = arith.constant 0 : index
    %c0_277 = arith.constant 0 : index
    %561 = vector.load %arg3[%c23, %c0_276, %c0_277] : memref<29x48x48xbf16, #tpu.memory_space<vmem>>, vector<1x48x48xbf16>
    %562 = vector.shape_cast %561 : vector<1x48x48xbf16> to vector<48x48xbf16>
    %cst_278 = arith.constant dense<0.000000e+00> : vector<48x360xf32>
    %563 = tpu.matmul %562, %553, %cst_278 {dimension_numbers = #tpu.dot_dimension_numbers<[1], [0], [0], [1], [0, 0, 1, 1], [], []>} : vector<48x48xbf16>, vector<48x360xbf16>, vector<48x360xf32> -> vector<48x360xf32>
    %564 = arith.truncf %563 : vector<48x360xf32> to vector<48x360xbf16>
    %c1_279 = arith.constant 1 : index
    %c0_280 = arith.constant 0 : index
    %c0_281 = arith.constant 0 : index
    %565 = vector.load %arg13[%c1_279, %c0_280, %c0_281] : memref<3x360x220xbf16, #tpu.memory_space<vmem>>, vector<1x360x220xbf16>
    %566 = vector.shape_cast %565 : vector<1x360x220xbf16> to vector<360x220xbf16>
    %cst_282 = arith.constant dense<0.000000e+00> : vector<48x220xf32>
    %567 = tpu.matmul %564, %566, %cst_282 {dimension_numbers = #tpu.dot_dimension_numbers<[1], [0], [0], [1], [0, 0, 1, 1], [], []>} : vector<48x360xbf16>, vector<360x220xbf16>, vector<48x220xf32> -> vector<48x220xf32>
    %568 = arith.addf %560, %567 : vector<48x220xf32>
    %c24 = arith.constant 24 : index
    %c0_283 = arith.constant 0 : index
    %c0_284 = arith.constant 0 : index
    %569 = vector.load %arg3[%c24, %c0_283, %c0_284] : memref<29x48x48xbf16, #tpu.memory_space<vmem>>, vector<1x48x48xbf16>
    %570 = vector.shape_cast %569 : vector<1x48x48xbf16> to vector<48x48xbf16>
    %cst_285 = arith.constant dense<0.000000e+00> : vector<48x360xf32>
    %571 = tpu.matmul %570, %553, %cst_285 {dimension_numbers = #tpu.dot_dimension_numbers<[1], [0], [0], [1], [0, 0, 1, 1], [], []>} : vector<48x48xbf16>, vector<48x360xbf16>, vector<48x360xf32> -> vector<48x360xf32>
    %572 = arith.truncf %571 : vector<48x360xf32> to vector<48x360xbf16>
    %c2_286 = arith.constant 2 : index
    %c0_287 = arith.constant 0 : index
    %c0_288 = arith.constant 0 : index
    %573 = vector.load %arg13[%c2_286, %c0_287, %c0_288] : memref<3x360x220xbf16, #tpu.memory_space<vmem>>, vector<1x360x220xbf16>
    %574 = vector.shape_cast %573 : vector<1x360x220xbf16> to vector<360x220xbf16>
    %cst_289 = arith.constant dense<0.000000e+00> : vector<48x220xf32>
    %575 = tpu.matmul %572, %574, %cst_289 {dimension_numbers = #tpu.dot_dimension_numbers<[1], [0], [0], [1], [0, 0, 1, 1], [], []>} : vector<48x360xbf16>, vector<360x220xbf16>, vector<48x220xf32> -> vector<48x220xf32>
    %576 = arith.addf %568, %575 : vector<48x220xf32>
    %c6_290 = arith.constant 6 : index
    %c0_291 = arith.constant 0 : index
    %c0_292 = arith.constant 0 : index
    %577 = vector.load %arg4[%c6_290, %c0_291, %c0_292] : memref<8x1x360xf32, #tpu.memory_space<vmem>>, vector<1x1x360xf32>
    %578 = vector.shape_cast %577 : vector<1x1x360xf32> to vector<1x360xf32>
    %579 = vector.extract_strided_slice %578 {offsets = [0, 0], sizes = [1, 220], strides = [1, 1]} : vector<1x360xf32> to vector<1x220xf32>
    %580 = vector.broadcast %579 : vector<1x220xf32> to vector<48x220xf32>
    %581 = arith.addf %576, %580 : vector<48x220xf32>
    %cst_293 = arith.constant 0.000000e+00 : f32
    %582 = vector.broadcast %cst_293 : f32 to vector<48x220xf32>
    %583 = arith.maximumf %581, %582 : vector<48x220xf32>
    %c6_294 = arith.constant 6 : index
    %c0_295 = arith.constant 0 : index
    %c0_296 = arith.constant 0 : index
    %584 = vector.load %arg2[%c6_294, %c0_295, %c0_296] : memref<8x48x1xf32, #tpu.memory_space<vmem>>, vector<1x48x1xf32>
    %585 = vector.shape_cast %584 : vector<1x48x1xf32> to vector<48x1xf32>
    %586 = vector.broadcast %585 : vector<48x1xf32> to vector<48x220xf32>
    %587 = arith.mulf %583, %586 : vector<48x220xf32>
    %cst_297 = arith.constant dense<0.000000e+00> : vector<220xf32>
    %588 = vector.multi_reduction <add>, %587, %cst_297 [0] : vector<48x220xf32> to vector<220xf32>
    %589 = vector.shape_cast %588 : vector<220xf32> to vector<1x220xf32>
    %590 = arith.mulf %587, %583 : vector<48x220xf32>
    %cst_298 = arith.constant dense<0.000000e+00> : vector<220xf32>
    %591 = vector.multi_reduction <add>, %590, %cst_298 [0] : vector<48x220xf32> to vector<220xf32>
    %592 = vector.shape_cast %591 : vector<220xf32> to vector<1x220xf32>
    %593 = vector.extract_strided_slice %589 {offsets = [0, 0], sizes = [1, 20], strides = [1, 1]} : vector<1x220xf32> to vector<1x20xf32>
    %594 = vector.extract_strided_slice %592 {offsets = [0, 0], sizes = [1, 20], strides = [1, 1]} : vector<1x220xf32> to vector<1x20xf32>
    %595 = vector.extract_strided_slice %589 {offsets = [0, 20], sizes = [1, 20], strides = [1, 1]} : vector<1x220xf32> to vector<1x20xf32>
    %596 = arith.addf %593, %595 : vector<1x20xf32>
    %597 = vector.extract_strided_slice %592 {offsets = [0, 20], sizes = [1, 20], strides = [1, 1]} : vector<1x220xf32> to vector<1x20xf32>
    %598 = arith.addf %594, %597 : vector<1x20xf32>
    %599 = vector.extract_strided_slice %589 {offsets = [0, 40], sizes = [1, 20], strides = [1, 1]} : vector<1x220xf32> to vector<1x20xf32>
    %600 = arith.addf %596, %599 : vector<1x20xf32>
    %601 = vector.extract_strided_slice %592 {offsets = [0, 40], sizes = [1, 20], strides = [1, 1]} : vector<1x220xf32> to vector<1x20xf32>
    %602 = arith.addf %598, %601 : vector<1x20xf32>
    %603 = vector.extract_strided_slice %589 {offsets = [0, 60], sizes = [1, 20], strides = [1, 1]} : vector<1x220xf32> to vector<1x20xf32>
    %604 = arith.addf %600, %603 : vector<1x20xf32>
    %605 = vector.extract_strided_slice %592 {offsets = [0, 60], sizes = [1, 20], strides = [1, 1]} : vector<1x220xf32> to vector<1x20xf32>
    %606 = arith.addf %602, %605 : vector<1x20xf32>
    %607 = vector.extract_strided_slice %589 {offsets = [0, 80], sizes = [1, 20], strides = [1, 1]} : vector<1x220xf32> to vector<1x20xf32>
    %608 = arith.addf %604, %607 : vector<1x20xf32>
    %609 = vector.extract_strided_slice %592 {offsets = [0, 80], sizes = [1, 20], strides = [1, 1]} : vector<1x220xf32> to vector<1x20xf32>
    %610 = arith.addf %606, %609 : vector<1x20xf32>
    %611 = vector.extract_strided_slice %589 {offsets = [0, 100], sizes = [1, 20], strides = [1, 1]} : vector<1x220xf32> to vector<1x20xf32>
    %612 = arith.addf %608, %611 : vector<1x20xf32>
    %613 = vector.extract_strided_slice %592 {offsets = [0, 100], sizes = [1, 20], strides = [1, 1]} : vector<1x220xf32> to vector<1x20xf32>
    %614 = arith.addf %610, %613 : vector<1x20xf32>
    %615 = vector.extract_strided_slice %589 {offsets = [0, 120], sizes = [1, 20], strides = [1, 1]} : vector<1x220xf32> to vector<1x20xf32>
    %616 = arith.addf %612, %615 : vector<1x20xf32>
    %617 = vector.extract_strided_slice %592 {offsets = [0, 120], sizes = [1, 20], strides = [1, 1]} : vector<1x220xf32> to vector<1x20xf32>
    %618 = arith.addf %614, %617 : vector<1x20xf32>
    %619 = vector.extract_strided_slice %589 {offsets = [0, 140], sizes = [1, 20], strides = [1, 1]} : vector<1x220xf32> to vector<1x20xf32>
    %620 = arith.addf %616, %619 : vector<1x20xf32>
    %621 = vector.extract_strided_slice %592 {offsets = [0, 140], sizes = [1, 20], strides = [1, 1]} : vector<1x220xf32> to vector<1x20xf32>
    %622 = arith.addf %618, %621 : vector<1x20xf32>
    %623 = vector.extract_strided_slice %589 {offsets = [0, 160], sizes = [1, 20], strides = [1, 1]} : vector<1x220xf32> to vector<1x20xf32>
    %624 = arith.addf %620, %623 : vector<1x20xf32>
    %625 = vector.extract_strided_slice %592 {offsets = [0, 160], sizes = [1, 20], strides = [1, 1]} : vector<1x220xf32> to vector<1x20xf32>
    %626 = arith.addf %622, %625 : vector<1x20xf32>
    %627 = vector.extract_strided_slice %589 {offsets = [0, 180], sizes = [1, 20], strides = [1, 1]} : vector<1x220xf32> to vector<1x20xf32>
    %628 = arith.addf %624, %627 : vector<1x20xf32>
    %629 = vector.extract_strided_slice %592 {offsets = [0, 180], sizes = [1, 20], strides = [1, 1]} : vector<1x220xf32> to vector<1x20xf32>
    %630 = arith.addf %626, %629 : vector<1x20xf32>
    %631 = vector.extract_strided_slice %589 {offsets = [0, 200], sizes = [1, 20], strides = [1, 1]} : vector<1x220xf32> to vector<1x20xf32>
    %632 = arith.addf %628, %631 : vector<1x20xf32>
    %633 = vector.extract_strided_slice %592 {offsets = [0, 200], sizes = [1, 20], strides = [1, 1]} : vector<1x220xf32> to vector<1x20xf32>
    %634 = arith.addf %630, %633 : vector<1x20xf32>
    %cst_299 = arith.constant 0.00413223123 : f32
    %635 = vector.broadcast %cst_299 : f32 to vector<1x20xf32>
    %636 = arith.mulf %632, %635 : vector<1x20xf32>
    %cst_300 = arith.constant 0.00413223123 : f32
    %637 = vector.broadcast %cst_300 : f32 to vector<1x20xf32>
    %638 = arith.mulf %634, %637 : vector<1x20xf32>
    %639 = arith.mulf %636, %636 : vector<1x20xf32>
    %640 = arith.subf %638, %639 : vector<1x20xf32>
    %cst_301 = arith.constant 0.000000e+00 : f32
    %641 = vector.broadcast %cst_301 : f32 to vector<1x20xf32>
    %642 = arith.maximumf %640, %641 : vector<1x20xf32>
    %c6_302 = arith.constant 6 : index
    %c0_303 = arith.constant 0 : index
    %c0_304 = arith.constant 0 : index
    %643 = vector.load %arg5[%c6_302, %c0_303, %c0_304] : memref<8x1x70xf32, #tpu.memory_space<vmem>>, vector<1x1x70xf32>
    %644 = vector.shape_cast %643 : vector<1x1x70xf32> to vector<1x70xf32>
    %645 = vector.extract_strided_slice %644 {offsets = [0, 0], sizes = [1, 20], strides = [1, 1]} : vector<1x70xf32> to vector<1x20xf32>
    %cst_305 = arith.constant 9.99999974E-6 : f32
    %646 = vector.broadcast %cst_305 : f32 to vector<1x20xf32>
    %647 = arith.addf %642, %646 : vector<1x20xf32>
    %648 = math.rsqrt %647 : vector<1x20xf32>
    %649 = arith.mulf %645, %648 : vector<1x20xf32>
    %c6_306 = arith.constant 6 : index
    %c0_307 = arith.constant 0 : index
    %c0_308 = arith.constant 0 : index
    %650 = vector.load %arg6[%c6_306, %c0_307, %c0_308] : memref<8x1x70xf32, #tpu.memory_space<vmem>>, vector<1x1x70xf32>
    %651 = vector.shape_cast %650 : vector<1x1x70xf32> to vector<1x70xf32>
    %652 = vector.extract_strided_slice %651 {offsets = [0, 0], sizes = [1, 20], strides = [1, 1]} : vector<1x70xf32> to vector<1x20xf32>
    %653 = arith.mulf %636, %649 : vector<1x20xf32>
    %654 = arith.subf %652, %653 : vector<1x20xf32>
    %655 = tpu.concatenate %649, %649, %649, %649, %649, %649, %649, %649, %649, %649, %649 in 1 : vector<1x20xf32>, vector<1x20xf32>, vector<1x20xf32>, vector<1x20xf32>, vector<1x20xf32>, vector<1x20xf32>, vector<1x20xf32>, vector<1x20xf32>, vector<1x20xf32>, vector<1x20xf32>, vector<1x20xf32> -> vector<1x220xf32>
    %656 = tpu.concatenate %654, %654, %654, %654, %654, %654, %654, %654, %654, %654, %654 in 1 : vector<1x20xf32>, vector<1x20xf32>, vector<1x20xf32>, vector<1x20xf32>, vector<1x20xf32>, vector<1x20xf32>, vector<1x20xf32>, vector<1x20xf32>, vector<1x20xf32>, vector<1x20xf32>, vector<1x20xf32> -> vector<1x220xf32>
    %657 = vector.broadcast %655 : vector<1x220xf32> to vector<48x220xf32>
    %658 = arith.mulf %583, %657 : vector<48x220xf32>
    %659 = vector.broadcast %656 : vector<1x220xf32> to vector<48x220xf32>
    %660 = arith.addf %658, %659 : vector<48x220xf32>
    %661 = arith.truncf %660 : vector<48x220xf32> to vector<48x220xbf16>
    %c25 = arith.constant 25 : index
    %c0_309 = arith.constant 0 : index
    %c0_310 = arith.constant 0 : index
    %662 = vector.load %arg3[%c25, %c0_309, %c0_310] : memref<29x48x48xbf16, #tpu.memory_space<vmem>>, vector<1x48x48xbf16>
    %663 = vector.shape_cast %662 : vector<1x48x48xbf16> to vector<48x48xbf16>
    %cst_311 = arith.constant dense<0.000000e+00> : vector<48x220xf32>
    %664 = tpu.matmul %663, %661, %cst_311 {dimension_numbers = #tpu.dot_dimension_numbers<[1], [0], [0], [1], [0, 0, 1, 1], [], []>} : vector<48x48xbf16>, vector<48x220xbf16>, vector<48x220xf32> -> vector<48x220xf32>
    %665 = arith.truncf %664 : vector<48x220xf32> to vector<48x220xbf16>
    %c0_312 = arith.constant 0 : index
    %c0_313 = arith.constant 0 : index
    %c0_314 = arith.constant 0 : index
    %666 = vector.load %arg14[%c0_312, %c0_313, %c0_314] : memref<4x220x72xbf16, #tpu.memory_space<vmem>>, vector<1x220x72xbf16>
    %667 = vector.shape_cast %666 : vector<1x220x72xbf16> to vector<220x72xbf16>
    %cst_315 = arith.constant dense<0.000000e+00> : vector<48x72xf32>
    %668 = tpu.matmul %665, %667, %cst_315 {dimension_numbers = #tpu.dot_dimension_numbers<[1], [0], [0], [1], [0, 0, 1, 1], [], []>} : vector<48x220xbf16>, vector<220x72xbf16>, vector<48x72xf32> -> vector<48x72xf32>
    %c26 = arith.constant 26 : index
    %c0_316 = arith.constant 0 : index
    %c0_317 = arith.constant 0 : index
    %669 = vector.load %arg3[%c26, %c0_316, %c0_317] : memref<29x48x48xbf16, #tpu.memory_space<vmem>>, vector<1x48x48xbf16>
    %670 = vector.shape_cast %669 : vector<1x48x48xbf16> to vector<48x48xbf16>
    %cst_318 = arith.constant dense<0.000000e+00> : vector<48x220xf32>
    %671 = tpu.matmul %670, %661, %cst_318 {dimension_numbers = #tpu.dot_dimension_numbers<[1], [0], [0], [1], [0, 0, 1, 1], [], []>} : vector<48x48xbf16>, vector<48x220xbf16>, vector<48x220xf32> -> vector<48x220xf32>
    %672 = arith.truncf %671 : vector<48x220xf32> to vector<48x220xbf16>
    %c1_319 = arith.constant 1 : index
    %c0_320 = arith.constant 0 : index
    %c0_321 = arith.constant 0 : index
    %673 = vector.load %arg14[%c1_319, %c0_320, %c0_321] : memref<4x220x72xbf16, #tpu.memory_space<vmem>>, vector<1x220x72xbf16>
    %674 = vector.shape_cast %673 : vector<1x220x72xbf16> to vector<220x72xbf16>
    %cst_322 = arith.constant dense<0.000000e+00> : vector<48x72xf32>
    %675 = tpu.matmul %672, %674, %cst_322 {dimension_numbers = #tpu.dot_dimension_numbers<[1], [0], [0], [1], [0, 0, 1, 1], [], []>} : vector<48x220xbf16>, vector<220x72xbf16>, vector<48x72xf32> -> vector<48x72xf32>
    %676 = arith.addf %668, %675 : vector<48x72xf32>
    %c27 = arith.constant 27 : index
    %c0_323 = arith.constant 0 : index
    %c0_324 = arith.constant 0 : index
    %677 = vector.load %arg3[%c27, %c0_323, %c0_324] : memref<29x48x48xbf16, #tpu.memory_space<vmem>>, vector<1x48x48xbf16>
    %678 = vector.shape_cast %677 : vector<1x48x48xbf16> to vector<48x48xbf16>
    %cst_325 = arith.constant dense<0.000000e+00> : vector<48x220xf32>
    %679 = tpu.matmul %678, %661, %cst_325 {dimension_numbers = #tpu.dot_dimension_numbers<[1], [0], [0], [1], [0, 0, 1, 1], [], []>} : vector<48x48xbf16>, vector<48x220xbf16>, vector<48x220xf32> -> vector<48x220xf32>
    %680 = arith.truncf %679 : vector<48x220xf32> to vector<48x220xbf16>
    %c2_326 = arith.constant 2 : index
    %c0_327 = arith.constant 0 : index
    %c0_328 = arith.constant 0 : index
    %681 = vector.load %arg14[%c2_326, %c0_327, %c0_328] : memref<4x220x72xbf16, #tpu.memory_space<vmem>>, vector<1x220x72xbf16>
    %682 = vector.shape_cast %681 : vector<1x220x72xbf16> to vector<220x72xbf16>
    %cst_329 = arith.constant dense<0.000000e+00> : vector<48x72xf32>
    %683 = tpu.matmul %680, %682, %cst_329 {dimension_numbers = #tpu.dot_dimension_numbers<[1], [0], [0], [1], [0, 0, 1, 1], [], []>} : vector<48x220xbf16>, vector<220x72xbf16>, vector<48x72xf32> -> vector<48x72xf32>
    %684 = arith.addf %676, %683 : vector<48x72xf32>
    %c28 = arith.constant 28 : index
    %c0_330 = arith.constant 0 : index
    %c0_331 = arith.constant 0 : index
    %685 = vector.load %arg3[%c28, %c0_330, %c0_331] : memref<29x48x48xbf16, #tpu.memory_space<vmem>>, vector<1x48x48xbf16>
    %686 = vector.shape_cast %685 : vector<1x48x48xbf16> to vector<48x48xbf16>
    %cst_332 = arith.constant dense<0.000000e+00> : vector<48x220xf32>
    %687 = tpu.matmul %686, %661, %cst_332 {dimension_numbers = #tpu.dot_dimension_numbers<[1], [0], [0], [1], [0, 0, 1, 1], [], []>} : vector<48x48xbf16>, vector<48x220xbf16>, vector<48x220xf32> -> vector<48x220xf32>
    %688 = arith.truncf %687 : vector<48x220xf32> to vector<48x220xbf16>
    %c3_333 = arith.constant 3 : index
    %c0_334 = arith.constant 0 : index
    %c0_335 = arith.constant 0 : index
    %689 = vector.load %arg14[%c3_333, %c0_334, %c0_335] : memref<4x220x72xbf16, #tpu.memory_space<vmem>>, vector<1x220x72xbf16>
    %690 = vector.shape_cast %689 : vector<1x220x72xbf16> to vector<220x72xbf16>
    %cst_336 = arith.constant dense<0.000000e+00> : vector<48x72xf32>
    %691 = tpu.matmul %688, %690, %cst_336 {dimension_numbers = #tpu.dot_dimension_numbers<[1], [0], [0], [1], [0, 0, 1, 1], [], []>} : vector<48x220xbf16>, vector<220x72xbf16>, vector<48x72xf32> -> vector<48x72xf32>
    %692 = arith.addf %684, %691 : vector<48x72xf32>
    %c7_337 = arith.constant 7 : index
    %c0_338 = arith.constant 0 : index
    %c0_339 = arith.constant 0 : index
    %693 = vector.load %arg4[%c7_337, %c0_338, %c0_339] : memref<8x1x360xf32, #tpu.memory_space<vmem>>, vector<1x1x360xf32>
    %694 = vector.shape_cast %693 : vector<1x1x360xf32> to vector<1x360xf32>
    %695 = vector.extract_strided_slice %694 {offsets = [0, 0], sizes = [1, 72], strides = [1, 1]} : vector<1x360xf32> to vector<1x72xf32>
    %696 = vector.broadcast %695 : vector<1x72xf32> to vector<48x72xf32>
    %697 = arith.addf %692, %696 : vector<48x72xf32>
    %c0_340 = arith.constant 0 : index
    %c0_341 = arith.constant 0 : index
    %698 = vector.load %arg15[%c0_340, %c0_341] : memref<48x72xf32, #tpu.memory_space<vmem>>, vector<48x72xf32>
    tpu.vector_store %arg15[%c0_340, %c0_341], %697 {strides = array<i32>} : memref<48x72xf32, #tpu.memory_space<vmem>>, vector<48x72xf32>,
    return
  }
  func.func @transform_0(%arg0: i32) -> (i32, i32) {
    %c0_i32 = arith.constant 0 : i32
    %c0_i32_0 = arith.constant 0 : i32
    %c0_i32_1 = arith.constant 0 : i32
    return %c0_i32, %c0_i32_0 : i32, i32
  }
  func.func @transform_1(%arg0: i32) -> (i32, i32, i32) {
    %c0_i32 = arith.constant 0 : i32
    %c0_i32_0 = arith.constant 0 : i32
    %c0_i32_1 = arith.constant 0 : i32
    %c0_i32_2 = arith.constant 0 : i32
    return %c0_i32, %c0_i32_0, %c0_i32_1 : i32, i32, i32
  }
  func.func @transform_2(%arg0: i32) -> (i32, i32, i32) {
    %c0_i32 = arith.constant 0 : i32
    %c0_i32_0 = arith.constant 0 : i32
    %c0_i32_1 = arith.constant 0 : i32
    %c0_i32_2 = arith.constant 0 : i32
    return %c0_i32, %c0_i32_0, %c0_i32_1 : i32, i32, i32
  }
  func.func @transform_3(%arg0: i32) -> (i32, i32, i32) {
    %c0_i32 = arith.constant 0 : i32
    %c0_i32_0 = arith.constant 0 : i32
    %c0_i32_1 = arith.constant 0 : i32
    %c0_i32_2 = arith.constant 0 : i32
    return %c0_i32, %c0_i32_0, %c0_i32_1 : i32, i32, i32
  }
  func.func @transform_4(%arg0: i32) -> (i32, i32, i32) {
    %c0_i32 = arith.constant 0 : i32
    %c0_i32_0 = arith.constant 0 : i32
    %c0_i32_1 = arith.constant 0 : i32
    %c0_i32_2 = arith.constant 0 : i32
    return %c0_i32, %c0_i32_0, %c0_i32_1 : i32, i32, i32
  }
  func.func @transform_5(%arg0: i32) -> (i32, i32, i32) {
    %c0_i32 = arith.constant 0 : i32
    %c0_i32_0 = arith.constant 0 : i32
    %c0_i32_1 = arith.constant 0 : i32
    %c0_i32_2 = arith.constant 0 : i32
    return %c0_i32, %c0_i32_0, %c0_i32_1 : i32, i32, i32
  }
  func.func @transform_6(%arg0: i32) -> (i32, i32, i32) {
    %c0_i32 = arith.constant 0 : i32
    %c0_i32_0 = arith.constant 0 : i32
    %c0_i32_1 = arith.constant 0 : i32
    %c0_i32_2 = arith.constant 0 : i32
    return %c0_i32, %c0_i32_0, %c0_i32_1 : i32, i32, i32
  }
  func.func @transform_7(%arg0: i32) -> (i32, i32, i32) {
    %c0_i32 = arith.constant 0 : i32
    %c0_i32_0 = arith.constant 0 : i32
    %c0_i32_1 = arith.constant 0 : i32
    %c0_i32_2 = arith.constant 0 : i32
    return %c0_i32, %c0_i32_0, %c0_i32_1 : i32, i32, i32
  }
  func.func @transform_8(%arg0: i32) -> (i32, i32, i32) {
    %c0_i32 = arith.constant 0 : i32
    %c0_i32_0 = arith.constant 0 : i32
    %c0_i32_1 = arith.constant 0 : i32
    %c0_i32_2 = arith.constant 0 : i32
    return %c0_i32, %c0_i32_0, %c0_i32_1 : i32, i32, i32
  }
  func.func @transform_9(%arg0: i32) -> (i32, i32, i32) {
    %c0_i32 = arith.constant 0 : i32
    %c0_i32_0 = arith.constant 0 : i32
    %c0_i32_1 = arith.constant 0 : i32
    %c0_i32_2 = arith.constant 0 : i32
    return %c0_i32, %c0_i32_0, %c0_i32_1 : i32, i32, i32
  }
  func.func @transform_10(%arg0: i32) -> (i32, i32, i32) {
    %c0_i32 = arith.constant 0 : i32
    %c0_i32_0 = arith.constant 0 : i32
    %c0_i32_1 = arith.constant 0 : i32
    %c0_i32_2 = arith.constant 0 : i32
    return %c0_i32, %c0_i32_0, %c0_i32_1 : i32, i32, i32
  }
  func.func @transform_11(%arg0: i32) -> (i32, i32, i32) {
    %c0_i32 = arith.constant 0 : i32
    %c0_i32_0 = arith.constant 0 : i32
    %c0_i32_1 = arith.constant 0 : i32
    %c0_i32_2 = arith.constant 0 : i32
    return %c0_i32, %c0_i32_0, %c0_i32_1 : i32, i32, i32
  }
  func.func @transform_12(%arg0: i32) -> (i32, i32, i32) {
    %c0_i32 = arith.constant 0 : i32
    %c0_i32_0 = arith.constant 0 : i32
    %c0_i32_1 = arith.constant 0 : i32
    %c0_i32_2 = arith.constant 0 : i32
    return %c0_i32, %c0_i32_0, %c0_i32_1 : i32, i32, i32
  }
  func.func @transform_13(%arg0: i32) -> (i32, i32, i32) {
    %c0_i32 = arith.constant 0 : i32
    %c0_i32_0 = arith.constant 0 : i32
    %c0_i32_1 = arith.constant 0 : i32
    %c0_i32_2 = arith.constant 0 : i32
    return %c0_i32, %c0_i32_0, %c0_i32_1 : i32, i32, i32
  }
  func.func @transform_14(%arg0: i32) -> (i32, i32) {
    %c0_i32 = arith.constant 0 : i32
    %c0_i32_0 = arith.constant 0 : i32
    %c0_i32_1 = arith.constant 0 : i32
    return %c0_i32, %c0_i32_0 : i32, i32
  }
}

</mosaic_0001>

<bundles_post_ra>
// kernel: forward.1
= control target key start
LH: loop header
LB: loop body
LE: loop exit
PB: predicated region body
PF: predicated region fallthrough
CT: control target
= control target key end

     0   :  { %19 = vsyncpa [#allocation3], 0  ;;  %s20650_s0 = inlined_call_operand.vmem [shape: f32[48,72], index: 0, kind: input, shape index: {}]   ;;  %s20651_s1 = inlined_call_operand.hbm [shape: f32[8,48,1], index: 1, kind: input, shape index: {}]   ;;  %s20652_s2 = inlined_call_operand.hbm [shape: bf16[29,48,48], index: 2, kind: input, shape index: {}]   ;;  %s20653_s3 = inlined_call_operand.hbm [shape: f32[8,1,360], index: 3, kind: input, shape index: {}]   ;;  %s20654_s4 = inlined_call_operand.vmem [shape: f32[8,1,70], index: 4, kind: input, shape index: {}]   ;;  %s20655_s5 = inlined_call_operand.vmem [shape: f32[8,1,70], index: 5, kind: input, shape index: {}]   ;;  %s20656_s6 = inlined_call_operand.hbm [shape: bf16[4,72,220], index: 6, kind: input, shape index: {}]   ;;  %s20657_s7 = inlined_call_operand.hbm [shape: bf16[3,220,360], index: 7, kind: input, shape index: {}]   ;;  %s20658_s8 = inlined_call_operand.hbm [shape: bf16[4,360,180], index: 8, kind: input, shape index: {}]   ;;  %s20659_s9 = inlined_call_operand.hbm [shape: bf16[3,180,70], index: 9, kind: input, shape index: {}]   ;;  %s20660_s10 = inlined_call_operand.vmem [shape: bf16[3,70,180], index: 10, kind: input, shape index: {}]   ;;  %s20661_s11 = inlined_call_operand.hbm [shape: bf16[5,180,360], index: 11, kind: input, shape index: {}]   ;;  %s20662_s12 = inlined_call_operand.hbm [shape: bf16[3,360,220], index: 12, kind: input, shape index: {}]   ;;  %s20663_s13 = inlined_call_operand.vmem [shape: bf16[4,220,72], index: 13, kind: input, shape index: {}]   ;;  %s20664_s14 = inlined_call_operand.vmem [shape: f32[48,72], index: 14, kind: output, shape index: {}]  }
   0x1   :  { %20 = vsyncpa [#allocation5], 0 }
   0x2   :  { %21 = vsyncpa [#allocation8], 0 }
   0x3   :  { %22 = vsyncpa [#allocation11], 0 }
   0x4   :  { %23 = vsyncpa [#allocation14], 0  ;;  %s17372_s29 = smov [#allocation4]   ;;  %s17164_s17 = scalar_lea.hbm %s20652_s2, 11136 }
   0x5   :  { %s43_s30 = sshll.u32 %s17372_s29, 4  ;;  %p17165_p0 = scmp.ne.s32.totalorder %s20652_s2, %s17164_s17  ;;  %s44_s30 = int_to_ptr.vmem [resolvable:$true] %s43_s30 }
   0x6   :  { %p17168_p1 = scmp.lt.u32.totalorder %s17164_s17, %s20652_s2 }
   0x8   :  { %p17170_p2 = pnand %p17168_p1, %p17165_p0 }
   0xa   :  { %17173 = shalt.err (!%p17170_p2)
}
   0xb   :  { %s17174_s22 = scalar_lea.vmem %s44_s30, 11136  ;;  %p17179_p4 = scmp.lt.s32.totalorder %s44_s30, %s44_s30 }
   0xc   :  { %p17175_p3 = scmp.ne.s32.totalorder %s44_s30, %s17174_s22  ;;  %p17180_p5 = scmp.lt.s32.totalorder %s17174_s22, %s17174_s22 }
   0xe   :  { %p17181_p6 = por %p17180_p5, %p17179_p4 }
  0x10   :  { %p17182_p7 = pnand %p17181_p6, %p17175_p3 }
  0x12   :  { %17185 = shalt.err (!%p17182_p7)
}
  0x13   :  { %s17373_s23 = smov 64   ;;  %s17374_s24 = smov 4  }
  0x14   :  { %49 = dma.hbm_to_vmem [thread:$0]  %s20652_s2, 11136, %s44_s30, [#allocation5], %s17373_s23, %s17373_s23, %s17374_s24  }
  0x15   :  { %s17375_s27 = smov [#allocation7]   ;;  %s17376_s29 = smov [#allocation10]  }
  0x16   :  { %s71_s28 = sshll.u32 %s17375_s27, 4  ;;  %s95_s15 = sshll.u32 %s17376_s29, 4  ;;  %s72_s28 = int_to_ptr.vmem [resolvable:$true] %s71_s28  ;;  %s96_s15 = int_to_ptr.vmem [resolvable:$true] %s95_s15 }
  0x17   :  { %s17186_s18 = scalar_lea.hbm %s20656_s6, 4608 }
  0x18   :  { %p17187_p8 = scmp.ne.s32.totalorder %s20656_s6, %s17186_s18  ;;  %p17190_p9 = scmp.lt.u32.totalorder %s17186_s18, %s20656_s6 }
  0x1a   :  { %p17192_p10 = pnand %p17190_p9, %p17187_p8 }
  0x1c   :  { %17195 = shalt.err (!%p17192_p10)
}
  0x1d   :  { %s17196_s2 = scalar_lea.vmem %s72_s28, 4608  ;;  %p17201_p12 = scmp.lt.s32.totalorder %s72_s28, %s72_s28 }
  0x1e   :  { %p17197_p11 = scmp.ne.s32.totalorder %s72_s28, %s17196_s2  ;;  %p17202_p13 = scmp.lt.s32.totalorder %s17196_s2, %s17196_s2 }
  0x20   :  { %p17203_p0 = por %p17202_p13, %p17201_p12 }
  0x22   :  { %p17204_p1 = pnand %p17203_p0, %p17197_p11 }
  0x24   :  { %17207 = shalt.err (!%p17204_p1)
}
  0x25   :  { %s20665_s30 = smov 128   ;;  %s17378_s25 = smov 8  }
  0x26   :  { %77 = dma.hbm_to_vmem [thread:$0]  %s20656_s6, 4608, %s72_s28, [#allocation8], %s20665_s30, %s20665_s30, %s17378_s25  }
  0x27   :  { %s17208_s17 = scalar_lea.hbm %s20658_s8, 23040 }
  0x28   :  { %p17209_p2 = scmp.ne.s32.totalorder %s20658_s8, %s17208_s17  ;;  %p17212_p3 = scmp.lt.u32.totalorder %s17208_s17, %s20658_s8 }
  0x2a   :  { %p17214_p4 = pnand %p17212_p3, %p17209_p2 }
  0x2c   :  { %17217 = shalt.err (!%p17214_p4)
}
  0x2d   :  { %s17218_s22 = scalar_lea.vmem %s96_s15, 23040  ;;  %p17223_p6 = scmp.lt.s32.totalorder %s96_s15, %s96_s15 }
  0x2e   :  { %p17219_p5 = scmp.ne.s32.totalorder %s96_s15, %s17218_s22  ;;  %p17224_p7 = scmp.lt.s32.totalorder %s17218_s22, %s17218_s22 }
  0x30   :  { %p17225_p8 = por %p17224_p7, %p17223_p6 }
  0x32   :  { %p17226_p9 = pnand %p17225_p8, %p17219_p5 }
  0x34   :  { %17229 = shalt.err (!%p17226_p9)
}
  0x35   :  { %101 = dma.hbm_to_vmem [thread:$0]  %s20658_s8, 23040, %s96_s15, [#allocation11], %s20665_s30, %s20665_s30, %s17378_s25  }
  0x36   :  { %s17379_s2 = smov [#allocation13]   ;;  %s17380_s27 = smov [#allocation2]  }
  0x37   :  { %s121_s26 = sshll.u32 %s17379_s2, 4  ;;  %s31_s29 = sshll.u32 %s17380_s27, 4  ;;  %s122_s26 = int_to_ptr.vmem [resolvable:$true] %s121_s26  ;;  %s32_s29 = int_to_ptr.vmem [resolvable:$true] %s31_s29 }
  0x38   :  { %s17230_s18 = scalar_lea.hbm %s20661_s11, 22080 }
  0x39   :  { %p17231_p10 = scmp.ne.s32.totalorder %s20661_s11, %s17230_s18  ;;  %p17234_p11 = scmp.lt.u32.totalorder %s17230_s18, %s20661_s11 }
  0x3b   :  { %p17236_p12 = pnand %p17234_p11, %p17231_p10 }
  0x3d   :  { %17239 = shalt.err (!%p17236_p12)
}
  0x3e   :  { %s17240_s8 = scalar_lea.vmem %s122_s26, 22080  ;;  %p17245_p0 = scmp.lt.s32.totalorder %s122_s26, %s122_s26 }
  0x3f   :  { %p17241_p13 = scmp.ne.s32.totalorder %s122_s26, %s17240_s8  ;;  %p17246_p1 = scmp.lt.s32.totalorder %s17240_s8, %s17240_s8 }
  0x41   :  { %p17247_p2 = por %p17246_p1, %p17245_p0 }
  0x43   :  { %p17248_p3 = pnand %p17247_p2, %p17241_p13 }
  0x45   :  { %17251 = shalt.err (!%p17248_p3)
}
  0x46   :  { %s17381_s15 = smov 192   ;;  %s20675_s6 = smov 12  }
  0x47   :  { %127 = dma.hbm_to_vmem [thread:$0]  %s20661_s11, 22080, %s122_s26, [#allocation14], %s17381_s15, %s17381_s15, %s20675_s6  }
  0x48   :  { %s17252_s17 = scalar_lea.hbm %s20651_s1, 6144 }
  0x49   :  { %p17253_p4 = scmp.ne.s32.totalorder %s20651_s1, %s17252_s17  ;;  %p17256_p5 = scmp.lt.u32.totalorder %s17252_s17, %s20651_s1 }
  0x4b   :  { %p17258_p6 = pnand %p17256_p5, %p17253_p4 }
  0x4d   :  { %17261 = shalt.err (!%p17258_p6)
}
  0x4e   :  { %s17262_s22 = scalar_lea.vmem %s32_s29, 6144  ;;  %p17267_p8 = scmp.lt.s32.totalorder %s32_s29, %s32_s29 }
  0x4f   :  { %p17263_p7 = scmp.ne.s32.totalorder %s32_s29, %s17262_s22  ;;  %p17268_p9 = scmp.lt.s32.totalorder %s17262_s22, %s17262_s22 }
  0x51   :  { %p17269_p10 = por %p17268_p9, %p17267_p8 }
  0x53   :  { %p17270_p11 = pnand %p17269_p10, %p17263_p7 }
  0x55   :  { %17273 = shalt.err (!%p17270_p11)
}
  0x56   :  { %37 = dma.hbm_to_vmem [thread:$0]  %s20651_s1, 6144, %s32_s29, [#allocation3], %s20665_s30, %s20665_s30, %s17378_s25  }
  0x57   :  { %s17383_s8 = smov [#allocation6]   ;;  %s17274_s16 = scalar_lea.hbm %s20653_s3, 384 }
  0x58   :  { %s55_s28 = sshll.u32 %s17383_s8, 4  ;;  %p17275_p12 = scmp.ne.s32.totalorder %s20653_s3, %s17274_s16  ;;  %s56_s28 = int_to_ptr.vmem [resolvable:$true] %s55_s28 }
  0x59   :  { %p17278_p13 = scmp.lt.u32.totalorder %s17274_s16, %s20653_s3 }
  0x5b   :  { %p17280_p0 = pnand %p17278_p13, %p17275_p12 }
  0x5d   :  { %17283 = shalt.err (!%p17280_p0)
}
  0x5e   :  { %s17284_s21 = scalar_lea.vmem %s56_s28, 384  ;;  %p17289_p2 = scmp.lt.s32.totalorder %s56_s28, %s56_s28 }
  0x5f   :  { %p17285_p1 = scmp.ne.s32.totalorder %s56_s28, %s17284_s21  ;;  %p17290_p3 = scmp.lt.s32.totalorder %s17284_s21, %s17284_s21 }
  0x61   :  { %p17291_p4 = por %p17290_p3, %p17289_p2 }
  0x63   :  { %p17292_p5 = pnand %p17291_p4, %p17285_p1 }
  0x65   :  { %17295 = shalt.err (!%p17292_p5)
}
  0x66   :  { %s17384_s1 = smov 48   ;;  %s17385_s29 = smov 3  }
  0x67   :  { %61 = dma.hbm_to_vmem [thread:$0]  %s20653_s3, 384, %s56_s28, [#allocation5], %s17384_s1, %s17384_s1, %s17385_s29  }
  0x68   :  { %s17386_s26 = smov [#allocation9]   ;;  %s17387_s2 = smov [#allocation12]  }
  0x69   :  { %s83_s8 = sshll.u32 %s17386_s26, 4  ;;  %s107_s27 = sshll.u32 %s17387_s2, 4  ;;  %s84_s8 = int_to_ptr.vmem [resolvable:$true] %s83_s8  ;;  %s17577_s27 = int_to_ptr.vmem [resolvable:$true] %s107_s27 }
  0x6a   :  { %s17296_s18 = scalar_lea.hbm %s20657_s7, 16128 }
  0x6b   :  { %p17297_p6 = scmp.ne.s32.totalorder %s20657_s7, %s17296_s18  ;;  %p17300_p7 = scmp.lt.u32.totalorder %s17296_s18, %s20657_s7 }
  0x6d   :  { %p17302_p8 = pnand %p17300_p7, %p17297_p6 }
  0x6f   :  { %17305 = shalt.err (!%p17302_p8)
}
  0x70   :  { %s17306_s3 = scalar_lea.vmem %s84_s8, 16128  ;;  %p17311_p10 = scmp.lt.s32.totalorder %s84_s8, %s84_s8 }
  0x71   :  { %p17307_p9 = scmp.ne.s32.totalorder %s84_s8, %s17306_s3  ;;  %p17312_p11 = scmp.lt.s32.totalorder %s17306_s3, %s17306_s3 }
  0x73   :  { %p17313_p12 = por %p17312_p11, %p17311_p10 }
  0x75   :  { %p17314_p13 = pnand %p17313_p12, %p17307_p9 }
  0x77   :  { %17317 = shalt.err (!%p17314_p13)
}
  0x78   :  { %89 = dma.hbm_to_vmem [thread:$0]  %s20657_s7, 16128, %s84_s8, [#allocation8], %s17381_s15, %s17381_s15, %s20675_s6  }
  0x79   :  { %s17318_s30 = scalar_lea.hbm %s20659_s9, 4416 }
  0x7a   :  { %p17319_p0 = scmp.ne.s32.totalorder %s20659_s9, %s17318_s30  ;;  %p17322_p1 = scmp.lt.u32.totalorder %s17318_s30, %s20659_s9 }
  0x7c   :  { %p17324_p2 = pnand %p17322_p1, %p17319_p0 }
  0x7e   :  { %17327 = shalt.err (!%p17324_p2)
}
  0x7f   :  { %s17328_s18 = scalar_lea.vmem %s17577_s27, 4416  ;;  %p17333_p4 = scmp.lt.s32.totalorder %s17577_s27, %s17577_s27 }
  0x80   :  { %p17329_p3 = scmp.ne.s32.totalorder %s17577_s27, %s17328_s18  ;;  %p17334_p5 = scmp.lt.s32.totalorder %s17328_s18, %s17328_s18 }
  0x82   :  { %p17335_p6 = por %p17334_p5, %p17333_p4 }
  0x84   :  { %p17336_p7 = pnand %p17335_p6, %p17329_p3 }
  0x86   :  { %17339 = shalt.err (!%p17336_p7)
}
  0x87   :  { %113 = dma.hbm_to_vmem [thread:$0]  %s20659_s9, 4416, %s17577_s27, [#allocation11], %s17373_s23, %s17373_s23, %s17374_s24  }
  0x88   :  { %s17388_s8 = smov [#allocation15]   ;;  %s17340_s3 = scalar_lea.hbm %s20662_s12, 17280 }
  0x89   :  { %s133_s19 = sshll.u32 %s17388_s8, 4  ;;  %p17341_p8 = scmp.ne.s32.totalorder %s20662_s12, %s17340_s3  ;;  %s134_s19 = int_to_ptr.vmem [resolvable:$true] %s133_s19 }
  0x8a   :  { %p17344_p9 = scmp.lt.u32.totalorder %s17340_s3, %s20662_s12 }
  0x8c   :  { %p17346_p10 = pnand %p17344_p9, %p17341_p8 }
  0x8e   :  { %17349 = shalt.err (!%p17346_p10)
}
  0x8f   :  { %s17350_s30 = scalar_lea.vmem %s134_s19, 17280  ;;  %p17355_p12 = scmp.lt.s32.totalorder %s134_s19, %s134_s19 }
  0x90   :  { %p17351_p11 = scmp.ne.s32.totalorder %s134_s19, %s17350_s30  ;;  %p17356_p13 = scmp.lt.s32.totalorder %s17350_s30, %s17350_s30 }
  0x92   :  { %p17357_p0 = por %p17356_p13, %p17355_p12 }
  0x94   :  { %p17358_p1 = pnand %p17357_p0, %p17351_p11 }
  0x96   :  { %17361 = shalt.err (!%p17358_p1)
}
  0x97   :  { %s20692_s9 = smov 128  }
  0x98   :  { %139 = dma.hbm_to_vmem [thread:$0]  %s20662_s12, 17280, %s134_s19, [#allocation14], %s20692_s9, %s20692_s9, %s17378_s25  }
  0x99   :  { %17362 = dma.done.wait [#allocation3], 6144  }
  0x9a   :  { %17363 = vsyncadd [#allocation3], 4294961152 }
  0x9b   :  { %17364 = dma.done.wait [#allocation5], 11520  }
  0x9c   :  { %17365 = vsyncadd [#allocation5], 4294955776 }
  0x9d   :  { %17366 = dma.done.wait [#allocation8], 20736  }
  0x9e   :  { %17367 = vsyncadd [#allocation8], 4294946560 }
  0x9f   :  { %17368 = dma.done.wait [#allocation11], 27456  }
  0xa0   :  { %17369 = vsyncadd [#allocation11], 4294939840 }
  0xa1   :  { %17370 = dma.done.wait [#allocation14], 39360  }
  0xa2   :  { %17371 = vsyncadd [#allocation14], 4294927936  ;;  %v17389_v0 = vmov 0.0   ;;  %vm17390_vm0 = vmmov 0   ;;  %v170_v1 = vld [vmem:[%s20650_s0] sm:$0xff]  ;;  %v171_v2 = vld [vmem:[%s20650_s0 + $0x8] sm:$0xff] }
  0xa3   :  { %15423 = vmatprep.subr.bf16.mxu0 %v17389_v0  ;;  %15429 = vmatprep.mubr.msk.bf16.mxu0 %vm17390_vm0, %v17389_v0  ;;  %v172_v3 = vld [vmem:[%s20650_s0 + $0x10] sm:$0xff]  ;;  %v176_v4 = vpack.c.bf16 %v171_v2, %v170_v1  ;;  %v173_v5 = vld [vmem:[%s20650_s0 + $0x18] sm:$0xff]  ;;  %v174_v7 = vld [vmem:[%s20650_s0 + $0x20] sm:$0xff]  ;;  %vm200_vm1 = vcmask 392192   ;;  %vm20677_vm2 = vcmask 1043456   ;;  %v17391_v34 = vmov 0  }
  0xa4   :  { %15459 = vmatprep.subr.bf16.mxu1 %v17389_v0  ;;  %15465 = vmatprep.mubr.msk.bf16.mxu1 %vm17390_vm0, %v17389_v0  ;;  %v177_v6 = vpack.c.bf16 %v173_v5, %v172_v3  ;;  %v175_v8 = vld [vmem:[%s20650_s0 + $0x28] sm:$0xff]  ;;  %v15994_v10 = vld [vmem:[#allocation4] sm:$0xff]   ;;  %v16000_v11 = vld [vmem:[#allocation4 + $0x30] sm:$0xff]   ;;  %vm425_vm3 = vcmask 588800   ;;  %vm20672_vm4 = vcmask 752640   ;;  %s20687_s0 = smov 108  }
  0xa5   :  { %15424 = vmatpush3.bf16.msra.mxu0 %v176_v4  ;;  %15460 = vmatpush3.bf16.msra.mxu1 %v176_v4  ;;  %v178_v9 = vpack.c.bf16 %v175_v8, %v174_v7  ;;  %v15995_v12 = vld [vmem:[#allocation4 + $0x8] sm:$0xff]   ;;  %v16001_v13 = vld [vmem:[#allocation4 + $0x38] sm:$0xff]   ;;  %v15996_v14 = vld [vmem:[#allocation4 + $0x10] sm:$0xff]   ;;  %s17393_s3 = smov 88   ;;  %s17394_s28 = smov 68   ;;  %vm1300_vm5 = vcmask 64512  }
  0xa6   :  { %15425 = vmatprep.subr.bf16.mxu0 %v17389_v0  ;;  %15461 = vmatprep.subr.bf16.mxu1 %v17389_v0  ;;  %v16002_v15 = vld [vmem:[#allocation4 + $0x40] sm:$0xff]   ;;  %v15997_v16 = vld [vmem:[#allocation4 + $0x18] sm:$0xff]   ;;  %v16003_v17 = vld [vmem:[#allocation4 + $0x48] sm:$0xff]   ;;  %s20685_s29 = smov 28   ;;  %s20683_s22 = smov 116   ;;  %vm20671_vm6 = vcmask 162816  }
  0xa7   :  { %v15998_v18 = vld [vmem:[#allocation4 + $0x20] sm:$0xff]   ;;  %v16004_v19 = vld [vmem:[#allocation4 + $0x50] sm:$0xff]   ;;  %v15999_v20 = vld [vmem:[#allocation4 + $0x28] sm:$0xff]   ;;  %15992 = vset.pattern.permute.xlu0 %v17391_v34  ;;  %15993 = vset.pattern.permute.xlu1 %v17391_v34  ;;  %s17397_s11 = smov 96   ;;  %s20681_s30 = smov 76   ;;  %vm1393_vm7 = vcmask 326656  }
  0xa8   :  { %v16005_v21 = vld [vmem:[#allocation4 + $0x58] sm:$0xff]   ;;  %v16009_v24 = vld [vmem:[#allocation7 + $0x58] ss:$8 sps:$4 sm:$0xff]   ;;  %v16011_v25 = vld [vmem:[#allocation7 + $0x5c] ss:$8 sps:$4 sm:$0xff]   ;;  %s17399_s9 = smov 56  }
  0xa9   :  { %15426 = vmatpush3.bf16.msra.mxu0 %v177_v6  ;;  %15462 = vmatpush3.bf16.msra.mxu1 %v177_v6  ;;  %v16008_v22 = vld [vmem:[#allocation7 + $0x4c] ss:$8 sps:$4 sm:$0xff]   ;;  %v16006_v23 = vld [vmem:[#allocation7 + $0x48] ss:$8 sps:$4 sm:$0xff]   ;;  %v16015_v28 = vld [vmem:[#allocation7 + $0x78] ss:$8 sps:$4 sm:$0xff]  }
  0xaa   :  { %15427 = vmatprep.subr.bf16.mxu0 %v17389_v0  ;;  %15463 = vmatprep.subr.bf16.mxu1 %v17389_v0  ;;  %v16014_v26 = vld [vmem:[#allocation7 + $0x6c] ss:$8 sps:$4 sm:$0xff]   ;;  %v16012_v27 = vld [vmem:[#allocation7 + $0x68] ss:$8 sps:$4 sm:$0xff]   ;;  %v16017_v29 = vld [vmem:[#allocation7 + $0x7c] ss:$8 sps:$4 sm:$0xff]  }
  0xab   :  { %v379_v30 = vld [vmem:[#allocation7 + $0x88] sm:$0xff]  ;;  %v1136_v36 = vld [vmem:[#allocation2] sm:$0xff]  ;;  %v1138_v37 = vld [vmem:[#allocation2 + $0x10] sm:$0xff]  ;;  %s17400_s12 = smov 40   ;;  %s20679_s26 = smov 20   ;;  %vm20670_vm8 = vcmask 97280  }
  0xac   :  { %v14128_v31 = vcombine.high %v379_v30, %v379_v30  ;;  %v14127_v32 = vcombine.low %v379_v30, %v379_v30  ;;  %v16022_v35 = vld [vmem:[#allocation7 + $0x4] ss:$8 sps:$4 sm:$0xff]   ;;  %1144 = vperm.xlu0 %15992, %v1136_v36   ;;  %1154 = vperm.xlu1 %15993, %v1138_v37   ;;  %v1137_v38 = vld [vmem:[#allocation2 + $0x8] sm:$0xff]  ;;  %v1140_v40 = vld [vmem:[#allocation2 + $0x20] sm:$0xff]  ;;  %s17402_s2 = smov 120   ;;  %s17403_s16 = smov 32  }
  0xad   :  { %15428 = vmatpush3.bf16.msra.mxu0 %v178_v9  ;;  %15464 = vmatpush3.bf16.msra.mxu1 %v178_v9  ;;  %v1139_v39 = vld [vmem:[#allocation2 + $0x18] sm:$0xff]  ;;  %v1141_v41 = vld [vmem:[#allocation2 + $0x28] sm:$0xff]  ;;  %s17404_s17 = smov 60   ;;  %s17405_s15 = smov 80   ;;  %vm1395_vm9 = vcmask 490496   ;;  %vm1405_vm10 = vcmask 261120  }
  0xae   :  { %15441 = vmatprep.subr.bf16.mxu0 %v17389_v0  ;;  %15477 = vmatprep.subr.bf16.mxu1 %v17389_v0  ;;  %v437_v33 = vsel %vm20677_vm2, %v14127_v32, 0  ;;  %v16029_v37 = vld [vmem:[#allocation7 + $0x30] ss:$8 sps:$4 sm:$0xff]   ;;  %s20673_s8 = smov 52   ;;  %s17407_s19 = smov 72   ;;  %vm1397_vm11 = vcmask 654336  }
  0xaf   :  { %s20668_s20 = smov 100   ;;  %vm1407_vm12 = vcmask 424960   ;;  %vm20667_vm13 = vcmask 818176   ;;  %vm1401_vm14 = vcmask 982016   ;;  %vm20666_vm15 = vcmask 1045504   ;;  %s17409_s21 = smov 16  }
  0xb0   :  { %15430 = vmatmul.mubr.msk.bf16.vlgmr.msra.gmra.mrb[0].mxu0 %vm200_vm1, %v15994_v10  ;;  %15466 = vmatmul.mubr.msk.bf16.vlgmr.msra.gmra.mrb[0].mxu1 %vm200_vm1, %v16000_v11  ;;  %v16020_v10 = vld [vmem:[#allocation7] ss:$8 sps:$4 sm:$0xff]   ;;  %s17410_s24 = smov 104   ;;  %s17411_s27 = smov 112  }
  0xb1   :  { %15433 = vmatprep.mubr.msk.bf16.mxu0 %vm17390_vm0, %v17389_v0  ;;  %15442 = vmatpush3.bf16.msra.mxu0 %v176_v4  ;;  %s20722_s18 = smov 100  }
  0xb2   :  { %15443 = vmatprep.subr.bf16.mxu0 %v17389_v0  ;;  %15469 = vmatprep.mubr.msk.bf16.mxu1 %vm17390_vm0, %v17389_v0 }
  0xb3   :  { %15478 = vmatpush3.bf16.msra.mxu1 %v176_v4  ;;  %1149 = vperm.xlu0 %15992, %v1137_v38  }
  0xb4   :  { %15479 = vmatprep.subr.bf16.mxu1 %v17389_v0  ;;  %1159 = vperm.xlu1 %15993, %v1139_v39  }
  0xb5   :  { %15444 = vmatpush3.bf16.msra.mxu0 %v177_v6 }
  0xb6   :  { %15445 = vmatprep.subr.bf16.mxu0 %v17389_v0 }
  0xb7   :  { %15480 = vmatpush3.bf16.msra.mxu1 %v177_v6  ;;  %1164 = vperm.xlu0 %15992, %v1140_v40  }
  0xb8   :  { %15434 = vmatmul.mubr.msk.bf16.gmra.mrb[4].mxu0 %vm200_vm1, %v15995_v12  ;;  %15470 = vmatmul.mubr.msk.bf16.gmra.mrb[4].mxu1 %vm200_vm1, %v16001_v13  ;;  %v16025_v13 = vld [vmem:[#allocation7 + $0x14] ss:$8 sps:$4 sm:$0xff]  }
  0xb9   :  { %15437 = vmatprep.mubr.msk.bf16.mxu0 %vm17390_vm0, %v17389_v0  ;;  %15446 = vmatpush3.bf16.msra.mxu0 %v178_v9 }
  0xba   :  { %15473 = vmatprep.mubr.msk.bf16.mxu1 %vm17390_vm0, %v17389_v0  ;;  %15481 = vmatprep.subr.bf16.mxu1 %v17389_v0 }
  0xbb   :  { %15482 = vmatpush3.bf16.msra.mxu1 %v178_v9  ;;  %442 = vmatprep.subr.bf16.mxu0 %v16008_v22  ;;  %v16028_v22 = vld [vmem:[#allocation7 + $0x24] ss:$8 sps:$4 sm:$0xff]  }
  0xbc   :  { %1169 = vperm.xlu1 %15993, %v1141_v41  }
  0xc0   :  { %15438 = vmatmul.mubr.msk.bf16.gmra.mrb[8].mxu0 %vm200_vm1, %v15996_v14  ;;  %15474 = vmatmul.mubr.msk.bf16.gmra.mrb[8].mxu1 %vm200_vm1, %v16002_v15 }
  0xc1   :  { %15447 = vmatprep.mubr.msk.bf16.mxu0 %vm17390_vm0, %v17389_v0  ;;  %15483 = vmatprep.mubr.msk.bf16.mxu1 %vm17390_vm0, %v17389_v0 }
  0xc8   :  { %15448 = vmatmul.mubr.msk.bf16.vlgmr.msra.gmra.mrb[12].mxu0 %vm200_vm1, %v15997_v16  ;;  %15484 = vmatmul.mubr.msk.bf16.vlgmr.msra.gmra.mrb[12].mxu1 %vm200_vm1, %v16003_v17 }
  0xc9   :  { %15451 = vmatprep.mubr.msk.bf16.mxu0 %vm17390_vm0, %v17389_v0  ;;  %15487 = vmatprep.mubr.msk.bf16.mxu1 %vm17390_vm0, %v17389_v0 }
  0xca   :  { %443 = vmatpush1.bf16.msra.mxu0 %v16006_v23 }
  0xcb   :  { %444 = vmatprep.subr.bf16.mxu0 %v16011_v25 }
  0xce   :  { %445 = vmatpush1.bf16.msra.mxu0 %v16009_v24  ;;  %v16026_v24 = vld [vmem:[#allocation7 + $0x20] ss:$8 sps:$4 sm:$0xff]  }
  0xcf   :  { %446 = vmatprep.subr.bf16.mxu0 %v16014_v26 }
  0xd0   :  { %15452 = vmatmul.mubr.msk.bf16.gmra.mrb[16].mxu0 %vm200_vm1, %v15998_v18  ;;  %15488 = vmatmul.mubr.msk.bf16.gmra.mrb[16].mxu1 %vm200_vm1, %v16004_v19 }
  0xd1   :  { %15455 = vmatprep.mubr.msk.bf16.mxu0 %vm17390_vm0, %v17389_v0  ;;  %15491 = vmatprep.mubr.msk.bf16.mxu1 %vm17390_vm0, %v17389_v0 }
  0xd2   :  { %447 = vmatpush1.bf16.msra.mxu0 %v16012_v27  ;;  %v16031_v27 = vld [vmem:[#allocation7 + $0x34] ss:$8 sps:$4 sm:$0xff]  }
  0xd3   :  { %448 = vmatprep.subr.bf16.mxu0 %v16017_v29 }
  0xd6   :  { %449 = vmatpush1.bf16.msra.mxu0 %v16015_v28  ;;  %v278_v28 = vld [vmem:[#allocation7 + $0x40] sm:$0xff] }
  0xd7   :  { %14129 = vmatprep.subr.msk.bf16.mxu0 %vm20677_vm2, %v14128_v31  ;;  %v14141_v38 = vcombine.low %v278_v28, %v278_v28  ;;  %v14142_v39 = vcombine.high %v278_v28, %v278_v28 }
  0xd8   :  { %15456 = vmatmul.mubr.msk.bf16.gmra.mrb[20].mxu0 %vm200_vm1, %v15999_v20  ;;  %15492 = vmatmul.mubr.msk.bf16.gmra.mrb[20].mxu1 %vm200_vm1, %v16005_v21  ;;  %v16023_v21 = vld [vmem:[#allocation7 + $0x10] ss:$8 sps:$4 sm:$0xff]  }
  0xd9   :  { %474 = vmatprep.mubr.bf16.mxu0 %v17391_v34  ;;  %1564 = vmatprep.mubr.bf16.mxu1 %v17391_v34 }
  0xda   :  { %451 = vmatpush1.bf16.msra.mxu0 %v437_v33 }
  0xdb   :  { %565 = vmatprep.subr.bf16.mxu0 %v16022_v35 }
 0x183   :  { %v17701_v42 = vpop.f32.mrb[0].mxu0  ;;  %v17703_v43 = vpop.f32.mrb[0].mxu1 }
 0x184   :  { %v15431_v44 = vpop.f32.mrb[1].mxu0  ;;  %v15467_v45 = vpop.f32.mrb[1].mxu1 }
 0x185   :  { %v17705_v46 = vpop.f32.mrb[2].mxu0  ;;  %v17707_v47 = vpop.f32.mrb[2].mxu1  ;;  %v16036_v45 = vld [vmem:[#allocation7 + $0x94] ss:$8 sps:$4 sm:$0xff]  }
 0x186   :  { %v267_v48 = vpack.c.bf16 %v17705_v46, %v17701_v42  ;;  %v15432_v49 = vpop.f32.mrb[3].mxu0  ;;  %v716_v50 = vpack.c.bf16 %v17707_v47, %v17703_v43  ;;  %v15468_v51 = vpop.f32.mrb[3].mxu1 }
 0x18b   :  { %v17713_v52 = vpop.f32.mrb[4].mxu0  ;;  %v17715_v53 = vpop.f32.mrb[4].mxu1 }
 0x18c   :  { %v15435_v54 = vpop.f32.mrb[5].mxu0  ;;  %v15471_v55 = vpop.f32.mrb[5].mxu1 }
 0x18d   :  { %v17717_v56 = vpop.f32.mrb[6].mxu0  ;;  %v17719_v57 = vpop.f32.mrb[6].mxu1  ;;  %v560_v54 = vsel %vm20677_vm2, %v14141_v38, 0 }
 0x18e   :  { %v268_v58 = vpack.c.bf16 %v17717_v56, %v17713_v52  ;;  %v15436_v59 = vpop.f32.mrb[7].mxu0  ;;  %v717_v60 = vpack.c.bf16 %v17719_v57, %v17715_v53  ;;  %v15472_v61 = vpop.f32.mrb[7].mxu1  ;;  %v16048_v52 = vld [vmem:[#allocation7 + $0xd8] ss:$8 sps:$4 sm:$0xff]   ;;  %v16053_v56 = vld [vmem:[#allocation7 + $0xec] ss:$8 sps:$4 sm:$0xff]   ;;  %v1102_v53 = vlaneseq }
 0x190   :  { %v17811_v57 = vshrl.u32 %v1102_v53, 7 }
 0x193   :  { %v17725_v62 = vpop.f32.mrb[8].mxu0  ;;  %v17727_v63 = vpop.f32.mrb[8].mxu1 }
 0x194   :  { %v15439_v1 = vpop.f32.mrb[9].mxu0  ;;  %v15475_v2 = vpop.f32.mrb[9].mxu1 }
 0x195   :  { %v17729_v3 = vpop.f32.mrb[10].mxu0  ;;  %v17731_v4 = vpop.f32.mrb[10].mxu1 }
 0x196   :  { %v269_v5 = vpack.c.bf16 %v17729_v3, %v17725_v62  ;;  %v15440_v6 = vpop.f32.mrb[11].mxu0  ;;  %v718_v7 = vpack.c.bf16 %v17731_v4, %v17727_v63  ;;  %v15476_v8 = vpop.f32.mrb[11].mxu1  ;;  %v16054_v62 = vld [vmem:[#allocation7 + $0xf8] ss:$8 sps:$4 sm:$0xff]   ;;  %v16059_v3 = vld [vmem:[#allocation7 + $0x10c] ss:$8 sps:$4 sm:$0xff]  }
 0x197   :  { %v16034_v6 = vld [vmem:[#allocation7 + $0x90] ss:$8 sps:$4 sm:$0xff]   ;;  %v16039_v8 = vld [vmem:[#allocation7 + $0xa4] ss:$8 sps:$4 sm:$0xff]   ;;  %v1100_v63 = vld [vmem:[#allocation6] sm:$0x7] }
 0x198   :  { %v17817_v4 = vsub.s32 1, %v17811_v57 }
 0x19b   :  { %v344_v9 = vpop.f32.mrb[12].mxu0  ;;  %v17737_v11 = vpop.f32.mrb[12].mxu1 }
 0x19c   :  { %v15449_v12 = vpop.f32.mrb[13].mxu0  ;;  %v15485_v14 = vpop.f32.mrb[13].mxu1 }
 0x19d   :  { %v347_v15 = vpop.f32.mrb[14].mxu0  ;;  %v17739_v16 = vpop.f32.mrb[14].mxu1  ;;  %v16040_v12 = vld [vmem:[#allocation7 + $0xb0] ss:$8 sps:$4 sm:$0xff]  }
 0x19e   :  { %v367_v17 = vpack.c.bf16 %v347_v15, %v344_v9  ;;  %v15450_v18 = vpop.f32.mrb[15].mxu0  ;;  %v952_v19 = vpack.c.bf16 %v17739_v16, %v17737_v11  ;;  %v15486_v20 = vpop.f32.mrb[15].mxu1  ;;  %v16037_v9 = vld [vmem:[#allocation7 + $0xa0] ss:$8 sps:$4 sm:$0xff]   ;;  %v728_v14 = vld [vmem:[#allocation7 + $0xd0] sm:$0xff]  ;;  %v1109_v16 = vrot.slane %v1100_v63, %v17817_v4 }
 0x19f   :  { %v16043_v15 = vld [vmem:[#allocation7 + $0xc0] ss:$8 sps:$4 sm:$0xff]   ;;  %v14162_v42 = vcombine.high %v728_v14, %v728_v14  ;;  %v14161_v46 = vcombine.low %v728_v14, %v728_v14  ;;  %v16056_v18 = vld [vmem:[#allocation7 + $0xfc] ss:$8 sps:$4 sm:$0xff]  }
 0x1a0   :  { %14130 = vmatmul.mubr.msk.bf16.vlgmr.msra.gmra.mrb[24].mxu0 %vm425_vm3, %v367_v17  ;;  %v16057_v20 = vld [vmem:[#allocation7 + $0x108] ss:$8 sps:$4 sm:$0xff]  }
 0x1a1   :  { %566 = vmatpush1.bf16.msra.mxu0 %v16020_v10  ;;  %484 = vmatprep.mubr.bf16.mxu0 %v17391_v34  ;;  %v16042_v10 = vld [vmem:[#allocation7 + $0xb4] ss:$8 sps:$4 sm:$0xff]   ;;  %v784_v17 = vsel %vm20677_vm2, %v14161_v46, 0 }
 0x1a2   :  { %567 = vmatprep.subr.bf16.mxu0 %v16025_v13  ;;  %v16045_v13 = vld [vmem:[#allocation7 + $0xc4] ss:$8 sps:$4 sm:$0xff]  }
 0x1a3   :  { %v352_v23 = vpop.f32.mrb[16].mxu0  ;;  %v17745_v25 = vpop.f32.mrb[16].mxu1 }
 0x1a4   :  { %v15453_v26 = vpop.f32.mrb[17].mxu0  ;;  %v15489_v29 = vpop.f32.mrb[17].mxu1 }
 0x1a5   :  { %v355_v30 = vpop.f32.mrb[18].mxu0  ;;  %568 = vmatpush1.bf16.msra.mxu0 %v16023_v21  ;;  %v17747_v31 = vpop.f32.mrb[18].mxu1 }
 0x1a6   :  { %v368_v32 = vpack.c.bf16 %v355_v30, %v352_v23  ;;  %v15454_v33 = vpop.f32.mrb[19].mxu0  ;;  %569 = vmatprep.subr.bf16.mxu0 %v16028_v22  ;;  %v953_v35 = vpack.c.bf16 %v17747_v31, %v17745_v25  ;;  %v15490_v36 = vpop.f32.mrb[19].mxu1 }
 0x1a7   :  { %v1155_v33 = vpop.permute.xlu1 %1154 }
 0x1a8   :  { %14131 = vmatmul.mubr.msk.bf16.gmra.mrb[28].mxu0 %vm425_vm3, %v368_v32 }
 0x1a9   :  { %570 = vmatpush1.bf16.msra.mxu0 %v16026_v24  ;;  %494 = vmatprep.mubr.bf16.mxu0 %v17391_v34 }
 0x1aa   :  { %571 = vmatprep.subr.bf16.mxu0 %v16031_v27 }
 0x1ab   :  { %v360_v40 = vpop.f32.mrb[20].mxu0  ;;  %v17753_v41 = vpop.f32.mrb[20].mxu1 }
 0x1ac   :  { %v15457_v44 = vpop.f32.mrb[21].mxu0  ;;  %v15493_v49 = vpop.f32.mrb[21].mxu1 }
 0x1ad   :  { %v363_v51 = vpop.f32.mrb[22].mxu0  ;;  %572 = vmatpush1.bf16.msra.mxu0 %v16029_v37  ;;  %v17756_v55 = vpop.f32.mrb[22].mxu1 }
 0x1ae   :  { %v369_v59 = vpack.c.bf16 %v363_v51, %v360_v40  ;;  %v15458_v61 = vpop.f32.mrb[23].mxu0  ;;  %14143 = vmatprep.subr.msk.bf16.mxu0 %vm20677_vm2, %v14142_v39  ;;  %v954_v1 = vpack.c.bf16 %v17756_v55, %v17753_v41  ;;  %v15494_v2 = vpop.f32.mrb[23].mxu1 }
 0x1b0   :  { %14132 = vmatmul.mubr.msk.bf16.gmra.mrb[32].mxu0 %vm425_vm3, %v369_v59 }
 0x1b1   :  { %574 = vmatpush1.bf16.msra.mxu0 %v560_v54  ;;  %597 = vmatprep.mubr.bf16.mxu0 %v17391_v34 }
 0x1b2   :  { %789 = vmatprep.subr.bf16.mxu0 %v16036_v45 }
 0x1b8   :  { %14144 = vmatmul.mubr.msk.bf16.vlgmr.msra.gmra.mrb[24].mxu0 %vm425_vm3, %v267_v48  ;;  %v16050_v48 = vld [vmem:[#allocation7 + $0xdc] ss:$8 sps:$4 sm:$0xff]  }
 0x1b9   :  { %790 = vmatpush1.bf16.msra.mxu0 %v16034_v6  ;;  %607 = vmatprep.mubr.bf16.mxu0 %v17391_v34 }
 0x1ba   :  { %791 = vmatprep.subr.bf16.mxu0 %v16039_v8 }
 0x1bd   :  { %792 = vmatpush1.bf16.msra.mxu0 %v16037_v9 }
 0x1be   :  { %793 = vmatprep.subr.bf16.mxu0 %v16042_v10  ;;  %v1160_v10 = vpop.permute.xlu1 %1159 }
 0x1c0   :  { %14145 = vmatmul.mubr.msk.bf16.gmra.mrb[28].mxu0 %vm425_vm3, %v268_v58  ;;  %v16051_v58 = vld [vmem:[#allocation7 + $0xe8] ss:$8 sps:$4 sm:$0xff]  }
 0x1c1   :  { %794 = vmatpush1.bf16.msra.mxu0 %v16040_v12  ;;  %617 = vmatprep.mubr.bf16.mxu0 %v17391_v34 }
 0x1c2   :  { %795 = vmatprep.subr.bf16.mxu0 %v16045_v13 }
 0x1c5   :  { %796 = vmatpush1.bf16.msra.mxu0 %v16043_v15 }
 0x1c6   :  { %14163 = vmatprep.subr.msk.bf16.mxu0 %vm20677_vm2, %v14162_v42 }
 0x1c8   :  { %14146 = vmatmul.mubr.msk.bf16.gmra.mrb[32].mxu0 %vm425_vm3, %v269_v5  ;;  %v964_v5 = vld [vmem:[#allocation7 + $0x118] sm:$0xff] }
 0x1c9   :  { %798 = vmatpush1.bf16.msra.mxu0 %v784_v17  ;;  %821 = vmatprep.mubr.bf16.mxu0 %v17391_v34  ;;  %v14182_v43 = vcombine.high %v964_v5, %v964_v5  ;;  %v14181_v47 = vcombine.low %v964_v5, %v964_v5 }
 0x1ca   :  { %1025 = vmatprep.subr.bf16.mxu0 %v16050_v48 }
 0x1d0   :  { %14164 = vmatmul.mubr.msk.bf16.vlgmr.msra.gmra.mrb[24].mxu0 %vm425_vm3, %v716_v50  ;;  %v1020_v50 = vsel %vm20677_vm2, %v14181_v47, 0 }
 0x1d1   :  { %1026 = vmatpush1.bf16.msra.mxu0 %v16048_v52  ;;  %831 = vmatprep.mubr.bf16.mxu0 %v17391_v34 }
 0x1d2   :  { %1027 = vmatprep.subr.bf16.mxu0 %v16053_v56 }
 0x1d5   :  { %1028 = vmatpush1.bf16.msra.mxu0 %v16051_v58 }
 0x1d6   :  { %1029 = vmatprep.subr.bf16.mxu0 %v16056_v18 }
 0x1d8   :  { %14165 = vmatmul.mubr.msk.bf16.gmra.mrb[28].mxu0 %vm425_vm3, %v717_v60  ;;  %v17814_v60 = vsub.s32 0, %v17811_v57 }
 0x1d9   :  { %1030 = vmatpush1.bf16.msra.mxu0 %v16054_v62  ;;  %841 = vmatprep.mubr.bf16.mxu0 %v17391_v34 }
 0x1da   :  { %1031 = vmatprep.subr.bf16.mxu0 %v16059_v3 }
 0x1dd   :  { %1032 = vmatpush1.bf16.msra.mxu0 %v16057_v20 }
 0x1de   :  { %14183 = vmatprep.subr.msk.bf16.mxu0 %vm20677_vm2, %v14182_v43 }
 0x1e0   :  { %14166 = vmatmul.mubr.msk.bf16.gmra.mrb[32].mxu0 %vm425_vm3, %v718_v7  ;;  %v1105_v7 = vrot.slane %v1100_v63, %v17814_v60 }
 0x1e1   :  { %1034 = vmatpush1.bf16.msra.mxu0 %v1020_v50  ;;  %1057 = vmatprep.mubr.bf16.mxu0 %v17391_v34 }
 0x1e8   :  { %14184 = vmatmul.mubr.msk.bf16.vlgmr.msra.gmra.mrb[24].mxu0 %vm425_vm3, %v952_v19  ;;  %v1145_v19 = vpop.permute.xlu0 %1144 }
 0x1e9   :  { %1067 = vmatprep.mubr.bf16.mxu0 %v17391_v34 }
 0x1ec   :  { %v1150_v29 = vpop.permute.xlu0 %1149 }
 0x1f0   :  { %14185 = vmatmul.mubr.msk.bf16.gmra.mrb[28].mxu0 %vm425_vm3, %v953_v35 }
 0x1f1   :  { %1077 = vmatprep.mubr.bf16.mxu0 %v17391_v34 }
 0x1f8   :  { %14186 = vmatmul.mubr.msk.bf16.gmra.mrb[32].mxu0 %vm425_vm3, %v954_v1 }
 0x2bb   :  { %v1059_v11 = vpop.f32.mrb[24].mxu0 }
 0x2bc   :  { %v1061_v21 = vpop.f32.mrb[25].mxu0  ;;  %v1112_v23 = vadd.f32 %v1105_v7, %v1059_v11 }
 0x2bd   :  { %v1063_v22 = vpop.f32.mrb[26].mxu0  ;;  %v1113_v26 = vadd.f32 %v1109_v16, %v1061_v21  ;;  %v1165_v21 = vpop.permute.xlu0 %1164 }
 0x2be   :  { %v1114_v24 = vadd.f32 %v1105_v7, %v1063_v22  ;;  %v1065_v25 = vpop.f32.mrb[27].mxu0  ;;  %v17823_v30 = vmax.f32 %v1112_v23, 0.0 }
 0x2bf   :  { %v1115_v28 = vadd.f32 %v1109_v16, %v1065_v25  ;;  %v17825_v31 = vmax.f32 %v1113_v26, 0.0 }
 0x2c0   :  { %v17821_v27 = vmax.f32 %v1114_v24, 0.0  ;;  %v1172_v41 = vmul.f32 %v1145_v19, %v17823_v30 }
 0x2c1   :  { %v17828_v38 = vmax.f32 %v1115_v28, 0.0  ;;  %v1173_v51 = vmul.f32 %v1145_v19, %v17825_v31 }
 0x2c2   :  { %v1174_v35 = vmul.f32 %v1150_v29, %v17821_v27  ;;  %v1213_v6 = vmul.f32 %v1172_v41, %v17823_v30 }
 0x2c3   :  { %v1069_v32 = vpop.f32.mrb[28].mxu0  ;;  %v1175_v2 = vmul.f32 %v1150_v29, %v17828_v38  ;;  %v1196_v15 = vsel %vm20672_vm4, %v1173_v51, 0.0  ;;  %v1214_v17 = vmul.f32 %v1173_v51, %v17825_v31 }
 0x2c4   :  { %v1116_v36 = vadd.f32 %v1105_v7, %v1069_v32  ;;  %v1071_v37 = vpop.f32.mrb[29].mxu0  ;;  %v1215_v55 = vmul.f32 %v1174_v35, %v17821_v27  ;;  %v1184_v12 = vadd.f32 %v1174_v35, %v1172_v41  ;;  %v1170_v32 = vpop.permute.xlu1 %1169 }
 0x2c5   :  { %v1117_v39 = vadd.f32 %v1109_v16, %v1071_v37  ;;  %v1073_v40 = vpop.f32.mrb[30].mxu0  ;;  %v1197_v52 = vsel %vm20672_vm4, %v1175_v2, 0.0  ;;  %v1216_v62 = vmul.f32 %v1175_v2, %v17828_v38 }
 0x2c6   :  { %v17831_v44 = vmax.f32 %v1116_v36, 0.0  ;;  %v1118_v45 = vadd.f32 %v1105_v7, %v1073_v40  ;;  %v1075_v49 = vpop.f32.mrb[31].mxu0  ;;  %v1225_v42 = vadd.f32 %v1215_v55, %v1213_v6  ;;  %v1198_v11 = vadd.f32 %v1197_v52, %v1196_v15 }
 0x2c7   :  { %v17834_v54 = vmax.f32 %v1117_v39, 0.0  ;;  %v1119_v1 = vadd.f32 %v1109_v16, %v1075_v49  ;;  %v1237_v28 = vsel %vm20672_vm4, %v1216_v62, 0.0  ;;  %v1236_v39 = vsel %vm20672_vm4, %v1214_v17, 0.0 }
 0x2c8   :  { %v1176_v59 = vmul.f32 %v1155_v33, %v17831_v44  ;;  %v17838_v61 = vmax.f32 %v1118_v45, 0.0  ;;  %v1238_v49 = vadd.f32 %v1237_v28, %v1236_v39 }
 0x2c9   :  { %v1177_v9 = vmul.f32 %v1155_v33, %v17834_v54  ;;  %v17846_v46 = vmax.f32 %v1119_v1, 0.0 }
 0x2ca   :  { %v1217_v8 = vmul.f32 %v1176_v59, %v17831_v44  ;;  %v1178_v13 = vmul.f32 %v1160_v10, %v17838_v61  ;;  %v1185_v56 = vadd.f32 %v1184_v12, %v1176_v59 }
 0x2cb   :  { %v1079_v14 = vpop.f32.mrb[32].mxu0  ;;  %v1199_v5 = vsel %vm20672_vm4, %v1177_v9, 0.0  ;;  %v1218_v19 = vmul.f32 %v1177_v9, %v17834_v54  ;;  %v1179_v22 = vmul.f32 %v1160_v10, %v17846_v46 }
 0x2cc   :  { %v1081_v48 = vpop.f32.mrb[33].mxu0  ;;  %v1120_v58 = vadd.f32 %v1105_v7, %v1079_v14  ;;  %v1226_v3 = vadd.f32 %v1225_v42, %v1217_v8  ;;  %v1219_v47 = vmul.f32 %v1178_v13, %v17838_v61  ;;  %v1186_v24 = vadd.f32 %v1185_v56, %v1178_v13 }
 0x2cd   :  { %v1083_v18 = vpop.f32.mrb[34].mxu0  ;;  %v1121_v20 = vadd.f32 %v1109_v16, %v1081_v48  ;;  %v1200_v29 = vadd.f32 %v1199_v5, %v1198_v11  ;;  %v1239_v40 = vsel %vm20672_vm4, %v1218_v19, 0.0  ;;  %v1201_v41 = vsel %vm20672_vm4, %v1179_v22, 0.0 }
 0x2ce   :  { %v1085_v43 = vpop.f32.mrb[35].mxu0  ;;  %v17853_v50 = vmax.f32 %v1120_v58, 0.0  ;;  %v1122_v53 = vadd.f32 %v1105_v7, %v1083_v18  ;;  %v1227_v33 = vadd.f32 %v1226_v3, %v1219_v47  ;;  %v1220_v45 = vmul.f32 %v1179_v22, %v17846_v46 }
 0x2cf   :  { %v1123_v63 = vadd.f32 %v1109_v16, %v1085_v43  ;;  %v17857_v23 = vmax.f32 %v1121_v20, 0.0  ;;  %v1240_v8 = vadd.f32 %v1239_v40, %v1238_v49  ;;  %v1202_v9 = vadd.f32 %v1201_v41, %v1200_v29 }
 0x2d0   :  { %v1180_v25 = vmul.f32 %v1165_v21, %v17853_v50  ;;  %v17860_v26 = vmax.f32 %v1122_v53, 0.0  ;;  %v1241_v13 = vsel %vm20672_vm4, %v1220_v45, 0.0 }
 0x2d1   :  { %v1181_v7 = vmul.f32 %v1165_v21, %v17857_v23  ;;  %v17864_v16 = vmax.f32 %v1123_v63, 0.0  ;;  %v1242_v56 = vadd.f32 %v1241_v13, %v1240_v8 }
 0x2d2   :  { %v1187_v35 = vadd.f32 %v1186_v24, %v1180_v25  ;;  %v1221_v36 = vmul.f32 %v1180_v25, %v17853_v50  ;;  %v1182_v37 = vmul.f32 %v1170_v32, %v17860_v26 }
 0x2d3   :  { %v1203_v1 = vsel %vm20672_vm4, %v1181_v7, 0.0  ;;  %v1222_v2 = vmul.f32 %v1181_v7, %v17857_v23  ;;  %v1183_v6 = vmul.f32 %v1170_v32, %v17864_v16 }
 0x2d4   :  { %v1228_v51 = vadd.f32 %v1227_v33, %v1221_v36  ;;  %v1188_v55 = vadd.f32 %v1187_v35, %v1182_v37  ;;  %v1223_v59 = vmul.f32 %v1182_v37, %v17860_v26  ;;  %v1204_v14 = vadd.f32 %v1203_v1, %v1202_v9 }
 0x2d5   :  { %v1243_v48 = vsel %vm20672_vm4, %v1222_v2, 0.0  ;;  %v1205_v17 = vsel %vm20672_vm4, %v1183_v6, 0.0  ;;  %v1224_v52 = vmul.f32 %v1183_v6, %v17864_v16 }
 0x2d6   :  { %v1189_v10 = vrot.slane %v1188_v55, 4  ;;  %v1229_v12 = vadd.f32 %v1228_v51, %v1223_v59  ;;  %v1244_v62 = vadd.f32 %v1243_v48, %v1242_v56  ;;  %v1206_v20 = vadd.f32 %v1205_v17, %v1204_v14 }
 0x2d7   :  { %v1245_v43 = vsel %vm20672_vm4, %v1224_v52, 0.0 }
 0x2d8   :  { %v1190_v15 = vadd.f32 %v1189_v10, %v1188_v55  ;;  %v1230_v42 = vrot.slane %v1229_v12, 4  ;;  %v1207_v19 = vrot.slane %v1206_v20, 4  ;;  %v1246_v21 = vadd.f32 %v1245_v43, %v1244_v62 }
 0x2da   :  { %v1191_v58 = vrot.slane %v1190_v15, 2  ;;  %v1231_v18 = vadd.f32 %v1230_v42, %v1229_v12  ;;  %v1208_v24 = vadd.f32 %v1207_v19, %v1206_v20  ;;  %v1247_v25 = vrot.slane %v1246_v21, 4 }
 0x2dc   :  { %v1192_v3 = vadd.f32 %v1191_v58, %v1190_v15  ;;  %v1232_v5 = vrot.slane %v1231_v18, 2  ;;  %v1209_v28 = vrot.slane %v1208_v24, 2  ;;  %v1248_v29 = vadd.f32 %v1247_v25, %v1246_v21 }
 0x2de   :  { %v1193_v47 = vrot.slane %v1192_v3, 1  ;;  %v1233_v53 = vadd.f32 %v1232_v5, %v1231_v18  ;;  %v1249_v32 = vrot.slane %v1248_v29, 2  ;;  %v1210_v7 = vadd.f32 %v1209_v28, %v1208_v24 }
 0x2e0   :  { %v1194_v63 = vadd.f32 %v1193_v47, %v1192_v3  ;;  %v1234_v11 = vrot.slane %v1233_v53, 1  ;;  %v1211_v33 = vrot.slane %v1210_v7, 1  ;;  %v1250_v35 = vadd.f32 %v1249_v32, %v1248_v29 }
 0x2e2   :  { %1296 = vrot.lane.b32.xlu1 %v1194_v63, %s17378_s25  ;;  %1254 = vrot.lane.b32.xlu0 %v1194_v63, %s20687_s0  ;;  %v1235_v22 = vadd.f32 %v1234_v11, %v1233_v53  ;;  %v1212_v36 = vadd.f32 %v1211_v33, %v1210_v7  ;;  %v1251_v37 = vrot.slane %v1250_v35, 1 }
 0x2e4   :  { %v1252_v39 = vadd.f32 %v1251_v37, %v1250_v35 }
 0x2e6   :  { %1259 = vrot.lane.b32.xlu1 %v1235_v22, %s20687_s0  ;;  %1263 = vrot.lane.b32.xlu0 %v1194_v63, %s17393_s3 }
 0x2ea   :  { %1267 = vrot.lane.b32.xlu1 %v1235_v22, %s17393_s3  ;;  %1271 = vrot.lane.b32.xlu0 %v1194_v63, %s17394_s28 }
 0x2ee   :  { %1275 = vrot.lane.b32.xlu1 %v1235_v22, %s17394_s28  ;;  %1279 = vrot.lane.b32.xlu0 %v1194_v63, %s17384_s1 }
 0x2f2   :  { %1283 = vrot.lane.b32.xlu1 %v1235_v22, %s17384_s1  ;;  %1287 = vrot.lane.b32.xlu0 %v1194_v63, %s20685_s29 }
 0x2f6   :  { %1291 = vrot.lane.b32.xlu1 %v1235_v22, %s20685_s29  ;;  %1298 = vrot.lane.b32.xlu0 %v1212_v36, %s17378_s25 }
 0x2fa   :  { %1307 = vrot.lane.b32.xlu1 %v1252_v39, %s17378_s25  ;;  %1305 = vrot.lane.b32.xlu0 %v1235_v22, %s17378_s25 }
 0x2fe   :  { %1316 = vrot.lane.b32.xlu1 %v1252_v39, %s20683_s22  ;;  %1312 = vrot.lane.b32.xlu0 %v1212_v36, %s20683_s22 }
 0x302   :  { %1324 = vrot.lane.b32.xlu1 %v1252_v39, %s17397_s11  ;;  %1320 = vrot.lane.b32.xlu0 %v1212_v36, %s17397_s11 }
 0x306   :  { %1332 = vrot.lane.b32.xlu1 %v1252_v39, %s20681_s30  ;;  %1328 = vrot.lane.b32.xlu0 %v1212_v36, %s20681_s30 }
 0x30a   :  { %1340 = vrot.lane.b32.xlu1 %v1252_v39, %s17399_s9  ;;  %1336 = vrot.lane.b32.xlu0 %v1212_v36, %s17399_s9 }
 0x354   :  { %v1297_v40 = vpop.permute.xlu1 %1296  ;;  %v1255_v41 = vpop.permute.xlu0 %1254 }
 0x355   :  { %v1257_v12 = vadd.f32 %v1255_v41, %v1194_v63 }
 0x358   :  { %v1260_v45 = vpop.permute.xlu1 %1259  ;;  %v1264_v49 = vpop.permute.xlu0 %1263 }
 0x359   :  { %v1262_v10 = vadd.f32 %v1260_v45, %v1235_v22  ;;  %v1266_v42 = vadd.f32 %v1264_v49, %v1257_v12  ;;  %v1349_v49 = vld [vmem:[%s20654_s4] sm:$0x1]  ;;  %v3125_v12 = vld [vmem:[#allocation2 + $0x48] sm:$0xff] }
 0x35c   :  { %v1268_v51 = vpop.permute.xlu1 %1267  ;;  %v1272_v55 = vpop.permute.xlu0 %1271 }
 0x35d   :  { %v1270_v13 = vadd.f32 %v1268_v51, %v1262_v10  ;;  %v1274_v17 = vadd.f32 %v1272_v55, %v1266_v42  ;;  %v3122_v10 = vld [vmem:[#allocation2 + $0x30] sm:$0xff]  ;;  %v16068_v42 = vld [vmem:[#allocation9 + $0x150] ss:$12 sps:$4 sm:$0xff]  }
 0x360   :  { %v1276_v59 = vpop.permute.xlu1 %1275  ;;  %v1280_v1 = vpop.permute.xlu0 %1279 }
 0x361   :  { %v1278_v48 = vadd.f32 %v1276_v59, %v1270_v13  ;;  %v1282_v62 = vadd.f32 %v1280_v1, %v1274_v17  ;;  %v3124_v13 = vld [vmem:[#allocation2 + $0x40] sm:$0xff]  ;;  %v16074_v17 = vld [vmem:[#allocation9 + $0x16c] ss:$12 sps:$4 sm:$0xff]  }
 0x364   :  { %v1284_v2 = vpop.permute.xlu1 %1283  ;;  %v1288_v6 = vpop.permute.xlu0 %1287 }
 0x365   :  { %v1286_v52 = vadd.f32 %v1284_v2, %v1278_v48  ;;  %v1290_v20 = vadd.f32 %v1288_v6, %v1282_v62  ;;  %v1353_v2 = vld [vmem:[%s20655_s5] sm:$0x1]  ;;  %v16070_v48 = vld [vmem:[#allocation9 + $0x154] ss:$12 sps:$4 sm:$0xff]   ;;  %v16080_v62 = vld [vmem:[#allocation9 + $0x198] ss:$12 sps:$4 sm:$0xff]  }
 0x366   :  { %2054 = vmatprep.subr.bf16.mxu0 %v16070_v48 }
 0x367   :  { %2055 = vmatpush1.bf16.msra.mxu0 %v16068_v42 }
 0x368   :  { %v1292_v8 = vpop.permute.xlu1 %1291  ;;  %v1299_v9 = vpop.permute.xlu0 %1298  ;;  %2056 = vmatprep.subr.bf16.mxu0 %v16074_v17 }
 0x369   :  { %v1294_v3 = vadd.f32 %v1292_v8, %v1286_v52  ;;  %v1301_v5 = vsel %vm1300_vm5, %v1297_v40, %v1299_v9  ;;  %v3123_v9 = vld [vmem:[#allocation2 + $0x38] sm:$0xff] }
 0x36a   :  { %v1303_v63 = vadd.f32 %v1301_v5, %v1290_v20  ;;  %v16072_v52 = vld [vmem:[#allocation9 + $0x168] ss:$12 sps:$4 sm:$0xff]   ;;  %v16084_v5 = vld [vmem:[#allocation9 + $0x1b0] ss:$12 sps:$4 sm:$0xff]   ;;  %v16090_v20 = vld [vmem:[#allocation9 + $0x1cc] ss:$12 sps:$4 sm:$0xff]  }
 0x36b   :  { %2057 = vmatpush1.bf16.msra.mxu0 %v16072_v52 }
 0x36c   :  { %v1308_v14 = vpop.permute.xlu1 %1307  ;;  %v1306_v15 = vpop.permute.xlu0 %1305 }
 0x36d   :  { %v1309_v56 = vsel %vm1300_vm5, %v1306_v15, %v1308_v14  ;;  %v3127_v14 = vld [vmem:[#allocation2 + $0x58] sm:$0xff]  ;;  %v3126_v15 = vld [vmem:[#allocation2 + $0x50] sm:$0xff] }
 0x36e   :  { %v1311_v43 = vadd.f32 %v1309_v56, %v1294_v3  ;;  %v16078_v56 = vld [vmem:[#allocation9 + $0x184] ss:$12 sps:$4 sm:$0xff]   ;;  %v16086_v3 = vld [vmem:[#allocation9 + $0x1b4] ss:$12 sps:$4 sm:$0xff]  }
 0x36f   :  { %2058 = vmatprep.subr.bf16.mxu0 %v16078_v56 }
 0x370   :  { %v1317_v58 = vpop.permute.xlu1 %1316  ;;  %v1313_v18 = vpop.permute.xlu0 %1312 }
 0x371   :  { %v1319_v11 = vadd.f32 %v1317_v58, %v1311_v43  ;;  %v1315_v19 = vadd.f32 %v1313_v18, %v1303_v63  ;;  %v16076_v58 = vld [vmem:[#allocation9 + $0x180] ss:$12 sps:$4 sm:$0xff]   ;;  %v16082_v18 = vld [vmem:[#allocation9 + $0x19c] ss:$12 sps:$4 sm:$0xff]  }
 0x372   :  { %2059 = vmatpush1.bf16.msra.mxu0 %v16076_v58  ;;  %v16088_v43 = vld [vmem:[#allocation9 + $0x1c8] ss:$12 sps:$4 sm:$0xff]  }
 0x373   :  { %2060 = vmatprep.subr.bf16.mxu0 %v16082_v18 }
 0x374   :  { %v1325_v47 = vpop.permute.xlu1 %1324  ;;  %v1321_v53 = vpop.permute.xlu0 %1320 }
 0x375   :  { %v1327_v24 = vadd.f32 %v1325_v47, %v1319_v11  ;;  %v1323_v25 = vadd.f32 %v1321_v53, %v1315_v19  ;;  %v16094_v47 = vld [vmem:[#allocation9 + $0x1e4] ss:$12 sps:$4 sm:$0xff]   ;;  %v16092_v53 = vld [vmem:[#allocation9 + $0x1e0] ss:$12 sps:$4 sm:$0xff]  }
 0x376   :  { %2061 = vmatpush1.bf16.msra.mxu0 %v16080_v62 }
 0x377   :  { %2062 = vmatprep.subr.bf16.mxu0 %v16086_v3 }
 0x378   :  { %v1333_v21 = vpop.permute.xlu1 %1332  ;;  %v1329_v22 = vpop.permute.xlu0 %1328 }
 0x379   :  { %v1335_v28 = vadd.f32 %v1333_v21, %v1327_v24  ;;  %v1331_v29 = vadd.f32 %v1329_v22, %v1323_v25 }
 0x37a   :  { %2063 = vmatpush1.bf16.msra.mxu0 %v16084_v5 }
 0x37b   :  { %2064 = vmatprep.subr.bf16.mxu0 %v16090_v20 }
 0x37c   :  { %v1341_v32 = vpop.permute.xlu1 %1340  ;;  %v1337_v7 = vpop.permute.xlu0 %1336 }
 0x37d   :  { %v1343_v33 = vadd.f32 %v1341_v32, %v1335_v28  ;;  %v1339_v35 = vadd.f32 %v1337_v7, %v1331_v29 }
 0x37e   :  { %2065 = vmatpush1.bf16.msra.mxu0 %v16088_v43 }
 0x37f   :  { %v1344_v36 = vmul.f32 0.004132231, %v1339_v35  ;;  %v1345_v37 = vmul.f32 0.004132231, %v1343_v33  ;;  %2066 = vmatprep.subr.bf16.mxu0 %v16094_v47 }
 0x381   :  { %v1346_v39 = vmul.f32 %v1344_v36, %v1344_v36 }
 0x382   :  { %2067 = vmatpush1.bf16.msra.mxu0 %v16092_v53 }
 0x383   :  { %v1347_v40 = vsub.f32 %v1345_v37, %v1346_v39 }
 0x385   :  { %v1348_v41 = vmax.f32 %v1347_v40, 0.0 }
 0x387   :  { %v1350_v45 = vadd.f32 1e-05, %v1348_v41 }
 0x389   :  { %17150 = vrsqrt.f32 %v1350_v45 }
 0x393   :  { %v17151_v51 = vpop.eup %17150 }
 0x394   :  { %v17908_v55 = vmul.f32 %v17151_v51, %v1349_v49 }
 0x396   :  { %v1360_v59 = vrot.slane %v17908_v55, %v17814_v60  ;;  %v1354_v1 = vmul.f32 %v17908_v55, %v1344_v36 }
 0x398   :  { %1364 = vrot.lane.b32.xlu1 %v1360_v59, %s17400_s12  ;;  %1361 = vrot.lane.b32.xlu0 %v1360_v59, %s20679_s26  ;;  %v17924_v6 = vsub.f32 %v1353_v2, %v1354_v1 }
 0x39a   :  { %v1414_v8 = vrot.slane %v17924_v6, %v17814_v60 }
 0x39c   :  { %1379 = vrot.lane.b32.xlu1 %v1360_v59, %s20675_s6  ;;  %1376 = vrot.lane.b32.xlu0 %v1360_v59, %s17402_s2 }
 0x3a0   :  { %1382 = vrot.lane.b32.xlu1 %v1360_v59, %s17403_s16  ;;  %1367 = vrot.lane.b32.xlu0 %v1360_v59, %s17404_s17 }
 0x3a4   :  { %1370 = vrot.lane.b32.xlu1 %v1360_v59, %s17405_s15  ;;  %1385 = vrot.lane.b32.xlu0 %v1360_v59, %s20673_s8 }
 0x3a8   :  { %1388 = vrot.lane.b32.xlu1 %v1360_v59, %s17407_s19  ;;  %1373 = vrot.lane.b32.xlu0 %v1360_v59, %s20668_s20 }
 0x3ac   :  { %1418 = vrot.lane.b32.xlu1 %v1414_v8, %s17400_s12  ;;  %1415 = vrot.lane.b32.xlu0 %v1414_v8, %s20679_s26 }
 0x3b0   :  { %1433 = vrot.lane.b32.xlu1 %v1414_v8, %s20675_s6  ;;  %1430 = vrot.lane.b32.xlu0 %v1414_v8, %s17402_s2 }
 0x3b4   :  { %1436 = vrot.lane.b32.xlu1 %v1414_v8, %s17403_s16  ;;  %1421 = vrot.lane.b32.xlu0 %v1414_v8, %s17404_s17 }
 0x3b8   :  { %1439 = vrot.lane.b32.xlu1 %v1414_v8, %s20673_s8  ;;  %1424 = vrot.lane.b32.xlu0 %v1414_v8, %s17405_s15 }
 0x3bc   :  { %1442 = vrot.lane.b32.xlu1 %v1414_v8, %s17407_s19  ;;  %1427 = vrot.lane.b32.xlu0 %v1414_v8, %s20668_s20  ;;  %s20689_s20 = smov 24  }
 0x3c0   :  { %3135 = vperm.xlu1 %15993, %v3123_v9   ;;  %3130 = vperm.xlu0 %15992, %v3122_v10  }
 0x3c4   :  { %3145 = vperm.xlu1 %15993, %v3125_v12   ;;  %3140 = vperm.xlu0 %15992, %v3124_v13  }
 0x3c8   :  { %3155 = vperm.xlu1 %15993, %v3127_v14   ;;  %3150 = vperm.xlu0 %15992, %v3126_v15  }
 0x40a   :  { %v1365_v63 = vpop.permute.xlu1 %1364  ;;  %v1362_v11 = vpop.permute.xlu0 %1361 }
 0x40b   :  { %v1392_v35 = vsel %vm20671_vm6, %v17908_v55, %v1362_v11 }
 0x40c   :  { %v1394_v39 = vsel %vm1393_vm7, %v1392_v35, %v1365_v63 }
 0x40e   :  { %v1380_v19 = vpop.permute.xlu1 %1379  ;;  %v1377_v21 = vpop.permute.xlu0 %1376 }
 0x40f   :  { %v1404_v40 = vsel %vm20670_vm8, %v1377_v21, %v1380_v19 }
 0x412   :  { %v1383_v22 = vpop.permute.xlu1 %1382  ;;  %v1368_v24 = vpop.permute.xlu0 %1367 }
 0x413   :  { %v1396_v41 = vsel %vm1395_vm9, %v1394_v39, %v1368_v24  ;;  %v1406_v45 = vsel %vm1405_vm10, %v1404_v40, %v1383_v22 }
 0x416   :  { %v1371_v25 = vpop.permute.xlu1 %1370  ;;  %v1386_v28 = vpop.permute.xlu0 %1385 }
 0x417   :  { %v1398_v49 = vsel %vm1397_vm11, %v1396_v41, %v1371_v25  ;;  %v1408_v59 = vsel %vm1407_vm12, %v1406_v45, %v1386_v28  ;;  %v16062_v41 = vld [vmem:[#allocation4 + $0x60] sm:$0xff]   ;;  %v16065_v45 = vld [vmem:[#allocation4 + $0x78] sm:$0xff]  }
 0x41a   :  { %v1389_v29 = vpop.permute.xlu1 %1388  ;;  %v1374_v32 = vpop.permute.xlu0 %1373 }
 0x41b   :  { %v1400_v1 = vsel %vm20667_vm13, %v1398_v49, %v1374_v32  ;;  %v1409_v2 = vsel %vm425_vm3, %v1408_v59, %v1389_v29  ;;  %v16071_v49 = vld [vmem:[#allocation9 + $0x158] ss:$12 sps:$4 sm:$0xff]   ;;  %v16079_v59 = vld [vmem:[#allocation9 + $0x188] ss:$12 sps:$4 sm:$0xff]  }
 0x41c   :  { %v1402_v9 = vsel %vm1401_vm14, %v1400_v1, %v1377_v21  ;;  %v1462_v13 = vrot.slane %v1409_v2, %v17814_v60  ;;  %v16083_v1 = vld [vmem:[#allocation9 + $0x1a0] ss:$12 sps:$4 sm:$0xff]   ;;  %v16067_v2 = vld [vmem:[#allocation4 + $0x88] sm:$0xff]  }
 0x41d   :  { %v1458_v42 = vrot.slane %v1402_v9, %v17814_v60  ;;  %v16091_v9 = vld [vmem:[#allocation9 + $0x1d0] ss:$12 sps:$4 sm:$0xff]  }
 0x41e   :  { %v1419_v7 = vpop.permute.xlu1 %1418  ;;  %v1416_v33 = vpop.permute.xlu0 %1415  ;;  %v1464_v3 = vmul.f32 %v1462_v13, %v17825_v31  ;;  %v1466_v5 = vmul.f32 %v1462_v13, %v17828_v38  ;;  %v1468_v47 = vmul.f32 %v1462_v13, %v17834_v54  ;;  %v1470_v53 = vmul.f32 %v1462_v13, %v17846_v46 }
 0x41f   :  { %v1445_v8 = vsel %vm20671_vm6, %v17924_v6, %v1416_v33  ;;  %v1463_v11 = vmul.f32 %v1458_v42, %v17823_v30  ;;  %v1465_v19 = vmul.f32 %v1458_v42, %v17821_v27  ;;  %v1467_v28 = vmul.f32 %v1458_v42, %v17831_v44 }
 0x420   :  { %v1446_v15 = vsel %vm1393_vm7, %v1445_v8, %v1419_v7  ;;  %v1469_v29 = vmul.f32 %v1458_v42, %v17838_v61  ;;  %v1472_v54 = vmul.f32 %v1462_v13, %v17857_v23  ;;  %v1474_v46 = vmul.f32 %v1462_v13, %v17864_v16  ;;  %v16087_v8 = vld [vmem:[#allocation9 + $0x1b8] ss:$12 sps:$4 sm:$0xff]  }
 0x421   :  { %v1471_v44 = vmul.f32 %v1458_v42, %v17853_v50  ;;  %v1473_v61 = vmul.f32 %v1458_v42, %v17860_v26  ;;  %v16063_v50 = vld [vmem:[#allocation4 + $0x68] sm:$0xff]   ;;  %v16064_v26 = vld [vmem:[#allocation4 + $0x70] sm:$0xff]   ;;  %vm20691_vm6 = vcmask 195584  }
 0x422   :  { %v1434_v36 = vpop.permute.xlu1 %1433  ;;  %v1431_v37 = vpop.permute.xlu0 %1430  ;;  %v16096_v13 = vld [vmem:[#allocation9 + $0x1f8] ss:$12 sps:$4 sm:$0xff]   ;;  %v16100_v42 = vld [vmem:[#allocation9 + $0x210] ss:$12 sps:$4 sm:$0xff]  }
 0x423   :  { %v1451_v14 = vsel %vm20670_vm8, %v1431_v37, %v1434_v36  ;;  %vm3404_vm8 = vcmask 916480  }
 0x426   :  { %v1437_v51 = vpop.permute.xlu1 %1436  ;;  %v1422_v55 = vpop.permute.xlu0 %1421 }
 0x427   :  { %v1452_v48 = vsel %vm1405_vm10, %v1451_v14, %v1437_v51  ;;  %v1447_v17 = vsel %vm1395_vm9, %v1446_v15, %v1422_v55  ;;  %v16075_v51 = vld [vmem:[#allocation9 + $0x170] ss:$12 sps:$4 sm:$0xff]   ;;  %v16099_v14 = vld [vmem:[#allocation9 + $0x200] ss:$12 sps:$4 sm:$0xff]  }
 0x428   :  { %v16066_v55 = vld [vmem:[#allocation4 + $0x80] sm:$0xff]  }
 0x429   :  { %v16102_v15 = vld [vmem:[#allocation9 + $0x214] ss:$12 sps:$4 sm:$0xff]  }
 0x42a   :  { %v1440_v10 = vpop.permute.xlu1 %1439  ;;  %v1425_v12 = vpop.permute.xlu0 %1424 }
 0x42b   :  { %v1453_v52 = vsel %vm1407_vm12, %v1452_v48, %v1440_v10  ;;  %v1448_v6 = vsel %vm1397_vm11, %v1447_v17, %v1425_v12  ;;  %v16095_v10 = vld [vmem:[#allocation9 + $0x1e8] ss:$12 sps:$4 sm:$0xff]   ;;  %v16103_v48 = vld [vmem:[#allocation9 + $0x218] ss:$12 sps:$4 sm:$0xff]  }
 0x42c   :  { %v16098_v12 = vld [vmem:[#allocation9 + $0x1fc] ss:$12 sps:$4 sm:$0xff]   ;;  %v16106_v17 = vld [vmem:[#allocation9 + $0x22c] ss:$12 sps:$4 sm:$0xff]  }
 0x42d   :  { %2068 = vmatprep.subr.bf16.mxu0 %v16098_v12  ;;  %v16131_v12 = vld [vmem:[#allocation9 + $0x20] ss:$12 sps:$4 sm:$0xff]  }
 0x42e   :  { %v1443_v56 = vpop.permute.xlu1 %1442  ;;  %v1428_v58 = vpop.permute.xlu0 %1427  ;;  %2069 = vmatpush1.bf16.msra.mxu0 %v16096_v13 }
 0x42f   :  { %v1454_v18 = vsel %vm425_vm3, %v1453_v52, %v1443_v56  ;;  %v1449_v62 = vsel %vm20667_vm13, %v1448_v6, %v1428_v58  ;;  %2070 = vmatprep.subr.bf16.mxu0 %v16102_v15  ;;  %v16104_v52 = vld [vmem:[#allocation9 + $0x228] ss:$12 sps:$4 sm:$0xff]   ;;  %v16107_v6 = vld [vmem:[#allocation9 + $0x230] ss:$12 sps:$4 sm:$0xff]   ;;  %v16108_v58 = vld [vmem:[#allocation9 + $0x240] ss:$12 sps:$4 sm:$0xff]  }
 0x430   :  { %v1482_v20 = vrot.slane %v1454_v18, %v17814_v60  ;;  %v1450_v43 = vsel %vm1401_vm14, %v1449_v62, %v1431_v37  ;;  %v16110_v56 = vld [vmem:[#allocation9 + $0x244] ss:$12 sps:$4 sm:$0xff]   ;;  %v16111_v18 = vld [vmem:[#allocation9 + $0x248] ss:$12 sps:$4 sm:$0xff]   ;;  %vm3328_vm13 = vcmask 130048  }
 0x431   :  { %v1478_v63 = vrot.slane %v1450_v43, %v17814_v60  ;;  %v16114_v62 = vld [vmem:[#allocation9 + $0x25c] ss:$12 sps:$4 sm:$0xff]  }
 0x432   :  { %v1484_v21 = vadd.f32 %v1482_v20, %v1464_v3  ;;  %v1486_v22 = vadd.f32 %v1482_v20, %v1466_v5  ;;  %v1488_v24 = vadd.f32 %v1482_v20, %v1468_v47  ;;  %v1490_v31 = vadd.f32 %v1482_v20, %v1470_v53  ;;  %2071 = vmatpush1.bf16.msra.mxu0 %v16100_v42  ;;  %v16112_v3 = vld [vmem:[#allocation9 + $0x258] ss:$12 sps:$4 sm:$0xff]   ;;  %v16115_v5 = vld [vmem:[#allocation9 + $0x260] ss:$12 sps:$4 sm:$0xff]   ;;  %v16116_v43 = vld [vmem:[#allocation9 + $0x270] ss:$12 sps:$4 sm:$0xff]  }
 0x433   :  { %v1483_v25 = vadd.f32 %v1478_v63, %v1463_v11  ;;  %v1485_v38 = vadd.f32 %v1478_v63, %v1465_v19  ;;  %v1487_v30 = vadd.f32 %v1478_v63, %v1467_v28  ;;  %v1489_v27 = vadd.f32 %v1478_v63, %v1469_v29  ;;  %2072 = vmatprep.subr.bf16.mxu0 %v16106_v17  ;;  %v16119_v47 = vld [vmem:[#allocation9 + $0x278] ss:$12 sps:$4 sm:$0xff]   ;;  %v16123_v11 = vld [vmem:[#allocation9 + $0x290] ss:$12 sps:$4 sm:$0x3f]  }
 0x434   :  { %v17974_v32 = vpack.c.bf16 %v1486_v22, %v1484_v21  ;;  %v17981_v33 = vpack.c.bf16 %v1490_v31, %v1488_v24  ;;  %v1492_v35 = vadd.f32 %v1482_v20, %v1472_v54  ;;  %v1494_v36 = vadd.f32 %v1482_v20, %v1474_v46  ;;  %v16118_v20 = vld [vmem:[#allocation9 + $0x274] ss:$12 sps:$4 sm:$0xff]   ;;  %v16120_v53 = vld [vmem:[#allocation9 + $0x28c] ss:$12 sps:$4 sm:$0x3f]  }
 0x435   :  { %v17978_v7 = vpack.c.bf16 %v1485_v38, %v1483_v25  ;;  %v17987_v23 = vpack.c.bf16 %v1489_v27, %v1487_v30  ;;  %v1491_v16 = vadd.f32 %v1478_v63, %v1471_v44  ;;  %v1493_v37 = vadd.f32 %v1478_v63, %v1473_v61  ;;  %v16122_v63 = vld [vmem:[#allocation9 + $0x288] ss:$12 sps:$4 sm:$0x3f]   ;;  %v16126_v22 = vld [vmem:[#allocation9 + $0x4] ss:$12 sps:$4 sm:$0xff]  }
 0x436   :  { %1532 = vmatprep.subr.bf16.mxu1 %v17974_v32  ;;  %v17989_v39 = vpack.c.bf16 %v1494_v36, %v1492_v35  ;;  %2073 = vmatpush1.bf16.msra.mxu0 %v16104_v52  ;;  %v2046_v19 = vsel %vm20666_vm15, %v16122_v63, 0  ;;  %v2052_v21 = vsel %vm20666_vm15, %v16123_v11, 0  ;;  %v16132_v52 = vld [vmem:[#allocation9 + $0x30] ss:$12 sps:$4 sm:$0xff]   ;;  %v16140_v63 = vld [vmem:[#allocation9 + $0x60] ss:$12 sps:$4 sm:$0xff]  }
 0x437   :  { %1533 = vmatpush1.bf16.msra.mxu1 %v17978_v7  ;;  %v17993_v40 = vpack.c.bf16 %v1493_v37, %v1491_v16  ;;  %2074 = vmatprep.subr.bf16.mxu0 %v16110_v56  ;;  %v16138_v56 = vld [vmem:[#allocation9 + $0x4c] ss:$12 sps:$4 sm:$0xff]   ;;  %v16143_v11 = vld [vmem:[#allocation9 + $0x68] ss:$12 sps:$4 sm:$0xff]  }
 0x438   :  { %1534 = vmatprep.subr.bf16.mxu1 %v17981_v33 }
 0x43a   :  { %2075 = vmatpush1.bf16.msra.mxu0 %v16108_v58 }
 0x43b   :  { %1535 = vmatpush1.bf16.msra.mxu1 %v17987_v23  ;;  %2076 = vmatprep.subr.bf16.mxu0 %v16114_v62  ;;  %v16139_v62 = vld [vmem:[#allocation9 + $0x50] ss:$12 sps:$4 sm:$0xff]  }
 0x43c   :  { %1536 = vmatprep.subr.bf16.mxu1 %v17989_v39 }
 0x43e   :  { %2077 = vmatpush1.bf16.msra.mxu0 %v16112_v3 }
 0x43f   :  { %1537 = vmatpush1.bf16.msra.mxu1 %v17993_v40  ;;  %2078 = vmatprep.subr.bf16.mxu0 %v16118_v20 }
 0x440   :  { %1688 = vmatprep.subr.bf16.mxu1 %v17974_v32 }
 0x442   :  { %14190 = vmatmul.mubr.msk.bf16.vlgmr.msra.gmra.mrb[24].mxu1 %vm200_vm1, %v16062_v41  ;;  %2079 = vmatpush1.bf16.msra.mxu0 %v16116_v43 }
 0x443   :  { %1689 = vmatpush1.bf16.msra.mxu1 %v17978_v7  ;;  %1574 = vmatprep.mubr.bf16.mxu1 %v17391_v34 }
 0x444   :  { %1690 = vmatprep.subr.bf16.mxu1 %v17981_v33  ;;  %14241 = vmatprep.subr.msk.bf16.mxu0 %vm20666_vm15, %v16120_v53 }
 0x446   :  { %2081 = vmatpush1.bf16.msra.mxu0 %v2046_v19  ;;  %v16146_v19 = vld [vmem:[#allocation9 + $0x7c] ss:$12 sps:$4 sm:$0xff]  }
 0x447   :  { %1691 = vmatpush1.bf16.msra.mxu1 %v17987_v23  ;;  %2413 = vmatprep.subr.bf16.mxu0 %v16126_v22  ;;  %v16147_v22 = vld [vmem:[#allocation9 + $0x80] ss:$12 sps:$4 sm:$0xff]  }
 0x448   :  { %1692 = vmatprep.subr.bf16.mxu1 %v17989_v39 }
 0x44a   :  { %14191 = vmatmul.mubr.msk.bf16.gmra.mrb[28].mxu1 %vm200_vm1, %v16063_v50 }
 0x44b   :  { %1693 = vmatpush1.bf16.msra.mxu1 %v17993_v40  ;;  %1584 = vmatprep.mubr.bf16.mxu1 %v17391_v34 }
 0x44c   :  { %2117 = vmatprep.subr.bf16.mxu1 %v17391_v34 }
 0x452   :  { %14192 = vmatmul.mubr.msk.bf16.gmra.mrb[32].mxu1 %vm200_vm1, %v16064_v26 }
 0x453   :  { %1720 = vmatprep.mubr.bf16.mxu1 %v17391_v34 }
 0x45a   :  { %14196 = vmatmul.mubr.msk.bf16.vlgmr.msra.gmra.mrb[36].mxu1 %vm200_vm1, %v16065_v45 }
 0x45b   :  { %1730 = vmatprep.mubr.bf16.mxu1 %v17391_v34  ;;  %2118 = vmatpush1.bf16.msra.mxu1 %v16071_v49 }
 0x45c   :  { %2119 = vmatprep.subr.bf16.mxu1 %v17391_v34 }
 0x45f   :  { %2120 = vmatpush1.bf16.msra.mxu1 %v16075_v51 }
 0x460   :  { %2121 = vmatprep.subr.bf16.mxu1 %v17391_v34 }
 0x462   :  { %14197 = vmatmul.mubr.msk.bf16.gmra.mrb[40].mxu1 %vm200_vm1, %v16066_v55 }
 0x463   :  { %1740 = vmatprep.mubr.bf16.mxu1 %v17391_v34  ;;  %2122 = vmatpush1.bf16.msra.mxu1 %v16079_v59 }
 0x464   :  { %2123 = vmatprep.subr.bf16.mxu1 %v17391_v34 }
 0x467   :  { %2124 = vmatpush1.bf16.msra.mxu1 %v16083_v1  ;;  %v16124_v1 = vld [vmem:[#allocation9] ss:$12 sps:$4 sm:$0xff]  }
 0x468   :  { %2125 = vmatprep.subr.bf16.mxu1 %v17391_v34 }
 0x46a   :  { %14198 = vmatmul.mubr.msk.bf16.gmra.mrb[44].mxu1 %vm200_vm1, %v16067_v2  ;;  %v16127_v2 = vld [vmem:[#allocation9 + $0x8] ss:$12 sps:$4 sm:$0xff]  }
 0x46b   :  { %2126 = vmatpush1.bf16.msra.mxu1 %v16087_v8  ;;  %v16130_v8 = vld [vmem:[#allocation9 + $0x1c] ss:$12 sps:$4 sm:$0xff]  }
 0x46c   :  { %2127 = vmatprep.subr.bf16.mxu1 %v17391_v34 }
 0x46f   :  { %2128 = vmatpush1.bf16.msra.mxu1 %v16091_v9 }
 0x470   :  { %2129 = vmatprep.subr.bf16.mxu1 %v17391_v34 }
 0x473   :  { %2130 = vmatpush1.bf16.msra.mxu1 %v16095_v10  ;;  %v16128_v10 = vld [vmem:[#allocation9 + $0x18] ss:$12 sps:$4 sm:$0xff]  }
 0x474   :  { %2131 = vmatprep.subr.bf16.mxu1 %v17391_v34 }
 0x477   :  { %2132 = vmatpush1.bf16.msra.mxu1 %v16099_v14  ;;  %v16134_v14 = vld [vmem:[#allocation9 + $0x34] ss:$12 sps:$4 sm:$0xff]  }
 0x478   :  { %2133 = vmatprep.subr.bf16.mxu1 %v17391_v34 }
 0x47b   :  { %2134 = vmatpush1.bf16.msra.mxu1 %v16103_v48 }
 0x47c   :  { %2135 = vmatprep.subr.bf16.mxu1 %v17391_v34 }
 0x47f   :  { %2136 = vmatpush1.bf16.msra.mxu1 %v16107_v6  ;;  %v16135_v6 = vld [vmem:[#allocation9 + $0x38] ss:$12 sps:$4 sm:$0xff]  }
 0x480   :  { %2137 = vmatprep.subr.bf16.mxu1 %v17391_v34 }
 0x483   :  { %2138 = vmatpush1.bf16.msra.mxu1 %v16111_v18  ;;  %v16136_v18 = vld [vmem:[#allocation9 + $0x48] ss:$12 sps:$4 sm:$0xff]  }
 0x484   :  { %2139 = vmatprep.subr.bf16.mxu1 %v17391_v34 }
 0x487   :  { %2140 = vmatpush1.bf16.msra.mxu1 %v16115_v5  ;;  %v16142_v5 = vld [vmem:[#allocation9 + $0x64] ss:$12 sps:$4 sm:$0xff]  }
 0x488   :  { %2141 = vmatprep.subr.bf16.mxu1 %v17391_v34 }
 0x48b   :  { %2142 = vmatpush1.bf16.msra.mxu1 %v16119_v47 }
 0x48c   :  { %2143 = vmatprep.subr.bf16.mxu1 %v17391_v34 }
 0x48f   :  { %2144 = vmatpush1.bf16.msra.mxu1 %v2052_v21  ;;  %v16144_v21 = vld [vmem:[#allocation9 + $0x78] ss:$12 sps:$4 sm:$0xff]  }
 0x490   :  { %2476 = vmatprep.subr.bf16.mxu1 %v17391_v34 }
 0x515   :  { %v1566_v24 = vpop.f32.mrb[24].mxu1 }
 0x516   :  { %v1568_v31 = vpop.f32.mrb[25].mxu1 }
 0x517   :  { %v1570_v25 = vpop.f32.mrb[26].mxu1 }
 0x518   :  { %v18031_v38 = vpack.c.bf16 %v1570_v25, %v1566_v24  ;;  %v1572_v28 = vpop.f32.mrb[27].mxu1  ;;  %v16150_v24 = vld [vmem:[#allocation9 + $0x94] ss:$12 sps:$4 sm:$0xff]   ;;  %v16151_v25 = vld [vmem:[#allocation9 + $0x98] ss:$12 sps:$4 sm:$0xff]  }
 0x519   :  { %v18033_v29 = vpack.c.bf16 %v1572_v28, %v1568_v31  ;;  %v16148_v31 = vld [vmem:[#allocation9 + $0x90] ss:$12 sps:$4 sm:$0xff]   ;;  %v16154_v28 = vld [vmem:[#allocation9 + $0xac] ss:$12 sps:$4 sm:$0xff]  }
 0x51d   :  { %v1576_v54 = vpop.f32.mrb[28].mxu1 }
 0x51e   :  { %v1578_v46 = vpop.f32.mrb[29].mxu1 }
 0x51f   :  { %v1580_v30 = vpop.f32.mrb[30].mxu1 }
 0x520   :  { %v18035_v27 = vpack.c.bf16 %v1580_v30, %v1576_v54  ;;  %v1582_v35 = vpop.f32.mrb[31].mxu1  ;;  %v16152_v54 = vld [vmem:[#allocation9 + $0xa8] ss:$12 sps:$4 sm:$0xff]   ;;  %v16156_v30 = vld [vmem:[#allocation9 + $0xc0] ss:$12 sps:$4 sm:$0xff]  }
 0x521   :  { %v18037_v36 = vpack.c.bf16 %v1582_v35, %v1578_v46  ;;  %v16155_v46 = vld [vmem:[#allocation9 + $0xb0] ss:$12 sps:$4 sm:$0xff]   ;;  %v16159_v35 = vld [vmem:[#allocation9 + $0xc8] ss:$12 sps:$4 sm:$0xff]  }
 0x525   :  { %v1586_v44 = vpop.f32.mrb[32].mxu1 }
 0x526   :  { %v1588_v61 = vpop.f32.mrb[33].mxu1 }
 0x527   :  { %v1590_v16 = vpop.f32.mrb[34].mxu1 }
 0x528   :  { %v18039_v37 = vpack.c.bf16 %v1590_v16, %v1586_v44  ;;  %v1592_v41 = vpop.f32.mrb[35].mxu1  ;;  %v16162_v44 = vld [vmem:[#allocation9 + $0xdc] ss:$12 sps:$4 sm:$0xff]   ;;  %v16163_v16 = vld [vmem:[#allocation9 + $0xe0] ss:$12 sps:$4 sm:$0xff]  }
 0x529   :  { %v18041_v50 = vpack.c.bf16 %v1592_v41, %v1588_v61  ;;  %v16160_v61 = vld [vmem:[#allocation9 + $0xd8] ss:$12 sps:$4 sm:$0xff]   ;;  %v16166_v41 = vld [vmem:[#allocation9 + $0xf4] ss:$12 sps:$4 sm:$0xff]  }
 0x52d   :  { %v1722_v26 = vpop.f32.mrb[36].mxu1 }
 0x52e   :  { %v1724_v45 = vpop.f32.mrb[37].mxu1 }
 0x52f   :  { %v1726_v49 = vpop.f32.mrb[38].mxu1 }
 0x530   :  { %v1751_v51 = vpack.c.bf16 %v1726_v49, %v1722_v26  ;;  %v1728_v55 = vpop.f32.mrb[39].mxu1  ;;  %v16164_v26 = vld [vmem:[#allocation9 + $0xf0] ss:$12 sps:$4 sm:$0xff]   ;;  %v16170_v49 = vld [vmem:[#allocation9 + $0x10c] ss:$12 sps:$4 sm:$0xff]  }
 0x531   :  { %v1752_v59 = vpack.c.bf16 %v1728_v55, %v1724_v45  ;;  %v16167_v45 = vld [vmem:[#allocation9 + $0xf8] ss:$12 sps:$4 sm:$0xff]   ;;  %v16171_v55 = vld [vmem:[#allocation9 + $0x110] ss:$12 sps:$4 sm:$0xff]  }
 0x533   :  { %14242 = vmatprep.mubr.msk.bf16.mxu0 %vm20672_vm4, %v1752_v59  ;;  %14245 = vmatprep.mubr.msk.bf16.mxu1 %vm20672_vm4, %v1752_v59  ;;  %v16174_v59 = vld [vmem:[#allocation9 + $0x124] ss:$12 sps:$4 sm:$0xff]  }
 0x534   :  { %2087 = vmatmul.mubr.bf16.vlgmr.msra.gmra.mrb[36].mxu0 %v1751_v51  ;;  %2150 = vmatmul.mubr.bf16.vlgmr.msra.gmra.mrb[48].mxu1 %v1751_v51  ;;  %v16168_v51 = vld [vmem:[#allocation9 + $0x108] ss:$12 sps:$4 sm:$0xff]  }
 0x535   :  { %2414 = vmatpush1.bf16.msra.mxu0 %v16124_v1  ;;  %2477 = vmatpush1.bf16.msra.mxu1 %v16127_v2  ;;  %v1732_v9 = vpop.f32.mrb[40].mxu1  ;;  %v16172_v1 = vld [vmem:[#allocation9 + $0x120] ss:$12 sps:$4 sm:$0xff]   ;;  %v16175_v2 = vld [vmem:[#allocation9 + $0x128] ss:$12 sps:$4 sm:$0xff]  }
 0x536   :  { %v1734_v13 = vpop.f32.mrb[41].mxu1  ;;  %2415 = vmatprep.subr.bf16.mxu0 %v16130_v8  ;;  %2478 = vmatprep.subr.bf16.mxu1 %v17391_v34  ;;  %v16176_v8 = vld [vmem:[#allocation9 + $0x13c] ss:$12 sps:$4 sm:$0x3f]  }
 0x537   :  { %v1736_v15 = vpop.f32.mrb[42].mxu1 }
 0x538   :  { %v1753_v42 = vpack.c.bf16 %v1736_v15, %v1732_v9  ;;  %v1738_v48 = vpop.f32.mrb[43].mxu1  ;;  %v16178_v9 = vld [vmem:[#allocation9 + $0x138] ss:$12 sps:$4 sm:$0x3f]   ;;  %v16195_v15 = vld [vmem:[#allocation9 + $0x2e8] ss:$12 sps:$4 sm:$0xff]  }
 0x539   :  { %v1754_v17 = vpack.c.bf16 %v1738_v48, %v1734_v13  ;;  %2416 = vmatpush1.bf16.msra.mxu0 %v16128_v10  ;;  %2479 = vmatpush1.bf16.msra.mxu1 %v16131_v12  ;;  %v16179_v10 = vld [vmem:[#allocation9 + $0x140] ss:$12 sps:$4 sm:$0x3f]   ;;  %v2405_v12 = vsel %vm20666_vm15, %v16178_v9, 0  ;;  %v16198_v48 = vld [vmem:[#allocation9 + $0x2f0] ss:$12 sps:$4 sm:$0xff]  }
 0x53a   :  { %2417 = vmatprep.subr.bf16.mxu0 %v16134_v14  ;;  %2480 = vmatprep.subr.bf16.mxu1 %v17391_v34  ;;  %v2411_v13 = vsel %vm20666_vm15, %v16179_v10, 0  ;;  %v16191_v14 = vld [vmem:[#allocation9 + $0x2d0] ss:$12 sps:$4 sm:$0xff]  }
 0x53b   :  { %14243 = vmatprep.mubr.msk.bf16.mxu0 %vm20672_vm4, %v1754_v17  ;;  %14246 = vmatprep.mubr.msk.bf16.mxu1 %vm20672_vm4, %v1754_v17  ;;  %v16201_v17 = vld [vmem:[#allocation9 + $0x304] ss:$12 sps:$4 sm:$0xff]  }
 0x53c   :  { %2097 = vmatmul.mubr.bf16.gmra.mrb[40].mxu0 %v1753_v42  ;;  %2158 = vmatmul.mubr.bf16.gmra.mrb[52].mxu1 %v1753_v42  ;;  %v16197_v42 = vld [vmem:[#allocation9 + $0x2ec] ss:$12 sps:$4 sm:$0xff]  }
 0x53d   :  { %2418 = vmatpush1.bf16.msra.mxu0 %v16132_v52  ;;  %2481 = vmatpush1.bf16.msra.mxu1 %v16135_v6  ;;  %v1742_v58 = vpop.f32.mrb[44].mxu1  ;;  %v16202_v52 = vld [vmem:[#allocation9 + $0x308] ss:$12 sps:$4 sm:$0xff]   ;;  %v16199_v6 = vld [vmem:[#allocation9 + $0x300] ss:$12 sps:$4 sm:$0xff]  }
 0x53e   :  { %v1744_v3 = vpop.f32.mrb[45].mxu1  ;;  %2419 = vmatprep.subr.bf16.mxu0 %v16138_v56  ;;  %2482 = vmatprep.subr.bf16.mxu1 %v17391_v34  ;;  %v16205_v56 = vld [vmem:[#allocation9 + $0x31c] ss:$12 sps:$4 sm:$0xff]  }
 0x53f   :  { %v1746_v20 = vpop.f32.mrb[46].mxu1 }
 0x540   :  { %v1755_v43 = vpack.c.bf16 %v1746_v20, %v1742_v58  ;;  %v1748_v47 = vpop.f32.mrb[47].mxu1  ;;  %v16206_v58 = vld [vmem:[#allocation9 + $0x320] ss:$12 sps:$4 sm:$0xff]  }
 0x541   :  { %v1756_v53 = vpack.c.bf16 %v1748_v47, %v1744_v3  ;;  %2420 = vmatpush1.bf16.msra.mxu0 %v16136_v18  ;;  %2483 = vmatpush1.bf16.msra.mxu1 %v16139_v62  ;;  %v16203_v18 = vld [vmem:[#allocation9 + $0x318] ss:$12 sps:$4 sm:$0xff]   ;;  %v16209_v62 = vld [vmem:[#allocation9 + $0x334] ss:$12 sps:$4 sm:$0xff]   ;;  %v16207_v3 = vld [vmem:[#allocation9 + $0x330] ss:$12 sps:$4 sm:$0xff]  }
 0x542   :  { %2421 = vmatprep.subr.bf16.mxu0 %v16142_v5  ;;  %2484 = vmatprep.subr.bf16.mxu1 %v17391_v34  ;;  %v16210_v5 = vld [vmem:[#allocation9 + $0x338] ss:$12 sps:$4 sm:$0xff]   ;;  %v16214_v47 = vld [vmem:[#allocation9 + $0x350] ss:$12 sps:$4 sm:$0xff]  }
 0x543   :  { %14244 = vmatprep.mubr.msk.bf16.mxu0 %vm20672_vm4, %v1756_v53  ;;  %14247 = vmatprep.mubr.msk.bf16.mxu1 %vm20672_vm4, %v1756_v53  ;;  %v16213_v20 = vld [vmem:[#allocation9 + $0x34c] ss:$12 sps:$4 sm:$0xff]   ;;  %v16217_v53 = vld [vmem:[#allocation9 + $0x364] ss:$12 sps:$4 sm:$0xff]  }
 0x544   :  { %2107 = vmatmul.mubr.bf16.gmra.mrb[44].mxu0 %v1755_v43  ;;  %2166 = vmatmul.mubr.bf16.gmra.mrb[56].mxu1 %v1755_v43  ;;  %v16211_v43 = vld [vmem:[#allocation9 + $0x348] ss:$12 sps:$4 sm:$0xff]  }
 0x545   :  { %2422 = vmatpush1.bf16.msra.mxu0 %v16140_v63  ;;  %2485 = vmatpush1.bf16.msra.mxu1 %v16143_v11  ;;  %v16215_v63 = vld [vmem:[#allocation9 + $0x360] ss:$12 sps:$4 sm:$0xff]   ;;  %v16218_v11 = vld [vmem:[#allocation9 + $0x368] ss:$12 sps:$4 sm:$0xff]  }
 0x546   :  { %14291 = vmatprep.mubr.msk.bf16.mxu0 %vm20672_vm4, %v18033_v29  ;;  %14294 = vmatprep.mubr.msk.bf16.mxu1 %vm20672_vm4, %v18033_v29  ;;  %v16158_v29 = vld [vmem:[#allocation9 + $0xc4] ss:$12 sps:$4 sm:$0xff]  }
 0x547   :  { %2423 = vmatprep.subr.bf16.mxu0 %v16146_v19  ;;  %2486 = vmatprep.subr.bf16.mxu1 %v17391_v34  ;;  %v16221_v19 = vld [vmem:[#allocation9 + $0x37c] ss:$12 sps:$4 sm:$0xff]  }
 0x549   :  { %2424 = vmatpush1.bf16.msra.mxu0 %v16144_v21  ;;  %2487 = vmatpush1.bf16.msra.mxu1 %v16147_v22  ;;  %v16219_v21 = vld [vmem:[#allocation9 + $0x378] ss:$12 sps:$4 sm:$0xff]   ;;  %v16222_v22 = vld [vmem:[#allocation9 + $0x380] ss:$12 sps:$4 sm:$0xff]  }
 0x54a   :  { %2425 = vmatprep.subr.bf16.mxu0 %v16150_v24  ;;  %2488 = vmatprep.subr.bf16.mxu1 %v17391_v34  ;;  %v16225_v24 = vld [vmem:[#allocation9 + $0x394] ss:$12 sps:$4 sm:$0xff]  }
 0x54d   :  { %2426 = vmatpush1.bf16.msra.mxu0 %v16148_v31  ;;  %2489 = vmatpush1.bf16.msra.mxu1 %v16151_v25  ;;  %v16223_v31 = vld [vmem:[#allocation9 + $0x390] ss:$12 sps:$4 sm:$0xff]   ;;  %v16226_v25 = vld [vmem:[#allocation9 + $0x398] ss:$12 sps:$4 sm:$0xff]  }
 0x54e   :  { %2427 = vmatprep.subr.bf16.mxu0 %v16154_v28  ;;  %2490 = vmatprep.subr.bf16.mxu1 %v17391_v34  ;;  %v16229_v28 = vld [vmem:[#allocation9 + $0x3ac] ss:$12 sps:$4 sm:$0xff]  }
 0x551   :  { %2428 = vmatpush1.bf16.msra.mxu0 %v16152_v54  ;;  %2491 = vmatpush1.bf16.msra.mxu1 %v16155_v46  ;;  %v16227_v54 = vld [vmem:[#allocation9 + $0x3a8] ss:$12 sps:$4 sm:$0xff]   ;;  %v16230_v46 = vld [vmem:[#allocation9 + $0x3b0] ss:$12 sps:$4 sm:$0xff]  }
 0x552   :  { %2429 = vmatprep.subr.bf16.mxu0 %v16158_v29  ;;  %2492 = vmatprep.subr.bf16.mxu1 %v17391_v34  ;;  %v16233_v29 = vld [vmem:[#allocation9 + $0x3c4] ss:$12 sps:$4 sm:$0xff]  }
 0x555   :  { %2430 = vmatpush1.bf16.msra.mxu0 %v16156_v30  ;;  %2493 = vmatpush1.bf16.msra.mxu1 %v16159_v35  ;;  %v16231_v30 = vld [vmem:[#allocation9 + $0x3c0] ss:$12 sps:$4 sm:$0xff]   ;;  %v16234_v35 = vld [vmem:[#allocation9 + $0x3c8] ss:$12 sps:$4 sm:$0xff]  }
 0x556   :  { %2431 = vmatprep.subr.bf16.mxu0 %v16162_v44  ;;  %2494 = vmatprep.subr.bf16.mxu1 %v17391_v34  ;;  %v16235_v44 = vld [vmem:[#allocation9 + $0x3dc] ss:$12 sps:$4 sm:$0x3f]  }
 0x559   :  { %2432 = vmatpush1.bf16.msra.mxu0 %v16160_v61  ;;  %2495 = vmatpush1.bf16.msra.mxu1 %v16163_v16  ;;  %v16237_v61 = vld [vmem:[#allocation9 + $0x3d8] ss:$12 sps:$4 sm:$0x3f]   ;;  %v16238_v16 = vld [vmem:[#allocation9 + $0x3e0] ss:$12 sps:$4 sm:$0x3f]  }
 0x55a   :  { %2433 = vmatprep.subr.bf16.mxu0 %v16166_v41  ;;  %2496 = vmatprep.subr.bf16.mxu1 %v17391_v34  ;;  %v2921_v41 = vsel %vm20666_vm15, %v16237_v61, 0 }
 0x55d   :  { %2434 = vmatpush1.bf16.msra.mxu0 %v16164_v26  ;;  %2497 = vmatpush1.bf16.msra.mxu1 %v16167_v45  ;;  %v2927_v26 = vsel %vm20666_vm15, %v16238_v16, 0 }
 0x55e   :  { %2435 = vmatprep.subr.bf16.mxu0 %v16170_v49  ;;  %2498 = vmatprep.subr.bf16.mxu1 %v17391_v34 }
 0x561   :  { %2436 = vmatpush1.bf16.msra.mxu0 %v16168_v51  ;;  %2499 = vmatpush1.bf16.msra.mxu1 %v16171_v55 }
 0x562   :  { %2437 = vmatprep.subr.bf16.mxu0 %v16174_v59  ;;  %2500 = vmatprep.subr.bf16.mxu1 %v17391_v34 }
 0x565   :  { %2438 = vmatpush1.bf16.msra.mxu0 %v16172_v1  ;;  %2501 = vmatpush1.bf16.msra.mxu1 %v16175_v2 }
 0x566   :  { %14290 = vmatprep.subr.msk.bf16.mxu0 %vm20666_vm15, %v16176_v8  ;;  %2502 = vmatprep.subr.bf16.mxu1 %v17391_v34 }
 0x569   :  { %2440 = vmatpush1.bf16.msra.mxu0 %v2405_v12  ;;  %2503 = vmatpush1.bf16.msra.mxu1 %v2411_v13 }
 0x56a   :  { %2564 = vmatprep.subr.bf16.mxu0 %v17974_v32  ;;  %2992 = vmatprep.subr.bf16.mxu1 %v17391_v34  ;;  %v16180_v32 = vld [vmem:[#allocation4 + $0x90] sm:$0xff]  }
 0x56c   :  { %2446 = vmatmul.mubr.bf16.vlgmr.msra.gmra.mrb[36].mxu0 %v18031_v38  ;;  %2509 = vmatmul.mubr.bf16.vlgmr.msra.gmra.mrb[60].mxu1 %v18031_v38  ;;  %v16187_v38 = vld [vmem:[#allocation9 + $0x2b8] ss:$12 sps:$4 sm:$0xff]  }
 0x56d   :  { %14292 = vmatprep.mubr.msk.bf16.mxu0 %vm20672_vm4, %v18037_v36  ;;  %14295 = vmatprep.mubr.msk.bf16.mxu1 %vm20672_vm4, %v18037_v36  ;;  %v16190_v36 = vld [vmem:[#allocation9 + $0x2c0] ss:$12 sps:$4 sm:$0xff]  }
 0x56e   :  { %2565 = vmatpush1.bf16.msra.mxu0 %v17978_v7  ;;  %v16181_v7 = vld [vmem:[#allocation4 + $0x98] sm:$0xff]  }
 0x56f   :  { %2566 = vmatprep.subr.bf16.mxu0 %v17981_v33  ;;  %v16183_v33 = vld [vmem:[#allocation9 + $0x2a0] ss:$12 sps:$4 sm:$0xff]  }
 0x572   :  { %2567 = vmatpush1.bf16.msra.mxu0 %v17987_v23  ;;  %v16185_v23 = vld [vmem:[#allocation9 + $0x2a4] ss:$12 sps:$4 sm:$0xff]  }
 0x573   :  { %2568 = vmatprep.subr.bf16.mxu0 %v17989_v39  ;;  %v16186_v39 = vld [vmem:[#allocation9 + $0x2a8] ss:$12 sps:$4 sm:$0xff]  }
 0x574   :  { %2456 = vmatmul.mubr.bf16.gmra.mrb[40].mxu0 %v18035_v27  ;;  %2517 = vmatmul.mubr.bf16.gmra.mrb[64].mxu1 %v18035_v27  ;;  %v16189_v27 = vld [vmem:[#allocation9 + $0x2bc] ss:$12 sps:$4 sm:$0xff]  }
 0x575   :  { %14293 = vmatprep.mubr.msk.bf16.mxu0 %vm20672_vm4, %v18041_v50  ;;  %14296 = vmatprep.mubr.msk.bf16.mxu1 %vm20672_vm4, %v18041_v50  ;;  %v16194_v50 = vld [vmem:[#allocation9 + $0x2d8] ss:$12 sps:$4 sm:$0xff]  }
 0x576   :  { %2569 = vmatpush1.bf16.msra.mxu0 %v17993_v40  ;;  %2993 = vmatpush1.bf16.msra.mxu1 %v16186_v39  ;;  %v16182_v40 = vld [vmem:[#allocation4 + $0xa0] sm:$0xff]  }
 0x577   :  { %2929 = vmatprep.subr.bf16.mxu0 %v16185_v23  ;;  %2994 = vmatprep.subr.bf16.mxu1 %v17391_v34 }
 0x57a   :  { %2995 = vmatpush1.bf16.msra.mxu1 %v16190_v36 }
 0x57b   :  { %2996 = vmatprep.subr.bf16.mxu1 %v17391_v34 }
 0x57c   :  { %2466 = vmatmul.mubr.bf16.gmra.mrb[44].mxu0 %v18039_v37  ;;  %2525 = vmatmul.mubr.bf16.gmra.mrb[68].mxu1 %v18039_v37  ;;  %v16193_v37 = vld [vmem:[#allocation9 + $0x2d4] ss:$12 sps:$4 sm:$0xff]  }
 0x57d   :  { %2596 = vmatprep.mubr.bf16.mxu0 %v17391_v34 }
 0x57e   :  { %2997 = vmatpush1.bf16.msra.mxu1 %v16194_v50 }
 0x57f   :  { %2998 = vmatprep.subr.bf16.mxu1 %v17391_v34 }
 0x582   :  { %2999 = vmatpush1.bf16.msra.mxu1 %v16198_v48 }
 0x583   :  { %3000 = vmatprep.subr.bf16.mxu1 %v17391_v34 }
 0x584   :  { %14300 = vmatmul.mubr.msk.bf16.vlgmr.msra.gmra.mrb[48].mxu0 %vm200_vm1, %v16180_v32 }
 0x585   :  { %2606 = vmatprep.mubr.bf16.mxu0 %v17391_v34  ;;  %2930 = vmatpush1.bf16.msra.mxu0 %v16183_v33 }
 0x586   :  { %2931 = vmatprep.subr.bf16.mxu0 %v16189_v27  ;;  %3001 = vmatpush1.bf16.msra.mxu1 %v16202_v52 }
 0x587   :  { %3002 = vmatprep.subr.bf16.mxu1 %v17391_v34 }
 0x589   :  { %2932 = vmatpush1.bf16.msra.mxu0 %v16187_v38 }
 0x58a   :  { %2933 = vmatprep.subr.bf16.mxu0 %v16193_v37  ;;  %3003 = vmatpush1.bf16.msra.mxu1 %v16206_v58 }
 0x58b   :  { %3004 = vmatprep.subr.bf16.mxu1 %v17391_v34 }
 0x58c   :  { %14301 = vmatmul.mubr.msk.bf16.gmra.mrb[52].mxu0 %vm200_vm1, %v16181_v7 }
 0x58d   :  { %2616 = vmatprep.mubr.bf16.mxu0 %v17391_v34  ;;  %2934 = vmatpush1.bf16.msra.mxu0 %v16191_v14 }
 0x58e   :  { %2935 = vmatprep.subr.bf16.mxu0 %v16197_v42  ;;  %3005 = vmatpush1.bf16.msra.mxu1 %v16210_v5 }
 0x58f   :  { %3006 = vmatprep.subr.bf16.mxu1 %v17391_v34 }
 0x591   :  { %2936 = vmatpush1.bf16.msra.mxu0 %v16195_v15 }
 0x592   :  { %2937 = vmatprep.subr.bf16.mxu0 %v16201_v17  ;;  %3007 = vmatpush1.bf16.msra.mxu1 %v16214_v47 }
 0x593   :  { %3008 = vmatprep.subr.bf16.mxu1 %v17391_v34 }
 0x594   :  { %14302 = vmatmul.mubr.msk.bf16.gmra.mrb[56].mxu0 %vm200_vm1, %v16182_v40 }
 0x595   :  { %2938 = vmatpush1.bf16.msra.mxu0 %v16199_v6 }
 0x596   :  { %2939 = vmatprep.subr.bf16.mxu0 %v16205_v56  ;;  %3009 = vmatpush1.bf16.msra.mxu1 %v16218_v11 }
 0x597   :  { %3010 = vmatprep.subr.bf16.mxu1 %v17391_v34 }
 0x599   :  { %2940 = vmatpush1.bf16.msra.mxu0 %v16203_v18 }
 0x59a   :  { %2941 = vmatprep.subr.bf16.mxu0 %v16209_v62  ;;  %3011 = vmatpush1.bf16.msra.mxu1 %v16222_v22 }
 0x59b   :  { %3012 = vmatprep.subr.bf16.mxu1 %v17391_v34 }
 0x59d   :  { %2942 = vmatpush1.bf16.msra.mxu0 %v16207_v3 }
 0x59e   :  { %2943 = vmatprep.subr.bf16.mxu0 %v16213_v20  ;;  %3013 = vmatpush1.bf16.msra.mxu1 %v16226_v25 }
 0x59f   :  { %3014 = vmatprep.subr.bf16.mxu1 %v17391_v34 }
 0x5a1   :  { %2944 = vmatpush1.bf16.msra.mxu0 %v16211_v43 }
 0x5a2   :  { %2945 = vmatprep.subr.bf16.mxu0 %v16217_v53  ;;  %3015 = vmatpush1.bf16.msra.mxu1 %v16230_v46 }
 0x5a3   :  { %3016 = vmatprep.subr.bf16.mxu1 %v17391_v34 }
 0x5a5   :  { %2946 = vmatpush1.bf16.msra.mxu0 %v16215_v63 }
 0x5a6   :  { %2947 = vmatprep.subr.bf16.mxu0 %v16221_v19  ;;  %3017 = vmatpush1.bf16.msra.mxu1 %v16234_v35 }
 0x5a7   :  { %3018 = vmatprep.subr.bf16.mxu1 %v17391_v34 }
 0x5a9   :  { %2948 = vmatpush1.bf16.msra.mxu0 %v16219_v21 }
 0x5aa   :  { %2949 = vmatprep.subr.bf16.mxu0 %v16225_v24  ;;  %3019 = vmatpush1.bf16.msra.mxu1 %v2927_v26 }
 0x5ad   :  { %2950 = vmatpush1.bf16.msra.mxu0 %v16223_v31 }
 0x5ae   :  { %2951 = vmatprep.subr.bf16.mxu0 %v16229_v28  ;;  %v3068_v28 = vld [vmem:[#allocation6 + $0x3] sm:$0x7] }
 0x5af   :  { %v18132_v46 = vrot.slane %v3068_v28, %v17814_v60  ;;  %v18135_v35 = vrot.slane %v3068_v28, %v17817_v4 }
 0x5b1   :  { %2952 = vmatpush1.bf16.msra.mxu0 %v16227_v54  ;;  %v3080_v54 = vsub.s32 2, %v17811_v57 }
 0x5b2   :  { %2953 = vmatprep.subr.bf16.mxu0 %v16233_v29 }
 0x5b3   :  { %v18139_v61 = vrot.slane %v3068_v28, %v3080_v54 }
 0x5b5   :  { %2954 = vmatpush1.bf16.msra.mxu0 %v16231_v30 }
 0x5b6   :  { %14345 = vmatprep.subr.msk.bf16.mxu0 %vm20666_vm15, %v16235_v44  ;;  %vm3198_vm15 = vcmask 850944  }
 0x5b9   :  { %2956 = vmatpush1.bf16.msra.mxu0 %v2921_v41 }
 0x5ba   :  { %15495 = vmatprep.subr.bf16.mxu0 %v17389_v0 }
 0x607   :  { %v2151_v45 = vpop.f32.mrb[48].mxu1 }
 0x608   :  { %v2153_v49 = vpop.f32.mrb[49].mxu1 }
 0x609   :  { %v2154_v51 = vpop.f32.mrb[50].mxu1 }
 0x60a   :  { %v2156_v55 = vpop.f32.mrb[51].mxu1 }
 0x60f   :  { %v2159_v59 = vpop.f32.mrb[52].mxu1 }
 0x610   :  { %v2161_v1 = vpop.f32.mrb[53].mxu1 }
 0x611   :  { %v2162_v2 = vpop.f32.mrb[54].mxu1 }
 0x612   :  { %v2164_v8 = vpop.f32.mrb[55].mxu1 }
 0x617   :  { %v2167_v9 = vpop.f32.mrb[56].mxu1 }
 0x618   :  { %v2169_v10 = vpop.f32.mrb[57].mxu1 }
 0x619   :  { %v2170_v12 = vpop.f32.mrb[58].mxu1 }
 0x61a   :  { %v2172_v13 = vpop.f32.mrb[59].mxu1 }
 0x61b   :  { %v3131_v13 = vpop.permute.xlu0 %3130 }
 0x63f   :  { %v2510_v32 = vpop.f32.mrb[60].mxu1 }
 0x640   :  { %v2511_v7 = vadd.f32 %v2510_v32, %v2151_v45  ;;  %v2512_v33 = vpop.f32.mrb[61].mxu1 }
 0x641   :  { %v2513_v23 = vpop.f32.mrb[62].mxu1 }
 0x642   :  { %v2514_v39 = vadd.f32 %v2513_v23, %v2154_v51  ;;  %v2515_v40 = vpop.f32.mrb[63].mxu1 }
 0x647   :  { %v2518_v38 = vpop.f32.mrb[64].mxu1 }
 0x648   :  { %v18113_v27 = vadd.f32 %v2518_v38, %v2159_v59  ;;  %v2520_v36 = vpop.f32.mrb[65].mxu1 }
 0x649   :  { %v2521_v37 = vpop.f32.mrb[66].mxu1 }
 0x64a   :  { %v18115_v50 = vadd.f32 %v2521_v37, %v2162_v2  ;;  %v2523_v14 = vpop.f32.mrb[67].mxu1 }
 0x64f   :  { %v2526_v15 = vpop.f32.mrb[68].mxu1 }
 0x650   :  { %v18117_v42 = vadd.f32 %v2526_v15, %v2167_v9  ;;  %v2528_v48 = vpop.f32.mrb[69].mxu1 }
 0x651   :  { %v2529_v17 = vpop.f32.mrb[70].mxu1 }
 0x652   :  { %v18119_v52 = vadd.f32 %v2529_v17, %v2170_v12  ;;  %v2531_v6 = vpop.f32.mrb[71].mxu1  ;;  %v3136_v12 = vpop.permute.xlu1 %3135 }
 0x657   :  { %v2598_v56 = vpop.f32.mrb[48].mxu0 }
 0x658   :  { %v2600_v58 = vpop.f32.mrb[49].mxu0 }
 0x659   :  { %v2602_v18 = vpop.f32.mrb[50].mxu0 }
 0x65a   :  { %v2627_v62 = vpack.c.bf16 %v2602_v18, %v2598_v56  ;;  %v2604_v3 = vpop.f32.mrb[51].mxu0 }
 0x65b   :  { %v2628_v5 = vpack.c.bf16 %v2604_v3, %v2600_v58 }
 0x65d   :  { %14346 = vmatprep.mubr.msk.bf16.mxu0 %vm20672_vm4, %v2628_v5  ;;  %14349 = vmatprep.mubr.msk.bf16.mxu1 %vm20672_vm4, %v2628_v5 }
 0x65e   :  { %2962 = vmatmul.mubr.bf16.vlgmr.msra.gmra.mrb[36].mxu0 %v2627_v62  ;;  %3025 = vmatmul.mubr.bf16.vlgmr.msra.gmra.mrb[72].mxu1 %v2627_v62 }
 0x65f   :  { %v2608_v20 = vpop.f32.mrb[52].mxu0 }
 0x660   :  { %v2610_v43 = vpop.f32.mrb[53].mxu0 }
 0x661   :  { %v2612_v47 = vpop.f32.mrb[54].mxu0 }
 0x662   :  { %v2629_v53 = vpack.c.bf16 %v2612_v47, %v2608_v20  ;;  %v2614_v63 = vpop.f32.mrb[55].mxu0  ;;  %v3141_v47 = vpop.permute.xlu0 %3140 }
 0x663   :  { %v2630_v11 = vpack.c.bf16 %v2614_v63, %v2610_v43 }
 0x665   :  { %14347 = vmatprep.mubr.msk.bf16.mxu0 %vm20672_vm4, %v2630_v11  ;;  %14350 = vmatprep.mubr.msk.bf16.mxu1 %vm20672_vm4, %v2630_v11 }
 0x666   :  { %2972 = vmatmul.mubr.bf16.gmra.mrb[40].mxu0 %v2629_v53  ;;  %3033 = vmatmul.mubr.bf16.gmra.mrb[76].mxu1 %v2629_v53 }
 0x667   :  { %v2618_v19 = vpop.f32.mrb[56].mxu0 }
 0x668   :  { %v2620_v21 = vpop.f32.mrb[57].mxu0 }
 0x669   :  { %v2622_v22 = vpop.f32.mrb[58].mxu0 }
 0x66a   :  { %v2631_v24 = vpack.c.bf16 %v2622_v22, %v2618_v19  ;;  %v2624_v31 = vpop.f32.mrb[59].mxu0 }
 0x66b   :  { %v2632_v25 = vpack.c.bf16 %v2624_v31, %v2620_v21  ;;  %v3146_v31 = vpop.permute.xlu1 %3145 }
 0x66d   :  { %14348 = vmatprep.mubr.msk.bf16.mxu0 %vm20672_vm4, %v2632_v25  ;;  %14351 = vmatprep.mubr.msk.bf16.mxu1 %vm20672_vm4, %v2632_v25  ;;  %vm20678_vm4 = vcmask 523264  }
 0x66e   :  { %2982 = vmatmul.mubr.bf16.gmra.mrb[44].mxu0 %v2631_v24  ;;  %3041 = vmatmul.mubr.bf16.gmra.mrb[80].mxu1 %v2631_v24 }
 0x66f   :  { %3579 = vmatprep.mubr.bf16.mxu1 %v17391_v34  ;;  %15501 = vmatprep.mubr.msk.bf16.mxu0 %vm17390_vm0, %v17389_v0 }
 0x731   :  { %v2963_v29 = vpop.f32.mrb[36].mxu0  ;;  %v3026_v30 = vpop.f32.mrb[72].mxu1 }
 0x732   :  { %v3051_v44 = vadd.f32 %v3026_v30, %v2511_v7  ;;  %v2965_v16 = vpop.f32.mrb[37].mxu0  ;;  %v3028_v41 = vpop.f32.mrb[73].mxu1  ;;  %v3085_v49 = vadd.f32 %v18132_v46, %v2963_v29 }
 0x733   :  { %v2967_v26 = vpop.f32.mrb[38].mxu0  ;;  %v3029_v45 = vpop.f32.mrb[74].mxu1  ;;  %v3086_v1 = vadd.f32 %v18135_v35, %v2965_v16 }
 0x734   :  { %v3054_v51 = vadd.f32 %v3029_v45, %v2514_v39  ;;  %v2969_v55 = vpop.f32.mrb[39].mxu0  ;;  %v3031_v59 = vpop.f32.mrb[75].mxu1  ;;  %v3088_v2 = vadd.f32 %v18132_v46, %v2967_v26  ;;  %v3087_v9 = vadd.f32 %v18139_v61, %v3051_v44  ;;  %v18147_v32 = vmax.f32 %v3085_v49, 0.0 }
 0x735   :  { %v3089_v8 = vadd.f32 %v18135_v35, %v2969_v55  ;;  %v18149_v7 = vmax.f32 %v3086_v1, 0.0 }
 0x736   :  { %v3090_v10 = vadd.f32 %v18139_v61, %v3054_v51  ;;  %v18151_v33 = vmax.f32 %v3088_v2, 0.0  ;;  %v18155_v38 = vmax.f32 %v3087_v9, 0.0  ;;  %v3158_v6 = vmul.f32 %v3131_v13, %v18147_v32 }
 0x737   :  { %v18153_v23 = vmax.f32 %v3089_v8, 0.0  ;;  %v3159_v3 = vmul.f32 %v3131_v13, %v18149_v7 }
 0x738   :  { %v18157_v36 = vmax.f32 %v3090_v10, 0.0  ;;  %v3161_v5 = vmul.f32 %v3136_v12, %v18151_v33  ;;  %v3160_v53 = vmul.f32 %v3131_v13, %v18155_v38  ;;  %v3216_v25 = vmul.f32 %v3158_v6, %v18147_v32 }
 0x739   :  { %v2973_v39 = vpop.f32.mrb[40].mxu0  ;;  %v3034_v40 = vpop.f32.mrb[76].mxu1  ;;  %v3162_v20 = vmul.f32 %v3136_v12, %v18153_v23  ;;  %v3217_v29 = vmul.f32 %v3159_v3, %v18149_v7 }
 0x73a   :  { %v2975_v37 = vpop.f32.mrb[41].mxu0  ;;  %v3036_v14 = vpop.f32.mrb[77].mxu1  ;;  %v3091_v15 = vadd.f32 %v18132_v46, %v2973_v39  ;;  %v3057_v56 = vadd.f32 %v3034_v40, %v18113_v27  ;;  %v3163_v63 = vmul.f32 %v3136_v12, %v18157_v36  ;;  %v3219_v30 = vmul.f32 %v3161_v5, %v18151_v33 }
 0x73b   :  { %v2977_v48 = vpop.f32.mrb[42].mxu0  ;;  %v3037_v17 = vpop.f32.mrb[78].mxu1  ;;  %v3092_v58 = vadd.f32 %v18135_v35, %v2975_v37  ;;  %v3220_v44 = vmul.f32 %v3162_v20, %v18153_v23  ;;  %v3199_v45 = vsel %vm3198_vm15, %v3160_v53, 0.0  ;;  %v3218_v13 = vmul.f32 %v3160_v53, %v18155_v38 }
 0x73c   :  { %v2979_v18 = vpop.f32.mrb[43].mxu0  ;;  %v3039_v62 = vpop.f32.mrb[79].mxu1  ;;  %v18166_v43 = vmax.f32 %v3091_v15, 0.0  ;;  %v3094_v27 = vadd.f32 %v18132_v46, %v2977_v48  ;;  %v3093_v21 = vadd.f32 %v18139_v61, %v3057_v56  ;;  %v3060_v22 = vadd.f32 %v3037_v17, %v18115_v50 }
 0x73d   :  { %v18170_v11 = vmax.f32 %v3092_v58, 0.0  ;;  %v3095_v24 = vadd.f32 %v18135_v35, %v2979_v18  ;;  %v3176_v50 = vadd.f32 %v3161_v5, %v3158_v6  ;;  %v3200_v49 = vsel %vm3198_vm15, %v3163_v63, 0.0  ;;  %v3151_v53 = vpop.permute.xlu0 %3150 }
 0x73e   :  { %v3164_v19 = vmul.f32 %v3141_v47, %v18166_v43  ;;  %v18178_v28 = vmax.f32 %v3094_v27, 0.0  ;;  %v18189_v2 = vmax.f32 %v3093_v21, 0.0  ;;  %v3096_v8 = vadd.f32 %v18139_v61, %v3060_v22 }
 0x73f   :  { %v3165_v16 = vmul.f32 %v3141_v47, %v18170_v11  ;;  %v18186_v51 = vmax.f32 %v3095_v24, 0.0  ;;  %v3187_v39 = vadd.f32 %v3162_v20, %v3159_v3  ;;  %v3234_v48 = vadd.f32 %v3219_v30, %v3216_v25 }
 0x740   :  { %v3222_v1 = vmul.f32 %v3164_v19, %v18166_v43  ;;  %v3177_v40 = vadd.f32 %v3176_v50, %v3164_v19  ;;  %v3167_v37 = vmul.f32 %v3146_v31, %v18178_v28  ;;  %v3221_v17 = vmul.f32 %v3163_v63, %v18157_v36 }
 0x741   :  { %v2983_v41 = vpop.f32.mrb[44].mxu0  ;;  %v3042_v26 = vpop.f32.mrb[80].mxu1  ;;  %v3245_v6 = vadd.f32 %v3220_v44, %v3217_v29  ;;  %v3223_v56 = vmul.f32 %v3165_v16, %v18170_v11  ;;  %v3201_v58 = vadd.f32 %v3200_v49, %v3199_v45  ;;  %v3168_v18 = vmul.f32 %v3146_v31, %v18186_v51 }
 0x742   :  { %v2985_v55 = vpop.f32.mrb[45].mxu0  ;;  %v3044_v59 = vpop.f32.mrb[81].mxu1  ;;  %v3097_v9 = vadd.f32 %v18132_v46, %v2983_v41  ;;  %v3063_v5 = vadd.f32 %v3042_v26, %v18117_v42  ;;  %v3235_v3 = vadd.f32 %v3234_v48, %v3222_v1  ;;  %v3166_v20 = vmul.f32 %v3141_v47, %v18189_v2 }
 0x743   :  { %v2987_v10 = vpop.f32.mrb[46].mxu0  ;;  %v3045_v12 = vpop.f32.mrb[82].mxu1  ;;  %v3188_v27 = vadd.f32 %v3187_v39, %v3165_v16  ;;  %v18202_v19 = vmax.f32 %v3096_v8, 0.0  ;;  %v3178_v21 = vadd.f32 %v3177_v40, %v3167_v37  ;;  %v3225_v63 = vmul.f32 %v3167_v37, %v18178_v28 }
 0x744   :  { %v2989_v14 = vpop.f32.mrb[47].mxu0  ;;  %v3047_v15 = vpop.f32.mrb[83].mxu1  ;;  %v18198_v62 = vmax.f32 %v3097_v9, 0.0  ;;  %v3099_v24 = vadd.f32 %v18139_v61, %v3063_v5  ;;  %v3246_v25 = vadd.f32 %v3245_v6, %v3223_v56  ;;  %v3098_v29 = vadd.f32 %v18135_v35, %v2985_v55 }
 0x745   :  { %v3100_v30 = vadd.f32 %v18132_v46, %v2987_v10  ;;  %v3066_v42 = vadd.f32 %v3045_v12, %v18119_v52  ;;  %v3226_v44 = vmul.f32 %v3168_v18, %v18186_v51  ;;  %v3101_v49 = vadd.f32 %v18135_v35, %v2989_v14  ;;  %v3156_v55 = vpop.permute.xlu1 %3155 }
 0x746   :  { %v3170_v22 = vmul.f32 %v3151_v53, %v18198_v62  ;;  %v18212_v41 = vmax.f32 %v3099_v24, 0.0  ;;  %v18214_v26 = vmax.f32 %v3098_v29, 0.0  ;;  %v3257_v46 = vsel %vm3198_vm15, %v3221_v17, 0.0 }
 0x747   :  { %v18216_v45 = vmax.f32 %v3100_v30, 0.0  ;;  %v3102_v50 = vadd.f32 %v18139_v61, %v3066_v42  ;;  %v3202_v52 = vsel %vm3198_vm15, %v3166_v20, 0.0  ;;  %v3236_v59 = vadd.f32 %v3235_v3, %v3225_v63 }
 0x748   :  { %v3179_v47 = vadd.f32 %v3178_v21, %v3170_v22  ;;  %v3228_v16 = vmul.f32 %v3170_v22, %v18198_v62  ;;  %v3169_v1 = vmul.f32 %v3146_v31, %v18202_v19  ;;  %v3189_v8 = vadd.f32 %v3188_v27, %v3168_v18 }
 0x749   :  { %v3171_v9 = vmul.f32 %v3151_v53, %v18214_v26  ;;  %v3173_v10 = vmul.f32 %v3156_v55, %v18216_v45  ;;  %v18225_v12 = vmax.f32 %v3101_v49, 0.0  ;;  %v3224_v39 = vmul.f32 %v3166_v20, %v18189_v2 }
 0x74a   :  { %v3247_v61 = vadd.f32 %v3246_v25, %v3226_v44  ;;  %v3237_v40 = vadd.f32 %v3236_v59, %v3228_v16  ;;  %v3172_v35 = vmul.f32 %v3151_v53, %v18212_v41  ;;  %v18230_v48 = vmax.f32 %v3102_v50, 0.0 }
 0x74b   :  { %v3190_v37 = vadd.f32 %v3189_v8, %v3171_v9  ;;  %v3229_v14 = vmul.f32 %v3171_v9, %v18214_v26  ;;  %v3180_v15 = vadd.f32 %v3179_v47, %v3173_v10  ;;  %v3256_v31 = vsel %vm3198_vm15, %v3218_v13, 0.0 }
 0x74c   :  { %v3203_v17 = vadd.f32 %v3202_v52, %v3201_v58  ;;  %v3231_v6 = vmul.f32 %v3173_v10, %v18216_v45  ;;  %v3174_v56 = vmul.f32 %v3156_v55, %v18225_v12  ;;  %v3258_v18 = vadd.f32 %v3257_v46, %v3256_v31 }
 0x74d   :  { %v3204_v5 = vsel %vm3198_vm15, %v3169_v1, 0.0  ;;  %v3248_v3 = vadd.f32 %v3247_v61, %v3229_v14  ;;  %v3181_v20 = vrot.slane %v3180_v15, 4  ;;  %v3259_v53 = vsel %vm3198_vm15, %v3224_v39, 0.0 }
 0x74e   :  { %v3227_v27 = vmul.f32 %v3169_v1, %v18202_v19  ;;  %v3238_v21 = vadd.f32 %v3237_v40, %v3231_v6  ;;  %v3191_v63 = vadd.f32 %v3190_v37, %v3174_v56  ;;  %v3206_v22 = vsel %vm3198_vm15, %v3172_v35, 0.0 }
 0x74f   :  { %v3175_v13 = vmul.f32 %v3156_v55, %v18230_v48  ;;  %v3232_v58 = vmul.f32 %v3174_v56, %v18225_v12  ;;  %v3182_v24 = vadd.f32 %v3181_v20, %v3180_v15  ;;  %v3205_v25 = vadd.f32 %v3204_v5, %v3203_v17 }
 0x750   :  { %v3230_v29 = vmul.f32 %v3172_v35, %v18212_v41  ;;  %v3239_v30 = vrot.slane %v3238_v21, 4  ;;  %v3192_v42 = vrot.slane %v3191_v63, 4  ;;  %v3260_v44 = vadd.f32 %v3259_v53, %v3258_v18 }
 0x751   :  { %v3249_v47 = vadd.f32 %v3248_v3, %v3232_v58  ;;  %v3183_v16 = vrot.slane %v3182_v24, 2  ;;  %v3261_v50 = vsel %vm3198_vm15, %v3227_v27, 0.0  ;;  %v3207_v49 = vadd.f32 %v3206_v22, %v3205_v25 }
 0x752   :  { %v3193_v46 = vadd.f32 %v3192_v42, %v3191_v63  ;;  %v3240_v52 = vadd.f32 %v3239_v30, %v3238_v21  ;;  %v3208_v59 = vsel %vm3198_vm15, %v3175_v13, 0.0  ;;  %v3263_v8 = vsel %vm3198_vm15, %v3230_v29, 0.0 }
 0x753   :  { %v3250_v1 = vrot.slane %v3249_v47, 4  ;;  %v3184_v55 = vadd.f32 %v3183_v16, %v3182_v24  ;;  %v3233_v9 = vmul.f32 %v3175_v13, %v18230_v48  ;;  %v3262_v61 = vadd.f32 %v3261_v50, %v3260_v44 }
 0x754   :  { %v3194_v10 = vrot.slane %v3193_v46, 2  ;;  %v3241_v39 = vrot.slane %v3240_v52, 2  ;;  %v3209_v37 = vadd.f32 %v3208_v59, %v3207_v49 }
 0x755   :  { %v3185_v40 = vrot.slane %v3184_v55, 1  ;;  %v3264_v14 = vadd.f32 %v3263_v8, %v3262_v61  ;;  %v3251_v17 = vadd.f32 %v3250_v1, %v3249_v47  ;;  %v3265_v6 = vsel %vm3198_vm15, %v3233_v9, 0.0 }
 0x756   :  { %v3195_v35 = vadd.f32 %v3194_v10, %v3193_v46  ;;  %v3242_v31 = vadd.f32 %v3241_v39, %v3240_v52  ;;  %v3210_v18 = vrot.slane %v3209_v37, 4 }
 0x757   :  { %v3186_v15 = vadd.f32 %v3185_v40, %v3184_v55  ;;  %v3252_v20 = vrot.slane %v3251_v17, 2  ;;  %v3266_v53 = vadd.f32 %v3265_v6, %v3264_v14 }
 0x758   :  { %v3196_v56 = vrot.slane %v3195_v35, 1  ;;  %v3243_v3 = vrot.slane %v3242_v31, 1  ;;  %v3211_v63 = vadd.f32 %v3210_v18, %v3209_v37 }
 0x759   :  { %3292 = vrot.lane.b32.xlu1 %v3186_v15, %s17378_s25  ;;  %3274 = vrot.lane.b32.xlu0 %v3186_v15, %s17393_s3  ;;  %v3253_v21 = vadd.f32 %v3252_v20, %v3251_v17  ;;  %v3267_v22 = vrot.slane %v3266_v53, 4 }
 0x75a   :  { %v3197_v5 = vadd.f32 %v3196_v56, %v3195_v35  ;;  %v3244_v27 = vadd.f32 %v3243_v3, %v3242_v31  ;;  %v3212_v58 = vrot.slane %v3211_v63, 2 }
 0x75b   :  { %v3254_v13 = vrot.slane %v3253_v21, 1  ;;  %v3268_v24 = vadd.f32 %v3267_v22, %v3266_v53 }
 0x75c   :  { %v3213_v29 = vadd.f32 %v3212_v58, %v3211_v63 }
 0x75d   :  { %3324 = vrot.lane.b32.xlu1 %v3197_v5, %s17409_s21  ;;  %3283 = vrot.lane.b32.xlu0 %v3186_v15, %s17384_s1  ;;  %v3255_v25 = vadd.f32 %v3254_v13, %v3253_v21  ;;  %v3269_v30 = vrot.slane %v3268_v24, 2 }
 0x75e   :  { %v3214_v42 = vrot.slane %v3213_v29, 1 }
 0x75f   :  { %v3270_v44 = vadd.f32 %v3269_v30, %v3268_v24 }
 0x760   :  { %v3215_v47 = vadd.f32 %v3214_v42, %v3213_v29 }
 0x761   :  { %3279 = vrot.lane.b32.xlu1 %v3244_v27, %s17393_s3  ;;  %3294 = vrot.lane.b32.xlu0 %v3197_v5, %s17378_s25  ;;  %v3271_v16 = vrot.slane %v3270_v44, 1 }
 0x763   :  { %v3272_v50 = vadd.f32 %v3271_v16, %v3270_v44 }
 0x765   :  { %3287 = vrot.lane.b32.xlu1 %v3244_v27, %s17384_s1  ;;  %3307 = vrot.lane.b32.xlu0 %v3197_v5, %s17397_s11 }
 0x769   :  { %3302 = vrot.lane.b32.xlu1 %v3255_v25, %s17378_s25  ;;  %3315 = vrot.lane.b32.xlu0 %v3197_v5, %s17399_s9 }
 0x76d   :  { %3311 = vrot.lane.b32.xlu1 %v3255_v25, %s17397_s11  ;;  %3300 = vrot.lane.b32.xlu0 %v3244_v27, %s17378_s25 }
 0x771   :  { %3319 = vrot.lane.b32.xlu1 %v3255_v25, %s17399_s9  ;;  %3326 = vrot.lane.b32.xlu0 %v3215_v47, %s17409_s21 }
 0x775   :  { %3335 = vrot.lane.b32.xlu1 %v3272_v50, %s17409_s21  ;;  %3333 = vrot.lane.b32.xlu0 %v3255_v25, %s17409_s21 }
 0x779   :  { %3344 = vrot.lane.b32.xlu1 %v3272_v50, %s17410_s24  ;;  %3340 = vrot.lane.b32.xlu0 %v3215_v47, %s17410_s24 }
 0x77d   :  { %3352 = vrot.lane.b32.xlu1 %v3272_v50, %s17373_s23  ;;  %3348 = vrot.lane.b32.xlu0 %v3215_v47, %s17373_s23 }
 0x7cb   :  { %v3293_v49 = vpop.permute.xlu1 %3292  ;;  %v3275_v46 = vpop.permute.xlu0 %3274 }
 0x7cc   :  { %v3277_v14 = vadd.f32 %v3275_v46, %v3186_v15 }
 0x7cf   :  { %v3325_v52 = vpop.permute.xlu1 %3324  ;;  %v3284_v59 = vpop.permute.xlu0 %3283 }
 0x7d0   :  { %v3286_v56 = vadd.f32 %v3284_v59, %v3277_v14  ;;  %v5866_v14 = vld [vmem:[#allocation2 + $0x68] sm:$0xff] }
 0x7d3   :  { %v3280_v1 = vpop.permute.xlu1 %3279  ;;  %v3295_v55 = vpop.permute.xlu0 %3294 }
 0x7d4   :  { %v3282_v61 = vadd.f32 %v3280_v1, %v3244_v27  ;;  %v3296_v17 = vsel %vm1300_vm5, %v3293_v49, %v3295_v55 }
 0x7d5   :  { %v3298_v3 = vadd.f32 %v3296_v17, %v3286_v56  ;;  %v5868_v17 = vld [vmem:[#allocation2 + $0x78] sm:$0xff]  ;;  %v5870_v56 = vld [vmem:[#allocation2 + $0x88] sm:$0xff] }
 0x7d7   :  { %v3288_v8 = vpop.permute.xlu1 %3287  ;;  %v3308_v9 = vpop.permute.xlu0 %3307 }
 0x7d8   :  { %v3290_v40 = vadd.f32 %v3288_v8, %v3282_v61  ;;  %v3310_v63 = vadd.f32 %v3308_v9, %v3298_v3 }
 0x7db   :  { %v3303_v10 = vpop.permute.xlu1 %3302  ;;  %v3316_v39 = vpop.permute.xlu0 %3315 }
 0x7dc   :  { %v3318_v15 = vadd.f32 %v3316_v39, %v3310_v63 }
 0x7df   :  { %v3312_v35 = vpop.permute.xlu1 %3311  ;;  %v3301_v37 = vpop.permute.xlu0 %3300 }
 0x7e0   :  { %v3304_v31 = vsel %vm1300_vm5, %v3301_v37, %v3303_v10 }
 0x7e1   :  { %v3306_v6 = vadd.f32 %v3304_v31, %v3290_v40  ;;  %v14353_v40 = vld [vmem:[%s20655_s5 + $0x1] sm:$0x1] }
 0x7e2   :  { %v5865_v31 = vld [vmem:[#allocation2 + $0x60] sm:$0xff] }
 0x7e3   :  { %v3320_v18 = vpop.permute.xlu1 %3319  ;;  %v3327_v5 = vpop.permute.xlu0 %3326  ;;  %v3314_v20 = vadd.f32 %v3312_v35, %v3306_v6  ;;  %v5867_v6 = vld [vmem:[#allocation2 + $0x70] sm:$0xff] }
 0x7e4   :  { %v3329_v13 = vsel %vm3328_vm13, %v3325_v52, %v3327_v5  ;;  %v14352_v52 = vld [vmem:[%s20654_s4 + $0x1] sm:$0x1] }
 0x7e5   :  { %v3322_v22 = vadd.f32 %v3320_v18, %v3314_v20  ;;  %v3331_v29 = vadd.f32 %v3329_v13, %v3318_v15  ;;  %v5869_v18 = vld [vmem:[#allocation2 + $0x80] sm:$0xff] }
 0x7e7   :  { %v3336_v53 = vpop.permute.xlu1 %3335  ;;  %v3334_v21 = vpop.permute.xlu0 %3333 }
 0x7e8   :  { %v3337_v27 = vsel %vm3328_vm13, %v3334_v21, %v3336_v53 }
 0x7e9   :  { %v3339_v58 = vadd.f32 %v3337_v27, %v3322_v22 }
 0x7eb   :  { %v3345_v24 = vpop.permute.xlu1 %3344  ;;  %v3341_v25 = vpop.permute.xlu0 %3340 }
 0x7ec   :  { %v3347_v30 = vadd.f32 %v3345_v24, %v3339_v58  ;;  %v3343_v42 = vadd.f32 %v3341_v25, %v3331_v29 }
 0x7ef   :  { %v3353_v44 = vpop.permute.xlu1 %3352  ;;  %v3349_v47 = vpop.permute.xlu0 %3348 }
 0x7f0   :  { %v3355_v16 = vadd.f32 %v3353_v44, %v3347_v30  ;;  %v3351_v50 = vadd.f32 %v3349_v47, %v3343_v42 }
 0x7f2   :  { %v3356_v49 = vmul.f32 0.0061728396, %v3351_v50  ;;  %v3357_v46 = vmul.f32 0.0061728396, %v3355_v16 }
 0x7f4   :  { %v3358_v59 = vmul.f32 %v3356_v49, %v3356_v49 }
 0x7f6   :  { %v3359_v1 = vsub.f32 %v3357_v46, %v3358_v59 }
 0x7f8   :  { %v3360_v55 = vmax.f32 %v3359_v1, 0.0 }
 0x7fa   :  { %v3363_v8 = vadd.f32 1e-05, %v3360_v55 }
 0x7fc   :  { %17152 = vrsqrt.f32 %v3363_v8 }
 0x806   :  { %v17153_v9 = vpop.eup %17152 }
 0x807   :  { %v3365_v10 = vmul.f32 %v17153_v9, %v14352_v52 }
 0x809   :  { %v3374_v39 = vrot.slane %v3365_v10, %v17814_v60  ;;  %v3368_v61 = vmul.f32 %v3365_v10, %v3356_v49 }
 0x80b   :  { %3384 = vrot.lane.b32.xlu1 %v3374_v39, %s17403_s16  ;;  %3381 = vrot.lane.b32.xlu0 %v3374_v39, %s17402_s2  ;;  %v3369_v35 = vsub.f32 %v14353_v40, %v3368_v61 }
 0x80d   :  { %v3414_v37 = vrot.slane %v3369_v35, %v17814_v60 }
 0x80f   :  { %3387 = vrot.lane.b32.xlu1 %v3374_v39, %s17407_s19  ;;  %3375 = vrot.lane.b32.xlu0 %v3374_v39, %s17400_s12 }
 0x813   :  { %3390 = vrot.lane.b32.xlu1 %v3374_v39, %s17411_s27  ;;  %3378 = vrot.lane.b32.xlu0 %v3374_v39, %s17405_s15 }
 0x817   :  { %3424 = vrot.lane.b32.xlu1 %v3414_v37, %s17403_s16  ;;  %3421 = vrot.lane.b32.xlu0 %v3414_v37, %s17402_s2 }
 0x81b   :  { %3427 = vrot.lane.b32.xlu1 %v3414_v37, %s17407_s19  ;;  %3415 = vrot.lane.b32.xlu0 %v3414_v37, %s17400_s12 }
 0x81f   :  { %3430 = vrot.lane.b32.xlu1 %v3414_v37, %s17411_s27  ;;  %3418 = vrot.lane.b32.xlu0 %v3414_v37, %s17405_s15 }
 0x823   :  { %3396 = vrot.lane.b32.xlu1 %v3374_v39, %s17373_s23  ;;  %3393 = vrot.lane.b32.xlu0 %v3374_v39, %s20689_s20 }
 0x827   :  { %3436 = vrot.lane.b32.xlu1 %v3414_v37, %s17373_s23  ;;  %3433 = vrot.lane.b32.xlu0 %v3414_v37, %s20689_s20  ;;  %s20693_s20 = smov 24  }
 0x82b   :  { %5878 = vperm.xlu1 %15993, %v5866_v14   ;;  %5873 = vperm.xlu0 %15992, %v5865_v31  }
 0x82f   :  { %5888 = vperm.xlu1 %15993, %v5868_v17   ;;  %5883 = vperm.xlu0 %15992, %v5867_v6  }
 0x833   :  { %5898 = vperm.xlu1 %15993, %v5870_v56   ;;  %5893 = vperm.xlu0 %15992, %v5869_v18  }
 0x87d   :  { %v3385_v5 = vpop.permute.xlu1 %3384  ;;  %v3382_v3 = vpop.permute.xlu0 %3381 }
 0x87e   :  { %v3402_v22 = vsel %vm1405_vm10, %v3382_v3, %v3385_v5 }
 0x881   :  { %v3388_v20 = vpop.permute.xlu1 %3387  ;;  %v3376_v53 = vpop.permute.xlu0 %3375 }
 0x882   :  { %v3399_v27 = vsel %vm1393_vm7, %v3365_v10, %v3376_v53  ;;  %v3403_v13 = vsel %vm425_vm3, %v3402_v22, %v3388_v20 }
 0x885   :  { %v3391_v21 = vpop.permute.xlu1 %3390  ;;  %v3379_v63 = vpop.permute.xlu0 %3378 }
 0x886   :  { %v3400_v15 = vsel %vm1397_vm11, %v3399_v27, %v3379_v63  ;;  %v3405_v25 = vsel %vm3404_vm8, %v3403_v13, %v3391_v21 }
 0x887   :  { %v3401_v29 = vsel %vm1401_vm14, %v3400_v15, %v3382_v3  ;;  %v3454_v30 = vrot.slane %v3405_v25, %v17814_v60 }
 0x888   :  { %v3450_v47 = vrot.slane %v3401_v29, %v17814_v60 }
 0x889   :  { %v3425_v58 = vpop.permute.xlu1 %3424  ;;  %v3422_v24 = vpop.permute.xlu0 %3421  ;;  %v3460_v1 = vmul.f32 %v3454_v30, %v18149_v7  ;;  %v3463_v55 = vmul.f32 %v3454_v30, %v18153_v23  ;;  %v3466_v9 = vmul.f32 %v3454_v30, %v18170_v11  ;;  %v3469_v10 = vmul.f32 %v3454_v30, %v18186_v51 }
 0x88a   :  { %v3442_v16 = vsel %vm1405_vm10, %v3422_v24, %v3425_v58  ;;  %v3459_v40 = vmul.f32 %v3450_v47, %v18147_v32  ;;  %v3465_v23 = vmul.f32 %v3450_v47, %v18166_v43  ;;  %v3468_v37 = vmul.f32 %v3450_v47, %v18178_v28 }
 0x88b   :  { %v3472_v14 = vmul.f32 %v3454_v30, %v18214_v26  ;;  %v3474_v58 = vmul.f32 %v3450_v47, %v18216_v45 }
 0x88d   :  { %v3428_v42 = vpop.permute.xlu1 %3427  ;;  %v3416_v44 = vpop.permute.xlu0 %3415 }
 0x88e   :  { %v3443_v50 = vsel %vm425_vm3, %v3442_v16, %v3428_v42  ;;  %v3439_v49 = vsel %vm1393_vm7, %v3369_v35, %v3416_v44  ;;  %v3462_v35 = vmul.f32 %v3450_v47, %v18151_v33  ;;  %v3475_v33 = vmul.f32 %v3454_v30, %v18225_v12 }
 0x88f   :  { %v3471_v12 = vmul.f32 %v3450_v47, %v18198_v62 }
 0x891   :  { %v3431_v46 = vpop.permute.xlu1 %3430  ;;  %v3419_v59 = vpop.permute.xlu0 %3418 }
 0x892   :  { %v3444_v8 = vsel %vm3404_vm8, %v3443_v50, %v3431_v46  ;;  %v3440_v52 = vsel %vm1397_vm11, %v3439_v49, %v3419_v59 }
 0x893   :  { %v3484_v39 = vrot.slane %v3444_v8, %v17814_v60  ;;  %v3441_v61 = vsel %vm1401_vm14, %v3440_v52, %v3422_v24 }
 0x894   :  { %v3480_v7 = vrot.slane %v3441_v61, %v17814_v60  ;;  %v16249_v61 = vld [vmem:[#allocation10 + $0x168] ss:$8 sps:$4 sm:$0xff]  }
 0x895   :  { %v3397_v31 = vpop.permute.xlu1 %3396  ;;  %v3394_v11 = vpop.permute.xlu0 %3393  ;;  %v3490_v17 = vadd.f32 %v3484_v39, %v3460_v1  ;;  %v3493_v51 = vadd.f32 %v3484_v39, %v3463_v55  ;;  %v3496_v6 = vadd.f32 %v3484_v39, %v3466_v9  ;;  %v3499_v56 = vadd.f32 %v3484_v39, %v3469_v10  ;;  %v16239_v55 = vld [vmem:[#allocation4 + $0xa8] sm:$0xff]   ;;  %v16241_v10 = vld [vmem:[#allocation4 + $0xb8] sm:$0xff]  }
 0x896   :  { %v3407_v18 = vsel %vm20691_vm6, %v3391_v21, %v3394_v11  ;;  %v3489_v5 = vadd.f32 %v3480_v7, %v3459_v40  ;;  %v3492_v32 = vadd.f32 %v3480_v7, %v3462_v35  ;;  %v3495_v43 = vadd.f32 %v3480_v7, %v3465_v23  ;;  %v16251_v9 = vld [vmem:[#allocation10 + $0x16c] ss:$8 sps:$4 sm:$0xff]   ;;  %v16254_v40 = vld [vmem:[#allocation10 + $0x17c] ss:$8 sps:$4 sm:$0xff]   ;;  %v16252_v35 = vld [vmem:[#allocation10 + $0x178] ss:$8 sps:$4 sm:$0xff]  }
 0x897   :  { %v3409_v3 = vsel %vm20678_vm4, %v3407_v18, %v3397_v31  ;;  %v18323_v20 = vpack.c.bf16 %v3493_v51, %v3490_v17  ;;  %v3498_v28 = vadd.f32 %v3480_v7, %v3468_v37  ;;  %v18329_v27 = vpack.c.bf16 %v3499_v56, %v3496_v6  ;;  %v16243_v23 = vld [vmem:[#allocation4 + $0xc8] sm:$0xff]   ;;  %v16258_v31 = vld [vmem:[#allocation10 + $0x198] ss:$8 sps:$4 sm:$0xff]   ;;  %v16244_v11 = vld [vmem:[#allocation4 + $0xd0] sm:$0xff]  }
 0x898   :  { %v3458_v26 = vrot.slane %v3409_v3, %v17814_v60  ;;  %v18326_v53 = vpack.c.bf16 %v3492_v32, %v3489_v5  ;;  %v3502_v21 = vadd.f32 %v3484_v39, %v3472_v14  ;;  %v3505_v13 = vadd.f32 %v3484_v39, %v3475_v33  ;;  %v16242_v39 = vld [vmem:[#allocation4 + $0xc0] sm:$0xff]   ;;  %v16255_v37 = vld [vmem:[#allocation10 + $0x188] ss:$8 sps:$4 sm:$0xff]   ;;  %v16263_v17 = vld [vmem:[#allocation10 + $0x1ac] ss:$8 sps:$4 sm:$0xff]  }
 0x899   :  { %v3437_v63 = vpop.permute.xlu1 %3436  ;;  %3547 = vmatprep.subr.bf16.mxu1 %v18323_v20  ;;  %v3434_v22 = vpop.permute.xlu0 %3433  ;;  %v18337_v25 = vpack.c.bf16 %v3498_v28, %v3495_v43  ;;  %v3501_v29 = vadd.f32 %v3480_v7, %v3471_v12  ;;  %v3504_v42 = vadd.f32 %v3480_v7, %v3474_v58  ;;  %v16257_v7 = vld [vmem:[#allocation10 + $0x18c] ss:$8 sps:$4 sm:$0xff]   ;;  %v16260_v14 = vld [vmem:[#allocation10 + $0x19c] ss:$8 sps:$4 sm:$0xff]   ;;  %v16261_v51 = vld [vmem:[#allocation10 + $0x1a8] ss:$8 sps:$4 sm:$0xff]  }
 0x89a   :  { %v3445_v15 = vsel %vm20691_vm6, %v3431_v46, %v3434_v22  ;;  %3548 = vmatpush1.bf16.msra.mxu1 %v18326_v53  ;;  %v3461_v44 = vmul.f32 %v3458_v26, %v18155_v38  ;;  %v3464_v62 = vmul.f32 %v3458_v26, %v18157_v36  ;;  %v18342_v16 = vpack.c.bf16 %v3505_v13, %v3502_v21  ;;  %v16266_v6 = vld [vmem:[#allocation10 + $0x1bc] ss:$8 sps:$4 sm:$0xff]   ;;  %v16264_v56 = vld [vmem:[#allocation10 + $0x1b8] ss:$8 sps:$4 sm:$0xff]   ;;  %v16269_v18 = vld [vmem:[#allocation10 + $0x1cc] ss:$8 sps:$4 sm:$0xff]  }
 0x89b   :  { %v3446_v24 = vsel %vm20678_vm4, %v3445_v15, %v3437_v63  ;;  %3549 = vmatprep.subr.bf16.mxu1 %v18329_v27  ;;  %v3467_v47 = vmul.f32 %v3458_v26, %v18189_v2  ;;  %v3470_v49 = vmul.f32 %v3458_v26, %v18202_v19  ;;  %v18348_v46 = vpack.c.bf16 %v3504_v42, %v3501_v29  ;;  %v16267_v5 = vld [vmem:[#allocation10 + $0x1c8] ss:$8 sps:$4 sm:$0xff]   ;;  %v16272_v32 = vld [vmem:[#allocation10 + $0x1dc] ss:$8 sps:$4 sm:$0xff]   ;;  %v16270_v33 = vld [vmem:[#allocation10 + $0x1d8] ss:$8 sps:$4 sm:$0xff]  }
 0x89c   :  { %v3488_v30 = vrot.slane %v3446_v24, %v17814_v60  ;;  %v3473_v36 = vmul.f32 %v3458_v26, %v18212_v41  ;;  %v3476_v8 = vmul.f32 %v3458_v26, %v18230_v48  ;;  %v16240_v48 = vld [vmem:[#allocation4 + $0xb0] sm:$0xff]   ;;  %v16245_v3 = vld [vmem:[#allocation4 + $0xd8] sm:$0xff]   ;;  %v16246_v26 = vld [vmem:[#allocation4 + $0xe0] sm:$0xff]   ;;  %vm6948_vm4 = vcmask 572416  }
 0x89d   :  { %v16275_v43 = vld [vmem:[#allocation10 + $0x1ec] ss:$8 sps:$4 sm:$0xff]   ;;  %v16273_v28 = vld [vmem:[#allocation10 + $0x1e8] ss:$8 sps:$4 sm:$0xff]   ;;  %v16278_v22 = vld [vmem:[#allocation10 + $0x1fc] ss:$8 sps:$4 sm:$0xff]  }
 0x89e   :  { %3550 = vmatpush1.bf16.msra.mxu1 %v18337_v25  ;;  %v3491_v50 = vadd.f32 %v3488_v30, %v3461_v44  ;;  %v3494_v45 = vadd.f32 %v3488_v30, %v3464_v62  ;;  %v3497_v1 = vadd.f32 %v3488_v30, %v3467_v47  ;;  %v3500_v38 = vadd.f32 %v3488_v30, %v3470_v49  ;;  %v16247_v63 = vld [vmem:[#allocation4 + $0xe8] sm:$0xff]   ;;  %v16284_v13 = vld [vmem:[#allocation10 + $0x21c] ss:$8 sps:$4 sm:$0xff]   ;;  %v16248_v58 = vld [vmem:[#allocation4 + $0xf0] sm:$0xff]  }
 0x89f   :  { %3551 = vmatprep.subr.bf16.mxu1 %v18342_v16  ;;  %v3503_v19 = vadd.f32 %v3488_v30, %v3473_v36  ;;  %v3506_v52 = vadd.f32 %v3488_v30, %v3476_v8  ;;  %v16281_v21 = vld [vmem:[#allocation10 + $0x20c] ss:$8 sps:$4 sm:$0xff]   ;;  %v16285_v15 = vld [vmem:[#allocation10 + $0x228] ss:$8 sps:$4 sm:$0xff]   ;;  %v16288_v24 = vld [vmem:[#allocation10 + $0x238] ss:$8 sps:$4 sm:$0xff]  }
 0x8a0   :  { %v18350_v59 = vpack.c.bf16 %v3494_v45, %v3491_v50  ;;  %v18358_v2 = vpack.c.bf16 %v3500_v38, %v3497_v1  ;;  %v16287_v12 = vld [vmem:[#allocation10 + $0x22c] ss:$8 sps:$4 sm:$0xff]   ;;  %v16291_v30 = vld [vmem:[#allocation10 + $0x248] ss:$8 sps:$4 sm:$0xff]   ;;  %v16294_v42 = vld [vmem:[#allocation10 + $0x258] ss:$8 sps:$4 sm:$0xff]  }
 0x8a1   :  { %v18365_v41 = vpack.c.bf16 %v3506_v52, %v3503_v19  ;;  %v16293_v29 = vld [vmem:[#allocation10 + $0x24c] ss:$8 sps:$4 sm:$0xff]   ;;  %v16296_v44 = vld [vmem:[#allocation10 + $0x25c] ss:$8 sps:$4 sm:$0xff]   ;;  %vm7285_vm6 = vcmask 1042432  }
 0x8a2   :  { %3552 = vmatpush1.bf16.msra.mxu1 %v18348_v46  ;;  %15496 = vmatpush3.bf16.msra.mxu0 %v18350_v59  ;;  %v16299_v62 = vld [vmem:[#allocation10 + $0x26c] ss:$8 sps:$4 sm:$0xff]   ;;  %v16354_v50 = vld [vmem:[#allocation4 + $0x100] sm:$0xff]  }
 0x8a3   :  { %3752 = vmatprep.subr.bf16.mxu1 %v18323_v20  ;;  %15497 = vmatprep.subr.bf16.mxu0 %v17389_v0 }
 0x8a5   :  { %14357 = vmatmul.mubr.msk.bf16.vlgmr.msra.gmra.mrb[84].mxu1 %vm200_vm1, %v16239_v55 }
 0x8a6   :  { %15498 = vmatpush3.bf16.msra.mxu0 %v18358_v2  ;;  %3753 = vmatpush1.bf16.msra.mxu1 %v18326_v53 }
 0x8a7   :  { %3754 = vmatprep.subr.bf16.mxu1 %v18329_v27  ;;  %15499 = vmatprep.subr.bf16.mxu0 %v17389_v0 }
 0x8a8   :  { %3589 = vmatprep.mubr.bf16.mxu1 %v17391_v34 }
 0x8aa   :  { %15500 = vmatpush3.bf16.msra.mxu0 %v18365_v41  ;;  %3755 = vmatpush1.bf16.msra.mxu1 %v18337_v25 }
 0x8ab   :  { %3756 = vmatprep.subr.bf16.mxu1 %v18342_v16  ;;  %15513 = vmatprep.subr.bf16.mxu0 %v17389_v0 }
 0x8ad   :  { %14358 = vmatmul.mubr.msk.bf16.gmra.mrb[88].mxu1 %vm200_vm1, %v16240_v48  ;;  %15502 = vmatmul.mubr.msk.bf16.vlgmr.msra.gmra.mrb[60].mxu0 %vm200_vm1, %v16239_v55 }
 0x8ae   :  { %3757 = vmatpush1.bf16.msra.mxu1 %v18348_v46  ;;  %15514 = vmatpush3.bf16.msra.mxu0 %v18350_v59 }
 0x8af   :  { %15515 = vmatprep.subr.bf16.mxu0 %v17389_v0  ;;  %3599 = vmatprep.mubr.bf16.mxu1 %v17391_v34 }
 0x8b0   :  { %15505 = vmatprep.mubr.msk.bf16.mxu0 %vm17390_vm0, %v17389_v0  ;;  %4167 = vmatprep.subr.bf16.mxu1 %v16251_v9 }
 0x8b2   :  { %15516 = vmatpush3.bf16.msra.mxu0 %v18358_v2 }
 0x8b3   :  { %15517 = vmatprep.subr.bf16.mxu0 %v17389_v0 }
 0x8b5   :  { %14359 = vmatmul.mubr.msk.bf16.gmra.mrb[92].mxu1 %vm200_vm1, %v16241_v10  ;;  %15506 = vmatmul.mubr.msk.bf16.gmra.mrb[64].mxu0 %vm200_vm1, %v16240_v48 }
 0x8b6   :  { %15518 = vmatpush3.bf16.msra.mxu0 %v18365_v41  ;;  %15509 = vmatprep.mubr.msk.bf16.mxu0 %vm17390_vm0, %v17389_v0 }
 0x8b7   :  { %4690 = vmatprep.subr.bf16.mxu0 %v18323_v20  ;;  %3784 = vmatprep.mubr.bf16.mxu1 %v17391_v34 }
 0x8bd   :  { %15510 = vmatmul.mubr.msk.bf16.gmra.mrb[68].mxu0 %vm200_vm1, %v16241_v10  ;;  %14366 = vmatmul.mubr.msk.bf16.vlgmr.msra.gmra.mrb[96].mxu1 %vm200_vm1, %v16242_v39 }
 0x8be   :  { %3794 = vmatprep.mubr.bf16.mxu1 %v17391_v34  ;;  %15519 = vmatprep.mubr.msk.bf16.mxu0 %vm17390_vm0, %v17389_v0 }
 0x8bf   :  { %4168 = vmatpush1.bf16.msra.mxu1 %v16249_v61 }
 0x8c0   :  { %4169 = vmatprep.subr.bf16.mxu1 %v16254_v40 }
 0x8c3   :  { %4170 = vmatpush1.bf16.msra.mxu1 %v16252_v35 }
 0x8c4   :  { %4171 = vmatprep.subr.bf16.mxu1 %v16257_v7 }
 0x8c5   :  { %14367 = vmatmul.mubr.msk.bf16.gmra.mrb[100].mxu1 %vm200_vm1, %v16243_v23  ;;  %15520 = vmatmul.mubr.msk.bf16.vlgmr.msra.gmra.mrb[72].mxu0 %vm200_vm1, %v16242_v39 }
 0x8c6   :  { %4691 = vmatpush1.bf16.msra.mxu0 %v18326_v53  ;;  %3804 = vmatprep.mubr.bf16.mxu1 %v17391_v34 }
 0x8c7   :  { %4692 = vmatprep.subr.bf16.mxu0 %v18329_v27  ;;  %15523 = vmatprep.mubr.msk.bf16.mxu0 %vm17390_vm0, %v17389_v0 }
 0x8c8   :  { %4172 = vmatpush1.bf16.msra.mxu1 %v16255_v37 }
 0x8c9   :  { %4173 = vmatprep.subr.bf16.mxu1 %v16260_v14 }
 0x8ca   :  { %4693 = vmatpush1.bf16.msra.mxu0 %v18337_v25 }
 0x8cb   :  { %4694 = vmatprep.subr.bf16.mxu0 %v18342_v16 }
 0x8cc   :  { %4174 = vmatpush1.bf16.msra.mxu1 %v16258_v31 }
 0x8cd   :  { %14368 = vmatmul.mubr.msk.bf16.gmra.mrb[104].mxu1 %vm200_vm1, %v16244_v11  ;;  %15524 = vmatmul.mubr.msk.bf16.gmra.mrb[76].mxu0 %vm200_vm1, %v16243_v23 }
 0x8ce   :  { %4695 = vmatpush1.bf16.msra.mxu0 %v18348_v46  ;;  %15527 = vmatprep.mubr.msk.bf16.mxu0 %vm17390_vm0, %v17389_v0 }
 0x8cf   :  { %15531 = vmatprep.subr.bf16.mxu0 %v17389_v0  ;;  %4175 = vmatprep.subr.bf16.mxu1 %v16263_v17 }
 0x8d0   :  { %4176 = vmatpush1.bf16.msra.mxu1 %v16261_v51 }
 0x8d1   :  { %4177 = vmatprep.subr.bf16.mxu1 %v16266_v6 }
 0x8d4   :  { %4178 = vmatpush1.bf16.msra.mxu1 %v16264_v56 }
 0x8d5   :  { %15528 = vmatmul.mubr.msk.bf16.gmra.mrb[80].mxu0 %vm200_vm1, %v16244_v11  ;;  %4179 = vmatprep.subr.bf16.mxu1 %v16269_v18 }
 0x8d6   :  { %4722 = vmatprep.mubr.bf16.mxu0 %v17391_v34 }
 0x8d8   :  { %4180 = vmatpush1.bf16.msra.mxu1 %v16267_v5 }
 0x8d9   :  { %4181 = vmatprep.subr.bf16.mxu1 %v16272_v32 }
 0x8dc   :  { %4182 = vmatpush1.bf16.msra.mxu1 %v16270_v33 }
 0x8dd   :  { %14475 = vmatmul.mubr.msk.bf16.vlgmr.msra.gmra.mrb[84].mxu0 %vm200_vm1, %v16245_v3  ;;  %4183 = vmatprep.subr.bf16.mxu1 %v16275_v43 }
 0x8de   :  { %15532 = vmatpush3.bf16.msra.mxu0 %v18350_v59  ;;  %4732 = vmatprep.mubr.bf16.mxu0 %v17391_v34 }
 0x8df   :  { %15533 = vmatprep.subr.bf16.mxu0 %v17389_v0 }
 0x8e0   :  { %4184 = vmatpush1.bf16.msra.mxu1 %v16273_v28 }
 0x8e1   :  { %4185 = vmatprep.subr.bf16.mxu1 %v16278_v22 }
 0x8e2   :  { %15534 = vmatpush3.bf16.msra.mxu0 %v18358_v2 }
 0x8e3   :  { %15535 = vmatprep.subr.bf16.mxu0 %v17389_v0 }
 0x8e5   :  { %14476 = vmatmul.mubr.msk.bf16.gmra.mrb[88].mxu0 %vm200_vm1, %v16246_v26 }
 0x8e6   :  { %15536 = vmatpush3.bf16.msra.mxu0 %v18365_v41  ;;  %4742 = vmatprep.mubr.bf16.mxu0 %v17391_v34 }
 0x8e7   :  { %5274 = vmatprep.subr.bf16.mxu0 %v18323_v20  ;;  %v16276_v20 = vld [vmem:[#allocation10 + $0x1f8] ss:$8 sps:$4 sm:$0xff]  }
 0x8e8   :  { %4186 = vmatpush1.bf16.msra.mxu1 %v16276_v20  ;;  %v16302_v20 = vld [vmem:[#allocation10 + $0x27c] ss:$8 sps:$4 sm:$0xff]  }
 0x8e9   :  { %4187 = vmatprep.subr.bf16.mxu1 %v16281_v21  ;;  %v16300_v21 = vld [vmem:[#allocation10 + $0x278] ss:$8 sps:$4 sm:$0xff]  }
 0x8ed   :  { %14477 = vmatmul.mubr.msk.bf16.gmra.mrb[92].mxu0 %vm200_vm1, %v16247_v63 }
 0x8ee   :  { %15537 = vmatprep.mubr.msk.bf16.mxu0 %vm17390_vm0, %v17389_v0 }
 0x8f5   :  { %15538 = vmatmul.mubr.msk.bf16.vlgmr.msra.gmra.mrb[96].mxu0 %vm200_vm1, %v16245_v3 }
 0x8f6   :  { %5275 = vmatpush1.bf16.msra.mxu0 %v18326_v53  ;;  %15541 = vmatprep.mubr.msk.bf16.mxu0 %vm17390_vm0, %v17389_v0  ;;  %v16279_v53 = vld [vmem:[#allocation10 + $0x208] ss:$8 sps:$4 sm:$0xff]  }
 0x8f7   :  { %5276 = vmatprep.subr.bf16.mxu0 %v18329_v27  ;;  %4188 = vmatpush1.bf16.msra.mxu1 %v16279_v53  ;;  %v16282_v27 = vld [vmem:[#allocation10 + $0x218] ss:$8 sps:$4 sm:$0xff]  }
 0x8f8   :  { %4189 = vmatprep.subr.bf16.mxu1 %v16284_v13  ;;  %v16305_v13 = vld [vmem:[#allocation10 + $0x28c] ss:$8 sps:$4 sm:$0xff]  }
 0x8fa   :  { %5277 = vmatpush1.bf16.msra.mxu0 %v18337_v25  ;;  %v16290_v25 = vld [vmem:[#allocation10 + $0x23c] ss:$8 sps:$4 sm:$0xff]  }
 0x8fb   :  { %5278 = vmatprep.subr.bf16.mxu0 %v18342_v16  ;;  %4190 = vmatpush1.bf16.msra.mxu1 %v16282_v27  ;;  %v16347_v16 = vld [vmem:[#allocation4 + $0xf8] sm:$0xff]  }
 0x8fc   :  { %4191 = vmatprep.subr.bf16.mxu1 %v16287_v12 }
 0x8fd   :  { %15542 = vmatmul.mubr.msk.bf16.gmra.mrb[100].mxu0 %vm200_vm1, %v16246_v26 }
 0x8fe   :  { %5279 = vmatpush1.bf16.msra.mxu0 %v18348_v46  ;;  %15545 = vmatprep.mubr.msk.bf16.mxu0 %vm17390_vm0, %v17389_v0 }
 0x8ff   :  { %15549 = vmatprep.subr.bf16.mxu0 %v17389_v0  ;;  %4192 = vmatpush1.bf16.msra.mxu1 %v16285_v15 }
 0x900   :  { %4193 = vmatprep.subr.bf16.mxu1 %v16290_v25 }
 0x903   :  { %4194 = vmatpush1.bf16.msra.mxu1 %v16288_v24 }
 0x904   :  { %4195 = vmatprep.subr.bf16.mxu1 %v16293_v29 }
 0x905   :  { %15546 = vmatmul.mubr.msk.bf16.gmra.mrb[104].mxu0 %vm200_vm1, %v16247_v63  ;;  %v16297_v63 = vld [vmem:[#allocation10 + $0x268] ss:$8 sps:$4 sm:$0xff]  }
 0x906   :  { %5306 = vmatprep.mubr.bf16.mxu0 %v17391_v34 }
 0x907   :  { %4196 = vmatpush1.bf16.msra.mxu1 %v16291_v30 }
 0x908   :  { %4197 = vmatprep.subr.bf16.mxu1 %v16296_v44  ;;  %v16303_v44 = vld [vmem:[#allocation10 + $0x288] ss:$8 sps:$4 sm:$0xff]  }
 0x90b   :  { %4198 = vmatpush1.bf16.msra.mxu1 %v16294_v42 }
 0x90c   :  { %4230 = vmatprep.subr.bf16.mxu1 %v16299_v62  ;;  %v16308_v62 = vld [vmem:[#allocation10 + $0x29c] ss:$8 sps:$4 sm:$0xff]  }
 0x90d   :  { %14534 = vmatmul.mubr.msk.bf16.vlgmr.msra.gmra.mrb[108].mxu0 %vm200_vm1, %v16248_v58 }
 0x90e   :  { %15550 = vmatpush3.bf16.msra.mxu0 %v18350_v59  ;;  %5316 = vmatprep.mubr.bf16.mxu0 %v17391_v34 }
 0x90f   :  { %15551 = vmatprep.subr.bf16.mxu0 %v17389_v0 }
 0x912   :  { %15552 = vmatpush3.bf16.msra.mxu0 %v18358_v2 }
 0x913   :  { %15553 = vmatprep.subr.bf16.mxu0 %v17389_v0 }
 0x915   :  { %14535 = vmatmul.mubr.msk.bf16.gmra.mrb[112].mxu0 %vm200_vm1, %v16347_v16 }
 0x916   :  { %15554 = vmatpush3.bf16.msra.mxu0 %v18365_v41  ;;  %5326 = vmatprep.mubr.bf16.mxu0 %v17391_v34 }
 0x91d   :  { %14536 = vmatmul.mubr.msk.bf16.gmra.mrb[116].mxu0 %vm200_vm1, %v16354_v50 }
 0x91e   :  { %15555 = vmatprep.mubr.msk.bf16.mxu0 %vm17390_vm0, %v17389_v0 }
 0x925   :  { %15556 = vmatmul.mubr.msk.bf16.vlgmr.msra.gmra.mrb[120].mxu0 %vm200_vm1, %v16248_v58 }
 0x926   :  { %15559 = vmatprep.mubr.msk.bf16.mxu0 %vm17390_vm0, %v17389_v0 }
 0x92d   :  { %15560 = vmatmul.mubr.msk.bf16.gmra.mrb[124].mxu0 %vm200_vm1, %v16347_v16 }
 0x92e   :  { %15563 = vmatprep.mubr.msk.bf16.mxu0 %vm17390_vm0, %v17389_v0 }
 0x935   :  { %15564 = vmatmul.mubr.msk.bf16.gmra.mrb[128].mxu0 %vm200_vm1, %v16354_v50  ;;  %v16306_v50 = vld [vmem:[#allocation10 + $0x298] ss:$8 sps:$4 sm:$0xff]  }
 0x936   :  { %6156 = vmatprep.mubr.bf16.mxu0 %v17391_v34 }
 0x978   :  { %v18456_v45 = vpop.f32.mrb[84].mxu1 }
 0x979   :  { %v18458_v47 = vpop.f32.mrb[85].mxu1 }
 0x97a   :  { %v18460_v49 = vpop.f32.mrb[86].mxu1 }
 0x97b   :  { %v3667_v46 = vpack.c.bf16 %v18460_v49, %v18456_v45  ;;  %v18465_v59 = vpop.f32.mrb[87].mxu1  ;;  %v16376_v45 = vld [vmem:[#allocation10 + $0x130] ss:$8 sps:$4 sm:$0xff]   ;;  %v16381_v49 = vld [vmem:[#allocation10 + $0x144] ss:$8 sps:$4 sm:$0xff]  }
 0x97c   :  { %v3668_v1 = vpack.c.bf16 %v18465_v59, %v18458_v47  ;;  %v16338_v59 = vld [vmem:[#allocation10 + $0x70] ss:$8 sps:$4 sm:$0xff]  }
 0x980   :  { %v18470_v38 = vpop.f32.mrb[88].mxu1  ;;  %v18472_v55 = vpop.f32.mrb[60].mxu0 }
 0x981   :  { %v18474_v36 = vpop.f32.mrb[89].mxu1  ;;  %v15503_v8 = vpop.f32.mrb[61].mxu0 }
 0x982   :  { %v18476_v2 = vpop.f32.mrb[90].mxu1  ;;  %v18478_v19 = vpop.f32.mrb[62].mxu0 }
 0x983   :  { %v3670_v52 = vpack.c.bf16 %v18476_v2, %v18470_v38  ;;  %v18482_v41 = vpop.f32.mrb[91].mxu1  ;;  %v3669_v48 = vpack.c.bf16 %v18478_v19, %v18472_v55  ;;  %v15504_v9 = vpop.f32.mrb[63].mxu0  ;;  %v16382_v38 = vld [vmem:[#allocation10 + $0x150] ss:$8 sps:$4 sm:$0xff]   ;;  %v16398_v55 = vld [vmem:[#allocation10 + $0x304] ss:$8 sps:$4 sm:$0xff]  }
 0x984   :  { %v3671_v10 = vpack.c.bf16 %v18482_v41, %v18474_v36  ;;  %v16384_v36 = vld [vmem:[#allocation10 + $0x154] ss:$8 sps:$4 sm:$0xff]   ;;  %v3720_v41 = vld [vmem:[#allocation10 + $0x160] sm:$0xff] }
 0x985   :  { %v14467_v2 = vcombine.high %v3720_v41, %v3720_v41  ;;  %v16396_v19 = vld [vmem:[#allocation10 + $0x300] ss:$8 sps:$4 sm:$0xff]  }
 0x988   :  { %v18488_v39 = vpop.f32.mrb[92].mxu1  ;;  %v18490_v61 = vpop.f32.mrb[64].mxu0 }
 0x989   :  { %v18492_v40 = vpop.f32.mrb[93].mxu1  ;;  %v15507_v35 = vpop.f32.mrb[65].mxu0 }
 0x98a   :  { %v18494_v7 = vpop.f32.mrb[94].mxu1  ;;  %v18496_v23 = vpop.f32.mrb[66].mxu0  ;;  %v16311_v35 = vld [vmem:[#allocation10 + $0x2ac] ss:$8 sps:$4 sm:$0xff]  }
 0x98b   :  { %v3673_v37 = vpack.c.bf16 %v18494_v7, %v18488_v39  ;;  %v18500_v14 = vpop.f32.mrb[95].mxu1  ;;  %v3672_v31 = vpack.c.bf16 %v18496_v23, %v18490_v61  ;;  %v15508_v11 = vpop.f32.mrb[67].mxu0  ;;  %v16390_v39 = vld [vmem:[#allocation10 + $0x2e0] ss:$8 sps:$4 sm:$0xff]  }
 0x98c   :  { %v3674_v17 = vpack.c.bf16 %v18500_v14, %v18492_v40  ;;  %v16389_v40 = vld [vmem:[#allocation10 + $0x2d4] ss:$8 sps:$4 sm:$0xff]   ;;  %v16387_v14 = vld [vmem:[#allocation10 + $0x2d0] ss:$8 sps:$4 sm:$0xff]   ;;  %v16402_v23 = vld [vmem:[#allocation10 + $0x320] ss:$8 sps:$4 sm:$0xff]  }
 0x990   :  { %v3786_v51 = vpop.f32.mrb[96].mxu1  ;;  %v18506_v6 = vpop.f32.mrb[68].mxu0 }
 0x991   :  { %v3788_v56 = vpop.f32.mrb[97].mxu1  ;;  %v15511_v18 = vpop.f32.mrb[69].mxu0 }
 0x992   :  { %v3790_v5 = vpop.f32.mrb[98].mxu1  ;;  %v18508_v32 = vpop.f32.mrb[70].mxu0 }
 0x993   :  { %v3872_v33 = vpack.c.bf16 %v3790_v5, %v3786_v51  ;;  %v3792_v3 = vpop.f32.mrb[99].mxu1  ;;  %v3675_v43 = vpack.c.bf16 %v18508_v32, %v18506_v6  ;;  %v15512_v28 = vpop.f32.mrb[71].mxu0  ;;  %v16410_v6 = vld [vmem:[#allocation10 + $0x344] ss:$8 sps:$4 sm:$0xff]   ;;  %v16408_v32 = vld [vmem:[#allocation10 + $0x340] ss:$8 sps:$4 sm:$0xff]  }
 0x994   :  { %v3873_v26 = vpack.c.bf16 %v3792_v3, %v3788_v56 }
 0x996   :  { %4199 = vmatprep.mubr.bf16.mxu1 %v3873_v26  ;;  %v16309_v26 = vld [vmem:[#allocation10 + $0x2a8] ss:$8 sps:$4 sm:$0xff]  }
 0x997   :  { %4200 = vmatmul.mubr.bf16.vlgmr.msra.gmra.mrb[108].mxu1 %v3872_v33 }
 0x998   :  { %4231 = vmatpush1.bf16.msra.mxu1 %v16297_v63  ;;  %v3796_v22 = vpop.f32.mrb[100].mxu1  ;;  %v3849_v53 = vpop.f32.mrb[72].mxu0  ;;  %v16314_v63 = vld [vmem:[#allocation10 + $0x2bc] ss:$8 sps:$4 sm:$0xff]  }
 0x999   :  { %v3798_v27 = vpop.f32.mrb[101].mxu1  ;;  %4232 = vmatprep.subr.bf16.mxu1 %v16302_v20  ;;  %v15521_v12 = vpop.f32.mrb[73].mxu0  ;;  %v3926_v20 = vld [vmem:[#allocation10 + $0x2c8] sm:$0xff] }
 0x99a   :  { %v3800_v15 = vpop.f32.mrb[102].mxu1  ;;  %v3852_v58 = vpop.f32.mrb[74].mxu0 }
 0x99b   :  { %v3875_v24 = vpack.c.bf16 %v3800_v15, %v3796_v22  ;;  %v3802_v25 = vpop.f32.mrb[103].mxu1  ;;  %v3874_v29 = vpack.c.bf16 %v3852_v58, %v3849_v53  ;;  %v15522_v30 = vpop.f32.mrb[75].mxu0  ;;  %v16312_v22 = vld [vmem:[#allocation10 + $0x2b8] ss:$8 sps:$4 sm:$0xff]   ;;  %v14417_v53 = vcombine.high %v3926_v20, %v3926_v20 }
 0x99c   :  { %v3876_v42 = vpack.c.bf16 %v3802_v25, %v3798_v27  ;;  %4233 = vmatpush1.bf16.msra.mxu1 %v16300_v21  ;;  %v14416_v27 = vcombine.low %v3926_v20, %v3926_v20  ;;  %v16319_v25 = vld [vmem:[#allocation10 + $0x4] ss:$8 sps:$4 sm:$0xff]   ;;  %v16317_v30 = vld [vmem:[#allocation10] ss:$8 sps:$4 sm:$0xff]  }
 0x99d   :  { %4234 = vmatprep.subr.bf16.mxu1 %v16305_v13 }
 0x99e   :  { %4209 = vmatprep.mubr.bf16.mxu1 %v3876_v42  ;;  %v16322_v42 = vld [vmem:[#allocation10 + $0x14] ss:$8 sps:$4 sm:$0xff]  }
 0x99f   :  { %4210 = vmatmul.mubr.bf16.gmra.mrb[112].mxu1 %v3875_v24  ;;  %v4162_v24 = vsel %vm20677_vm2, %v14416_v27, 0 }
 0x9a0   :  { %4235 = vmatpush1.bf16.msra.mxu1 %v16303_v44  ;;  %v3806_v16 = vpop.f32.mrb[104].mxu1  ;;  %v3857_v8 = vpop.f32.mrb[76].mxu0  ;;  %v16320_v44 = vld [vmem:[#allocation10 + $0x10] ss:$8 sps:$4 sm:$0xff]  }
 0x9a1   :  { %v3808_v9 = vpop.f32.mrb[105].mxu1  ;;  %4236 = vmatprep.subr.bf16.mxu1 %v16308_v62  ;;  %v15525_v11 = vpop.f32.mrb[77].mxu0  ;;  %v16325_v62 = vld [vmem:[#allocation10 + $0x24] ss:$8 sps:$4 sm:$0xff]  }
 0x9a2   :  { %v3810_v51 = vpop.f32.mrb[106].mxu1  ;;  %v3860_v56 = vpop.f32.mrb[78].mxu0  ;;  %v16332_v11 = vld [vmem:[#allocation10 + $0x50] ss:$8 sps:$4 sm:$0xff]  }
 0x9a3   :  { %v3878_v18 = vpack.c.bf16 %v3810_v51, %v3806_v16  ;;  %v3812_v5 = vpop.f32.mrb[107].mxu1  ;;  %v3877_v33 = vpack.c.bf16 %v3860_v56, %v3857_v8  ;;  %v15526_v3 = vpop.f32.mrb[79].mxu0  ;;  %v16323_v16 = vld [vmem:[#allocation10 + $0x20] ss:$8 sps:$4 sm:$0xff]   ;;  %v16326_v8 = vld [vmem:[#allocation10 + $0x30] ss:$8 sps:$4 sm:$0xff]  }
 0x9a4   :  { %v3879_v28 = vpack.c.bf16 %v3812_v5, %v3808_v9  ;;  %4237 = vmatpush1.bf16.msra.mxu1 %v16306_v50  ;;  %v16328_v50 = vld [vmem:[#allocation10 + $0x34] ss:$8 sps:$4 sm:$0xff]   ;;  %v16331_v9 = vld [vmem:[#allocation10 + $0x44] ss:$8 sps:$4 sm:$0xff]   ;;  %v16335_v3 = vld [vmem:[#allocation10 + $0x60] ss:$8 sps:$4 sm:$0xff]  }
 0x9a5   :  { %4238 = vmatprep.subr.bf16.mxu1 %v16311_v35  ;;  %v16334_v35 = vld [vmem:[#allocation10 + $0x54] ss:$8 sps:$4 sm:$0xff]   ;;  %v16337_v56 = vld [vmem:[#allocation10 + $0x64] ss:$8 sps:$4 sm:$0xff]  }
 0x9a6   :  { %4219 = vmatprep.mubr.bf16.mxu1 %v3879_v28 }
 0x9a7   :  { %4220 = vmatmul.mubr.bf16.gmra.mrb[116].mxu1 %v3878_v18 }
 0x9a8   :  { %4239 = vmatpush1.bf16.msra.mxu1 %v16309_v26  ;;  %4262 = vmatprep.mubr.bf16.mxu1 %v17391_v34  ;;  %v3865_v21 = vpop.f32.mrb[80].mxu0  ;;  %v16340_v26 = vld [vmem:[#allocation10 + $0x74] ss:$8 sps:$4 sm:$0xff]  }
 0x9a9   :  { %4240 = vmatprep.subr.bf16.mxu1 %v16314_v63  ;;  %v15529_v13 = vpop.f32.mrb[81].mxu0  ;;  %v16341_v63 = vld [vmem:[#allocation10 + $0x80] ss:$8 sps:$4 sm:$0xff]  }
 0x9aa   :  { %v3868_v12 = vpop.f32.mrb[82].mxu0 }
 0x9ab   :  { %v3880_v15 = vpack.c.bf16 %v3868_v12, %v3865_v21  ;;  %v15530_v58 = vpop.f32.mrb[83].mxu0  ;;  %v16344_v12 = vld [vmem:[#allocation10 + $0x90] ss:$8 sps:$4 sm:$0xff]  }
 0x9ac   :  { %4241 = vmatpush1.bf16.msra.mxu1 %v16312_v22  ;;  %v16346_v22 = vld [vmem:[#allocation10 + $0x94] ss:$8 sps:$4 sm:$0xff]   ;;  %v16350_v58 = vld [vmem:[#allocation10 + $0xa4] ss:$8 sps:$4 sm:$0xff]  }
 0x9ad   :  { %14418 = vmatprep.subr.msk.bf16.mxu1 %vm20677_vm2, %v14417_v53 }
 0x9b0   :  { %4243 = vmatpush1.bf16.msra.mxu1 %v4162_v24  ;;  %v18523_v51 = vpop.f32.mrb[84].mxu0  ;;  %v16348_v24 = vld [vmem:[#allocation10 + $0xa0] ss:$8 sps:$4 sm:$0xff]  }
 0x9b1   :  { %4533 = vmatprep.subr.bf16.mxu1 %v16319_v25  ;;  %v18525_v18 = vpop.f32.mrb[85].mxu0 }
 0x9b2   :  { %v18527_v5 = vpop.f32.mrb[86].mxu0 }
 0x9b3   :  { %14419 = vmatmul.mubr.msk.bf16.vlgmr.msra.gmra.mrb[108].mxu1 %vm3198_vm15, %v3874_v29  ;;  %v16329_v29 = vld [vmem:[#allocation10 + $0x40] ss:$8 sps:$4 sm:$0xff]   ;;  %v18531_v28 = vpop.f32.mrb[87].mxu0 }
 0x9b4   :  { %4534 = vmatpush1.bf16.msra.mxu1 %v16317_v30  ;;  %4272 = vmatprep.mubr.bf16.mxu1 %v17391_v34  ;;  %v4811_v47 = vpack.c.bf16 %v18531_v28, %v18525_v18  ;;  %v16353_v30 = vld [vmem:[#allocation10 + $0xb4] ss:$8 sps:$4 sm:$0xff]  }
 0x9b5   :  { %4535 = vmatprep.subr.bf16.mxu1 %v16322_v42  ;;  %v16413_v28 = vld [vmem:[#allocation10 + $0x354] ss:$8 sps:$4 sm:$0xff]  }
 0x9b8   :  { %4536 = vmatpush1.bf16.msra.mxu1 %v16320_v44  ;;  %v18535_v20 = vpop.f32.mrb[88].mxu0 }
 0x9b9   :  { %4537 = vmatprep.subr.bf16.mxu1 %v16325_v62  ;;  %v18537_v21 = vpop.f32.mrb[89].mxu0 }
 0x9ba   :  { %v18539_v53 = vpop.f32.mrb[90].mxu0 }
 0x9bb   :  { %14420 = vmatmul.mubr.msk.bf16.gmra.mrb[112].mxu1 %vm3198_vm15, %v3877_v33  ;;  %v4810_v33 = vpack.c.bf16 %v18527_v5, %v18523_v51  ;;  %v4813_v27 = vpack.c.bf16 %v18539_v53, %v18535_v20  ;;  %v18543_v13 = vpop.f32.mrb[91].mxu0  ;;  %v16444_v51 = vld [vmem:[#allocation10 + $0x400] ss:$8 sps:$4 sm:$0xff]   ;;  %v16449_v5 = vld [vmem:[#allocation10 + $0x414] ss:$8 sps:$4 sm:$0xff]  }
 0x9bc   :  { %4538 = vmatpush1.bf16.msra.mxu1 %v16323_v16  ;;  %4282 = vmatprep.mubr.bf16.mxu1 %v17391_v34  ;;  %v16450_v20 = vld [vmem:[#allocation10 + $0x420] ss:$8 sps:$4 sm:$0xff]  }
 0x9bd   :  { %4539 = vmatprep.subr.bf16.mxu1 %v16328_v50  ;;  %v16351_v50 = vld [vmem:[#allocation10 + $0xb0] ss:$8 sps:$4 sm:$0xff]  }
 0x9c0   :  { %4540 = vmatpush1.bf16.msra.mxu1 %v16326_v8  ;;  %v18547_v25 = vpop.f32.mrb[92].mxu0 }
 0x9c1   :  { %4541 = vmatprep.subr.bf16.mxu1 %v16331_v9  ;;  %v18549_v42 = vpop.f32.mrb[93].mxu0  ;;  %v16357_v9 = vld [vmem:[#allocation10 + $0xc4] ss:$8 sps:$4 sm:$0xff]  }
 0x9c2   :  { %v18551_v44 = vpop.f32.mrb[94].mxu0 }
 0x9c3   :  { %14421 = vmatmul.mubr.msk.bf16.gmra.mrb[116].mxu1 %vm3198_vm15, %v3880_v15  ;;  %v4814_v15 = vpack.c.bf16 %v18543_v13, %v18537_v21  ;;  %v4816_v62 = vpack.c.bf16 %v18551_v44, %v18547_v25  ;;  %v18555_v16 = vpop.f32.mrb[95].mxu0  ;;  %v16452_v21 = vld [vmem:[#allocation10 + $0x424] ss:$8 sps:$4 sm:$0xff]   ;;  %v4864_v13 = vld [vmem:[#allocation10 + $0x430] sm:$0xff] }
 0x9c4   :  { %4542 = vmatpush1.bf16.msra.mxu1 %v16329_v29  ;;  %4565 = vmatprep.mubr.bf16.mxu1 %v3668_v1  ;;  %v16343_v1 = vld [vmem:[#allocation10 + $0x84] ss:$8 sps:$4 sm:$0xff]   ;;  %v4817_v8 = vpack.c.bf16 %v18555_v16, %v18549_v42  ;;  %v16355_v29 = vld [vmem:[#allocation10 + $0xc0] ss:$8 sps:$4 sm:$0xff]   ;;  %v14526_v53 = vcombine.high %v4864_v13, %v4864_v13 }
 0x9c5   :  { %4543 = vmatprep.subr.bf16.mxu1 %v16334_v35  ;;  %v16360_v35 = vld [vmem:[#allocation10 + $0xd4] ss:$8 sps:$4 sm:$0xff]   ;;  %v16455_v16 = vld [vmem:[#allocation10 + $0x438] ss:$8 sps:$4 sm:$0xff]   ;;  %v16458_v25 = vld [vmem:[#allocation10 + $0x448] ss:$8 sps:$4 sm:$0xff]  }
 0x9c6   :  { %v16457_v42 = vld [vmem:[#allocation10 + $0x43c] ss:$8 sps:$4 sm:$0xff]  }
 0x9c7   :  { %v16463_v44 = vld [vmem:[#allocation10 + $0x45c] ss:$8 sps:$4 sm:$0xff]  }
 0x9c8   :  { %4544 = vmatpush1.bf16.msra.mxu1 %v16332_v11  ;;  %v18559_v11 = vpop.f32.mrb[96].mxu0 }
 0x9c9   :  { %4545 = vmatprep.subr.bf16.mxu1 %v16337_v56  ;;  %v15539_v56 = vpop.f32.mrb[97].mxu0 }
 0x9ca   :  { %v16378_v56 = vld [vmem:[#allocation10 + $0x134] ss:$8 sps:$4 sm:$0xff]  }
 0x9cc   :  { %4546 = vmatpush1.bf16.msra.mxu1 %v16335_v3  ;;  %v16358_v3 = vld [vmem:[#allocation10 + $0xd0] ss:$8 sps:$4 sm:$0xff]  }
 0x9cd   :  { %4547 = vmatprep.subr.bf16.mxu1 %v16340_v26  ;;  %v18561_v26 = vpop.f32.mrb[98].mxu0 }
 0x9d0   :  { %4548 = vmatpush1.bf16.msra.mxu1 %v16338_v59  ;;  %v16363_v59 = vld [vmem:[#allocation10 + $0xe4] ss:$8 sps:$4 sm:$0xff]  }
 0x9d1   :  { %4549 = vmatprep.subr.bf16.mxu1 %v16343_v1  ;;  %v4812_v1 = vpack.c.bf16 %v18561_v26, %v18559_v11  ;;  %v16469_v11 = vld [vmem:[#allocation10 + $0x47c] ss:$8 sps:$4 sm:$0xff]   ;;  %v16467_v26 = vld [vmem:[#allocation10 + $0x478] ss:$8 sps:$4 sm:$0xff]  }
 0x9d4   :  { %4550 = vmatpush1.bf16.msra.mxu1 %v16341_v63  ;;  %v15540_v63 = vpop.f32.mrb[99].mxu0 }
 0x9d5   :  { %4551 = vmatprep.subr.bf16.mxu1 %v16346_v22  ;;  %v16361_v22 = vld [vmem:[#allocation10 + $0xe0] ss:$8 sps:$4 sm:$0xff]   ;;  %v18588_v7 = vpop.f32.mrb[100].mxu0 }
 0x9d8   :  { %4552 = vmatpush1.bf16.msra.mxu1 %v16344_v12  ;;  %v16366_v12 = vld [vmem:[#allocation10 + $0xf4] ss:$8 sps:$4 sm:$0xff]  }
 0x9d9   :  { %4553 = vmatprep.subr.bf16.mxu1 %v16350_v58  ;;  %v16364_v58 = vld [vmem:[#allocation10 + $0xf0] ss:$8 sps:$4 sm:$0xff]  }
 0x9dc   :  { %4554 = vmatpush1.bf16.msra.mxu1 %v16348_v24  ;;  %v16369_v24 = vld [vmem:[#allocation10 + $0x104] ss:$8 sps:$4 sm:$0xff]  }
 0x9dd   :  { %4555 = vmatprep.subr.bf16.mxu1 %v16353_v30  ;;  %v16367_v30 = vld [vmem:[#allocation10 + $0x100] ss:$8 sps:$4 sm:$0xff]  }
 0x9e0   :  { %4556 = vmatpush1.bf16.msra.mxu1 %v16351_v50  ;;  %v16372_v50 = vld [vmem:[#allocation10 + $0x114] ss:$8 sps:$4 sm:$0xff]  }
 0x9e1   :  { %4557 = vmatprep.subr.bf16.mxu1 %v16357_v9  ;;  %v16370_v9 = vld [vmem:[#allocation10 + $0x110] ss:$8 sps:$4 sm:$0xff]  }
 0x9e4   :  { %4558 = vmatpush1.bf16.msra.mxu1 %v16355_v29  ;;  %v16375_v29 = vld [vmem:[#allocation10 + $0x124] ss:$8 sps:$4 sm:$0xff]  }
 0x9e5   :  { %4559 = vmatprep.subr.bf16.mxu1 %v16360_v35  ;;  %v16373_v35 = vld [vmem:[#allocation10 + $0x120] ss:$8 sps:$4 sm:$0xff]  }
 0x9e8   :  { %4560 = vmatpush1.bf16.msra.mxu1 %v16358_v3  ;;  %v15543_v3 = vpop.f32.mrb[101].mxu0 }
 0x9e9   :  { %4561 = vmatprep.subr.bf16.mxu1 %v16363_v59  ;;  %v18590_v59 = vpop.f32.mrb[102].mxu0 }
 0x9ea   :  { %v4815_v63 = vpack.c.bf16 %v18590_v59, %v18588_v7  ;;  %v16475_v7 = vld [vmem:[#allocation10 + $0x49c] ss:$8 sps:$4 sm:$0xff]   ;;  %v16473_v59 = vld [vmem:[#allocation10 + $0x498] ss:$8 sps:$4 sm:$0xff]  }
 0x9ec   :  { %4562 = vmatpush1.bf16.msra.mxu1 %v16361_v22  ;;  %v15544_v22 = vpop.f32.mrb[103].mxu0 }
 0x9ed   :  { %4563 = vmatprep.subr.bf16.mxu1 %v16366_v12  ;;  %v16393_v12 = vld [vmem:[#allocation10 + $0x2f0] ss:$8 sps:$4 sm:$0xff]  }
 0x9f0   :  { %4564 = vmatpush1.bf16.msra.mxu1 %v16364_v58  ;;  %v16401_v58 = vld [vmem:[#allocation10 + $0x314] ss:$8 sps:$4 sm:$0xff]  }
 0x9f1   :  { %4596 = vmatprep.subr.bf16.mxu1 %v16369_v24 }
 0x9f3   :  { %4566 = vmatmul.mubr.bf16.vlgmr.msra.gmra.mrb[108].mxu1 %v3667_v46  ;;  %v16379_v46 = vld [vmem:[#allocation10 + $0x140] ss:$8 sps:$4 sm:$0xff]  }
 0x9f4   :  { %4575 = vmatprep.mubr.bf16.mxu1 %v3671_v10  ;;  %4597 = vmatpush1.bf16.msra.mxu1 %v16367_v30 }
 0x9f5   :  { %4598 = vmatprep.subr.bf16.mxu1 %v16372_v50 }
 0x9f8   :  { %4599 = vmatpush1.bf16.msra.mxu1 %v16370_v9  ;;  %v16399_v9 = vld [vmem:[#allocation10 + $0x310] ss:$8 sps:$4 sm:$0xff]  }
 0x9f9   :  { %4600 = vmatprep.subr.bf16.mxu1 %v16375_v29  ;;  %v16404_v29 = vld [vmem:[#allocation10 + $0x324] ss:$8 sps:$4 sm:$0xff]  }
 0x9fb   :  { %4576 = vmatmul.mubr.bf16.gmra.mrb[112].mxu1 %v3670_v52  ;;  %v14466_v52 = vcombine.low %v3720_v41, %v3720_v41 }
 0x9fc   :  { %4585 = vmatprep.mubr.bf16.mxu1 %v3674_v17  ;;  %4601 = vmatpush1.bf16.msra.mxu1 %v16373_v35  ;;  %v16392_v17 = vld [vmem:[#allocation10 + $0x2e4] ss:$8 sps:$4 sm:$0xff]   ;;  %v16407_v35 = vld [vmem:[#allocation10 + $0x334] ss:$8 sps:$4 sm:$0xff]  }
 0x9fd   :  { %4602 = vmatprep.subr.bf16.mxu1 %v16378_v56  ;;  %v4528_v10 = vsel %vm20677_vm2, %v14466_v52, 0  ;;  %v16414_v52 = vld [vmem:[#allocation10 + $0x360] ss:$8 sps:$4 sm:$0xff]  }
 0xa00   :  { %4603 = vmatpush1.bf16.msra.mxu1 %v16376_v45 }
 0xa01   :  { %4604 = vmatprep.subr.bf16.mxu1 %v16381_v49  ;;  %v16405_v49 = vld [vmem:[#allocation10 + $0x330] ss:$8 sps:$4 sm:$0xff]  }
 0xa03   :  { %4586 = vmatmul.mubr.bf16.gmra.mrb[116].mxu1 %v3673_v37  ;;  %v16395_v37 = vld [vmem:[#allocation10 + $0x2f4] ss:$8 sps:$4 sm:$0xff]  }
 0xa04   :  { %4605 = vmatpush1.bf16.msra.mxu1 %v16379_v46  ;;  %4628 = vmatprep.mubr.bf16.mxu1 %v17391_v34 }
 0xa05   :  { %4606 = vmatprep.subr.bf16.mxu1 %v16384_v36  ;;  %v16416_v36 = vld [vmem:[#allocation10 + $0x364] ss:$8 sps:$4 sm:$0xff]  }
 0xa08   :  { %4607 = vmatpush1.bf16.msra.mxu1 %v16382_v38 }
 0xa09   :  { %14468 = vmatprep.subr.msk.bf16.mxu1 %vm20677_vm2, %v14467_v2 }
 0xa0c   :  { %4609 = vmatpush1.bf16.msra.mxu1 %v4528_v10 }
 0xa0d   :  { %5105 = vmatprep.subr.bf16.mxu1 %v16389_v40 }
 0xa0f   :  { %14469 = vmatmul.mubr.msk.bf16.vlgmr.msra.gmra.mrb[108].mxu1 %vm3198_vm15, %v3669_v48  ;;  %v18599_v48 = vpop.f32.mrb[104].mxu0 }
 0xa10   :  { %5106 = vmatpush1.bf16.msra.mxu1 %v16387_v14  ;;  %4638 = vmatprep.mubr.bf16.mxu1 %v17391_v34  ;;  %v15547_v24 = vpop.f32.mrb[105].mxu0  ;;  %v16419_v14 = vld [vmem:[#allocation10 + $0x374] ss:$8 sps:$4 sm:$0xff]  }
 0xa11   :  { %5107 = vmatprep.subr.bf16.mxu1 %v16392_v17  ;;  %v18601_v30 = vpop.f32.mrb[106].mxu0  ;;  %v16425_v24 = vld [vmem:[#allocation10 + $0x394] ss:$8 sps:$4 sm:$0xff]  }
 0xa12   :  { %v15548_v50 = vpop.f32.mrb[107].mxu0  ;;  %v4818_v61 = vpack.c.bf16 %v18601_v30, %v18599_v48  ;;  %v16479_v48 = vld [vmem:[#allocation10 + $0x4b8] ss:$8 sps:$4 sm:$0xff]   ;;  %v16484_v30 = vld [vmem:[#allocation10 + $0x4cc] ss:$8 sps:$4 sm:$0xff]  }
 0xa14   :  { %5108 = vmatpush1.bf16.msra.mxu1 %v16390_v39  ;;  %v16417_v39 = vld [vmem:[#allocation10 + $0x370] ss:$8 sps:$4 sm:$0xff]  }
 0xa15   :  { %5109 = vmatprep.subr.bf16.mxu1 %v16395_v37  ;;  %v16422_v37 = vld [vmem:[#allocation10 + $0x384] ss:$8 sps:$4 sm:$0xff]  }
 0xa17   :  { %14470 = vmatmul.mubr.msk.bf16.gmra.mrb[112].mxu1 %vm3198_vm15, %v3672_v31  ;;  %v18612_v31 = vpop.f32.mrb[108].mxu0 }
 0xa18   :  { %5110 = vmatpush1.bf16.msra.mxu1 %v16393_v12  ;;  %4648 = vmatprep.mubr.bf16.mxu1 %v17391_v34  ;;  %v18614_v56 = vpop.f32.mrb[109].mxu0 }
 0xa19   :  { %5111 = vmatprep.subr.bf16.mxu1 %v16398_v55  ;;  %v18616_v45 = vpop.f32.mrb[110].mxu0  ;;  %v16420_v55 = vld [vmem:[#allocation10 + $0x380] ss:$8 sps:$4 sm:$0xff]  }
 0xa1a   :  { %v18618_v46 = vpop.f32.mrb[111].mxu0  ;;  %v5394_v18 = vpack.c.bf16 %v18616_v45, %v18612_v31  ;;  %v16517_v31 = vld [vmem:[#allocation10 + $0x57c] ss:$8 sps:$4 sm:$0xff]   ;;  %v16515_v45 = vld [vmem:[#allocation10 + $0x578] ss:$8 sps:$4 sm:$0xff]  }
 0xa1b   :  { %v18624_v41 = vpop.f32.mrb[112].mxu0 }
 0xa1c   :  { %5112 = vmatpush1.bf16.msra.mxu1 %v16396_v19  ;;  %v18626_v38 = vpop.f32.mrb[113].mxu0 }
 0xa1d   :  { %5113 = vmatprep.subr.bf16.mxu1 %v16401_v58  ;;  %v18628_v2 = vpop.f32.mrb[114].mxu0 }
 0xa1e   :  { %v18630_v10 = vpop.f32.mrb[115].mxu0  ;;  %v5397_v40 = vpack.c.bf16 %v18628_v2, %v18624_v41  ;;  %v16518_v41 = vld [vmem:[#allocation10 + $0x588] ss:$8 sps:$4 sm:$0xff]  }
 0xa1f   :  { %14471 = vmatmul.mubr.msk.bf16.gmra.mrb[116].mxu1 %vm3198_vm15, %v3675_v43  ;;  %v5395_v43 = vpack.c.bf16 %v18618_v46, %v18614_v56  ;;  %v5398_v17 = vpack.c.bf16 %v18630_v10, %v18626_v38  ;;  %v18636_v3 = vpop.f32.mrb[116].mxu0  ;;  %v16485_v56 = vld [vmem:[#allocation10 + $0x4d8] ss:$8 sps:$4 sm:$0xff]   ;;  %v16490_v46 = vld [vmem:[#allocation10 + $0x4ec] ss:$8 sps:$4 sm:$0xff]  }
 0xa20   :  { %5114 = vmatpush1.bf16.msra.mxu1 %v16399_v9  ;;  %5137 = vmatprep.mubr.bf16.mxu1 %v4811_v47  ;;  %v16411_v47 = vld [vmem:[#allocation10 + $0x350] ss:$8 sps:$4 sm:$0xff]   ;;  %v18638_v22 = vpop.f32.mrb[117].mxu0 }
 0xa21   :  { %5115 = vmatprep.subr.bf16.mxu1 %v16404_v29  ;;  %v18640_v12 = vpop.f32.mrb[118].mxu0  ;;  %v16423_v9 = vld [vmem:[#allocation10 + $0x390] ss:$8 sps:$4 sm:$0xff]   ;;  %v16428_v29 = vld [vmem:[#allocation10 + $0x3a4] ss:$8 sps:$4 sm:$0xff]  }
 0xa22   :  { %v5400_v19 = vpack.c.bf16 %v18640_v12, %v18636_v3  ;;  %v18644_v58 = vpop.f32.mrb[119].mxu0  ;;  %v5448_v38 = vld [vmem:[#allocation10 + $0x598] sm:$0xff] }
 0xa23   :  { %v5401_v50 = vpack.c.bf16 %v18644_v58, %v18638_v22  ;;  %v14585_v2 = vcombine.high %v5448_v38, %v5448_v38  ;;  %v14584_v10 = vcombine.low %v5448_v38, %v5448_v38 }
 0xa24   :  { %5116 = vmatpush1.bf16.msra.mxu1 %v16402_v23  ;;  %v18648_v23 = vpop.f32.mrb[120].mxu0 }
 0xa25   :  { %5117 = vmatprep.subr.bf16.mxu1 %v16407_v35  ;;  %v15557_v35 = vpop.f32.mrb[121].mxu0 }
 0xa26   :  { %v16435_v35 = vld [vmem:[#allocation10 + $0x3d0] ss:$8 sps:$4 sm:$0xff]  }
 0xa28   :  { %5118 = vmatpush1.bf16.msra.mxu1 %v16405_v49  ;;  %v16426_v49 = vld [vmem:[#allocation10 + $0x3a0] ss:$8 sps:$4 sm:$0xff]  }
 0xa29   :  { %5119 = vmatprep.subr.bf16.mxu1 %v16410_v6  ;;  %v18650_v6 = vpop.f32.mrb[122].mxu0 }
 0xa2c   :  { %5120 = vmatpush1.bf16.msra.mxu1 %v16408_v32  ;;  %v16431_v32 = vld [vmem:[#allocation10 + $0x3b4] ss:$8 sps:$4 sm:$0xff]  }
 0xa2d   :  { %5121 = vmatprep.subr.bf16.mxu1 %v16413_v28  ;;  %v5396_v28 = vpack.c.bf16 %v18650_v6, %v18648_v23 }
 0xa30   :  { %5122 = vmatpush1.bf16.msra.mxu1 %v16411_v47  ;;  %v15558_v47 = vpop.f32.mrb[123].mxu0 }
 0xa31   :  { %5123 = vmatprep.subr.bf16.mxu1 %v16416_v36  ;;  %v16429_v36 = vld [vmem:[#allocation10 + $0x3b0] ss:$8 sps:$4 sm:$0xff]  }
 0xa34   :  { %5124 = vmatpush1.bf16.msra.mxu1 %v16414_v52  ;;  %v16434_v52 = vld [vmem:[#allocation10 + $0x3c4] ss:$8 sps:$4 sm:$0xff]  }
 0xa35   :  { %5125 = vmatprep.subr.bf16.mxu1 %v16419_v14  ;;  %v18654_v14 = vpop.f32.mrb[124].mxu0 }
 0xa38   :  { %5126 = vmatpush1.bf16.msra.mxu1 %v16417_v39  ;;  %v15561_v39 = vpop.f32.mrb[125].mxu0 }
 0xa39   :  { %5127 = vmatprep.subr.bf16.mxu1 %v16422_v37  ;;  %v18656_v37 = vpop.f32.mrb[126].mxu0 }
 0xa3c   :  { %5128 = vmatpush1.bf16.msra.mxu1 %v16420_v55  ;;  %v16432_v55 = vld [vmem:[#allocation10 + $0x3c0] ss:$8 sps:$4 sm:$0xff]  }
 0xa3d   :  { %5129 = vmatprep.subr.bf16.mxu1 %v16425_v24  ;;  %v5399_v24 = vpack.c.bf16 %v18656_v37, %v18654_v14 }
 0xa40   :  { %5130 = vmatpush1.bf16.msra.mxu1 %v16423_v9  ;;  %v15562_v9 = vpop.f32.mrb[127].mxu0 }
 0xa41   :  { %5131 = vmatprep.subr.bf16.mxu1 %v16428_v29  ;;  %v16437_v29 = vld [vmem:[#allocation10 + $0x3d4] ss:$8 sps:$4 sm:$0xff]   ;;  %v18660_v47 = vpop.f32.mrb[128].mxu0 }
 0xa42   :  { %v16443_v9 = vld [vmem:[#allocation10 + $0x3f4] ss:$8 sps:$4 sm:$0xff]  }
 0xa44   :  { %5132 = vmatpush1.bf16.msra.mxu1 %v16426_v49  ;;  %v16440_v49 = vld [vmem:[#allocation10 + $0x3e4] ss:$8 sps:$4 sm:$0xff]  }
 0xa45   :  { %5133 = vmatprep.subr.bf16.mxu1 %v16431_v32  ;;  %v15565_v32 = vpop.f32.mrb[129].mxu0 }
 0xa46   :  { %v18665_v39 = vpop.f32.mrb[130].mxu0  ;;  %v16446_v32 = vld [vmem:[#allocation10 + $0x404] ss:$8 sps:$4 sm:$0xff]  }
 0xa48   :  { %5134 = vmatpush1.bf16.msra.mxu1 %v16429_v36  ;;  %v16438_v36 = vld [vmem:[#allocation10 + $0x3e0] ss:$8 sps:$4 sm:$0xff]  }
 0xa49   :  { %5135 = vmatprep.subr.bf16.mxu1 %v16434_v52  ;;  %v5402_v52 = vpack.c.bf16 %v18665_v39, %v18660_v47  ;;  %v5874_v47 = vpop.permute.xlu0 %5873 }
 0xa4c   :  { %5136 = vmatpush1.bf16.msra.mxu1 %v16432_v55  ;;  %v15566_v55 = vpop.f32.mrb[131].mxu0 }
 0xa4d   :  { %5168 = vmatprep.subr.bf16.mxu1 %v16437_v29  ;;  %v16441_v29 = vld [vmem:[#allocation10 + $0x3f0] ss:$8 sps:$4 sm:$0xff]  }
 0xa4e   :  { %v16476_v55 = vld [vmem:[#allocation10 + $0x4a8] ss:$8 sps:$4 sm:$0xff]  }
 0xa4f   :  { %5138 = vmatmul.mubr.bf16.vlgmr.msra.gmra.mrb[108].mxu1 %v4810_v33  ;;  %v16447_v33 = vld [vmem:[#allocation10 + $0x410] ss:$8 sps:$4 sm:$0xff]  }
 0xa50   :  { %5169 = vmatpush1.bf16.msra.mxu1 %v16435_v35  ;;  %5147 = vmatprep.mubr.bf16.mxu1 %v4814_v15  ;;  %v16466_v35 = vld [vmem:[#allocation10 + $0x46c] ss:$8 sps:$4 sm:$0xff]  }
 0xa51   :  { %5170 = vmatprep.subr.bf16.mxu1 %v16440_v49  ;;  %v16464_v49 = vld [vmem:[#allocation10 + $0x468] ss:$8 sps:$4 sm:$0xff]  }
 0xa54   :  { %5171 = vmatpush1.bf16.msra.mxu1 %v16438_v36  ;;  %v16470_v36 = vld [vmem:[#allocation10 + $0x488] ss:$8 sps:$4 sm:$0xff]  }
 0xa55   :  { %5172 = vmatprep.subr.bf16.mxu1 %v16443_v9  ;;  %v16481_v9 = vld [vmem:[#allocation10 + $0x4bc] ss:$8 sps:$4 sm:$0xff]  }
 0xa57   :  { %5148 = vmatmul.mubr.bf16.gmra.mrb[112].mxu1 %v4813_v27  ;;  %v14525_v27 = vcombine.low %v4864_v13, %v4864_v13  ;;  %v16497_v13 = vld [vmem:[#allocation10 + $0x518] ss:$8 sps:$4 sm:$0xff]  }
 0xa58   :  { %5173 = vmatpush1.bf16.msra.mxu1 %v16441_v29  ;;  %5157 = vmatprep.mubr.bf16.mxu1 %v4817_v8  ;;  %v16460_v8 = vld [vmem:[#allocation10 + $0x44c] ss:$8 sps:$4 sm:$0xff]   ;;  %v16487_v29 = vld [vmem:[#allocation10 + $0x4dc] ss:$8 sps:$4 sm:$0xff]  }
 0xa59   :  { %5174 = vmatprep.subr.bf16.mxu1 %v16446_v32  ;;  %v5100_v15 = vsel %vm20677_vm2, %v14525_v27, 0  ;;  %v16493_v32 = vld [vmem:[#allocation10 + $0x4fc] ss:$8 sps:$4 sm:$0xff]  }
 0xa5a   :  { %v16505_v27 = vld [vmem:[#allocation10 + $0x53c] ss:$8 sps:$4 sm:$0xff]  }
 0xa5c   :  { %5175 = vmatpush1.bf16.msra.mxu1 %v16444_v51  ;;  %v16491_v51 = vld [vmem:[#allocation10 + $0x4f8] ss:$8 sps:$4 sm:$0xff]  }
 0xa5d   :  { %5176 = vmatprep.subr.bf16.mxu1 %v16449_v5  ;;  %v16496_v5 = vld [vmem:[#allocation10 + $0x50c] ss:$8 sps:$4 sm:$0xff]  }
 0xa5f   :  { %5158 = vmatmul.mubr.bf16.gmra.mrb[116].mxu1 %v4816_v62  ;;  %v16461_v62 = vld [vmem:[#allocation10 + $0x458] ss:$8 sps:$4 sm:$0xff]  }
 0xa60   :  { %5177 = vmatpush1.bf16.msra.mxu1 %v16447_v33  ;;  %5200 = vmatprep.mubr.bf16.mxu1 %v17391_v34  ;;  %v16494_v33 = vld [vmem:[#allocation10 + $0x508] ss:$8 sps:$4 sm:$0xff]  }
 0xa61   :  { %5178 = vmatprep.subr.bf16.mxu1 %v16452_v21  ;;  %v16499_v21 = vld [vmem:[#allocation10 + $0x51c] ss:$8 sps:$4 sm:$0xff]  }
 0xa64   :  { %5179 = vmatpush1.bf16.msra.mxu1 %v16450_v20  ;;  %v16502_v20 = vld [vmem:[#allocation10 + $0x52c] ss:$8 sps:$4 sm:$0xff]  }
 0xa65   :  { %14527 = vmatprep.subr.msk.bf16.mxu1 %vm20677_vm2, %v14526_v53  ;;  %v16500_v53 = vld [vmem:[#allocation10 + $0x528] ss:$8 sps:$4 sm:$0xff]  }
 0xa68   :  { %5181 = vmatpush1.bf16.msra.mxu1 %v5100_v15  ;;  %v16503_v15 = vld [vmem:[#allocation10 + $0x538] ss:$8 sps:$4 sm:$0xff]  }
 0xa69   :  { %5689 = vmatprep.subr.bf16.mxu1 %v16457_v42  ;;  %v16508_v42 = vld [vmem:[#allocation10 + $0x54c] ss:$8 sps:$4 sm:$0xff]  }
 0xa6b   :  { %14528 = vmatmul.mubr.msk.bf16.vlgmr.msra.gmra.mrb[108].mxu1 %vm3198_vm15, %v4812_v1  ;;  %v16472_v1 = vld [vmem:[#allocation10 + $0x48c] ss:$8 sps:$4 sm:$0xff]  }
 0xa6c   :  { %5690 = vmatpush1.bf16.msra.mxu1 %v16455_v16  ;;  %5210 = vmatprep.mubr.bf16.mxu1 %v17391_v34  ;;  %v16506_v16 = vld [vmem:[#allocation10 + $0x548] ss:$8 sps:$4 sm:$0xff]  }
 0xa6d   :  { %5691 = vmatprep.subr.bf16.mxu1 %v16460_v8  ;;  %v16511_v8 = vld [vmem:[#allocation10 + $0x55c] ss:$8 sps:$4 sm:$0xff]  }
 0xa70   :  { %5692 = vmatpush1.bf16.msra.mxu1 %v16458_v25  ;;  %v16509_v25 = vld [vmem:[#allocation10 + $0x558] ss:$8 sps:$4 sm:$0xff]  }
 0xa71   :  { %5693 = vmatprep.subr.bf16.mxu1 %v16463_v44  ;;  %v16514_v44 = vld [vmem:[#allocation10 + $0x56c] ss:$8 sps:$4 sm:$0xff]  }
 0xa73   :  { %14529 = vmatmul.mubr.msk.bf16.gmra.mrb[112].mxu1 %vm3198_vm15, %v4815_v63  ;;  %v16478_v63 = vld [vmem:[#allocation10 + $0x4ac] ss:$8 sps:$4 sm:$0xff]  }
 0xa74   :  { %5694 = vmatpush1.bf16.msra.mxu1 %v16461_v62  ;;  %5220 = vmatprep.mubr.bf16.mxu1 %v17391_v34  ;;  %v16512_v62 = vld [vmem:[#allocation10 + $0x568] ss:$8 sps:$4 sm:$0xff]  }
 0xa75   :  { %5695 = vmatprep.subr.bf16.mxu1 %v16466_v35  ;;  %v5879_v35 = vpop.permute.xlu1 %5878 }
 0xa78   :  { %5696 = vmatpush1.bf16.msra.mxu1 %v16464_v49 }
 0xa79   :  { %5697 = vmatprep.subr.bf16.mxu1 %v16469_v11 }
 0xa7b   :  { %14530 = vmatmul.mubr.msk.bf16.gmra.mrb[116].mxu1 %vm3198_vm15, %v4818_v61  ;;  %v16482_v61 = vld [vmem:[#allocation10 + $0x4c8] ss:$8 sps:$4 sm:$0xff]  }
 0xa7c   :  { %5698 = vmatpush1.bf16.msra.mxu1 %v16467_v26  ;;  %5721 = vmatprep.mubr.bf16.mxu1 %v5395_v43  ;;  %v16488_v43 = vld [vmem:[#allocation10 + $0x4e8] ss:$8 sps:$4 sm:$0xff]  }
 0xa7d   :  { %5699 = vmatprep.subr.bf16.mxu1 %v16472_v1 }
 0xa80   :  { %5700 = vmatpush1.bf16.msra.mxu1 %v16470_v36 }
 0xa81   :  { %5701 = vmatprep.subr.bf16.mxu1 %v16475_v7 }
 0xa84   :  { %5702 = vmatpush1.bf16.msra.mxu1 %v16473_v59 }
 0xa85   :  { %5703 = vmatprep.subr.bf16.mxu1 %v16478_v63 }
 0xa88   :  { %5704 = vmatpush1.bf16.msra.mxu1 %v16476_v55 }
 0xa89   :  { %5705 = vmatprep.subr.bf16.mxu1 %v16481_v9 }
 0xa8c   :  { %5706 = vmatpush1.bf16.msra.mxu1 %v16479_v48 }
 0xa8d   :  { %5707 = vmatprep.subr.bf16.mxu1 %v16484_v30 }
 0xa90   :  { %5708 = vmatpush1.bf16.msra.mxu1 %v16482_v61 }
 0xa91   :  { %5709 = vmatprep.subr.bf16.mxu1 %v16487_v29  ;;  %v5884_v29 = vpop.permute.xlu0 %5883 }
 0xa94   :  { %5710 = vmatpush1.bf16.msra.mxu1 %v16485_v56 }
 0xa95   :  { %5711 = vmatprep.subr.bf16.mxu1 %v16490_v46 }
 0xa98   :  { %5712 = vmatpush1.bf16.msra.mxu1 %v16488_v43 }
 0xa99   :  { %5713 = vmatprep.subr.bf16.mxu1 %v16493_v32 }
 0xa9c   :  { %5714 = vmatpush1.bf16.msra.mxu1 %v16491_v51 }
 0xa9d   :  { %5715 = vmatprep.subr.bf16.mxu1 %v16496_v5 }
 0xaa0   :  { %5716 = vmatpush1.bf16.msra.mxu1 %v16494_v33  ;;  %v5889_v33 = vpop.permute.xlu1 %5888 }
 0xaa1   :  { %5717 = vmatprep.subr.bf16.mxu1 %v16499_v21 }
 0xaa4   :  { %5718 = vmatpush1.bf16.msra.mxu1 %v16497_v13 }
 0xaa5   :  { %5719 = vmatprep.subr.bf16.mxu1 %v16502_v20 }
 0xaa8   :  { %5720 = vmatpush1.bf16.msra.mxu1 %v16500_v53 }
 0xaa9   :  { %5752 = vmatprep.subr.bf16.mxu1 %v16505_v27 }
 0xaab   :  { %5722 = vmatmul.mubr.bf16.vlgmr.msra.gmra.mrb[108].mxu1 %v5394_v18  ;;  %v16520_v18 = vld [vmem:[#allocation10 + $0x58c] ss:$8 sps:$4 sm:$0xff]  }
 0xaac   :  { %5753 = vmatpush1.bf16.msra.mxu1 %v16503_v15  ;;  %5731 = vmatprep.mubr.bf16.mxu1 %v5398_v17  ;;  %v5828_v17 = vld [vmem:[#allocation6 + $0x6] sm:$0x7] }
 0xaad   :  { %5754 = vmatprep.subr.bf16.mxu1 %v16508_v42  ;;  %v18735_v3 = vrot.slane %v5828_v17, %v17814_v60  ;;  %v18738_v22 = vrot.slane %v5828_v17, %v17817_v4 }
 0xab0   :  { %5755 = vmatpush1.bf16.msra.mxu1 %v16506_v16 }
 0xab1   :  { %5756 = vmatprep.subr.bf16.mxu1 %v16511_v8 }
 0xab3   :  { %5732 = vmatmul.mubr.bf16.gmra.mrb[112].mxu1 %v5397_v40  ;;  %v5684_v40 = vsel %vm20677_vm2, %v14584_v10, 0 }
 0xab4   :  { %5757 = vmatpush1.bf16.msra.mxu1 %v16509_v25  ;;  %5741 = vmatprep.mubr.bf16.mxu1 %v5401_v50 }
 0xab5   :  { %5758 = vmatprep.subr.bf16.mxu1 %v16514_v44 }
 0xab8   :  { %5759 = vmatpush1.bf16.msra.mxu1 %v16512_v62 }
 0xab9   :  { %5760 = vmatprep.subr.bf16.mxu1 %v16517_v31 }
 0xabb   :  { %5742 = vmatmul.mubr.bf16.gmra.mrb[116].mxu1 %v5400_v19 }
 0xabc   :  { %5761 = vmatpush1.bf16.msra.mxu1 %v16515_v45  ;;  %5784 = vmatprep.mubr.bf16.mxu1 %v17391_v34 }
 0xabd   :  { %5762 = vmatprep.subr.bf16.mxu1 %v16520_v18 }
 0xac0   :  { %5763 = vmatpush1.bf16.msra.mxu1 %v16518_v41 }
 0xac1   :  { %14586 = vmatprep.subr.msk.bf16.mxu1 %vm20677_vm2, %v14585_v2  ;;  %vm6418_vm2 = vcmask 1041408  }
 0xac4   :  { %5765 = vmatpush1.bf16.msra.mxu1 %v5684_v40 }
 0xac7   :  { %14587 = vmatmul.mubr.msk.bf16.vlgmr.msra.gmra.mrb[108].mxu1 %vm3198_vm15, %v5396_v28 }
 0xac8   :  { %5794 = vmatprep.mubr.bf16.mxu1 %v17391_v34 }
 0xacf   :  { %14588 = vmatmul.mubr.msk.bf16.gmra.mrb[112].mxu1 %vm3198_vm15, %v5399_v24 }
 0xad0   :  { %5804 = vmatprep.mubr.bf16.mxu1 %v17391_v34 }
 0xad7   :  { %14589 = vmatmul.mubr.msk.bf16.gmra.mrb[116].mxu1 %vm3198_vm15, %v5402_v52 }
 0xad8   :  { %7324 = vmatprep.mubr.bf16.mxu1 %v17391_v34 }
 0xb9a   :  { %v5786_v12 = vpop.f32.mrb[108].mxu1 }
 0xb9b   :  { %v5788_v19 = vpop.f32.mrb[109].mxu1  ;;  %v5840_v58 = vadd.f32 %v18735_v3, %v5786_v12 }
 0xb9c   :  { %v5841_v50 = vadd.f32 %v18738_v22, %v5788_v19  ;;  %v5790_v23 = vpop.f32.mrb[110].mxu1 }
 0xb9d   :  { %v5842_v6 = vadd.f32 %v18735_v3, %v5790_v23  ;;  %v5792_v28 = vpop.f32.mrb[111].mxu1  ;;  %v18748_v39 = vmax.f32 %v5840_v58, 0.0 }
 0xb9e   :  { %v5843_v14 = vadd.f32 %v18738_v22, %v5792_v28  ;;  %v18744_v37 = vmax.f32 %v5841_v50, 0.0 }
 0xb9f   :  { %v18746_v24 = vmax.f32 %v5842_v6, 0.0  ;;  %v5901_v59 = vmul.f32 %v5874_v47, %v18748_v39 }
 0xba0   :  { %v18750_v52 = vmax.f32 %v5843_v14, 0.0  ;;  %v5902_v26 = vmul.f32 %v5874_v47, %v18744_v37 }
 0xba1   :  { %v5903_v1 = vmul.f32 %v5879_v35, %v18746_v24  ;;  %v5941_v21 = vmul.f32 %v5901_v59, %v18748_v39 }
 0xba2   :  { %v5904_v49 = vmul.f32 %v5879_v35, %v18750_v52  ;;  %v5796_v11 = vpop.f32.mrb[112].mxu1  ;;  %v5942_v43 = vmul.f32 %v5902_v26, %v18744_v37  ;;  %v5924_v8 = vsel %vm1407_vm12, %v5902_v26, 0.0 }
 0xba3   :  { %v5844_v36 = vadd.f32 %v18735_v3, %v5796_v11  ;;  %v5798_v7 = vpop.f32.mrb[113].mxu1  ;;  %v5943_v32 = vmul.f32 %v5903_v1, %v18746_v24  ;;  %v5913_v27 = vadd.f32 %v5903_v1, %v5901_v59  ;;  %v5894_v11 = vpop.permute.xlu0 %5893 }
 0xba4   :  { %v5845_v63 = vadd.f32 %v18738_v22, %v5798_v7  ;;  %v5800_v55 = vpop.f32.mrb[114].mxu1  ;;  %v5944_v9 = vmul.f32 %v5904_v49, %v18750_v52  ;;  %v5925_v13 = vsel %vm1407_vm12, %v5904_v49, 0.0  ;;  %v5964_v45 = vsel %vm1407_vm12, %v5942_v43, 0.0 }
 0xba5   :  { %v18759_v48 = vmax.f32 %v5844_v36, 0.0  ;;  %v5846_v30 = vadd.f32 %v18735_v3, %v5800_v55  ;;  %v5802_v61 = vpop.f32.mrb[115].mxu1  ;;  %v5953_v18 = vadd.f32 %v5943_v32, %v5941_v21  ;;  %v5926_v38 = vadd.f32 %v5925_v13, %v5924_v8 }
 0xba6   :  { %v18762_v56 = vmax.f32 %v5845_v63, 0.0  ;;  %v5847_v46 = vadd.f32 %v18738_v22, %v5802_v61  ;;  %v5965_v15 = vsel %vm1407_vm12, %v5944_v9, 0.0  ;;  %v5899_v9 = vpop.permute.xlu1 %5898 }
 0xba7   :  { %v5905_v51 = vmul.f32 %v5884_v29, %v18759_v48  ;;  %v18768_v5 = vmax.f32 %v5846_v30, 0.0  ;;  %v5966_v10 = vadd.f32 %v5965_v15, %v5964_v45 }
 0xba8   :  { %v5906_v20 = vmul.f32 %v5884_v29, %v18762_v56  ;;  %v18773_v53 = vmax.f32 %v5847_v46, 0.0 }
 0xba9   :  { %v5945_v42 = vmul.f32 %v5905_v51, %v18759_v48  ;;  %v5907_v16 = vmul.f32 %v5889_v33, %v18768_v5  ;;  %v5914_v41 = vadd.f32 %v5913_v27, %v5905_v51 }
 0xbaa   :  { %v5927_v25 = vsel %vm1407_vm12, %v5906_v20, 0.0  ;;  %v5946_v44 = vmul.f32 %v5906_v20, %v18762_v56  ;;  %v5908_v62 = vmul.f32 %v5889_v33, %v18773_v53  ;;  %v5806_v31 = vpop.f32.mrb[116].mxu1 }
 0xbab   :  { %v5808_v2 = vpop.f32.mrb[117].mxu1  ;;  %v5848_v12 = vadd.f32 %v18735_v3, %v5806_v31  ;;  %v5954_v58 = vadd.f32 %v5953_v18, %v5945_v42  ;;  %v5928_v50 = vadd.f32 %v5927_v25, %v5926_v38  ;;  %v5947_v23 = vmul.f32 %v5907_v16, %v18768_v5 }
 0xbac   :  { %v5967_v40 = vsel %vm1407_vm12, %v5946_v44, 0.0  ;;  %v5948_v17 = vmul.f32 %v5908_v62, %v18773_v53  ;;  %v5810_v19 = vpop.f32.mrb[118].mxu1  ;;  %v5849_v6 = vadd.f32 %v18738_v22, %v5808_v2  ;;  %v5929_v14 = vsel %vm1407_vm12, %v5908_v62, 0.0 }
 0xbad   :  { %v5812_v28 = vpop.f32.mrb[119].mxu1  ;;  %v18789_v47 = vmax.f32 %v5848_v12, 0.0  ;;  %v5850_v35 = vadd.f32 %v18735_v3, %v5810_v19  ;;  %v5968_v26 = vadd.f32 %v5967_v40, %v5966_v10  ;;  %v5915_v1 = vadd.f32 %v5914_v41, %v5907_v16 }
 0xbae   :  { %v5851_v49 = vadd.f32 %v18738_v22, %v5812_v28  ;;  %v18793_v36 = vmax.f32 %v5849_v6, 0.0  ;;  %v5969_v7 = vsel %vm1407_vm12, %v5948_v17, 0.0  ;;  %v5955_v30 = vadd.f32 %v5954_v58, %v5947_v23 }
 0xbaf   :  { %v5909_v59 = vmul.f32 %v5894_v11, %v18789_v47  ;;  %v18797_v63 = vmax.f32 %v5850_v35, 0.0  ;;  %v5930_v61 = vadd.f32 %v5929_v14, %v5928_v50  ;;  %v5970_v32 = vadd.f32 %v5969_v7, %v5968_v26 }
 0xbb0   :  { %v18799_v55 = vmax.f32 %v5851_v49, 0.0  ;;  %v5910_v3 = vmul.f32 %v5894_v11, %v18793_v36 }
 0xbb1   :  { %v5916_v29 = vadd.f32 %v5915_v1, %v5909_v59  ;;  %v5949_v22 = vmul.f32 %v5909_v59, %v18789_v47  ;;  %v5911_v46 = vmul.f32 %v5899_v9, %v18797_v63 }
 0xbb2   :  { %v5912_v43 = vmul.f32 %v5899_v9, %v18799_v55  ;;  %v5931_v51 = vsel %vm1407_vm12, %v5910_v3, 0.0  ;;  %v5950_v33 = vmul.f32 %v5910_v3, %v18793_v36 }
 0xbb3   :  { %v5956_v21 = vadd.f32 %v5955_v30, %v5949_v22  ;;  %v5932_v13 = vadd.f32 %v5931_v51, %v5930_v61  ;;  %v5917_v20 = vadd.f32 %v5916_v29, %v5911_v46  ;;  %v5951_v27 = vmul.f32 %v5911_v46, %v18797_v63 }
 0xbb4   :  { %v5971_v15 = vsel %vm1407_vm12, %v5950_v33, 0.0  ;;  %v5933_v42 = vsel %vm1407_vm12, %v5912_v43, 0.0  ;;  %v5952_v16 = vmul.f32 %v5912_v43, %v18799_v55 }
 0xbb5   :  { %v5972_v8 = vadd.f32 %v5971_v15, %v5970_v32  ;;  %v5918_v25 = vrot.slane %v5917_v20, 4  ;;  %v5957_v44 = vadd.f32 %v5956_v21, %v5951_v27  ;;  %v5934_v62 = vadd.f32 %v5933_v42, %v5932_v13 }
 0xbb6   :  { %v5973_v31 = vsel %vm1407_vm12, %v5952_v16, 0.0 }
 0xbb7   :  { %v5958_v45 = vrot.slane %v5957_v44, 4  ;;  %v5974_v18 = vadd.f32 %v5973_v31, %v5972_v8  ;;  %v5919_v38 = vadd.f32 %v5918_v25, %v5917_v20  ;;  %v5935_v41 = vrot.slane %v5934_v62, 4  ;;  %v14590_v25 = vld [vmem:[%s20654_s4 + $0x2] sm:$0x1] }
 0xbb8   :  { %v14591_v31 = vld [vmem:[%s20655_s5 + $0x2] sm:$0x1] }
 0xbb9   :  { %v5959_v2 = vadd.f32 %v5958_v45, %v5957_v44  ;;  %v5920_v10 = vrot.slane %v5919_v38, 2  ;;  %v5936_v40 = vadd.f32 %v5935_v41, %v5934_v62  ;;  %v5975_v17 = vrot.slane %v5974_v18, 4 }
 0xbbb   :  { %v5921_v12 = vadd.f32 %v5920_v10, %v5919_v38  ;;  %v5960_v19 = vrot.slane %v5959_v2, 2  ;;  %v5937_v58 = vrot.slane %v5936_v40, 2  ;;  %v5976_v50 = vadd.f32 %v5975_v17, %v5974_v18  ;;  %v6906_v10 = vld [vmem:[#allocation2 + $0x90] sm:$0xff]  ;;  %v6908_v17 = vld [vmem:[#allocation2 + $0xa0] sm:$0xff] }
 0xbbd   :  { %v5922_v23 = vrot.slane %v5921_v12, 1  ;;  %v5961_v6 = vadd.f32 %v5960_v19, %v5959_v2  ;;  %v5938_v28 = vadd.f32 %v5937_v58, %v5936_v40  ;;  %v5977_v14 = vrot.slane %v5976_v50, 2  ;;  %v6907_v2 = vld [vmem:[#allocation2 + $0x98] sm:$0xff]  ;;  %v6909_v40 = vld [vmem:[#allocation2 + $0xa8] sm:$0xff]  ;;  %v6910_v19 = vld [vmem:[#allocation2 + $0xb0] sm:$0xff] }
 0xbbe   :  { %v7753_v58 = vld [vmem:[#allocation2 + $0xc8] sm:$0xff] }
 0xbbf   :  { %v5923_v35 = vadd.f32 %v5922_v23, %v5921_v12  ;;  %v5962_v49 = vrot.slane %v5961_v6, 1  ;;  %v5939_v11 = vrot.slane %v5938_v28, 1  ;;  %v5978_v26 = vadd.f32 %v5977_v14, %v5976_v50  ;;  %v6911_v12 = vld [vmem:[#allocation2 + $0xb8] sm:$0xff]  ;;  %v7752_v50 = vld [vmem:[#allocation2 + $0xc0] sm:$0xff] }
 0xbc0   :  { %v7755_v23 = vld [vmem:[#allocation2 + $0xd8] sm:$0xff]  ;;  %v7756_v14 = vld [vmem:[#allocation2 + $0xe0] sm:$0xff] }
 0xbc1   :  { %5992 = vrot.lane.b32.xlu1 %v5923_v35, %s17378_s25  ;;  %5982 = vrot.lane.b32.xlu0 %v5923_v35, %s17394_s28  ;;  %v5963_v1 = vadd.f32 %v5962_v49, %v5961_v6  ;;  %v5940_v7 = vadd.f32 %v5939_v11, %v5938_v28  ;;  %v5979_v59 = vrot.slane %v5978_v26, 1  ;;  %v7754_v6 = vld [vmem:[#allocation2 + $0xd0] sm:$0xff]  ;;  %v7757_v28 = vld [vmem:[#allocation2 + $0xe8] sm:$0xff] }
 0xbc3   :  { %v5980_v9 = vadd.f32 %v5979_v59, %v5978_v26 }
 0xbc5   :  { %5987 = vrot.lane.b32.xlu1 %v5963_v1, %s17394_s28  ;;  %5994 = vrot.lane.b32.xlu0 %v5940_v7, %s17378_s25 }
 0xbc9   :  { %6002 = vrot.lane.b32.xlu1 %v5980_v9, %s17378_s25  ;;  %6000 = vrot.lane.b32.xlu0 %v5963_v1, %s17378_s25 }
 0xc33   :  { %v5993_v30 = vpop.permute.xlu1 %5992  ;;  %v5983_v61 = vpop.permute.xlu0 %5982 }
 0xc34   :  { %v5985_v3 = vadd.f32 %v5983_v61, %v5923_v35 }
 0xc37   :  { %v5988_v29 = vpop.permute.xlu1 %5987  ;;  %v5995_v22 = vpop.permute.xlu0 %5994 }
 0xc38   :  { %v5996_v46 = vsel %vm1300_vm5, %v5993_v30, %v5995_v22  ;;  %v5990_v32 = vadd.f32 %v5988_v29, %v5963_v1 }
 0xc39   :  { %v5998_v43 = vadd.f32 %v5996_v46, %v5985_v3 }
 0xc3b   :  { %v6007_v51 = vmul.f32 0.055555556, %v5998_v43  ;;  %v6003_v33 = vpop.permute.xlu1 %6002  ;;  %v6001_v21 = vpop.permute.xlu0 %6000 }
 0xc3c   :  { %v6004_v13 = vsel %vm1300_vm5, %v6001_v21, %v6003_v33 }
 0xc3d   :  { %v6006_v20 = vadd.f32 %v6004_v13, %v5990_v32  ;;  %v6009_v27 = vmul.f32 %v6007_v51, %v6007_v51 }
 0xc3f   :  { %v6008_v15 = vmul.f32 0.055555556, %v6006_v20 }
 0xc41   :  { %v6010_v42 = vsub.f32 %v6008_v15, %v6009_v27 }
 0xc43   :  { %v6011_v16 = vmax.f32 %v6010_v42, 0.0 }
 0xc45   :  { %v6014_v8 = vadd.f32 1e-05, %v6011_v16 }
 0xc47   :  { %17154 = vrsqrt.f32 %v6014_v8 }
 0xc51   :  { %v17155_v44 = vpop.eup %17154 }
 0xc52   :  { %v6016_v62 = vmul.f32 %v17155_v44, %v14590_v25 }
 0xc54   :  { %v6025_v45 = vrot.slane %v6016_v62, %v17814_v60  ;;  %v6019_v18 = vmul.f32 %v6016_v62, %v6007_v51 }
 0xc56   :  { %6029 = vrot.lane.b32.xlu1 %v6025_v45, %s17402_s2  ;;  %6026 = vrot.lane.b32.xlu0 %v6025_v45, %s17404_s17  ;;  %v6020_v38 = vsub.f32 %v14591_v31, %v6019_v18 }
 0xc58   :  { %v6038_v41 = vrot.slane %v6020_v38, %v17814_v60 }
 0xc5a   :  { %6042 = vrot.lane.b32.xlu1 %v6038_v41, %s17402_s2  ;;  %6039 = vrot.lane.b32.xlu0 %v6038_v41, %s17404_s17  ;;  %v16526_v41 = vld [vmem:[#allocation4 + $0x120] sm:$0xff]  }
 0xc5e   :  { %6919 = vperm.xlu1 %15993, %v6907_v2   ;;  %6914 = vperm.xlu0 %15992, %v6906_v10   ;;  %v16529_v2 = vld [vmem:[#allocation12 + $0x5c] sm:$0xff]   ;;  %v16530_v10 = vld [vmem:[#allocation12 + $0x64] sm:$0xff]  }
 0xc62   :  { %6929 = vperm.xlu1 %15993, %v6909_v40   ;;  %6924 = vperm.xlu0 %15992, %v6908_v17   ;;  %v16527_v40 = vld [vmem:[#allocation4 + $0x128] sm:$0xff]  }
 0xc63   :  { %v16531_v17 = vld [vmem:[#allocation12 + $0x6c] sm:$0xff]  }
 0xc66   :  { %6939 = vperm.xlu1 %15993, %v6911_v12   ;;  %6934 = vperm.xlu0 %15992, %v6910_v19   ;;  %v16532_v12 = vld [vmem:[#allocation12 + $0x74] sm:$0xff]  }
 0xc67   :  { %v16528_v19 = vld [vmem:[#allocation4 + $0x130] sm:$0xff]  }
 0xc6a   :  { %7765 = vperm.xlu1 %15993, %v7753_v58   ;;  %7760 = vperm.xlu0 %15992, %v7752_v50   ;;  %v16533_v58 = vld [vmem:[#allocation12 + $0x7c] sm:$0xff]   ;;  %v16534_v50 = vld [vmem:[#allocation12 + $0x84] sm:$0xff]  }
 0xc6e   :  { %7775 = vperm.xlu1 %15993, %v7755_v23   ;;  %7770 = vperm.xlu0 %15992, %v7754_v6   ;;  %v16535_v23 = vld [vmem:[#allocation12 + $0x8c] sm:$0xff]   ;;  %v16536_v6 = vld [vmem:[#allocation12 + $0x94] sm:$0xff]  }
 0xc72   :  { %7785 = vperm.xlu1 %15993, %v7757_v28   ;;  %7780 = vperm.xlu0 %15992, %v7756_v14   ;;  %v16537_v28 = vld [vmem:[#allocation12 + $0x9c] sm:$0xff]   ;;  %v16538_v14 = vld [vmem:[#allocation12 + $0xa4] sm:$0xff]  }
 0xcc8   :  { %v6030_v35 = vpop.permute.xlu1 %6029  ;;  %v6027_v49 = vpop.permute.xlu0 %6026 }
 0xcc9   :  { %v6054_v11 = vrot.slane %v6030_v35, %v17814_v60  ;;  %v6032_v26 = vsel %vm1395_vm9, %v6016_v62, %v6027_v49  ;;  %v16540_v49 = vld [vmem:[#allocation12 + $0xb4] ss:$0 sps:$4 sm:$0x33]  }
 0xcca   :  { %v6033_v1 = vsel %vm1401_vm14, %v6032_v26, %v6030_v35  ;;  %v16539_v35 = vld [vmem:[#allocation12 + $0xac] sm:$0xff]  }
 0xccb   :  { %v6050_v7 = vrot.slane %v6033_v1, %v17814_v60  ;;  %v6056_v3 = vmul.f32 %v6054_v11, %v18744_v37  ;;  %v6058_v29 = vmul.f32 %v6054_v11, %v18750_v52  ;;  %v6060_v43 = vmul.f32 %v6054_v11, %v18762_v56 }
 0xccc   :  { %v6043_v59 = vpop.permute.xlu1 %6042  ;;  %v6040_v9 = vpop.permute.xlu0 %6039  ;;  %v6062_v32 = vmul.f32 %v6054_v11, %v18773_v53  ;;  %v6064_v56 = vmul.f32 %v6054_v11, %v18793_v36  ;;  %v6066_v53 = vmul.f32 %v6054_v11, %v18799_v55  ;;  %v6420_v11 = vsel %vm6418_vm2, %v16540_v49, 0  ;;  %v16560_v49 = vld [vmem:[#allocation12 + $0xd8] sm:$0xff]  }
 0xccd   :  { %v6074_v30 = vrot.slane %v6043_v59, %v17814_v60  ;;  %v6045_v61 = vsel %vm1395_vm9, %v6020_v38, %v6040_v9  ;;  %v6055_v46 = vmul.f32 %v6050_v7, %v18748_v39  ;;  %v6057_v13 = vmul.f32 %v6050_v7, %v18746_v24  ;;  %v16523_v38 = vld [vmem:[#allocation4 + $0x108] sm:$0xff]  }
 0xcce   :  { %v6046_v22 = vsel %vm1401_vm14, %v6045_v61, %v6043_v59  ;;  %v6059_v37 = vmul.f32 %v6050_v7, %v18759_v48  ;;  %v6061_v39 = vmul.f32 %v6050_v7, %v18768_v5  ;;  %v6063_v62 = vmul.f32 %v6050_v7, %v18789_v47  ;;  %v16524_v47 = vld [vmem:[#allocation4 + $0x110] sm:$0xff]  }
 0xccf   :  { %v6070_v51 = vrot.slane %v6046_v22, %v17814_v60  ;;  %v6076_v33 = vadd.f32 %v6074_v30, %v6056_v3  ;;  %v6078_v21 = vadd.f32 %v6074_v30, %v6058_v29  ;;  %v6080_v20 = vadd.f32 %v6074_v30, %v6060_v43 }
 0xcd0   :  { %v6082_v27 = vadd.f32 %v6074_v30, %v6062_v32  ;;  %v6084_v44 = vadd.f32 %v6074_v30, %v6064_v56  ;;  %v6086_v48 = vadd.f32 %v6074_v30, %v6066_v53  ;;  %v6065_v5 = vmul.f32 %v6050_v7, %v18797_v63  ;;  %v16525_v63 = vld [vmem:[#allocation4 + $0x118] sm:$0xff]   ;;  %v16541_v53 = vld [vmem:[#allocation12] sm:$0xff]  }
 0xcd1   :  { %v18847_v15 = vpack.c.bf16 %v6078_v21, %v6076_v33  ;;  %v6075_v52 = vadd.f32 %v6070_v51, %v6055_v46  ;;  %v6077_v42 = vadd.f32 %v6070_v51, %v6057_v13  ;;  %v6079_v8 = vadd.f32 %v6070_v51, %v6059_v37 }
 0xcd2   :  { %v6081_v24 = vadd.f32 %v6070_v51, %v6061_v39  ;;  %v18855_v25 = vpack.c.bf16 %v6082_v27, %v6080_v20  ;;  %v6083_v55 = vadd.f32 %v6070_v51, %v6063_v62  ;;  %v6085_v31 = vadd.f32 %v6070_v51, %v6065_v5 }
 0xcd3   :  { %6124 = vmatprep.subr.bf16.mxu0 %v18847_v15  ;;  %v18853_v16 = vpack.c.bf16 %v6077_v42, %v6075_v52  ;;  %v18863_v45 = vpack.c.bf16 %v6086_v48, %v6084_v44 }
 0xcd4   :  { %v18861_v36 = vpack.c.bf16 %v6081_v24, %v6079_v8  ;;  %v18867_v18 = vpack.c.bf16 %v6085_v31, %v6083_v55  ;;  %v16542_v24 = vld [vmem:[#allocation12 + $0x8] sm:$0xff]   ;;  %v16543_v31 = vld [vmem:[#allocation12 + $0x10] sm:$0xff]  }
 0xcd5   :  { %6125 = vmatpush1.bf16.msra.mxu0 %v18853_v16 }
 0xcd6   :  { %6126 = vmatprep.subr.bf16.mxu0 %v18855_v25 }
 0xcd9   :  { %6127 = vmatpush1.bf16.msra.mxu0 %v18861_v36 }
 0xcda   :  { %6128 = vmatprep.subr.bf16.mxu0 %v18863_v45 }
 0xcdd   :  { %6129 = vmatpush1.bf16.msra.mxu0 %v18867_v18 }
 0xcde   :  { %6247 = vmatprep.subr.bf16.mxu0 %v18847_v15 }
 0xce0   :  { %14595 = vmatmul.mubr.msk.bf16.vlgmr.msra.gmra.mrb[132].mxu0 %vm200_vm1, %v16523_v38 }
 0xce1   :  { %6248 = vmatpush1.bf16.msra.mxu0 %v18853_v16  ;;  %6166 = vmatprep.mubr.bf16.mxu0 %v17391_v34 }
 0xce2   :  { %6249 = vmatprep.subr.bf16.mxu0 %v18855_v25 }
 0xce5   :  { %6250 = vmatpush1.bf16.msra.mxu0 %v18861_v36 }
 0xce6   :  { %6251 = vmatprep.subr.bf16.mxu0 %v18863_v45 }
 0xce8   :  { %14596 = vmatmul.mubr.msk.bf16.gmra.mrb[136].mxu0 %vm200_vm1, %v16524_v47  ;;  %v16544_v47 = vld [vmem:[#allocation12 + $0x18] sm:$0xff]  }
 0xce9   :  { %6252 = vmatpush1.bf16.msra.mxu0 %v18867_v18  ;;  %6176 = vmatprep.mubr.bf16.mxu0 %v17391_v34 }
 0xcea   :  { %6422 = vmatprep.subr.bf16.mxu0 %v17391_v34 }
 0xcf0   :  { %14597 = vmatmul.mubr.msk.bf16.gmra.mrb[140].mxu0 %vm200_vm1, %v16525_v63 }
 0xcf1   :  { %6279 = vmatprep.mubr.bf16.mxu0 %v17391_v34 }
 0xcf8   :  { %14601 = vmatmul.mubr.msk.bf16.vlgmr.msra.gmra.mrb[144].mxu0 %vm200_vm1, %v16526_v41 }
 0xcf9   :  { %6289 = vmatprep.mubr.bf16.mxu0 %v17391_v34  ;;  %6423 = vmatpush1.bf16.msra.mxu0 %v16529_v2 }
 0xcfa   :  { %6424 = vmatprep.subr.bf16.mxu0 %v17391_v34 }
 0xcfd   :  { %6425 = vmatpush1.bf16.msra.mxu0 %v16530_v10 }
 0xcfe   :  { %6426 = vmatprep.subr.bf16.mxu0 %v17391_v34 }
 0xd00   :  { %14602 = vmatmul.mubr.msk.bf16.gmra.mrb[148].mxu0 %vm200_vm1, %v16527_v40 }
 0xd01   :  { %6299 = vmatprep.mubr.bf16.mxu0 %v17391_v34  ;;  %6427 = vmatpush1.bf16.msra.mxu0 %v16531_v17  ;;  %v16545_v17 = vld [vmem:[#allocation12 + $0x20] sm:$0xff]  }
 0xd02   :  { %6428 = vmatprep.subr.bf16.mxu0 %v17391_v34 }
 0xd05   :  { %6429 = vmatpush1.bf16.msra.mxu0 %v16532_v12  ;;  %v16546_v12 = vld [vmem:[#allocation12 + $0x28] sm:$0xff]  }
 0xd06   :  { %6430 = vmatprep.subr.bf16.mxu0 %v17391_v34 }
 0xd08   :  { %14603 = vmatmul.mubr.msk.bf16.gmra.mrb[152].mxu0 %vm200_vm1, %v16528_v19  ;;  %v16547_v19 = vld [vmem:[#allocation12 + $0x30] sm:$0xff]  }
 0xd09   :  { %6431 = vmatpush1.bf16.msra.mxu0 %v16533_v58  ;;  %v16548_v58 = vld [vmem:[#allocation12 + $0x38] sm:$0xff]  }
 0xd0a   :  { %6432 = vmatprep.subr.bf16.mxu0 %v17391_v34 }
 0xd0d   :  { %6433 = vmatpush1.bf16.msra.mxu0 %v16534_v50  ;;  %v16549_v50 = vld [vmem:[#allocation12 + $0x40] sm:$0xff]  }
 0xd0e   :  { %6434 = vmatprep.subr.bf16.mxu0 %v17391_v34 }
 0xd11   :  { %6435 = vmatpush1.bf16.msra.mxu0 %v16535_v23  ;;  %v16550_v23 = vld [vmem:[#allocation12 + $0x48] sm:$0xff]  }
 0xd12   :  { %6436 = vmatprep.subr.bf16.mxu0 %v17391_v34 }
 0xd15   :  { %6437 = vmatpush1.bf16.msra.mxu0 %v16536_v6  ;;  %v16551_v6 = vld [vmem:[#allocation12 + $0x50] sm:$0xff]  }
 0xd16   :  { %6438 = vmatprep.subr.bf16.mxu0 %v17391_v34 }
 0xd19   :  { %6439 = vmatpush1.bf16.msra.mxu0 %v16537_v28  ;;  %v16552_v28 = vld [vmem:[#allocation12 + $0x58] ss:$0 sps:$4 sm:$0x33]  }
 0xd1a   :  { %6440 = vmatprep.subr.bf16.mxu0 %v17391_v34 }
 0xd1d   :  { %6441 = vmatpush1.bf16.msra.mxu0 %v16538_v14  ;;  %v6558_v14 = vsel %vm6418_vm2, %v16552_v28, 0 }
 0xd1e   :  { %6442 = vmatprep.subr.bf16.mxu0 %v17391_v34 }
 0xd21   :  { %6443 = vmatpush1.bf16.msra.mxu0 %v16539_v35  ;;  %v16559_v35 = vld [vmem:[#allocation12 + $0xd0] sm:$0xff]  }
 0xd22   :  { %6444 = vmatprep.subr.bf16.mxu0 %v17391_v34 }
 0xd25   :  { %6445 = vmatpush1.bf16.msra.mxu0 %v6420_v11  ;;  %v16561_v11 = vld [vmem:[#allocation12 + $0xe0] sm:$0xff]  }
 0xd26   :  { %6560 = vmatprep.subr.bf16.mxu0 %v17391_v34 }
 0xdb3   :  { %v18901_v26 = vpop.f32.mrb[132].mxu0 }
 0xdb4   :  { %v6160_v1 = vpop.f32.mrb[133].mxu0 }
 0xdb5   :  { %v18903_v7 = vpop.f32.mrb[134].mxu0 }
 0xdb6   :  { %v6187_v59 = vpack.c.bf16 %v18903_v7, %v18901_v26  ;;  %v6164_v9 = vpop.f32.mrb[135].mxu0  ;;  %v16562_v26 = vld [vmem:[#allocation12 + $0xe8] sm:$0xff]   ;;  %v16564_v7 = vld [vmem:[#allocation12 + $0xf8] sm:$0xff]  }
 0xdb7   :  { %v6188_v30 = vpack.c.bf16 %v6164_v9, %v6160_v1  ;;  %v16563_v1 = vld [vmem:[#allocation12 + $0xf0] sm:$0xff]   ;;  %v16566_v9 = vld [vmem:[#allocation12 + $0x108] sm:$0xff]  }
 0xdbb   :  { %v18907_v61 = vpop.f32.mrb[136].mxu0 }
 0xdbc   :  { %v18909_v3 = vpop.f32.mrb[137].mxu0 }
 0xdbd   :  { %v18911_v29 = vpop.f32.mrb[138].mxu0 }
 0xdbe   :  { %v6189_v22 = vpack.c.bf16 %v18911_v29, %v18907_v61  ;;  %v18915_v46 = vpop.f32.mrb[139].mxu0 }
 0xdbf   :  { %v6190_v43 = vpack.c.bf16 %v18915_v46, %v18909_v3 }
 0xdc3   :  { %v18919_v32 = vpop.f32.mrb[140].mxu0 }
 0xdc4   :  { %v18921_v51 = vpop.f32.mrb[141].mxu0 }
 0xdc5   :  { %v18923_v33 = vpop.f32.mrb[142].mxu0 }
 0xdc6   :  { %v6191_v21 = vpack.c.bf16 %v18923_v33, %v18919_v32  ;;  %v18927_v13 = vpop.f32.mrb[143].mxu0 }
 0xdc7   :  { %v6192_v20 = vpack.c.bf16 %v18927_v13, %v18921_v51 }
 0xdcb   :  { %v6281_v27 = vpop.f32.mrb[144].mxu0 }
 0xdcc   :  { %v6283_v37 = vpop.f32.mrb[145].mxu0 }
 0xdcd   :  { %v6285_v52 = vpop.f32.mrb[146].mxu0 }
 0xdce   :  { %v6310_v42 = vpack.c.bf16 %v6285_v52, %v6281_v27  ;;  %v6287_v39 = vpop.f32.mrb[147].mxu0 }
 0xdcf   :  { %v6311_v56 = vpack.c.bf16 %v6287_v39, %v6283_v37 }
 0xdd1   :  { %14616 = vmatprep.mubr.msk.bf16.mxu0 %vm1407_vm12, %v6311_v56 }
 0xdd2   :  { %6455 = vmatmul.mubr.bf16.vlgmr.msra.gmra.mrb[156].mxu0 %v6310_v42 }
 0xdd3   :  { %6561 = vmatpush1.bf16.msra.mxu0 %v16541_v53  ;;  %v6291_v8 = vpop.f32.mrb[148].mxu0 }
 0xdd4   :  { %v6293_v44 = vpop.f32.mrb[149].mxu0  ;;  %6562 = vmatprep.subr.bf16.mxu0 %v17391_v34 }
 0xdd5   :  { %v6295_v48 = vpop.f32.mrb[150].mxu0 }
 0xdd6   :  { %v6312_v62 = vpack.c.bf16 %v6295_v48, %v6291_v8  ;;  %v6297_v5 = vpop.f32.mrb[151].mxu0 }
 0xdd7   :  { %v6313_v55 = vpack.c.bf16 %v6297_v5, %v6293_v44  ;;  %6563 = vmatpush1.bf16.msra.mxu0 %v16542_v24 }
 0xdd8   :  { %6564 = vmatprep.subr.bf16.mxu0 %v17391_v34 }
 0xdd9   :  { %14617 = vmatprep.mubr.msk.bf16.mxu0 %vm1407_vm12, %v6313_v55 }
 0xdda   :  { %6463 = vmatmul.mubr.bf16.gmra.mrb[160].mxu0 %v6312_v62 }
 0xddb   :  { %6565 = vmatpush1.bf16.msra.mxu0 %v16543_v31  ;;  %v6301_v38 = vpop.f32.mrb[152].mxu0 }
 0xddc   :  { %v6303_v63 = vpop.f32.mrb[153].mxu0  ;;  %6566 = vmatprep.subr.bf16.mxu0 %v17391_v34 }
 0xddd   :  { %v6305_v41 = vpop.f32.mrb[154].mxu0 }
 0xdde   :  { %v6314_v2 = vpack.c.bf16 %v6305_v41, %v6301_v38  ;;  %v6307_v10 = vpop.f32.mrb[155].mxu0 }
 0xddf   :  { %v6315_v40 = vpack.c.bf16 %v6307_v10, %v6303_v63  ;;  %6567 = vmatpush1.bf16.msra.mxu0 %v16544_v47 }
 0xde0   :  { %6568 = vmatprep.subr.bf16.mxu0 %v17391_v34 }
 0xde1   :  { %14618 = vmatprep.mubr.msk.bf16.mxu0 %vm1407_vm12, %v6315_v40 }
 0xde2   :  { %6471 = vmatmul.mubr.bf16.gmra.mrb[164].mxu0 %v6314_v2 }
 0xde3   :  { %6569 = vmatpush1.bf16.msra.mxu0 %v16545_v17  ;;  %14631 = vmatprep.mubr.msk.bf16.mxu0 %vm1407_vm12, %v6188_v30  ;;  %v16567_v30 = vld [vmem:[#allocation12 + $0x110] ss:$0 sps:$4 sm:$0x33]  }
 0xde4   :  { %6570 = vmatprep.subr.bf16.mxu0 %v17391_v34  ;;  %v6820_v61 = vsel %vm6418_vm2, %v16567_v30, 0 }
 0xde7   :  { %6571 = vmatpush1.bf16.msra.mxu0 %v16546_v12 }
 0xde8   :  { %6572 = vmatprep.subr.bf16.mxu0 %v17391_v34 }
 0xdeb   :  { %6573 = vmatpush1.bf16.msra.mxu0 %v16547_v19 }
 0xdec   :  { %6574 = vmatprep.subr.bf16.mxu0 %v17391_v34 }
 0xdef   :  { %6575 = vmatpush1.bf16.msra.mxu0 %v16548_v58 }
 0xdf0   :  { %6576 = vmatprep.subr.bf16.mxu0 %v17391_v34 }
 0xdf3   :  { %6577 = vmatpush1.bf16.msra.mxu0 %v16549_v50 }
 0xdf4   :  { %6578 = vmatprep.subr.bf16.mxu0 %v17391_v34 }
 0xdf7   :  { %6579 = vmatpush1.bf16.msra.mxu0 %v16550_v23 }
 0xdf8   :  { %6580 = vmatprep.subr.bf16.mxu0 %v17391_v34 }
 0xdfb   :  { %6581 = vmatpush1.bf16.msra.mxu0 %v16551_v6 }
 0xdfc   :  { %6582 = vmatprep.subr.bf16.mxu0 %v17391_v34 }
 0xdff   :  { %6583 = vmatpush1.bf16.msra.mxu0 %v6558_v14 }
 0xe00   :  { %6648 = vmatprep.subr.bf16.mxu0 %v18847_v15  ;;  %v16553_v15 = vld [vmem:[#allocation4 + $0x138] sm:$0xff]  }
 0xe02   :  { %6593 = vmatmul.mubr.bf16.vlgmr.msra.gmra.mrb[168].mxu0 %v6187_v59  ;;  %v16565_v59 = vld [vmem:[#allocation12 + $0x100] sm:$0xff]  }
 0xe03   :  { %14632 = vmatprep.mubr.msk.bf16.mxu0 %vm1407_vm12, %v6190_v43  ;;  %6649 = vmatpush1.bf16.msra.mxu0 %v18853_v16  ;;  %v16554_v16 = vld [vmem:[#allocation4 + $0x140] sm:$0xff]  }
 0xe04   :  { %6650 = vmatprep.subr.bf16.mxu0 %v18855_v25  ;;  %v16555_v25 = vld [vmem:[#allocation4 + $0x148] sm:$0xff]  }
 0xe07   :  { %6651 = vmatpush1.bf16.msra.mxu0 %v18861_v36  ;;  %v16556_v36 = vld [vmem:[#allocation12 + $0xb8] sm:$0xff]  }
 0xe08   :  { %6652 = vmatprep.subr.bf16.mxu0 %v18863_v45  ;;  %v16557_v45 = vld [vmem:[#allocation12 + $0xc0] sm:$0xff]  }
 0xe0a   :  { %6601 = vmatmul.mubr.bf16.gmra.mrb[172].mxu0 %v6189_v22 }
 0xe0b   :  { %14633 = vmatprep.mubr.msk.bf16.mxu0 %vm1407_vm12, %v6192_v20  ;;  %6653 = vmatpush1.bf16.msra.mxu0 %v18867_v18  ;;  %v16558_v18 = vld [vmem:[#allocation12 + $0xc8] sm:$0xff]  }
 0xe0c   :  { %6822 = vmatprep.subr.bf16.mxu0 %v17391_v34 }
 0xe12   :  { %6609 = vmatmul.mubr.bf16.gmra.mrb[176].mxu0 %v6191_v21 }
 0xe13   :  { %6680 = vmatprep.mubr.bf16.mxu0 %v17391_v34 }
 0xe1a   :  { %14637 = vmatmul.mubr.msk.bf16.vlgmr.msra.gmra.mrb[180].mxu0 %vm200_vm1, %v16553_v15 }
 0xe1b   :  { %6690 = vmatprep.mubr.bf16.mxu0 %v17391_v34  ;;  %6823 = vmatpush1.bf16.msra.mxu0 %v16556_v36 }
 0xe1c   :  { %6824 = vmatprep.subr.bf16.mxu0 %v17391_v34 }
 0xe1f   :  { %6825 = vmatpush1.bf16.msra.mxu0 %v16557_v45 }
 0xe20   :  { %6826 = vmatprep.subr.bf16.mxu0 %v17391_v34 }
 0xe22   :  { %14638 = vmatmul.mubr.msk.bf16.gmra.mrb[184].mxu0 %vm200_vm1, %v16554_v16 }
 0xe23   :  { %6700 = vmatprep.mubr.bf16.mxu0 %v17391_v34  ;;  %6827 = vmatpush1.bf16.msra.mxu0 %v16558_v18 }
 0xe24   :  { %6828 = vmatprep.subr.bf16.mxu0 %v17391_v34 }
 0xe27   :  { %6829 = vmatpush1.bf16.msra.mxu0 %v16559_v35  ;;  %v6886_v35 = vld [vmem:[#allocation6 + $0x9] sm:$0x7] }
 0xe28   :  { %6830 = vmatprep.subr.bf16.mxu0 %v17391_v34 }
 0xe2a   :  { %14639 = vmatmul.mubr.msk.bf16.gmra.mrb[188].mxu0 %vm200_vm1, %v16555_v25 }
 0xe2b   :  { %6831 = vmatpush1.bf16.msra.mxu0 %v16560_v49  ;;  %v6891_v49 = vrot.slane %v6886_v35, %v17814_v60 }
 0xe2c   :  { %6832 = vmatprep.subr.bf16.mxu0 %v17391_v34 }
 0xe2f   :  { %6833 = vmatpush1.bf16.msra.mxu0 %v16561_v11 }
 0xe30   :  { %6834 = vmatprep.subr.bf16.mxu0 %v17391_v34 }
 0xe33   :  { %6835 = vmatpush1.bf16.msra.mxu0 %v16562_v26 }
 0xe34   :  { %6836 = vmatprep.subr.bf16.mxu0 %v17391_v34 }
 0xe37   :  { %6837 = vmatpush1.bf16.msra.mxu0 %v16563_v1 }
 0xe38   :  { %6838 = vmatprep.subr.bf16.mxu0 %v17391_v34 }
 0xe3b   :  { %6839 = vmatpush1.bf16.msra.mxu0 %v16564_v7 }
 0xe3c   :  { %6840 = vmatprep.subr.bf16.mxu0 %v17391_v34 }
 0xe3f   :  { %6841 = vmatpush1.bf16.msra.mxu0 %v16565_v59 }
 0xe40   :  { %6842 = vmatprep.subr.bf16.mxu0 %v17391_v34 }
 0xe43   :  { %6843 = vmatpush1.bf16.msra.mxu0 %v16566_v9 }
 0xe44   :  { %6844 = vmatprep.subr.bf16.mxu0 %v17391_v34 }
 0xe47   :  { %6845 = vmatpush1.bf16.msra.mxu0 %v6820_v61 }
 0xe48   :  { %15567 = vmatprep.subr.bf16.mxu0 %v17389_v0 }
 0xea5   :  { %v6456_v3 = vpop.f32.mrb[156].mxu0 }
 0xea6   :  { %v6458_v29 = vpop.f32.mrb[157].mxu0 }
 0xea7   :  { %v6459_v22 = vpop.f32.mrb[158].mxu0  ;;  %v6915_v29 = vpop.permute.xlu0 %6914 }
 0xea8   :  { %v6461_v46 = vpop.f32.mrb[159].mxu0 }
 0xead   :  { %v6464_v43 = vpop.f32.mrb[160].mxu0 }
 0xeae   :  { %v6466_v32 = vpop.f32.mrb[161].mxu0 }
 0xeaf   :  { %v6467_v51 = vpop.f32.mrb[162].mxu0 }
 0xeb0   :  { %v6469_v33 = vpop.f32.mrb[163].mxu0 }
 0xeb5   :  { %v6472_v21 = vpop.f32.mrb[164].mxu0 }
 0xeb6   :  { %v6474_v13 = vpop.f32.mrb[165].mxu0 }
 0xeb7   :  { %v6475_v20 = vpop.f32.mrb[166].mxu0 }
 0xeb8   :  { %v6477_v27 = vpop.f32.mrb[167].mxu0 }
 0xed5   :  { %v6594_v37 = vpop.f32.mrb[168].mxu0 }
 0xed6   :  { %v6595_v52 = vadd.f32 %v6594_v37, %v6456_v3  ;;  %v6596_v42 = vpop.f32.mrb[169].mxu0 }
 0xed7   :  { %v6597_v39 = vpop.f32.mrb[170].mxu0 }
 0xed8   :  { %v6598_v56 = vadd.f32 %v6597_v39, %v6459_v22  ;;  %v6599_v53 = vpop.f32.mrb[171].mxu0 }
 0xedd   :  { %v6602_v8 = vpop.f32.mrb[172].mxu0 }
 0xede   :  { %v6603_v24 = vadd.f32 %v6602_v8, %v6464_v43  ;;  %v6604_v44 = vpop.f32.mrb[173].mxu0  ;;  %v6920_v43 = vpop.permute.xlu1 %6919 }
 0xedf   :  { %v6605_v48 = vpop.f32.mrb[174].mxu0 }
 0xee0   :  { %v6606_v62 = vadd.f32 %v6605_v48, %v6467_v51  ;;  %v6607_v5 = vpop.f32.mrb[175].mxu0 }
 0xee1   :  { %v6925_v5 = vpop.permute.xlu0 %6924 }
 0xee5   :  { %v6610_v55 = vpop.f32.mrb[176].mxu0 }
 0xee6   :  { %v18990_v31 = vadd.f32 %v6610_v55, %v6472_v21  ;;  %v6612_v38 = vpop.f32.mrb[177].mxu0 }
 0xee7   :  { %v6613_v47 = vpop.f32.mrb[178].mxu0 }
 0xee8   :  { %v18992_v63 = vadd.f32 %v6613_v47, %v6475_v20  ;;  %v6615_v41 = vpop.f32.mrb[179].mxu0 }
 0xeed   :  { %v6682_v2 = vpop.f32.mrb[180].mxu0 }
 0xeee   :  { %v6684_v10 = vpop.f32.mrb[181].mxu0 }
 0xeef   :  { %v6686_v40 = vpop.f32.mrb[182].mxu0 }
 0xef0   :  { %v6711_v17 = vpack.c.bf16 %v6686_v40, %v6682_v2  ;;  %v6688_v12 = vpop.f32.mrb[183].mxu0  ;;  %v6930_v2 = vpop.permute.xlu1 %6929 }
 0xef1   :  { %v6712_v19 = vpack.c.bf16 %v6688_v12, %v6684_v10 }
 0xef3   :  { %14652 = vmatprep.mubr.msk.bf16.mxu0 %vm1407_vm12, %v6712_v19 }
 0xef4   :  { %6855 = vmatmul.mubr.bf16.vlgmr.msra.gmra.mrb[192].mxu0 %v6711_v17 }
 0xef5   :  { %v6692_v58 = vpop.f32.mrb[184].mxu0 }
 0xef6   :  { %v6694_v50 = vpop.f32.mrb[185].mxu0 }
 0xef7   :  { %v6696_v23 = vpop.f32.mrb[186].mxu0 }
 0xef8   :  { %v6713_v6 = vpack.c.bf16 %v6696_v23, %v6692_v58  ;;  %v6698_v28 = vpop.f32.mrb[187].mxu0 }
 0xef9   :  { %v6714_v14 = vpack.c.bf16 %v6698_v28, %v6694_v50 }
 0xefb   :  { %14653 = vmatprep.mubr.msk.bf16.mxu0 %vm1407_vm12, %v6714_v14 }
 0xefc   :  { %6863 = vmatmul.mubr.bf16.gmra.mrb[196].mxu0 %v6713_v6 }
 0xefd   :  { %v6702_v15 = vpop.f32.mrb[188].mxu0 }
 0xefe   :  { %v6704_v16 = vpop.f32.mrb[189].mxu0 }
 0xeff   :  { %v6706_v25 = vpop.f32.mrb[190].mxu0 }
 0xf00   :  { %v6715_v36 = vpack.c.bf16 %v6706_v25, %v6702_v15  ;;  %v6708_v45 = vpop.f32.mrb[191].mxu0 }
 0xf01   :  { %v6716_v18 = vpack.c.bf16 %v6708_v45, %v6704_v16 }
 0xf03   :  { %14654 = vmatprep.mubr.msk.bf16.mxu0 %vm1407_vm12, %v6716_v18 }
 0xf04   :  { %6871 = vmatmul.mubr.bf16.gmra.mrb[200].mxu0 %v6715_v36 }
 0xf05   :  { %15573 = vmatprep.mubr.msk.bf16.mxu0 %vm17390_vm0, %v17389_v0 }
 0xfc7   :  { %v6856_v11 = vpop.f32.mrb[192].mxu0 }
 0xfc8   :  { %v6879_v26 = vadd.f32 %v6856_v11, %v6595_v52  ;;  %v6858_v1 = vpop.f32.mrb[193].mxu0 }
 0xfc9   :  { %v6859_v7 = vpop.f32.mrb[194].mxu0  ;;  %v6940_v1 = vpop.permute.xlu1 %6939 }
 0xfca   :  { %v6893_v59 = vadd.f32 %v6891_v49, %v6879_v26  ;;  %v6880_v9 = vadd.f32 %v6859_v7, %v6598_v56  ;;  %v6861_v30 = vpop.f32.mrb[195].mxu0 }
 0xfcc   :  { %v19000_v61 = vmax.f32 %v6893_v59, 0.0  ;;  %v6894_v3 = vadd.f32 %v6891_v49, %v6880_v9 }
 0xfce   :  { %v6942_v22 = vmul.f32 %v6915_v29, %v19000_v61  ;;  %v19003_v46 = vmax.f32 %v6894_v3, 0.0 }
 0xfcf   :  { %v6864_v32 = vpop.f32.mrb[196].mxu0 }
 0xfd0   :  { %v6966_v51 = vmul.f32 %v6942_v22, %v19000_v61  ;;  %v6943_v33 = vmul.f32 %v6920_v43, %v19003_v46  ;;  %v6881_v21 = vadd.f32 %v6864_v32, %v6603_v24  ;;  %v6866_v13 = vpop.f32.mrb[197].mxu0  ;;  %v6949_v27 = vsel %vm6948_vm4, %v6942_v22, 0.0 }
 0xfd1   :  { %v6867_v20 = vpop.f32.mrb[198].mxu0 }
 0xfd2   :  { %v6950_v37 = vsel %vm6948_vm4, %v6943_v33, 0.0  ;;  %v6967_v52 = vmul.f32 %v6943_v33, %v19003_v46  ;;  %v6895_v42 = vadd.f32 %v6891_v49, %v6881_v21  ;;  %v6869_v39 = vpop.f32.mrb[199].mxu0  ;;  %v6882_v53 = vadd.f32 %v6867_v20, %v6606_v62 }
 0xfd3   :  { %v6951_v56 = vadd.f32 %v6950_v37, %v6949_v27  ;;  %v6972_v8 = vsel %vm6948_vm4, %v6966_v51, 0.0 }
 0xfd4   :  { %v6973_v44 = vsel %vm6948_vm4, %v6967_v52, 0.0  ;;  %v19012_v48 = vmax.f32 %v6895_v42, 0.0  ;;  %v6896_v55 = vadd.f32 %v6891_v49, %v6882_v53 }
 0xfd5   :  { %v6974_v24 = vadd.f32 %v6973_v44, %v6972_v8 }
 0xfd6   :  { %v6944_v38 = vmul.f32 %v6925_v5, %v19012_v48  ;;  %v19015_v47 = vmax.f32 %v6896_v55, 0.0 }
 0xfd7   :  { %v6872_v41 = vpop.f32.mrb[200].mxu0 }
 0xfd8   :  { %v6952_v10 = vsel %vm6948_vm4, %v6944_v38, 0.0  ;;  %v6968_v40 = vmul.f32 %v6944_v38, %v19012_v48  ;;  %v6883_v62 = vadd.f32 %v6872_v41, %v18990_v31  ;;  %v6874_v17 = vpop.f32.mrb[201].mxu0  ;;  %v6945_v19 = vmul.f32 %v6930_v2, %v19015_v47  ;;  %v6935_v31 = vpop.permute.xlu0 %6934  ;;  %v14655_v41 = vld [vmem:[%s20654_s4 + $0x3] sm:$0x1] }
 0xfd9   :  { %v6953_v12 = vadd.f32 %v6952_v10, %v6951_v56  ;;  %v6875_v58 = vpop.f32.mrb[202].mxu0 }
 0xfda   :  { %v6975_v50 = vsel %vm6948_vm4, %v6968_v40, 0.0  ;;  %v6897_v23 = vadd.f32 %v6891_v49, %v6883_v62  ;;  %v6884_v6 = vadd.f32 %v6875_v58, %v18992_v63  ;;  %v6877_v28 = vpop.f32.mrb[203].mxu0  ;;  %v6954_v15 = vsel %vm6948_vm4, %v6945_v19, 0.0  ;;  %v14656_v40 = vld [vmem:[%s20655_s5 + $0x3] sm:$0x1] }
 0xfdb   :  { %v6976_v14 = vadd.f32 %v6975_v50, %v6974_v24  ;;  %v6969_v16 = vmul.f32 %v6945_v19, %v19015_v47  ;;  %v6955_v25 = vadd.f32 %v6954_v15, %v6953_v12 }
 0xfdc   :  { %v6903_v36 = vmax.f32 %v6897_v23, 0.0  ;;  %v6898_v45 = vadd.f32 %v6891_v49, %v6884_v6 }
 0xfdd   :  { %v6977_v18 = vsel %vm6948_vm4, %v6969_v16, 0.0 }
 0xfde   :  { %v6978_v35 = vadd.f32 %v6977_v18, %v6976_v14  ;;  %v6946_v11 = vmul.f32 %v6935_v31, %v6903_v36  ;;  %v6904_v26 = vmax.f32 %v6898_v45, 0.0 }
 0xfe0   :  { %v6956_v7 = vsel %vm6948_vm4, %v6946_v11, 0.0  ;;  %v6970_v59 = vmul.f32 %v6946_v11, %v6903_v36  ;;  %v6947_v63 = vmul.f32 %v6940_v1, %v6904_v26  ;;  %v16573_v1 = vld [vmem:[#allocation4 + $0x178] sm:$0xff]  }
 0xfe1   :  { %v6957_v9 = vadd.f32 %v6956_v7, %v6955_v25  ;;  %v16574_v7 = vld [vmem:[#allocation4 + $0x180] sm:$0xff]  }
 0xfe2   :  { %v6979_v30 = vsel %vm6948_vm4, %v6970_v59, 0.0  ;;  %v6958_v3 = vsel %vm6948_vm4, %v6947_v63, 0.0  ;;  %v6971_v29 = vmul.f32 %v6947_v63, %v6904_v26  ;;  %v16575_v59 = vld [vmem:[#allocation4 + $0x188] sm:$0xff]   ;;  %v16576_v63 = vld [vmem:[#allocation4 + $0x190] sm:$0xff]  }
 0xfe3   :  { %v6980_v22 = vadd.f32 %v6979_v30, %v6978_v35  ;;  %v6959_v43 = vadd.f32 %v6958_v3, %v6957_v9  ;;  %v16577_v9 = vld [vmem:[%s20660_s10 + $0x48] ss:$8 sps:$4 sm:$0xff]   ;;  %v16579_v30 = vld [vmem:[%s20660_s10 + $0x4c] ss:$8 sps:$4 sm:$0xff]   ;;  %v16582_v3 = vld [vmem:[%s20660_s10 + $0x5c] ss:$8 sps:$4 sm:$0xff]  }
 0xfe4   :  { %v6981_v49 = vsel %vm6948_vm4, %v6971_v29, 0.0  ;;  %7292 = vmatprep.subr.bf16.mxu1 %v16579_v30  ;;  %v16580_v29 = vld [vmem:[%s20660_s10 + $0x58] ss:$8 sps:$4 sm:$0xff]   ;;  %v16610_v30 = vld [vmem:[%s20660_s10 + $0xa4] ss:$8 sps:$4 sm:$0xff]  }
 0xfe5   :  { %v6960_v32 = vrot.slane %v6959_v43, 4  ;;  %v6982_v51 = vadd.f32 %v6981_v49, %v6980_v22  ;;  %7293 = vmatpush1.bf16.msra.mxu1 %v16577_v9  ;;  %v16583_v22 = vld [vmem:[%s20660_s10 + $0x68] ss:$8 sps:$4 sm:$0xff]   ;;  %v16588_v49 = vld [vmem:[%s20660_s10 + $0x7c] ss:$8 sps:$4 sm:$0xff]  }
 0xfe6   :  { %7294 = vmatprep.subr.bf16.mxu1 %v16582_v3 }
 0xfe7   :  { %v6961_v33 = vadd.f32 %v6960_v32, %v6959_v43  ;;  %v6983_v21 = vrot.slane %v6982_v51, 4  ;;  %v16585_v43 = vld [vmem:[%s20660_s10 + $0x6c] ss:$8 sps:$4 sm:$0xff]   ;;  %v16586_v32 = vld [vmem:[%s20660_s10 + $0x78] ss:$8 sps:$4 sm:$0xff]  }
 0xfe9   :  { %v6962_v13 = vrot.slane %v6961_v33, 2  ;;  %v6984_v20 = vadd.f32 %v6983_v21, %v6982_v51  ;;  %7295 = vmatpush1.bf16.msra.mxu1 %v16580_v29  ;;  %v14677_v51 = vld [vmem:[%s20660_s10 + $0x88] sm:$0x77] }
 0xfea   :  { %7296 = vmatprep.subr.bf16.mxu1 %v16585_v43  ;;  %v14686_v21 = vcombine.low %v14677_v51, %v14677_v51  ;;  %v16613_v43 = vld [vmem:[%s20660_s10 + $0xb4] ss:$8 sps:$4 sm:$0xff]  }
 0xfeb   :  { %v6963_v27 = vadd.f32 %v6962_v13, %v6961_v33  ;;  %v6985_v37 = vrot.slane %v6984_v20, 2  ;;  %v14687_v33 = vcombine.high %v14677_v51, %v14677_v51  ;;  %v16611_v51 = vld [vmem:[%s20660_s10 + $0xb0] ss:$8 sps:$4 sm:$0xff]  }
 0xfec   :  { %v7287_v13 = vsel %vm7285_vm6, %v14686_v21, 0  ;;  %v16616_v21 = vld [vmem:[%s20660_s10 + $0xc4] ss:$8 sps:$4 sm:$0xff]  }
 0xfed   :  { %v6964_v52 = vrot.slane %v6963_v27, 1  ;;  %v6986_v42 = vadd.f32 %v6985_v37, %v6984_v20  ;;  %7297 = vmatpush1.bf16.msra.mxu1 %v16583_v22  ;;  %v16593_v20 = vld [vmem:[%s20660_s10 + $0x4] ss:$8 sps:$4 sm:$0xff]   ;;  %v16608_v22 = vld [vmem:[%s20660_s10 + $0xa0] ss:$8 sps:$4 sm:$0xff]  }
 0xfee   :  { %7298 = vmatprep.subr.bf16.mxu1 %v16588_v49 }
 0xfef   :  { %v6965_v39 = vadd.f32 %v6964_v52, %v6963_v27  ;;  %v6987_v56 = vrot.slane %v6986_v42, 1 }
 0xff1   :  { %v6988_v53 = vadd.f32 %v6987_v56, %v6986_v42  ;;  %v6989_v8 = vmul.f32 0.5, %v6965_v39  ;;  %7299 = vmatpush1.bf16.msra.mxu1 %v16586_v32 }
 0xff2   :  { %14688 = vmatprep.subr.msk.bf16.mxu1 %vm7285_vm6, %v14687_v33 }
 0xff3   :  { %v6990_v44 = vmul.f32 0.5, %v6988_v53  ;;  %v6991_v5 = vmul.f32 %v6989_v8, %v6989_v8 }
 0xff5   :  { %v6992_v24 = vsub.f32 %v6990_v44, %v6991_v5  ;;  %7301 = vmatpush1.bf16.msra.mxu1 %v7287_v13 }
 0xff6   :  { %7415 = vmatprep.subr.bf16.mxu1 %v16593_v20 }
 0xff7   :  { %v6993_v55 = vmax.f32 %v6992_v24, 0.0 }
 0xff9   :  { %v6996_v38 = vadd.f32 1e-05, %v6993_v55 }
 0xffb   :  { %17156 = vrsqrt.f32 %v6996_v38 }
0x1005   :  { %v17157_v2 = vpop.eup %17156 }
0x1006   :  { %v6998_v10 = vmul.f32 %v17157_v2, %v14655_v41 }
0x1008   :  { %v7001_v62 = vmul.f32 %v6998_v10, %v6989_v8  ;;  %v7007_v17 = vrot.slane %v6998_v10, %v17814_v60 }
0x100a   :  { %v7002_v12 = vsub.f32 %v14656_v40, %v7001_v62  ;;  %v7014_v19 = vmul.f32 %v7007_v17, %v6904_v26  ;;  %v7009_v58 = vmul.f32 %v7007_v17, %v19000_v61  ;;  %v7010_v50 = vmul.f32 %v7007_v17, %v19003_v46  ;;  %v16568_v61 = vld [vmem:[#allocation4 + $0x150] sm:$0xff]   ;;  %v16569_v46 = vld [vmem:[#allocation4 + $0x158] sm:$0xff]  }
0x100b   :  { %v7011_v23 = vmul.f32 %v7007_v17, %v19012_v48  ;;  %v7012_v6 = vmul.f32 %v7007_v17, %v19015_v47  ;;  %v7013_v28 = vmul.f32 %v7007_v17, %v6903_v36  ;;  %v16570_v48 = vld [vmem:[#allocation4 + $0x160] sm:$0xff]   ;;  %v16571_v47 = vld [vmem:[#allocation4 + $0x168] sm:$0xff]   ;;  %v16572_v36 = vld [vmem:[#allocation4 + $0x170] sm:$0xff]  }
0x100c   :  { %v7019_v14 = vrot.slane %v7002_v12, %v17814_v60  ;;  %v16591_v17 = vld [vmem:[%s20660_s10] ss:$8 sps:$4 sm:$0xff]  }
0x100e   :  { %v7021_v15 = vadd.f32 %v7019_v14, %v7009_v58  ;;  %v7022_v16 = vadd.f32 %v7019_v14, %v7010_v50  ;;  %v7023_v25 = vadd.f32 %v7019_v14, %v7011_v23  ;;  %v7024_v45 = vadd.f32 %v7019_v14, %v7012_v6  ;;  %v16596_v58 = vld [vmem:[%s20660_s10 + $0x14] ss:$8 sps:$4 sm:$0xff]   ;;  %v16594_v50 = vld [vmem:[%s20660_s10 + $0x10] ss:$8 sps:$4 sm:$0xff]   ;;  %v16599_v23 = vld [vmem:[%s20660_s10 + $0x24] ss:$8 sps:$4 sm:$0xff]  }
0x100f   :  { %v7025_v31 = vadd.f32 %v7019_v14, %v7013_v28  ;;  %v7026_v18 = vadd.f32 %v7019_v14, %v7014_v19 }
0x1010   :  { %v7027_v35 = vpack.c.bf16 %v7022_v16, %v7021_v15  ;;  %v7028_v11 = vpack.c.bf16 %v7024_v45, %v7023_v25  ;;  %v16597_v15 = vld [vmem:[%s20660_s10 + $0x20] ss:$8 sps:$4 sm:$0xff]   ;;  %v16602_v45 = vld [vmem:[%s20660_s10 + $0x34] ss:$8 sps:$4 sm:$0xff]  }
0x1011   :  { %v7029_v26 = vpack.c.bf16 %v7026_v18, %v7025_v31  ;;  %v7129_v31 = vld [vmem:[%s20660_s10 + $0x40] sm:$0x77]  ;;  %v16600_v18 = vld [vmem:[%s20660_s10 + $0x30] ss:$8 sps:$4 sm:$0xff]  }
0x1012   :  { %15568 = vmatpush3.bf16.msra.mxu0 %v7027_v35 }
0x1013   :  { %15569 = vmatprep.subr.bf16.mxu0 %v17389_v0 }
0x1016   :  { %15570 = vmatpush3.bf16.msra.mxu0 %v7028_v11 }
0x1017   :  { %15571 = vmatprep.subr.bf16.mxu0 %v17389_v0 }
0x101a   :  { %15572 = vmatpush3.bf16.msra.mxu0 %v7029_v26 }
0x101b   :  { %15585 = vmatprep.subr.bf16.mxu0 %v17389_v0 }
0x101d   :  { %15574 = vmatmul.mubr.msk.bf16.vlgmr.msra.gmra.mrb[204].mxu0 %vm200_vm1, %v16568_v61 }
0x101e   :  { %15586 = vmatpush3.bf16.msra.mxu0 %v7027_v35  ;;  %15577 = vmatprep.mubr.msk.bf16.mxu0 %vm17390_vm0, %v17389_v0 }
0x101f   :  { %15587 = vmatprep.subr.bf16.mxu0 %v17389_v0 }
0x1022   :  { %15588 = vmatpush3.bf16.msra.mxu0 %v7028_v11 }
0x1023   :  { %15589 = vmatprep.subr.bf16.mxu0 %v17389_v0 }
0x1025   :  { %15578 = vmatmul.mubr.msk.bf16.gmra.mrb[208].mxu0 %vm200_vm1, %v16569_v46 }
0x1026   :  { %15590 = vmatpush3.bf16.msra.mxu0 %v7029_v26  ;;  %15581 = vmatprep.mubr.msk.bf16.mxu0 %vm17390_vm0, %v17389_v0 }
0x1027   :  { %15603 = vmatprep.subr.bf16.mxu0 %v17389_v0 }
0x102d   :  { %15582 = vmatmul.mubr.msk.bf16.gmra.mrb[212].mxu0 %vm200_vm1, %v16570_v48 }
0x102e   :  { %15591 = vmatprep.mubr.msk.bf16.mxu0 %vm17390_vm0, %v17389_v0 }
0x1035   :  { %15592 = vmatmul.mubr.msk.bf16.vlgmr.msra.gmra.mrb[216].mxu0 %vm200_vm1, %v16571_v47 }
0x1036   :  { %15604 = vmatpush3.bf16.msra.mxu0 %v7027_v35  ;;  %15595 = vmatprep.mubr.msk.bf16.mxu0 %vm17390_vm0, %v17389_v0  ;;  %v14701_v35 = vcombine.high %v7129_v31, %v7129_v31 }
0x1037   :  { %15605 = vmatprep.subr.bf16.mxu0 %v17389_v0 }
0x103a   :  { %15606 = vmatpush3.bf16.msra.mxu0 %v7028_v11  ;;  %v14700_v11 = vcombine.low %v7129_v31, %v7129_v31 }
0x103b   :  { %15607 = vmatprep.subr.bf16.mxu0 %v17389_v0 }
0x103d   :  { %15596 = vmatmul.mubr.msk.bf16.gmra.mrb[220].mxu0 %vm200_vm1, %v16572_v36  ;;  %v7410_v36 = vsel %vm7285_vm6, %v14700_v11, 0 }
0x103e   :  { %15608 = vmatpush3.bf16.msra.mxu0 %v7029_v26  ;;  %15599 = vmatprep.mubr.msk.bf16.mxu0 %vm17390_vm0, %v17389_v0 }
0x1045   :  { %15600 = vmatmul.mubr.msk.bf16.gmra.mrb[224].mxu0 %vm200_vm1, %v16573_v1  ;;  %v16607_v1 = vld [vmem:[%s20660_s10 + $0x94] ss:$8 sps:$4 sm:$0xff]  }
0x1046   :  { %15609 = vmatprep.mubr.msk.bf16.mxu0 %vm17390_vm0, %v17389_v0 }
0x104d   :  { %15610 = vmatmul.mubr.msk.bf16.vlgmr.msra.gmra.mrb[228].mxu0 %vm200_vm1, %v16574_v7 }
0x104e   :  { %15613 = vmatprep.mubr.msk.bf16.mxu0 %vm17390_vm0, %v17389_v0 }
0x1055   :  { %15614 = vmatmul.mubr.msk.bf16.gmra.mrb[232].mxu0 %vm200_vm1, %v16575_v59 }
0x1056   :  { %15617 = vmatprep.mubr.msk.bf16.mxu0 %vm17390_vm0, %v17389_v0 }
0x105d   :  { %15618 = vmatmul.mubr.msk.bf16.gmra.mrb[236].mxu0 %vm200_vm1, %v16576_v63  ;;  %v16605_v63 = vld [vmem:[%s20660_s10 + $0x90] ss:$8 sps:$4 sm:$0xff]  }
0x105e   :  { %8043 = vmatprep.mubr.bf16.mxu0 %v17391_v34 }
0x10f0   :  { %v19108_v27 = vpop.f32.mrb[204].mxu0 }
0x10f1   :  { %v15575_v37 = vpop.f32.mrb[205].mxu0 }
0x10f2   :  { %v19110_v52 = vpop.f32.mrb[206].mxu0  ;;  %v16614_v37 = vld [vmem:[%s20660_s10 + $0xc0] ss:$8 sps:$4 sm:$0xff]  }
0x10f3   :  { %v7118_v42 = vpack.c.bf16 %v19110_v52, %v19108_v27  ;;  %v15576_v39 = vpop.f32.mrb[207].mxu0  ;;  %v14720_v27 = vld [vmem:[%s20660_s10 + $0xd0] sm:$0x77] }
0x10f4   :  { %v14730_v52 = vcombine.high %v14720_v27, %v14720_v27 }
0x10f8   :  { %v19114_v56 = vpop.f32.mrb[208].mxu0 }
0x10f9   :  { %v15579_v53 = vpop.f32.mrb[209].mxu0 }
0x10fa   :  { %v19116_v8 = vpop.f32.mrb[210].mxu0 }
0x10fb   :  { %v7119_v44 = vpack.c.bf16 %v19116_v8, %v19114_v56  ;;  %v15580_v5 = vpop.f32.mrb[211].mxu0 }
0x1100   :  { %v19120_v24 = vpop.f32.mrb[212].mxu0 }
0x1101   :  { %v15583_v55 = vpop.f32.mrb[213].mxu0 }
0x1102   :  { %v19122_v38 = vpop.f32.mrb[214].mxu0  ;;  %v7715_v55 = vld [vmem:[#allocation6 + $0xc] sm:$0x7] }
0x1103   :  { %v7120_v41 = vpack.c.bf16 %v19122_v38, %v19120_v24  ;;  %v15584_v2 = vpop.f32.mrb[215].mxu0  ;;  %v19208_v24 = vrot.slane %v7715_v55, %v17817_v4 }
0x1104   :  { %v19205_v2 = vrot.slane %v7715_v55, %v17814_v60 }
0x1108   :  { %v7195_v10 = vpop.f32.mrb[216].mxu0 }
0x1109   :  { %v15593_v40 = vpop.f32.mrb[217].mxu0 }
0x110a   :  { %v7198_v62 = vpop.f32.mrb[218].mxu0 }
0x110b   :  { %v7218_v12 = vpack.c.bf16 %v7198_v62, %v7195_v10  ;;  %v15594_v19 = vpop.f32.mrb[219].mxu0 }
0x110d   :  { %14689 = vmatmul.mubr.msk.bf16.vlgmr.msra.gmra.mrb[120].mxu1 %vm6948_vm4, %v7218_v12 }
0x110e   :  { %7416 = vmatpush1.bf16.msra.mxu1 %v16591_v17  ;;  %7334 = vmatprep.mubr.bf16.mxu1 %v17391_v34 }
0x110f   :  { %7417 = vmatprep.subr.bf16.mxu1 %v16596_v58 }
0x1110   :  { %v7203_v6 = vpop.f32.mrb[220].mxu0 }
0x1111   :  { %v15597_v28 = vpop.f32.mrb[221].mxu0 }
0x1112   :  { %v7206_v14 = vpop.f32.mrb[222].mxu0  ;;  %7418 = vmatpush1.bf16.msra.mxu1 %v16594_v50 }
0x1113   :  { %v7219_v16 = vpack.c.bf16 %v7206_v14, %v7203_v6  ;;  %v15598_v25 = vpop.f32.mrb[223].mxu0  ;;  %7419 = vmatprep.subr.bf16.mxu1 %v16599_v23  ;;  %v7761_v23 = vpop.permute.xlu0 %7760 }
0x1114   :  { %v7766_v14 = vpop.permute.xlu1 %7765 }
0x1115   :  { %14690 = vmatmul.mubr.msk.bf16.gmra.mrb[124].mxu1 %vm6948_vm4, %v7219_v16 }
0x1116   :  { %7420 = vmatpush1.bf16.msra.mxu1 %v16597_v15  ;;  %7344 = vmatprep.mubr.bf16.mxu1 %v17391_v34 }
0x1117   :  { %7421 = vmatprep.subr.bf16.mxu1 %v16602_v45 }
0x1118   :  { %v7211_v26 = vpop.f32.mrb[224].mxu0 }
0x1119   :  { %v15601_v61 = vpop.f32.mrb[225].mxu0 }
0x111a   :  { %v7214_v46 = vpop.f32.mrb[226].mxu0  ;;  %7422 = vmatpush1.bf16.msra.mxu1 %v16600_v18 }
0x111b   :  { %v7220_v48 = vpack.c.bf16 %v7214_v46, %v7211_v26  ;;  %v15602_v47 = vpop.f32.mrb[227].mxu0  ;;  %14702 = vmatprep.subr.msk.bf16.mxu1 %vm7285_vm6, %v14701_v35 }
0x111d   :  { %14691 = vmatmul.mubr.msk.bf16.gmra.mrb[128].mxu1 %vm6948_vm4, %v7220_v48 }
0x111e   :  { %7424 = vmatpush1.bf16.msra.mxu1 %v7410_v36  ;;  %7447 = vmatprep.mubr.bf16.mxu1 %v17391_v34  ;;  %v7771_v36 = vpop.permute.xlu0 %7770 }
0x111f   :  { %7639 = vmatprep.subr.bf16.mxu1 %v16607_v1 }
0x1120   :  { %v7543_v7 = vpop.f32.mrb[228].mxu0 }
0x1121   :  { %v15611_v59 = vpop.f32.mrb[229].mxu0 }
0x1122   :  { %v7546_v9 = vpop.f32.mrb[230].mxu0 }
0x1123   :  { %v7566_v3 = vpack.c.bf16 %v7546_v9, %v7543_v7  ;;  %v15612_v29 = vpop.f32.mrb[231].mxu0 }
0x1125   :  { %14703 = vmatmul.mubr.msk.bf16.vlgmr.msra.gmra.mrb[120].mxu1 %vm6948_vm4, %v7118_v42  ;;  %v14729_v42 = vcombine.low %v14720_v27, %v14720_v27 }
0x1126   :  { %7640 = vmatpush1.bf16.msra.mxu1 %v16605_v63  ;;  %7457 = vmatprep.mubr.bf16.mxu1 %v17391_v34 }
0x1127   :  { %7641 = vmatprep.subr.bf16.mxu1 %v16610_v30  ;;  %v7634_v56 = vsel %vm7285_vm6, %v14729_v42, 0 }
0x1128   :  { %v7551_v49 = vpop.f32.mrb[232].mxu0 }
0x1129   :  { %v15615_v32 = vpop.f32.mrb[233].mxu0 }
0x112a   :  { %7642 = vmatpush1.bf16.msra.mxu1 %v16608_v22  ;;  %v7554_v33 = vpop.f32.mrb[234].mxu0 }
0x112b   :  { %7643 = vmatprep.subr.bf16.mxu1 %v16613_v43  ;;  %v7567_v13 = vpack.c.bf16 %v7554_v33, %v7551_v49  ;;  %v15616_v20 = vpop.f32.mrb[235].mxu0 }
0x112d   :  { %14704 = vmatmul.mubr.msk.bf16.gmra.mrb[124].mxu1 %vm6948_vm4, %v7119_v44 }
0x112e   :  { %7644 = vmatpush1.bf16.msra.mxu1 %v16611_v51  ;;  %7467 = vmatprep.mubr.bf16.mxu1 %v17391_v34 }
0x112f   :  { %7645 = vmatprep.subr.bf16.mxu1 %v16616_v21 }
0x1130   :  { %v7559_v39 = vpop.f32.mrb[236].mxu0 }
0x1131   :  { %v15619_v53 = vpop.f32.mrb[237].mxu0 }
0x1132   :  { %7646 = vmatpush1.bf16.msra.mxu1 %v16614_v37  ;;  %v7562_v5 = vpop.f32.mrb[238].mxu0 }
0x1133   :  { %14731 = vmatprep.subr.msk.bf16.mxu1 %vm7285_vm6, %v14730_v52  ;;  %v7568_v8 = vpack.c.bf16 %v7562_v5, %v7559_v39  ;;  %v15620_v44 = vpop.f32.mrb[239].mxu0 }
0x1135   :  { %14705 = vmatmul.mubr.msk.bf16.gmra.mrb[128].mxu1 %vm6948_vm4, %v7120_v41 }
0x1136   :  { %7648 = vmatpush1.bf16.msra.mxu1 %v7634_v56  ;;  %7671 = vmatprep.mubr.bf16.mxu1 %v17391_v34 }
0x113d   :  { %14732 = vmatmul.mubr.msk.bf16.vlgmr.msra.gmra.mrb[120].mxu1 %vm6948_vm4, %v7566_v3  ;;  %v7776_v3 = vpop.permute.xlu1 %7775 }
0x113e   :  { %7681 = vmatprep.mubr.bf16.mxu1 %v17391_v34 }
0x1145   :  { %14733 = vmatmul.mubr.msk.bf16.gmra.mrb[124].mxu1 %vm6948_vm4, %v7567_v13 }
0x1146   :  { %7691 = vmatprep.mubr.bf16.mxu1 %v17391_v34 }
0x114d   :  { %14734 = vmatmul.mubr.msk.bf16.gmra.mrb[128].mxu1 %vm6948_vm4, %v7568_v8  ;;  %vm20695_vm4 = vcmask 523264  }
0x1210   :  { %v7673_v38 = vpop.f32.mrb[120].mxu1 }
0x1211   :  { %v7675_v41 = vpop.f32.mrb[121].mxu1  ;;  %v7727_v10 = vadd.f32 %v19205_v2, %v7673_v38 }
0x1212   :  { %v7728_v40 = vadd.f32 %v19208_v24, %v7675_v41  ;;  %v7677_v62 = vpop.f32.mrb[122].mxu1 }
0x1213   :  { %v7729_v17 = vadd.f32 %v19205_v2, %v7677_v62  ;;  %v7679_v12 = vpop.f32.mrb[123].mxu1  ;;  %v19218_v6 = vmax.f32 %v7727_v10, 0.0 }
0x1214   :  { %v7730_v19 = vadd.f32 %v19208_v24, %v7679_v12  ;;  %v19214_v58 = vmax.f32 %v7728_v40, 0.0 }
0x1215   :  { %v19216_v50 = vmax.f32 %v7729_v17, 0.0  ;;  %v7788_v35 = vmul.f32 %v7761_v23, %v19218_v6 }
0x1216   :  { %v19220_v28 = vmax.f32 %v7730_v19, 0.0  ;;  %v7789_v25 = vmul.f32 %v7761_v23, %v19214_v58 }
0x1217   :  { %v7790_v45 = vmul.f32 %v7766_v14, %v19216_v50  ;;  %v7828_v29 = vmul.f32 %v7788_v35, %v19218_v6 }
0x1218   :  { %v7791_v15 = vmul.f32 %v7766_v14, %v19220_v28  ;;  %v7683_v16 = vpop.f32.mrb[124].mxu1  ;;  %v7829_v59 = vmul.f32 %v7789_v25, %v19214_v58  ;;  %v7811_v13 = vsel %vm1407_vm12, %v7789_v25, 0.0 }
0x1219   :  { %v7731_v31 = vadd.f32 %v19205_v2, %v7683_v16  ;;  %v7685_v18 = vpop.f32.mrb[125].mxu1  ;;  %v7830_v63 = vmul.f32 %v7790_v45, %v19216_v50  ;;  %v7800_v32 = vadd.f32 %v7790_v45, %v7788_v35  ;;  %v7781_v16 = vpop.permute.xlu0 %7780 }
0x121a   :  { %v7732_v11 = vadd.f32 %v19208_v24, %v7685_v18  ;;  %v7687_v26 = vpop.f32.mrb[126].mxu1  ;;  %v7831_v61 = vmul.f32 %v7791_v15, %v19220_v28  ;;  %v7812_v22 = vsel %vm1407_vm12, %v7791_v15, 0.0  ;;  %v7851_v42 = vsel %vm1407_vm12, %v7829_v59, 0.0 }
0x121b   :  { %v19229_v46 = vmax.f32 %v7731_v31, 0.0  ;;  %v7733_v48 = vadd.f32 %v19205_v2, %v7687_v26  ;;  %v7689_v47 = vpop.f32.mrb[127].mxu1  ;;  %v7840_v39 = vadd.f32 %v7830_v63, %v7828_v29  ;;  %v7813_v53 = vadd.f32 %v7812_v22, %v7811_v13 }
0x121c   :  { %v19232_v1 = vmax.f32 %v7732_v11, 0.0  ;;  %v7734_v7 = vadd.f32 %v19208_v24, %v7689_v47  ;;  %v7852_v51 = vsel %vm1407_vm12, %v7831_v61, 0.0  ;;  %v7786_v61 = vpop.permute.xlu1 %7785 }
0x121d   :  { %v7792_v9 = vmul.f32 %v7771_v36, %v19229_v46  ;;  %v19238_v30 = vmax.f32 %v7733_v48, 0.0  ;;  %v7853_v8 = vadd.f32 %v7852_v51, %v7851_v42 }
0x121e   :  { %v7793_v43 = vmul.f32 %v7771_v36, %v19232_v1  ;;  %v19243_v49 = vmax.f32 %v7734_v7, 0.0 }
0x121f   :  { %v7832_v33 = vmul.f32 %v7792_v9, %v19229_v46  ;;  %v7794_v21 = vmul.f32 %v7776_v3, %v19238_v30  ;;  %v7801_v5 = vadd.f32 %v7800_v32, %v7792_v9 }
0x1220   :  { %v7814_v20 = vsel %vm1407_vm12, %v7793_v43, 0.0  ;;  %v7833_v27 = vmul.f32 %v7793_v43, %v19232_v1  ;;  %v7795_v37 = vmul.f32 %v7776_v3, %v19243_v49  ;;  %v7693_v52 = vpop.f32.mrb[128].mxu1 }
0x1221   :  { %v7695_v56 = vpop.f32.mrb[129].mxu1  ;;  %v7735_v38 = vadd.f32 %v19205_v2, %v7693_v52  ;;  %v7841_v10 = vadd.f32 %v7840_v39, %v7832_v33  ;;  %v7815_v40 = vadd.f32 %v7814_v20, %v7813_v53  ;;  %v7834_v62 = vmul.f32 %v7794_v21, %v19238_v30 }
0x1222   :  { %v7854_v44 = vsel %vm1407_vm12, %v7833_v27, 0.0  ;;  %v7835_v55 = vmul.f32 %v7795_v37, %v19243_v49  ;;  %v7697_v41 = vpop.f32.mrb[130].mxu1  ;;  %v7736_v17 = vadd.f32 %v19208_v24, %v7695_v56  ;;  %v7816_v19 = vsel %vm1407_vm12, %v7795_v37, 0.0 }
0x1223   :  { %v7699_v12 = vpop.f32.mrb[131].mxu1  ;;  %v19259_v23 = vmax.f32 %v7735_v38, 0.0  ;;  %v7737_v14 = vadd.f32 %v19205_v2, %v7697_v41  ;;  %v7855_v25 = vadd.f32 %v7854_v44, %v7853_v8  ;;  %v7802_v45 = vadd.f32 %v7801_v5, %v7794_v21 }
0x1224   :  { %v7738_v15 = vadd.f32 %v19208_v24, %v7699_v12  ;;  %v19263_v31 = vmax.f32 %v7736_v17, 0.0  ;;  %v7856_v18 = vsel %vm1407_vm12, %v7835_v55, 0.0  ;;  %v7842_v48 = vadd.f32 %v7841_v10, %v7834_v62 }
0x1225   :  { %v7796_v35 = vmul.f32 %v7781_v16, %v19259_v23  ;;  %v19267_v11 = vmax.f32 %v7737_v14, 0.0  ;;  %v7817_v47 = vadd.f32 %v7816_v19, %v7815_v40  ;;  %v7857_v63 = vadd.f32 %v7856_v18, %v7855_v25 }
0x1226   :  { %v19269_v26 = vmax.f32 %v7738_v15, 0.0  ;;  %v7797_v2 = vmul.f32 %v7781_v16, %v19263_v31 }
0x1227   :  { %v7803_v36 = vadd.f32 %v7802_v45, %v7796_v35  ;;  %v7836_v24 = vmul.f32 %v7796_v35, %v19259_v23  ;;  %v7798_v7 = vmul.f32 %v7786_v61, %v19267_v11 }
0x1228   :  { %v7799_v59 = vmul.f32 %v7786_v61, %v19269_v26  ;;  %v7818_v9 = vsel %vm1407_vm12, %v7797_v2, 0.0  ;;  %v7837_v3 = vmul.f32 %v7797_v2, %v19263_v31 }
0x1229   :  { %v7843_v29 = vadd.f32 %v7842_v48, %v7836_v24  ;;  %v7819_v22 = vadd.f32 %v7818_v9, %v7817_v47  ;;  %v7804_v43 = vadd.f32 %v7803_v36, %v7798_v7  ;;  %v7838_v32 = vmul.f32 %v7798_v7, %v19267_v11 }
0x122a   :  { %v7858_v51 = vsel %vm1407_vm12, %v7837_v3, 0.0  ;;  %v7820_v33 = vsel %vm1407_vm12, %v7799_v59, 0.0  ;;  %v7839_v21 = vmul.f32 %v7799_v59, %v19269_v26 }
0x122b   :  { %v7859_v13 = vadd.f32 %v7858_v51, %v7857_v63  ;;  %v7805_v20 = vrot.slane %v7804_v43, 4  ;;  %v7844_v27 = vadd.f32 %v7843_v29, %v7838_v32  ;;  %v7821_v37 = vadd.f32 %v7820_v33, %v7819_v22 }
0x122c   :  { %v7860_v52 = vsel %vm1407_vm12, %v7839_v21, 0.0 }
0x122d   :  { %v7845_v42 = vrot.slane %v7844_v27, 4  ;;  %v7861_v39 = vadd.f32 %v7860_v52, %v7859_v13  ;;  %v7806_v53 = vadd.f32 %v7805_v20, %v7804_v43  ;;  %v7822_v5 = vrot.slane %v7821_v37, 4  ;;  %v14735_v20 = vld [vmem:[%s20654_s4 + $0x4] sm:$0x1] }
0x122e   :  { %v14736_v52 = vld [vmem:[%s20655_s5 + $0x4] sm:$0x1] }
0x122f   :  { %v7846_v56 = vadd.f32 %v7845_v42, %v7844_v27  ;;  %v7807_v8 = vrot.slane %v7806_v53, 2  ;;  %v7823_v44 = vadd.f32 %v7822_v5, %v7821_v37  ;;  %v7862_v55 = vrot.slane %v7861_v39, 4 }
0x1231   :  { %v7808_v38 = vadd.f32 %v7807_v8, %v7806_v53  ;;  %v7847_v41 = vrot.slane %v7846_v56, 2  ;;  %v7824_v10 = vrot.slane %v7823_v44, 2  ;;  %v7863_v40 = vadd.f32 %v7862_v55, %v7861_v39  ;;  %v10433_v8 = vld [vmem:[#allocation2 + $0xf0] sm:$0xff]  ;;  %v10435_v55 = vld [vmem:[#allocation2 + $0x100] sm:$0xff] }
0x1233   :  { %v7809_v62 = vrot.slane %v7808_v38, 1  ;;  %v7848_v17 = vadd.f32 %v7847_v41, %v7846_v56  ;;  %v7825_v12 = vadd.f32 %v7824_v10, %v7823_v44  ;;  %v7864_v19 = vrot.slane %v7863_v40, 2  ;;  %v10434_v56 = vld [vmem:[#allocation2 + $0xf8] sm:$0xff]  ;;  %v10436_v44 = vld [vmem:[#allocation2 + $0x108] sm:$0xff]  ;;  %v10437_v41 = vld [vmem:[#allocation2 + $0x110] sm:$0xff] }
0x1234   :  { %v16625_v10 = vld [vmem:[#allocation13 + $0x114] ss:$12 sps:$4 sm:$0xff]  }
0x1235   :  { %v7810_v14 = vadd.f32 %v7809_v62, %v7808_v38  ;;  %v7849_v15 = vrot.slane %v7848_v17, 1  ;;  %v7826_v16 = vrot.slane %v7825_v12, 1  ;;  %v7865_v25 = vadd.f32 %v7864_v19, %v7863_v40  ;;  %v10438_v38 = vld [vmem:[#allocation2 + $0x118] sm:$0xff]  ;;  %v16631_v62 = vld [vmem:[#allocation13 + $0x130] ss:$12 sps:$4 sm:$0xff]  }
0x1236   :  { %v16627_v40 = vld [vmem:[#allocation13 + $0x118] ss:$12 sps:$4 sm:$0xff]  }
0x1237   :  { %7879 = vrot.lane.b32.xlu1 %v7810_v14, %s17378_s25  ;;  %7869 = vrot.lane.b32.xlu0 %v7810_v14, %s17394_s28  ;;  %v7850_v45 = vadd.f32 %v7849_v15, %v7848_v17  ;;  %v7827_v18 = vadd.f32 %v7826_v16, %v7825_v12  ;;  %v7866_v35 = vrot.slane %v7865_v25, 1  ;;  %v16629_v17 = vld [vmem:[#allocation13 + $0x12c] ss:$12 sps:$4 sm:$0xff]   ;;  %v16635_v12 = vld [vmem:[#allocation13 + $0x148] ss:$12 sps:$4 sm:$0xff]  }
0x1238   :  { %8475 = vmatprep.subr.bf16.mxu1 %v16627_v40  ;;  %v16633_v19 = vld [vmem:[#allocation13 + $0x144] ss:$12 sps:$4 sm:$0xff]   ;;  %v16637_v15 = vld [vmem:[#allocation13 + $0x15c] ss:$12 sps:$4 sm:$0xff]   ;;  %v16636_v40 = vld [vmem:[#allocation13 + $0x14c] ss:$12 sps:$4 sm:$0xff]  }
0x1239   :  { %v7867_v61 = vadd.f32 %v7866_v35, %v7865_v25  ;;  %8476 = vmatpush1.bf16.msra.mxu1 %v16625_v10  ;;  %v16643_v16 = vld [vmem:[#allocation13 + $0x178] ss:$12 sps:$4 sm:$0xff]   ;;  %v16641_v25 = vld [vmem:[#allocation13 + $0x174] ss:$12 sps:$4 sm:$0xff]  }
0x123a   :  { %8477 = vmatprep.subr.bf16.mxu1 %v16631_v62  ;;  %v16623_v10 = vld [vmem:[#allocation4 + $0x1b8] sm:$0xff]  }
0x123b   :  { %7874 = vrot.lane.b32.xlu1 %v7850_v45, %s17394_s28  ;;  %7881 = vrot.lane.b32.xlu0 %v7827_v18, %s17378_s25  ;;  %v16640_v62 = vld [vmem:[#allocation13 + $0x164] ss:$12 sps:$4 sm:$0xff]  }
0x123d   :  { %8478 = vmatpush1.bf16.msra.mxu1 %v16629_v17  ;;  %v16624_v17 = vld [vmem:[#allocation4 + $0x1c0] sm:$0xff]  }
0x123e   :  { %8479 = vmatprep.subr.bf16.mxu1 %v16635_v12  ;;  %v16644_v12 = vld [vmem:[#allocation13 + $0x17c] ss:$12 sps:$4 sm:$0xff]  }
0x123f   :  { %7889 = vrot.lane.b32.xlu1 %v7867_v61, %s17378_s25  ;;  %7887 = vrot.lane.b32.xlu0 %v7850_v45, %s17378_s25 }
0x1241   :  { %8480 = vmatpush1.bf16.msra.mxu1 %v16633_v19  ;;  %v16645_v19 = vld [vmem:[#allocation13 + $0x18c] ss:$12 sps:$4 sm:$0xff]  }
0x12a9   :  { %v7880_v48 = vpop.permute.xlu1 %7879  ;;  %v7870_v47 = vpop.permute.xlu0 %7869 }
0x12aa   :  { %v7872_v2 = vadd.f32 %v7870_v47, %v7810_v14  ;;  %v16639_v14 = vld [vmem:[#allocation13 + $0x160] ss:$12 sps:$4 sm:$0xff]  }
0x12ab   :  { %8481 = vmatprep.subr.bf16.mxu1 %v16639_v14  ;;  %v16647_v14 = vld [vmem:[#allocation13 + $0x190] ss:$12 sps:$4 sm:$0xff]  }
0x12ac   :  { %8482 = vmatpush1.bf16.msra.mxu1 %v16637_v15  ;;  %v16648_v15 = vld [vmem:[#allocation13 + $0x194] ss:$12 sps:$4 sm:$0xff]  }
0x12ad   :  { %v7875_v36 = vpop.permute.xlu1 %7874  ;;  %v7882_v24 = vpop.permute.xlu0 %7881  ;;  %8483 = vmatprep.subr.bf16.mxu1 %v16643_v16  ;;  %v16651_v16 = vld [vmem:[#allocation13 + $0x1a8] ss:$12 sps:$4 sm:$0xff]  }
0x12ae   :  { %v7883_v7 = vsel %vm1300_vm5, %v7880_v48, %v7882_v24  ;;  %v7877_v63 = vadd.f32 %v7875_v36, %v7850_v45 }
0x12af   :  { %v7885_v59 = vadd.f32 %v7883_v7, %v7872_v2 }
0x12b0   :  { %8484 = vmatpush1.bf16.msra.mxu1 %v16641_v25  ;;  %v16649_v25 = vld [vmem:[#allocation13 + $0x1a4] ss:$12 sps:$4 sm:$0xff]  }
0x12b1   :  { %v7894_v9 = vmul.f32 0.055555556, %v7885_v59  ;;  %v7890_v3 = vpop.permute.xlu1 %7889  ;;  %v7888_v29 = vpop.permute.xlu0 %7887  ;;  %8485 = vmatprep.subr.bf16.mxu1 %v16647_v14  ;;  %v16676_v14 = vld [vmem:[#allocation13 + $0x18] ss:$12 sps:$4 sm:$0xff]  }
0x12b2   :  { %v7891_v22 = vsel %vm1300_vm5, %v7888_v29, %v7890_v3 }
0x12b3   :  { %v7893_v43 = vadd.f32 %v7891_v22, %v7877_v63  ;;  %v7896_v32 = vmul.f32 %v7894_v9, %v7894_v9 }
0x12b4   :  { %8486 = vmatpush1.bf16.msra.mxu1 %v16645_v19 }
0x12b5   :  { %v7895_v51 = vmul.f32 0.055555556, %v7893_v43  ;;  %8487 = vmatprep.subr.bf16.mxu1 %v16651_v16 }
0x12b7   :  { %v7897_v33 = vsub.f32 %v7895_v51, %v7896_v32 }
0x12b8   :  { %8488 = vmatpush1.bf16.msra.mxu1 %v16649_v25  ;;  %v16682_v25 = vld [vmem:[#allocation13 + $0x34] ss:$12 sps:$4 sm:$0xff]  }
0x12b9   :  { %v7898_v21 = vmax.f32 %v7897_v33, 0.0 }
0x12bb   :  { %v7901_v13 = vadd.f32 1e-05, %v7898_v21 }
0x12bd   :  { %17158 = vrsqrt.f32 %v7901_v13 }
0x12c7   :  { %v17159_v27 = vpop.eup %17158 }
0x12c8   :  { %v7903_v37 = vmul.f32 %v17159_v27, %v14735_v20 }
0x12ca   :  { %v7912_v42 = vrot.slane %v7903_v37, %v17814_v60  ;;  %v7906_v39 = vmul.f32 %v7903_v37, %v7894_v9 }
0x12cc   :  { %7916 = vrot.lane.b32.xlu1 %v7912_v42, %s17402_s2  ;;  %7913 = vrot.lane.b32.xlu0 %v7912_v42, %s17404_s17  ;;  %v7907_v53 = vsub.f32 %v14736_v52, %v7906_v39 }
0x12ce   :  { %v7925_v5 = vrot.slane %v7907_v53, %v17814_v60 }
0x12d0   :  { %7929 = vrot.lane.b32.xlu1 %v7925_v5, %s17402_s2  ;;  %7926 = vrot.lane.b32.xlu0 %v7925_v5, %s17404_s17 }
0x12d4   :  { %10446 = vperm.xlu1 %15993, %v10434_v56   ;;  %10441 = vperm.xlu0 %15992, %v10433_v8  }
0x12d8   :  { %10456 = vperm.xlu1 %15993, %v10436_v44   ;;  %10451 = vperm.xlu0 %15992, %v10435_v55   ;;  %v16619_v44 = vld [vmem:[#allocation4 + $0x198] sm:$0xff]   ;;  %v16622_v55 = vld [vmem:[#allocation4 + $0x1b0] sm:$0xff]  }
0x12dc   :  { %10466 = vperm.xlu1 %15993, %v10438_v38   ;;  %10461 = vperm.xlu0 %15992, %v10437_v41   ;;  %v16628_v38 = vld [vmem:[#allocation13 + $0x11c] ss:$12 sps:$4 sm:$0xff]   ;;  %v16632_v41 = vld [vmem:[#allocation13 + $0x134] ss:$12 sps:$4 sm:$0xff]  }
0x133e   :  { %v7917_v45 = vpop.permute.xlu1 %7916  ;;  %v7914_v18 = vpop.permute.xlu0 %7913 }
0x133f   :  { %v7941_v35 = vrot.slane %v7917_v45, %v17814_v60  ;;  %v7919_v61 = vsel %vm1395_vm9, %v7903_v37, %v7914_v18  ;;  %v16653_v18 = vld [vmem:[#allocation13 + $0x1bc] ss:$12 sps:$4 sm:$0xff]  }
0x1340   :  { %v7920_v48 = vsel %vm1401_vm14, %v7919_v61, %v7917_v45  ;;  %v16652_v45 = vld [vmem:[#allocation13 + $0x1ac] ss:$12 sps:$4 sm:$0xff]   ;;  %v16656_v61 = vld [vmem:[#allocation13 + $0x1c4] ss:$12 sps:$4 sm:$0xff]  }
0x1341   :  { %v7937_v47 = vrot.slane %v7920_v48, %v17814_v60  ;;  %v7943_v59 = vmul.f32 %v7941_v35, %v19214_v58  ;;  %v7945_v63 = vmul.f32 %v7941_v35, %v19220_v28  ;;  %v7947_v29 = vmul.f32 %v7941_v35, %v19232_v1  ;;  %v16659_v48 = vld [vmem:[#allocation13 + $0x1d8] ss:$12 sps:$4 sm:$0xff]  }
0x1342   :  { %v7930_v2 = vpop.permute.xlu1 %7929  ;;  %v7927_v36 = vpop.permute.xlu0 %7926  ;;  %v7949_v22 = vmul.f32 %v7941_v35, %v19243_v49  ;;  %v7951_v1 = vmul.f32 %v7941_v35, %v19263_v31  ;;  %v7953_v49 = vmul.f32 %v7941_v35, %v19269_v26  ;;  %v16655_v35 = vld [vmem:[#allocation13 + $0x1c0] ss:$12 sps:$4 sm:$0xff]  }
0x1343   :  { %v7961_v24 = vrot.slane %v7930_v2, %v17814_v60  ;;  %v7932_v7 = vsel %vm1395_vm9, %v7907_v53, %v7927_v36  ;;  %v7942_v3 = vmul.f32 %v7937_v47, %v19218_v6  ;;  %v7944_v33 = vmul.f32 %v7937_v47, %v19216_v50  ;;  %8489 = vmatprep.subr.bf16.mxu1 %v16655_v35  ;;  %v16661_v36 = vld [vmem:[#allocation13 + $0x1ec] ss:$12 sps:$4 sm:$0xff]  }
0x1344   :  { %v7933_v9 = vsel %vm1401_vm14, %v7932_v7, %v7930_v2  ;;  %v7946_v58 = vmul.f32 %v7937_v47, %v19229_v46  ;;  %v7948_v6 = vmul.f32 %v7937_v47, %v19238_v30  ;;  %v7950_v53 = vmul.f32 %v7937_v47, %v19259_v23  ;;  %v16620_v23 = vld [vmem:[#allocation4 + $0x1a0] sm:$0xff]   ;;  %8490 = vmatpush1.bf16.msra.mxu1 %v16653_v18  ;;  %v16660_v2 = vld [vmem:[#allocation13 + $0x1dc] ss:$12 sps:$4 sm:$0xff]   ;;  %v16664_v7 = vld [vmem:[#allocation13 + $0x1f4] ss:$12 sps:$4 sm:$0xff]  }
0x1345   :  { %v7957_v43 = vrot.slane %v7933_v9, %v17814_v60  ;;  %v7963_v32 = vadd.f32 %v7961_v24, %v7943_v59  ;;  %v7965_v51 = vadd.f32 %v7961_v24, %v7945_v63  ;;  %v7967_v21 = vadd.f32 %v7961_v24, %v7947_v29  ;;  %8491 = vmatprep.subr.bf16.mxu1 %v16659_v48  ;;  %v16667_v59 = vld [vmem:[#allocation13 + $0x208] ss:$12 sps:$4 sm:$0xff]   ;;  %v16665_v63 = vld [vmem:[#allocation13 + $0x204] ss:$12 sps:$4 sm:$0xff]   ;;  %v16668_v9 = vld [vmem:[#allocation13 + $0x20c] ss:$12 sps:$4 sm:$0xff]  }
0x1346   :  { %v7969_v13 = vadd.f32 %v7961_v24, %v7949_v22  ;;  %v7971_v39 = vadd.f32 %v7961_v24, %v7951_v1  ;;  %v7973_v46 = vadd.f32 %v7961_v24, %v7953_v49  ;;  %v7952_v30 = vmul.f32 %v7937_v47, %v19267_v11  ;;  %v16621_v11 = vld [vmem:[#allocation4 + $0x1a8] sm:$0xff]   ;;  %v16663_v24 = vld [vmem:[#allocation13 + $0x1f0] ss:$12 sps:$4 sm:$0xff]  }
0x1347   :  { %v19317_v20 = vpack.c.bf16 %v7965_v51, %v7963_v32  ;;  %v7962_v28 = vadd.f32 %v7957_v43, %v7942_v3  ;;  %v7964_v27 = vadd.f32 %v7957_v43, %v7944_v33  ;;  %v7966_v52 = vadd.f32 %v7957_v43, %v7946_v58  ;;  %v16657_v47 = vld [vmem:[#allocation13 + $0x1d4] ss:$12 sps:$4 sm:$0xff]   ;;  %v16674_v33 = vld [vmem:[#allocation13 + $0x4] ss:$12 sps:$4 sm:$0xff]  }
0x1348   :  { %v7968_v50 = vadd.f32 %v7957_v43, %v7948_v6  ;;  %v19325_v42 = vpack.c.bf16 %v7969_v13, %v7967_v21  ;;  %v7970_v26 = vadd.f32 %v7957_v43, %v7950_v53  ;;  %v7972_v5 = vadd.f32 %v7957_v43, %v7952_v30  ;;  %8492 = vmatpush1.bf16.msra.mxu1 %v16657_v47  ;;  %v8271_v3 = vld [vmem:[#allocation13 + $0x21c] sm:$0x33]  ;;  %v16671_v43 = vld [vmem:[#allocation13 + $0x224] ss:$0 sps:$4 sm:$0x33]  }
0x1349   :  { %8011 = vmatprep.subr.bf16.mxu0 %v19317_v20  ;;  %v19323_v37 = vpack.c.bf16 %v7964_v27, %v7962_v28  ;;  %v19333_v56 = vpack.c.bf16 %v7973_v46, %v7971_v39  ;;  %8493 = vmatprep.subr.bf16.mxu1 %v16663_v24  ;;  %v14783_v29 = vcombine.high %v8271_v3, %v8271_v3  ;;  %v8473_v51 = vsel %vm6418_vm2, %v16671_v43, 0  ;;  %v16680_v48 = vld [vmem:[#allocation13 + $0x30] ss:$12 sps:$4 sm:$0xff]   ;;  %v16683_v47 = vld [vmem:[#allocation13 + $0x38] ss:$12 sps:$4 sm:$0xff]  }
0x134a   :  { %v19331_v31 = vpack.c.bf16 %v7968_v50, %v7966_v52  ;;  %v19337_v8 = vpack.c.bf16 %v7972_v5, %v7970_v26  ;;  %v14782_v22 = vcombine.low %v8271_v3, %v8271_v3  ;;  %v16684_v24 = vld [vmem:[#allocation13 + $0x48] ss:$12 sps:$4 sm:$0xff]   ;;  %v16688_v43 = vld [vmem:[#allocation13 + $0x60] ss:$12 sps:$4 sm:$0xff]  }
0x134b   :  { %8012 = vmatpush1.bf16.msra.mxu0 %v19323_v37 }
0x134c   :  { %8013 = vmatprep.subr.bf16.mxu0 %v19325_v42  ;;  %8494 = vmatpush1.bf16.msra.mxu1 %v16661_v36  ;;  %v8467_v32 = vsel %vm6418_vm2, %v14782_v22, 0 }
0x134d   :  { %8495 = vmatprep.subr.bf16.mxu1 %v16667_v59 }
0x134f   :  { %8014 = vmatpush1.bf16.msra.mxu0 %v19331_v31 }
0x1350   :  { %8015 = vmatprep.subr.bf16.mxu0 %v19333_v56  ;;  %8496 = vmatpush1.bf16.msra.mxu1 %v16665_v63  ;;  %v16690_v63 = vld [vmem:[#allocation13 + $0x64] ss:$12 sps:$4 sm:$0xff]  }
0x1351   :  { %14785 = vmatprep.subr.msk.bf16.mxu1 %vm6418_vm2, %v14783_v29 }
0x1353   :  { %8016 = vmatpush1.bf16.msra.mxu0 %v19337_v8 }
0x1354   :  { %8157 = vmatprep.subr.bf16.mxu0 %v19317_v20  ;;  %8498 = vmatpush1.bf16.msra.mxu1 %v8467_v32  ;;  %v16691_v32 = vld [vmem:[#allocation13 + $0x68] ss:$12 sps:$4 sm:$0xff]  }
0x1355   :  { %8797 = vmatprep.subr.bf16.mxu1 %v16674_v33  ;;  %v16692_v33 = vld [vmem:[#allocation13 + $0x78] ss:$12 sps:$4 sm:$0xff]  }
0x1356   :  { %14740 = vmatmul.mubr.msk.bf16.vlgmr.msra.gmra.mrb[240].mxu0 %vm200_vm1, %v16619_v44 }
0x1357   :  { %8158 = vmatpush1.bf16.msra.mxu0 %v19323_v37  ;;  %8053 = vmatprep.mubr.bf16.mxu0 %v17391_v34 }
0x1358   :  { %8159 = vmatprep.subr.bf16.mxu0 %v19325_v42 }
0x135b   :  { %8160 = vmatpush1.bf16.msra.mxu0 %v19331_v31 }
0x135c   :  { %8161 = vmatprep.subr.bf16.mxu0 %v19333_v56 }
0x135e   :  { %14741 = vmatmul.mubr.msk.bf16.gmra.mrb[244].mxu0 %vm200_vm1, %v16620_v23 }
0x135f   :  { %8162 = vmatpush1.bf16.msra.mxu0 %v19337_v8  ;;  %8063 = vmatprep.mubr.bf16.mxu0 %v17391_v34 }
0x1360   :  { %8538 = vmatprep.subr.bf16.mxu0 %v17391_v34 }
0x1366   :  { %14742 = vmatmul.mubr.msk.bf16.gmra.mrb[248].mxu0 %vm200_vm1, %v16621_v11 }
0x1367   :  { %8189 = vmatprep.mubr.bf16.mxu0 %v17391_v34 }
0x136e   :  { %14746 = vmatmul.mubr.msk.bf16.vlgmr.msra.gmra.mrb[252].mxu0 %vm200_vm1, %v16622_v55 }
0x136f   :  { %8199 = vmatprep.mubr.bf16.mxu0 %v17391_v34  ;;  %8539 = vmatpush1.bf16.msra.mxu0 %v16628_v38 }
0x1370   :  { %8540 = vmatprep.subr.bf16.mxu0 %v17391_v34 }
0x1373   :  { %8541 = vmatpush1.bf16.msra.mxu0 %v16632_v41 }
0x1374   :  { %8542 = vmatprep.subr.bf16.mxu0 %v17391_v34 }
0x1376   :  { %14747 = vmatmul.mubr.msk.bf16.gmra.mrb[0].mxu0 %vm200_vm1, %v16623_v10 }
0x1377   :  { %8209 = vmatprep.mubr.bf16.mxu0 %v17391_v34  ;;  %8543 = vmatpush1.bf16.msra.mxu0 %v16636_v40 }
0x1378   :  { %8544 = vmatprep.subr.bf16.mxu0 %v17391_v34 }
0x137b   :  { %8545 = vmatpush1.bf16.msra.mxu0 %v16640_v62  ;;  %v16672_v62 = vld [vmem:[#allocation13] ss:$12 sps:$4 sm:$0xff]  }
0x137c   :  { %8546 = vmatprep.subr.bf16.mxu0 %v17391_v34 }
0x137e   :  { %14748 = vmatmul.mubr.msk.bf16.gmra.mrb[4].mxu0 %vm200_vm1, %v16624_v17  ;;  %v16675_v17 = vld [vmem:[#allocation13 + $0x8] ss:$12 sps:$4 sm:$0xff]  }
0x137f   :  { %8547 = vmatpush1.bf16.msra.mxu0 %v16644_v12  ;;  %v16678_v12 = vld [vmem:[#allocation13 + $0x1c] ss:$12 sps:$4 sm:$0xff]  }
0x1380   :  { %8548 = vmatprep.subr.bf16.mxu0 %v17391_v34 }
0x1383   :  { %8549 = vmatpush1.bf16.msra.mxu0 %v16648_v15  ;;  %v16679_v15 = vld [vmem:[#allocation13 + $0x20] ss:$12 sps:$4 sm:$0xff]  }
0x1384   :  { %8550 = vmatprep.subr.bf16.mxu0 %v17391_v34 }
0x1387   :  { %8551 = vmatpush1.bf16.msra.mxu0 %v16652_v45 }
0x1388   :  { %8552 = vmatprep.subr.bf16.mxu0 %v17391_v34 }
0x138b   :  { %8553 = vmatpush1.bf16.msra.mxu0 %v16656_v61 }
0x138c   :  { %8554 = vmatprep.subr.bf16.mxu0 %v17391_v34 }
0x138f   :  { %8555 = vmatpush1.bf16.msra.mxu0 %v16660_v2  ;;  %v16686_v2 = vld [vmem:[#allocation13 + $0x4c] ss:$12 sps:$4 sm:$0xff]  }
0x1390   :  { %8556 = vmatprep.subr.bf16.mxu0 %v17391_v34 }
0x1393   :  { %8557 = vmatpush1.bf16.msra.mxu0 %v16664_v7  ;;  %v16687_v7 = vld [vmem:[#allocation13 + $0x50] ss:$12 sps:$4 sm:$0xff]  }
0x1394   :  { %8558 = vmatprep.subr.bf16.mxu0 %v17391_v34 }
0x1397   :  { %8559 = vmatpush1.bf16.msra.mxu0 %v16668_v9 }
0x1398   :  { %8560 = vmatprep.subr.bf16.mxu0 %v17391_v34 }
0x139b   :  { %8561 = vmatpush1.bf16.msra.mxu0 %v8473_v51  ;;  %v16694_v51 = vld [vmem:[#allocation13 + $0x7c] ss:$12 sps:$4 sm:$0xff]  }
0x139c   :  { %8860 = vmatprep.subr.bf16.mxu0 %v17391_v34 }
0x1429   :  { %v8045_v21 = vpop.f32.mrb[240].mxu0 }
0x142a   :  { %v8047_v13 = vpop.f32.mrb[241].mxu0 }
0x142b   :  { %v8049_v58 = vpop.f32.mrb[242].mxu0 }
0x142c   :  { %v19373_v28 = vpack.c.bf16 %v8049_v58, %v8045_v21  ;;  %v8051_v27 = vpop.f32.mrb[243].mxu0  ;;  %v16695_v21 = vld [vmem:[#allocation13 + $0x80] ss:$12 sps:$4 sm:$0xff]   ;;  %v16696_v58 = vld [vmem:[#allocation13 + $0x90] ss:$12 sps:$4 sm:$0xff]  }
0x142d   :  { %v19375_v6 = vpack.c.bf16 %v8051_v27, %v8047_v13  ;;  %v16698_v13 = vld [vmem:[#allocation13 + $0x94] ss:$12 sps:$4 sm:$0xff]   ;;  %v16699_v27 = vld [vmem:[#allocation13 + $0x98] ss:$12 sps:$4 sm:$0xff]  }
0x1431   :  { %v8055_v1 = vpop.f32.mrb[244].mxu0 }
0x1432   :  { %v8057_v49 = vpop.f32.mrb[245].mxu0 }
0x1433   :  { %v8059_v52 = vpop.f32.mrb[246].mxu0 }
0x1434   :  { %v19377_v50 = vpack.c.bf16 %v8059_v52, %v8055_v1  ;;  %v8061_v39 = vpop.f32.mrb[247].mxu0  ;;  %v16702_v1 = vld [vmem:[#allocation13 + $0xac] ss:$12 sps:$4 sm:$0xff]   ;;  %v16703_v52 = vld [vmem:[#allocation13 + $0xb0] ss:$12 sps:$4 sm:$0xff]  }
0x1435   :  { %v19379_v46 = vpack.c.bf16 %v8061_v39, %v8057_v49  ;;  %v16700_v49 = vld [vmem:[#allocation13 + $0xa8] ss:$12 sps:$4 sm:$0xff]   ;;  %v16704_v39 = vld [vmem:[#allocation13 + $0xc0] ss:$12 sps:$4 sm:$0xff]  }
0x1439   :  { %v8065_v53 = vpop.f32.mrb[248].mxu0 }
0x143a   :  { %v8067_v30 = vpop.f32.mrb[249].mxu0 }
0x143b   :  { %v8069_v26 = vpop.f32.mrb[250].mxu0 }
0x143c   :  { %v19381_v5 = vpack.c.bf16 %v8069_v26, %v8065_v53  ;;  %v8071_v44 = vpop.f32.mrb[251].mxu0  ;;  %v16707_v53 = vld [vmem:[#allocation13 + $0xc8] ss:$12 sps:$4 sm:$0xff]   ;;  %v16708_v26 = vld [vmem:[#allocation13 + $0xd8] ss:$12 sps:$4 sm:$0xff]  }
0x143d   :  { %v19383_v23 = vpack.c.bf16 %v8071_v44, %v8067_v30  ;;  %v16710_v30 = vld [vmem:[#allocation13 + $0xdc] ss:$12 sps:$4 sm:$0xff]   ;;  %v16711_v44 = vld [vmem:[#allocation13 + $0xe0] ss:$12 sps:$4 sm:$0xff]  }
0x1441   :  { %v8191_v11 = vpop.f32.mrb[252].mxu0 }
0x1442   :  { %v8193_v55 = vpop.f32.mrb[253].mxu0 }
0x1443   :  { %v8195_v38 = vpop.f32.mrb[254].mxu0 }
0x1444   :  { %v8220_v41 = vpack.c.bf16 %v8195_v38, %v8191_v11  ;;  %v8197_v10 = vpop.f32.mrb[255].mxu0  ;;  %v16714_v11 = vld [vmem:[#allocation13 + $0xf4] ss:$12 sps:$4 sm:$0xff]   ;;  %v16712_v38 = vld [vmem:[#allocation13 + $0xf0] ss:$12 sps:$4 sm:$0xff]  }
0x1445   :  { %v8221_v40 = vpack.c.bf16 %v8197_v10, %v8193_v55  ;;  %v8124_v55 = vld [vmem:[#allocation13 + $0x108] sm:$0x33] }
0x1446   :  { %v14826_v10 = vcombine.high %v8124_v55, %v8124_v55 }
0x1447   :  { %14786 = vmatprep.mubr.msk.bf16.mxu1 %vm1407_vm12, %v8221_v40  ;;  %14789 = vmatprep.mubr.msk.bf16.mxu0 %vm1407_vm12, %v8221_v40  ;;  %v14825_v40 = vcombine.low %v8124_v55, %v8124_v55 }
0x1448   :  { %8508 = vmatmul.mubr.bf16.vlgmr.msra.gmra.mrb[132].mxu1 %v8220_v41  ;;  %8571 = vmatmul.mubr.bf16.vlgmr.msra.gmra.mrb[8].mxu0 %v8220_v41  ;;  %v16715_v41 = vld [vmem:[#allocation13 + $0xf8] ss:$12 sps:$4 sm:$0xff]  }
0x1449   :  { %8798 = vmatpush1.bf16.msra.mxu1 %v16672_v62  ;;  %8861 = vmatpush1.bf16.msra.mxu0 %v16675_v17  ;;  %v8201_v19 = vpop.f32.mrb[0].mxu0  ;;  %v16718_v62 = vld [vmem:[#allocation13 + $0x110] ss:$0 sps:$4 sm:$0x33]   ;;  %v8789_v17 = vsel %vm6418_vm2, %v14825_v40, 0 }
0x144a   :  { %v8203_v16 = vpop.f32.mrb[1].mxu0  ;;  %8799 = vmatprep.subr.bf16.mxu1 %v16678_v12  ;;  %8862 = vmatprep.subr.bf16.mxu0 %v17391_v34  ;;  %v8795_v12 = vsel %vm6418_vm2, %v16718_v62, 0 }
0x144b   :  { %v8205_v45 = vpop.f32.mrb[2].mxu0 }
0x144c   :  { %v8222_v18 = vpack.c.bf16 %v8205_v45, %v8201_v19  ;;  %v8207_v35 = vpop.f32.mrb[3].mxu0  ;;  %v16719_v19 = vld [vmem:[#allocation13 + $0x230] ss:$12 sps:$4 sm:$0xff]  }
0x144d   :  { %v8223_v61 = vpack.c.bf16 %v8207_v35, %v8203_v16  ;;  %8800 = vmatpush1.bf16.msra.mxu1 %v16676_v14  ;;  %8863 = vmatpush1.bf16.msra.mxu0 %v16679_v15  ;;  %v16720_v14 = vld [vmem:[#allocation13 + $0x248] ss:$12 sps:$4 sm:$0xff]   ;;  %v16721_v15 = vld [vmem:[#allocation13 + $0x260] ss:$12 sps:$4 sm:$0xff]   ;;  %v16729_v45 = vld [vmem:[#allocation13 + $0x2f0] ss:$12 sps:$4 sm:$0xff]  }
0x144e   :  { %8801 = vmatprep.subr.bf16.mxu1 %v16682_v25  ;;  %8864 = vmatprep.subr.bf16.mxu0 %v17391_v34  ;;  %v16726_v16 = vld [vmem:[#allocation13 + $0x2c0] ss:$12 sps:$4 sm:$0xff]   ;;  %v16727_v25 = vld [vmem:[#allocation13 + $0x2d8] ss:$12 sps:$4 sm:$0xff]  }
0x144f   :  { %14787 = vmatprep.mubr.msk.bf16.mxu1 %vm1407_vm12, %v8223_v61  ;;  %14790 = vmatprep.mubr.msk.bf16.mxu0 %vm1407_vm12, %v8223_v61  ;;  %v16731_v35 = vld [vmem:[#allocation4 + $0x1d8] sm:$0xff]   ;;  %v16732_v61 = vld [vmem:[#allocation13 + $0x320] ss:$12 sps:$4 sm:$0xff]  }
0x1450   :  { %8518 = vmatmul.mubr.bf16.gmra.mrb[136].mxu1 %v8222_v18  ;;  %8579 = vmatmul.mubr.bf16.gmra.mrb[12].mxu0 %v8222_v18  ;;  %v16730_v18 = vld [vmem:[#allocation13 + $0x308] ss:$12 sps:$4 sm:$0xff]  }
0x1451   :  { %8802 = vmatpush1.bf16.msra.mxu1 %v16680_v48  ;;  %8865 = vmatpush1.bf16.msra.mxu0 %v16683_v47  ;;  %v8211_v36 = vpop.f32.mrb[4].mxu0  ;;  %v16733_v48 = vld [vmem:[#allocation13 + $0x338] ss:$0 sps:$4 sm:$0x33]  }
0x1452   :  { %v8213_v59 = vpop.f32.mrb[5].mxu0  ;;  %8803 = vmatprep.subr.bf16.mxu1 %v16686_v2  ;;  %8866 = vmatprep.subr.bf16.mxu0 %v17391_v34  ;;  %v9264_v47 = vsel %vm6418_vm2, %v16733_v48, 0  ;;  %v16734_v2 = vld [vmem:[#allocation13 + $0x228] ss:$12 sps:$4 sm:$0xff]  }
0x1453   :  { %v8215_v9 = vpop.f32.mrb[6].mxu0 }
0x1454   :  { %v8224_v3 = vpack.c.bf16 %v8215_v9, %v8211_v36  ;;  %v8217_v29 = vpop.f32.mrb[7].mxu0  ;;  %v16736_v36 = vld [vmem:[#allocation13 + $0x22c] ss:$12 sps:$4 sm:$0xff]   ;;  %v16745_v9 = vld [vmem:[#allocation13 + $0x274] ss:$12 sps:$4 sm:$0xff]  }
0x1455   :  { %v8225_v22 = vpack.c.bf16 %v8217_v29, %v8213_v59  ;;  %8804 = vmatpush1.bf16.msra.mxu1 %v16684_v24  ;;  %8867 = vmatpush1.bf16.msra.mxu0 %v16687_v7  ;;  %v16737_v24 = vld [vmem:[#allocation13 + $0x240] ss:$12 sps:$4 sm:$0xff]   ;;  %v16739_v7 = vld [vmem:[#allocation13 + $0x244] ss:$12 sps:$4 sm:$0xff]   ;;  %v16742_v59 = vld [vmem:[#allocation13 + $0x25c] ss:$12 sps:$4 sm:$0xff]  }
0x1456   :  { %8805 = vmatprep.subr.bf16.mxu1 %v16690_v63  ;;  %8868 = vmatprep.subr.bf16.mxu0 %v17391_v34  ;;  %v16740_v63 = vld [vmem:[#allocation13 + $0x258] ss:$12 sps:$4 sm:$0xff]  }
0x1457   :  { %14788 = vmatprep.mubr.msk.bf16.mxu1 %vm1407_vm12, %v8225_v22  ;;  %14791 = vmatprep.mubr.msk.bf16.mxu0 %vm1407_vm12, %v8225_v22  ;;  %v16748_v29 = vld [vmem:[#allocation13 + $0x28c] ss:$12 sps:$4 sm:$0xff]   ;;  %v16746_v22 = vld [vmem:[#allocation13 + $0x288] ss:$12 sps:$4 sm:$0xff]  }
0x1458   :  { %8528 = vmatmul.mubr.bf16.gmra.mrb[140].mxu1 %v8224_v3  ;;  %8587 = vmatmul.mubr.bf16.gmra.mrb[16].mxu0 %v8224_v3  ;;  %v16743_v3 = vld [vmem:[#allocation13 + $0x270] ss:$12 sps:$4 sm:$0xff]  }
0x1459   :  { %8806 = vmatpush1.bf16.msra.mxu1 %v16688_v43  ;;  %8869 = vmatpush1.bf16.msra.mxu0 %v16691_v32  ;;  %v16751_v43 = vld [vmem:[#allocation13 + $0x2a4] ss:$12 sps:$4 sm:$0xff]   ;;  %v16749_v32 = vld [vmem:[#allocation13 + $0x2a0] ss:$12 sps:$4 sm:$0xff]  }
0x145a   :  { %14829 = vmatprep.mubr.msk.bf16.mxu1 %vm1407_vm12, %v19375_v6  ;;  %14832 = vmatprep.mubr.msk.bf16.mxu0 %vm1407_vm12, %v19375_v6  ;;  %v16706_v6 = vld [vmem:[#allocation13 + $0xc4] ss:$12 sps:$4 sm:$0xff]  }
0x145b   :  { %8807 = vmatprep.subr.bf16.mxu1 %v16694_v51  ;;  %8870 = vmatprep.subr.bf16.mxu0 %v17391_v34  ;;  %v16754_v51 = vld [vmem:[#allocation13 + $0x2bc] ss:$12 sps:$4 sm:$0xff]  }
0x145d   :  { %8808 = vmatpush1.bf16.msra.mxu1 %v16692_v33  ;;  %8871 = vmatpush1.bf16.msra.mxu0 %v16695_v21  ;;  %v16752_v33 = vld [vmem:[#allocation13 + $0x2b8] ss:$12 sps:$4 sm:$0xff]   ;;  %v16757_v21 = vld [vmem:[#allocation13 + $0x2d4] ss:$12 sps:$4 sm:$0xff]  }
0x145e   :  { %8809 = vmatprep.subr.bf16.mxu1 %v16698_v13  ;;  %8872 = vmatprep.subr.bf16.mxu0 %v17391_v34  ;;  %v16755_v13 = vld [vmem:[#allocation13 + $0x2d0] ss:$12 sps:$4 sm:$0xff]  }
0x1461   :  { %8810 = vmatpush1.bf16.msra.mxu1 %v16696_v58  ;;  %8873 = vmatpush1.bf16.msra.mxu0 %v16699_v27  ;;  %v16760_v58 = vld [vmem:[#allocation13 + $0x2ec] ss:$12 sps:$4 sm:$0xff]   ;;  %v16758_v27 = vld [vmem:[#allocation13 + $0x2e8] ss:$12 sps:$4 sm:$0xff]  }
0x1462   :  { %8811 = vmatprep.subr.bf16.mxu1 %v16702_v1  ;;  %8874 = vmatprep.subr.bf16.mxu0 %v17391_v34  ;;  %v16763_v1 = vld [vmem:[#allocation13 + $0x304] ss:$12 sps:$4 sm:$0xff]  }
0x1465   :  { %8812 = vmatpush1.bf16.msra.mxu1 %v16700_v49  ;;  %8875 = vmatpush1.bf16.msra.mxu0 %v16703_v52  ;;  %v16761_v49 = vld [vmem:[#allocation13 + $0x300] ss:$12 sps:$4 sm:$0xff]   ;;  %v16766_v52 = vld [vmem:[#allocation13 + $0x31c] ss:$12 sps:$4 sm:$0xff]  }
0x1466   :  { %8813 = vmatprep.subr.bf16.mxu1 %v16706_v6  ;;  %8876 = vmatprep.subr.bf16.mxu0 %v17391_v34  ;;  %v16764_v6 = vld [vmem:[#allocation13 + $0x318] ss:$12 sps:$4 sm:$0xff]  }
0x1469   :  { %8814 = vmatpush1.bf16.msra.mxu1 %v16704_v39  ;;  %8877 = vmatpush1.bf16.msra.mxu0 %v16707_v53  ;;  %v9062_v39 = vld [vmem:[#allocation13 + $0x330] sm:$0x33] }
0x146a   :  { %8815 = vmatprep.subr.bf16.mxu1 %v16710_v30  ;;  %8878 = vmatprep.subr.bf16.mxu0 %v17391_v34  ;;  %v14875_v53 = vcombine.high %v9062_v39, %v9062_v39  ;;  %v14874_v30 = vcombine.low %v9062_v39, %v9062_v39  ;;  %v16780_v39 = vld [vmem:[#allocation13 + $0x388] ss:$12 sps:$4 sm:$0xff]  }
0x146d   :  { %8816 = vmatpush1.bf16.msra.mxu1 %v16708_v26  ;;  %8879 = vmatpush1.bf16.msra.mxu0 %v16711_v44  ;;  %v9258_v26 = vsel %vm6418_vm2, %v14874_v30, 0  ;;  %v16771_v44 = vld [vmem:[#allocation13 + $0x340] ss:$12 sps:$4 sm:$0xff]   ;;  %v16778_v30 = vld [vmem:[#allocation13 + $0x384] ss:$12 sps:$4 sm:$0xff]  }
0x146e   :  { %8817 = vmatprep.subr.bf16.mxu1 %v16714_v11  ;;  %8880 = vmatprep.subr.bf16.mxu0 %v17391_v34 }
0x1471   :  { %8818 = vmatpush1.bf16.msra.mxu1 %v16712_v38  ;;  %8881 = vmatpush1.bf16.msra.mxu0 %v16715_v41 }
0x1472   :  { %14828 = vmatprep.subr.msk.bf16.mxu1 %vm6418_vm2, %v14826_v10  ;;  %8882 = vmatprep.subr.bf16.mxu0 %v17391_v34 }
0x1475   :  { %8820 = vmatpush1.bf16.msra.mxu1 %v8789_v17  ;;  %8883 = vmatpush1.bf16.msra.mxu0 %v8795_v12 }
0x1476   :  { %8948 = vmatprep.subr.bf16.mxu1 %v19317_v20  ;;  %9329 = vmatprep.subr.bf16.mxu0 %v17391_v34 }
0x1478   :  { %8830 = vmatmul.mubr.bf16.vlgmr.msra.gmra.mrb[132].mxu1 %v19373_v28  ;;  %8893 = vmatmul.mubr.bf16.vlgmr.msra.gmra.mrb[20].mxu0 %v19373_v28  ;;  %v16722_v28 = vld [vmem:[#allocation13 + $0x278] ss:$12 sps:$4 sm:$0xff]  }
0x1479   :  { %14830 = vmatprep.mubr.msk.bf16.mxu1 %vm1407_vm12, %v19379_v46  ;;  %14833 = vmatprep.mubr.msk.bf16.mxu0 %vm1407_vm12, %v19379_v46  ;;  %v16723_v46 = vld [vmem:[#allocation13 + $0x290] ss:$12 sps:$4 sm:$0xff]  }
0x147a   :  { %8949 = vmatpush1.bf16.msra.mxu1 %v19323_v37  ;;  %9330 = vmatpush1.bf16.msra.mxu0 %v16719_v19 }
0x147b   :  { %8950 = vmatprep.subr.bf16.mxu1 %v19325_v42  ;;  %9331 = vmatprep.subr.bf16.mxu0 %v17391_v34 }
0x147e   :  { %8951 = vmatpush1.bf16.msra.mxu1 %v19331_v31  ;;  %9332 = vmatpush1.bf16.msra.mxu0 %v16720_v14 }
0x147f   :  { %8952 = vmatprep.subr.bf16.mxu1 %v19333_v56  ;;  %9333 = vmatprep.subr.bf16.mxu0 %v17391_v34 }
0x1480   :  { %8840 = vmatmul.mubr.bf16.gmra.mrb[136].mxu1 %v19377_v50  ;;  %8901 = vmatmul.mubr.bf16.gmra.mrb[24].mxu0 %v19377_v50  ;;  %v16724_v50 = vld [vmem:[#allocation13 + $0x2a8] ss:$12 sps:$4 sm:$0xff]  }
0x1481   :  { %14831 = vmatprep.mubr.msk.bf16.mxu1 %vm1407_vm12, %v19383_v23  ;;  %14834 = vmatprep.mubr.msk.bf16.mxu0 %vm1407_vm12, %v19383_v23  ;;  %v16725_v23 = vld [vmem:[#allocation4 + $0x1c8] sm:$0xff]  }
0x1482   :  { %8953 = vmatpush1.bf16.msra.mxu1 %v19337_v8  ;;  %9334 = vmatpush1.bf16.msra.mxu0 %v16721_v15 }
0x1483   :  { %9335 = vmatprep.subr.bf16.mxu0 %v17391_v34  ;;  %9266 = vmatprep.subr.bf16.mxu1 %v16736_v36 }
0x1486   :  { %9336 = vmatpush1.bf16.msra.mxu0 %v16722_v28 }
0x1487   :  { %9337 = vmatprep.subr.bf16.mxu0 %v17391_v34 }
0x1488   :  { %8850 = vmatmul.mubr.bf16.gmra.mrb[140].mxu1 %v19381_v5  ;;  %8909 = vmatmul.mubr.bf16.gmra.mrb[28].mxu0 %v19381_v5  ;;  %v16728_v5 = vld [vmem:[#allocation4 + $0x1d0] sm:$0xff]  }
0x1489   :  { %8980 = vmatprep.mubr.bf16.mxu1 %v17391_v34 }
0x148a   :  { %9338 = vmatpush1.bf16.msra.mxu0 %v16723_v46 }
0x148b   :  { %9339 = vmatprep.subr.bf16.mxu0 %v17391_v34 }
0x148e   :  { %9340 = vmatpush1.bf16.msra.mxu0 %v16724_v50 }
0x148f   :  { %9341 = vmatprep.subr.bf16.mxu0 %v17391_v34 }
0x1490   :  { %14838 = vmatmul.mubr.msk.bf16.vlgmr.msra.gmra.mrb[144].mxu1 %vm200_vm1, %v16725_v23 }
0x1491   :  { %8990 = vmatprep.mubr.bf16.mxu1 %v17391_v34  ;;  %9267 = vmatpush1.bf16.msra.mxu1 %v16734_v2 }
0x1492   :  { %9342 = vmatpush1.bf16.msra.mxu0 %v16726_v16  ;;  %9268 = vmatprep.subr.bf16.mxu1 %v16739_v7 }
0x1493   :  { %9343 = vmatprep.subr.bf16.mxu0 %v17391_v34 }
0x1495   :  { %9269 = vmatpush1.bf16.msra.mxu1 %v16737_v24 }
0x1496   :  { %9344 = vmatpush1.bf16.msra.mxu0 %v16727_v25  ;;  %9270 = vmatprep.subr.bf16.mxu1 %v16742_v59 }
0x1497   :  { %9345 = vmatprep.subr.bf16.mxu0 %v17391_v34 }
0x1498   :  { %14839 = vmatmul.mubr.msk.bf16.gmra.mrb[148].mxu1 %vm200_vm1, %v16728_v5 }
0x1499   :  { %9000 = vmatprep.mubr.bf16.mxu1 %v17391_v34  ;;  %9271 = vmatpush1.bf16.msra.mxu1 %v16740_v63 }
0x149a   :  { %9346 = vmatpush1.bf16.msra.mxu0 %v16729_v45  ;;  %9272 = vmatprep.subr.bf16.mxu1 %v16745_v9 }
0x149b   :  { %9347 = vmatprep.subr.bf16.mxu0 %v17391_v34 }
0x149d   :  { %9273 = vmatpush1.bf16.msra.mxu1 %v16743_v3 }
0x149e   :  { %9348 = vmatpush1.bf16.msra.mxu0 %v16730_v18  ;;  %9274 = vmatprep.subr.bf16.mxu1 %v16748_v29 }
0x149f   :  { %9349 = vmatprep.subr.bf16.mxu0 %v17391_v34 }
0x14a0   :  { %14840 = vmatmul.mubr.msk.bf16.gmra.mrb[152].mxu1 %vm200_vm1, %v16731_v35 }
0x14a1   :  { %9275 = vmatpush1.bf16.msra.mxu1 %v16746_v22 }
0x14a2   :  { %9350 = vmatpush1.bf16.msra.mxu0 %v16732_v61  ;;  %9276 = vmatprep.subr.bf16.mxu1 %v16751_v43 }
0x14a3   :  { %9351 = vmatprep.subr.bf16.mxu0 %v17391_v34 }
0x14a5   :  { %9277 = vmatpush1.bf16.msra.mxu1 %v16749_v32  ;;  %v16769_v32 = vld [vmem:[#allocation13 + $0x33c] ss:$12 sps:$4 sm:$0xff]  }
0x14a6   :  { %9352 = vmatpush1.bf16.msra.mxu0 %v9264_v47  ;;  %9278 = vmatprep.subr.bf16.mxu1 %v16754_v51  ;;  %v16774_v51 = vld [vmem:[#allocation13 + $0x358] ss:$12 sps:$4 sm:$0xff]  }
0x14a7   :  { %9435 = vmatprep.subr.bf16.mxu0 %v19317_v20 }
0x14a9   :  { %9279 = vmatpush1.bf16.msra.mxu1 %v16752_v33 }
0x14aa   :  { %9280 = vmatprep.subr.bf16.mxu1 %v16757_v21  ;;  %v16772_v21 = vld [vmem:[#allocation13 + $0x354] ss:$12 sps:$4 sm:$0xff]  }
0x14ad   :  { %9281 = vmatpush1.bf16.msra.mxu1 %v16755_v13 }
0x14ae   :  { %9282 = vmatprep.subr.bf16.mxu1 %v16760_v58  ;;  %v16777_v58 = vld [vmem:[#allocation13 + $0x370] ss:$12 sps:$4 sm:$0xff]  }
0x14b1   :  { %9283 = vmatpush1.bf16.msra.mxu1 %v16758_v27 }
0x14b2   :  { %9284 = vmatprep.subr.bf16.mxu1 %v16763_v1 }
0x14b5   :  { %9285 = vmatpush1.bf16.msra.mxu1 %v16761_v49 }
0x14b6   :  { %9286 = vmatprep.subr.bf16.mxu1 %v16766_v52 }
0x14b9   :  { %9287 = vmatpush1.bf16.msra.mxu1 %v16764_v6  ;;  %v16775_v6 = vld [vmem:[#allocation13 + $0x36c] ss:$12 sps:$4 sm:$0xff]  }
0x14ba   :  { %14877 = vmatprep.subr.msk.bf16.mxu1 %vm6418_vm2, %v14875_v53 }
0x14bd   :  { %9289 = vmatpush1.bf16.msra.mxu1 %v9258_v26 }
0x14be   :  { %9753 = vmatprep.subr.bf16.mxu1 %v16771_v44  ;;  %v16783_v44 = vld [vmem:[#allocation13 + $0x3a0] ss:$12 sps:$4 sm:$0xff]  }
0x151b   :  { %v8572_v11 = vpop.f32.mrb[8].mxu0 }
0x151c   :  { %v8574_v55 = vpop.f32.mrb[9].mxu0 }
0x151d   :  { %v8575_v38 = vpop.f32.mrb[10].mxu0 }
0x151e   :  { %v8577_v41 = vpop.f32.mrb[11].mxu0 }
0x1523   :  { %v8580_v10 = vpop.f32.mrb[12].mxu0 }
0x1524   :  { %v8582_v40 = vpop.f32.mrb[13].mxu0 }
0x1525   :  { %v8583_v62 = vpop.f32.mrb[14].mxu0  ;;  %v16786_v40 = vld [vmem:[#allocation13 + $0x3b8] ss:$12 sps:$4 sm:$0xff]  }
0x1526   :  { %v8585_v17 = vpop.f32.mrb[15].mxu0 }
0x1527   :  { %v16789_v17 = vld [vmem:[#allocation13 + $0x3d0] ss:$12 sps:$4 sm:$0xff]  }
0x152b   :  { %v8588_v12 = vpop.f32.mrb[16].mxu0 }
0x152c   :  { %v8590_v19 = vpop.f32.mrb[17].mxu0 }
0x152d   :  { %v8591_v14 = vpop.f32.mrb[18].mxu0  ;;  %v16787_v19 = vld [vmem:[#allocation13 + $0x3cc] ss:$12 sps:$4 sm:$0xff]  }
0x152e   :  { %v8593_v15 = vpop.f32.mrb[19].mxu0 }
0x152f   :  { %v16807_v15 = vld [vmem:[#allocation13 + $0x344] ss:$12 sps:$4 sm:$0xff]  }
0x154b   :  { %v8894_v28 = vpop.f32.mrb[20].mxu0 }
0x154c   :  { %v19451_v46 = vadd.f32 %v8894_v28, %v8572_v11  ;;  %v8896_v50 = vpop.f32.mrb[21].mxu0  ;;  %v16791_v28 = vld [vmem:[#allocation13 + $0x3e4] ss:$12 sps:$4 sm:$0xff]  }
0x154d   :  { %v8897_v23 = vpop.f32.mrb[22].mxu0  ;;  %v16796_v50 = vld [vmem:[#allocation13 + $0x400] ss:$12 sps:$4 sm:$0xff]  }
0x154e   :  { %v19453_v16 = vadd.f32 %v8897_v23, %v8575_v38  ;;  %v8899_v25 = vpop.f32.mrb[23].mxu0  ;;  %v16808_v23 = vld [vmem:[#allocation13 + $0x35c] ss:$12 sps:$4 sm:$0xff]  }
0x154f   :  { %v16797_v25 = vld [vmem:[#allocation4 + $0x1e8] sm:$0xff]  }
0x1553   :  { %v8902_v5 = vpop.f32.mrb[24].mxu0 }
0x1554   :  { %v19455_v45 = vadd.f32 %v8902_v5, %v8580_v10  ;;  %v8904_v18 = vpop.f32.mrb[25].mxu0  ;;  %v16781_v10 = vld [vmem:[#allocation13 + $0x39c] ss:$12 sps:$4 sm:$0xff]  }
0x1555   :  { %v8905_v35 = vpop.f32.mrb[26].mxu0  ;;  %v16794_v5 = vld [vmem:[#allocation13 + $0x3fc] ss:$12 sps:$4 sm:$0xff]   ;;  %v16800_v18 = vld [vmem:[#allocation13 + $0x418] ss:$12 sps:$4 sm:$0xff]  }
0x1556   :  { %v19457_v61 = vadd.f32 %v8905_v35, %v8583_v62  ;;  %v8907_v48 = vpop.f32.mrb[27].mxu0  ;;  %v16784_v62 = vld [vmem:[#allocation13 + $0x3b4] ss:$12 sps:$4 sm:$0xff]  }
0x1557   :  { %v16809_v35 = vld [vmem:[#allocation13 + $0x374] ss:$12 sps:$4 sm:$0xff]  }
0x1558   :  { %v16798_v48 = vld [vmem:[#allocation13 + $0x414] ss:$12 sps:$4 sm:$0xff]  }
0x155b   :  { %v8910_v47 = vpop.f32.mrb[28].mxu0 }
0x155c   :  { %v19459_v2 = vadd.f32 %v8910_v47, %v8588_v12  ;;  %v8912_v36 = vpop.f32.mrb[29].mxu0  ;;  %v16790_v12 = vld [vmem:[#allocation4 + $0x1e0] sm:$0xff]  }
0x155d   :  { %v8913_v24 = vpop.f32.mrb[30].mxu0  ;;  %v16803_v47 = vld [vmem:[#allocation13 + $0x430] ss:$12 sps:$4 sm:$0xff]   ;;  %v16810_v36 = vld [vmem:[#allocation13 + $0x38c] ss:$12 sps:$4 sm:$0xff]  }
0x155e   :  { %v19461_v7 = vadd.f32 %v8913_v24, %v8591_v14  ;;  %v8915_v59 = vpop.f32.mrb[31].mxu0  ;;  %v16793_v14 = vld [vmem:[#allocation13 + $0x3e8] ss:$12 sps:$4 sm:$0xff]  }
0x155f   :  { %v9549_v24 = vld [vmem:[#allocation13 + $0x444] sm:$0x33]  ;;  %v16804_v59 = vld [vmem:[#allocation4 + $0x1f0] sm:$0xff]  }
0x1563   :  { %v8982_v63 = vpop.f32.mrb[144].mxu1 }
0x1564   :  { %v8984_v9 = vpop.f32.mrb[145].mxu1 }
0x1565   :  { %v8986_v3 = vpop.f32.mrb[146].mxu1 }
0x1566   :  { %v9011_v29 = vpack.c.bf16 %v8986_v3, %v8982_v63  ;;  %v8988_v22 = vpop.f32.mrb[147].mxu1  ;;  %v16801_v63 = vld [vmem:[#allocation13 + $0x42c] ss:$12 sps:$4 sm:$0xff]   ;;  %v14923_v3 = vcombine.low %v9549_v24, %v9549_v24 }
0x1567   :  { %v9012_v43 = vpack.c.bf16 %v8988_v22, %v8984_v9  ;;  %v14924_v9 = vcombine.high %v9549_v24, %v9549_v24  ;;  %v16811_v22 = vld [vmem:[#allocation13 + $0x3a4] ss:$12 sps:$4 sm:$0xff]   ;;  %v16828_v24 = vld [vmem:[#allocation13 + $0x46c] ss:$12 sps:$4 sm:$0xff]  }
0x1569   :  { %14878 = vmatprep.mubr.msk.bf16.mxu1 %vm1407_vm12, %v9012_v43  ;;  %14881 = vmatprep.mubr.msk.bf16.mxu0 %vm1407_vm12, %v9012_v43  ;;  %v16812_v43 = vld [vmem:[#allocation13 + $0x3bc] ss:$12 sps:$4 sm:$0xff]  }
0x156a   :  { %9299 = vmatmul.mubr.bf16.vlgmr.msra.gmra.mrb[132].mxu1 %v9011_v29  ;;  %9362 = vmatmul.mubr.bf16.vlgmr.msra.gmra.mrb[32].mxu0 %v9011_v29  ;;  %v9745_v29 = vsel %vm6418_vm2, %v14923_v3, 0  ;;  %v16830_v3 = vld [vmem:[#allocation13 + $0x480] ss:$12 sps:$4 sm:$0xff]  }
0x156b   :  { %9436 = vmatpush1.bf16.msra.mxu0 %v19323_v37  ;;  %9754 = vmatpush1.bf16.msra.mxu1 %v16769_v32  ;;  %v8992_v33 = vpop.f32.mrb[148].mxu1  ;;  %v16813_v32 = vld [vmem:[#allocation13 + $0x3d4] ss:$12 sps:$4 sm:$0xff]  }
0x156c   :  { %9437 = vmatprep.subr.bf16.mxu0 %v19325_v42  ;;  %v8994_v13 = vpop.f32.mrb[149].mxu1  ;;  %9755 = vmatprep.subr.bf16.mxu1 %v16774_v51  ;;  %v16814_v51 = vld [vmem:[#allocation13 + $0x3ec] ss:$12 sps:$4 sm:$0xff]  }
0x156d   :  { %v8996_v27 = vpop.f32.mrb[150].mxu1 }
0x156e   :  { %v9013_v1 = vpack.c.bf16 %v8996_v27, %v8992_v33  ;;  %v8998_v49 = vpop.f32.mrb[151].mxu1  ;;  %v16815_v33 = vld [vmem:[#allocation13 + $0x404] ss:$12 sps:$4 sm:$0xff]  }
0x156f   :  { %v9014_v52 = vpack.c.bf16 %v8998_v49, %v8994_v13  ;;  %9438 = vmatpush1.bf16.msra.mxu0 %v19331_v31  ;;  %9756 = vmatpush1.bf16.msra.mxu1 %v16772_v21  ;;  %v16817_v21 = vld [vmem:[#allocation13 + $0x434] ss:$12 sps:$4 sm:$0xff]   ;;  %v16818_v13 = vld [vmem:[#allocation13 + $0x44c] ss:$0 sps:$4 sm:$0x33]  }
0x1570   :  { %9439 = vmatprep.subr.bf16.mxu0 %v19333_v56  ;;  %9757 = vmatprep.subr.bf16.mxu1 %v16777_v58  ;;  %v9751_v58 = vsel %vm6418_vm2, %v16818_v13, 0  ;;  %v16845_v13 = vld [vmem:[#allocation13 + $0x4d0] ss:$12 sps:$4 sm:$0xff]  }
0x1571   :  { %14879 = vmatprep.mubr.msk.bf16.mxu1 %vm1407_vm12, %v9014_v52  ;;  %14882 = vmatprep.mubr.msk.bf16.mxu0 %vm1407_vm12, %v9014_v52 }
0x1572   :  { %9309 = vmatmul.mubr.bf16.gmra.mrb[136].mxu1 %v9013_v1  ;;  %9370 = vmatmul.mubr.bf16.gmra.mrb[48].mxu0 %v9013_v1 }
0x1573   :  { %9440 = vmatpush1.bf16.msra.mxu0 %v19337_v8  ;;  %9758 = vmatpush1.bf16.msra.mxu1 %v16775_v6  ;;  %v9002_v53 = vpop.f32.mrb[152].mxu1 }
0x1574   :  { %v9004_v26 = vpop.f32.mrb[153].mxu1  ;;  %9759 = vmatprep.subr.bf16.mxu1 %v16780_v39  ;;  %9816 = vmatprep.subr.bf16.mxu0 %v17391_v34 }
0x1575   :  { %v9006_v11 = vpop.f32.mrb[154].mxu1 }
0x1576   :  { %v9015_v55 = vpack.c.bf16 %v9006_v11, %v9002_v53  ;;  %v9008_v38 = vpop.f32.mrb[155].mxu1 }
0x1577   :  { %v9016_v41 = vpack.c.bf16 %v9008_v38, %v9004_v26  ;;  %9760 = vmatpush1.bf16.msra.mxu1 %v16778_v30 }
0x1578   :  { %9761 = vmatprep.subr.bf16.mxu1 %v16783_v44 }
0x1579   :  { %14880 = vmatprep.mubr.msk.bf16.mxu1 %vm1407_vm12, %v9016_v41  ;;  %14883 = vmatprep.mubr.msk.bf16.mxu0 %vm1407_vm12, %v9016_v41 }
0x157a   :  { %9319 = vmatmul.mubr.bf16.gmra.mrb[140].mxu1 %v9015_v55  ;;  %9378 = vmatmul.mubr.bf16.gmra.mrb[52].mxu0 %v9015_v55 }
0x157b   :  { %9762 = vmatpush1.bf16.msra.mxu1 %v16781_v10  ;;  %9467 = vmatprep.mubr.bf16.mxu0 %v17391_v34 }
0x157c   :  { %9763 = vmatprep.subr.bf16.mxu1 %v16786_v40 }
0x157f   :  { %9764 = vmatpush1.bf16.msra.mxu1 %v16784_v62 }
0x1580   :  { %9765 = vmatprep.subr.bf16.mxu1 %v16789_v17 }
0x1582   :  { %14887 = vmatmul.mubr.msk.bf16.vlgmr.msra.gmra.mrb[56].mxu0 %vm200_vm1, %v16790_v12 }
0x1583   :  { %9766 = vmatpush1.bf16.msra.mxu1 %v16787_v19  ;;  %9477 = vmatprep.mubr.bf16.mxu0 %v17391_v34 }
0x1584   :  { %9767 = vmatprep.subr.bf16.mxu1 %v16793_v14  ;;  %9817 = vmatpush1.bf16.msra.mxu0 %v16807_v15  ;;  %v16825_v15 = vld [vmem:[#allocation13 + $0x458] ss:$12 sps:$4 sm:$0xff]  }
0x1585   :  { %9818 = vmatprep.subr.bf16.mxu0 %v17391_v34 }
0x1587   :  { %9768 = vmatpush1.bf16.msra.mxu1 %v16791_v28 }
0x1588   :  { %9769 = vmatprep.subr.bf16.mxu1 %v16796_v50  ;;  %9819 = vmatpush1.bf16.msra.mxu0 %v16808_v23 }
0x1589   :  { %9820 = vmatprep.subr.bf16.mxu0 %v17391_v34 }
0x158a   :  { %14888 = vmatmul.mubr.msk.bf16.gmra.mrb[36].mxu0 %vm200_vm1, %v16797_v25 }
0x158b   :  { %9770 = vmatpush1.bf16.msra.mxu1 %v16794_v5  ;;  %9487 = vmatprep.mubr.bf16.mxu0 %v17391_v34  ;;  %v16833_v5 = vld [vmem:[#allocation13 + $0x488] ss:$12 sps:$4 sm:$0xff]  }
0x158c   :  { %9771 = vmatprep.subr.bf16.mxu1 %v16800_v18  ;;  %9821 = vmatpush1.bf16.msra.mxu0 %v16809_v35  ;;  %v16824_v18 = vld [vmem:[#allocation13 + $0x454] ss:$12 sps:$4 sm:$0xff]  }
0x158d   :  { %9822 = vmatprep.subr.bf16.mxu0 %v17391_v34 }
0x158f   :  { %9772 = vmatpush1.bf16.msra.mxu1 %v16798_v48 }
0x1590   :  { %9773 = vmatprep.subr.bf16.mxu1 %v16803_v47  ;;  %9823 = vmatpush1.bf16.msra.mxu0 %v16810_v36  ;;  %v16822_v36 = vld [vmem:[#allocation13 + $0x450] ss:$12 sps:$4 sm:$0xff]  }
0x1591   :  { %9824 = vmatprep.subr.bf16.mxu0 %v17391_v34 }
0x1592   :  { %14889 = vmatmul.mubr.msk.bf16.gmra.mrb[40].mxu0 %vm200_vm1, %v16804_v59  ;;  %v16826_v59 = vld [vmem:[#allocation13 + $0x468] ss:$12 sps:$4 sm:$0xff]  }
0x1593   :  { %9774 = vmatpush1.bf16.msra.mxu1 %v16801_v63  ;;  %v16832_v63 = vld [vmem:[#allocation13 + $0x484] ss:$12 sps:$4 sm:$0xff]  }
0x1594   :  { %14926 = vmatprep.subr.msk.bf16.mxu1 %vm6418_vm2, %v14924_v9  ;;  %9825 = vmatpush1.bf16.msra.mxu0 %v16811_v22  ;;  %v16820_v9 = vld [vmem:[#allocation4 + $0x200] sm:$0xff]   ;;  %v16834_v22 = vld [vmem:[#allocation13 + $0x498] ss:$12 sps:$4 sm:$0xff]  }
0x1595   :  { %9826 = vmatprep.subr.bf16.mxu0 %v17391_v34 }
0x1597   :  { %9776 = vmatpush1.bf16.msra.mxu1 %v9745_v29  ;;  %v16836_v29 = vld [vmem:[#allocation13 + $0x49c] ss:$12 sps:$4 sm:$0xff]  }
0x1598   :  { %9922 = vmatprep.subr.bf16.mxu1 %v19317_v20  ;;  %9827 = vmatpush1.bf16.msra.mxu0 %v16812_v43  ;;  %v16816_v20 = vld [vmem:[#allocation13 + $0x41c] ss:$12 sps:$4 sm:$0xff]   ;;  %v16840_v43 = vld [vmem:[#allocation13 + $0x4b4] ss:$12 sps:$4 sm:$0xff]  }
0x1599   :  { %9828 = vmatprep.subr.bf16.mxu0 %v17391_v34 }
0x159c   :  { %9829 = vmatpush1.bf16.msra.mxu0 %v16813_v32  ;;  %v16821_v32 = vld [vmem:[#allocation4 + $0x208] sm:$0xff]  }
0x159d   :  { %9830 = vmatprep.subr.bf16.mxu0 %v17391_v34 }
0x15a0   :  { %9831 = vmatpush1.bf16.msra.mxu0 %v16814_v51  ;;  %v16838_v51 = vld [vmem:[#allocation13 + $0x4b0] ss:$12 sps:$4 sm:$0xff]  }
0x15a1   :  { %9832 = vmatprep.subr.bf16.mxu0 %v17391_v34 }
0x15a4   :  { %9833 = vmatpush1.bf16.msra.mxu0 %v16815_v33  ;;  %v16841_v33 = vld [vmem:[#allocation13 + $0x4b8] ss:$12 sps:$4 sm:$0xff]  }
0x15a5   :  { %9834 = vmatprep.subr.bf16.mxu0 %v17391_v34 }
0x15a8   :  { %9835 = vmatpush1.bf16.msra.mxu0 %v16816_v20  ;;  %v16842_v20 = vld [vmem:[#allocation13 + $0x4c8] ss:$12 sps:$4 sm:$0xff]  }
0x15a9   :  { %9836 = vmatprep.subr.bf16.mxu0 %v17391_v34 }
0x15ac   :  { %9837 = vmatpush1.bf16.msra.mxu0 %v16817_v21  ;;  %v16844_v21 = vld [vmem:[#allocation13 + $0x4cc] ss:$12 sps:$4 sm:$0xff]  }
0x15ad   :  { %9838 = vmatprep.subr.bf16.mxu0 %v17391_v34 }
0x15b0   :  { %9839 = vmatpush1.bf16.msra.mxu0 %v9751_v58  ;;  %v16848_v58 = vld [vmem:[#allocation13 + $0x4e4] ss:$12 sps:$4 sm:$0xff]  }
0x15b1   :  { %10303 = vmatprep.subr.bf16.mxu0 %v17391_v34 }
0x163d   :  { %v9363_v27 = vpop.f32.mrb[32].mxu0 }
0x163e   :  { %v19498_v1 = vadd.f32 %v9363_v27, %v19451_v46  ;;  %v9365_v49 = vpop.f32.mrb[33].mxu0  ;;  %v16846_v27 = vld [vmem:[#allocation13 + $0x4e0] ss:$12 sps:$4 sm:$0xff]  }
0x163f   :  { %v9366_v52 = vpop.f32.mrb[34].mxu0  ;;  %v16849_v49 = vld [vmem:[#allocation13 + $0x4e8] ss:$12 sps:$4 sm:$0xff]  }
0x1640   :  { %v19501_v6 = vadd.f32 %v9366_v52, %v19453_v16  ;;  %v9368_v39 = vpop.f32.mrb[35].mxu0  ;;  %v16850_v52 = vld [vmem:[#allocation13 + $0x4f8] ss:$12 sps:$4 sm:$0xff]  }
0x1641   :  { %v16852_v39 = vld [vmem:[#allocation13 + $0x4fc] ss:$12 sps:$4 sm:$0xff]  }
0x1645   :  { %v9371_v53 = vpop.f32.mrb[48].mxu0 }
0x1646   :  { %v19504_v30 = vadd.f32 %v9371_v53, %v19455_v45  ;;  %v9373_v26 = vpop.f32.mrb[49].mxu0  ;;  %v16853_v53 = vld [vmem:[#allocation13 + $0x500] ss:$12 sps:$4 sm:$0xff]  }
0x1647   :  { %v9374_v44 = vpop.f32.mrb[50].mxu0  ;;  %v16856_v26 = vld [vmem:[#allocation13 + $0x514] ss:$12 sps:$4 sm:$0xff]  }
0x1648   :  { %v19507_v11 = vadd.f32 %v9374_v44, %v19457_v61  ;;  %v9376_v55 = vpop.f32.mrb[51].mxu0  ;;  %v16854_v44 = vld [vmem:[#allocation13 + $0x510] ss:$12 sps:$4 sm:$0xff]  }
0x1649   :  { %v16857_v55 = vld [vmem:[#allocation13 + $0x518] ss:$12 sps:$4 sm:$0xff]  }
0x164d   :  { %v9379_v38 = vpop.f32.mrb[52].mxu0 }
0x164e   :  { %v19510_v46 = vadd.f32 %v9379_v38, %v19459_v2  ;;  %v9381_v41 = vpop.f32.mrb[53].mxu0  ;;  %v16829_v2 = vld [vmem:[#allocation13 + $0x470] ss:$12 sps:$4 sm:$0xff]   ;;  %v16858_v38 = vld [vmem:[#allocation13 + $0x528] ss:$12 sps:$4 sm:$0xff]  }
0x164f   :  { %v9382_v10 = vpop.f32.mrb[54].mxu0  ;;  %v16860_v41 = vld [vmem:[#allocation13 + $0x52c] ss:$12 sps:$4 sm:$0xff]  }
0x1650   :  { %v19513_v16 = vadd.f32 %v9382_v10, %v19461_v7  ;;  %v9384_v40 = vpop.f32.mrb[55].mxu0  ;;  %v16861_v10 = vld [vmem:[#allocation13 + $0x530] ss:$12 sps:$4 sm:$0xff]  }
0x1651   :  { %v16864_v40 = vld [vmem:[#allocation13 + $0x544] ss:$12 sps:$4 sm:$0xff]  }
0x1655   :  { %v9469_v62 = vpop.f32.mrb[56].mxu0 }
0x1656   :  { %v9471_v17 = vpop.f32.mrb[57].mxu0 }
0x1657   :  { %v9473_v45 = vpop.f32.mrb[58].mxu0 }
0x1658   :  { %v9498_v12 = vpack.c.bf16 %v9473_v45, %v9469_v62  ;;  %v9475_v19 = vpop.f32.mrb[59].mxu0  ;;  %v16862_v62 = vld [vmem:[#allocation13 + $0x540] ss:$12 sps:$4 sm:$0xff]   ;;  %v10036_v45 = vld [vmem:[#allocation13 + $0x558] sm:$0x33] }
0x1659   :  { %v9499_v14 = vpack.c.bf16 %v9475_v19, %v9471_v17  ;;  %v16865_v17 = vld [vmem:[#allocation13 + $0x548] ss:$12 sps:$4 sm:$0xff]   ;;  %v14972_v19 = vcombine.low %v10036_v45, %v10036_v45 }
0x165b   :  { %14927 = vmatprep.mubr.msk.bf16.mxu1 %vm1407_vm12, %v9499_v14  ;;  %14930 = vmatprep.mubr.msk.bf16.mxu0 %vm1407_vm12, %v9499_v14  ;;  %v16868_v14 = vld [vmem:[#allocation13 + $0x560] ss:$0 sps:$4 sm:$0x33]  }
0x165c   :  { %9786 = vmatmul.mubr.bf16.vlgmr.msra.gmra.mrb[132].mxu1 %v9498_v12  ;;  %9849 = vmatmul.mubr.bf16.vlgmr.msra.gmra.mrb[44].mxu0 %v9498_v12  ;;  %v14973_v12 = vcombine.high %v10036_v45, %v10036_v45 }
0x165d   :  { %9923 = vmatpush1.bf16.msra.mxu1 %v19323_v37  ;;  %v9479_v61 = vpop.f32.mrb[36].mxu0  ;;  %10304 = vmatpush1.bf16.msra.mxu0 %v16825_v15  ;;  %v10232_v15 = vsel %vm6418_vm2, %v14972_v19, 0 }
0x165e   :  { %9924 = vmatprep.subr.bf16.mxu1 %v19325_v42  ;;  %v9481_v7 = vpop.f32.mrb[37].mxu0  ;;  %10305 = vmatprep.subr.bf16.mxu0 %v17391_v34  ;;  %v16837_v42 = vld [vmem:[#allocation13 + $0x4a0] ss:$12 sps:$4 sm:$0xff]  }
0x165f   :  { %v9483_v28 = vpop.f32.mrb[38].mxu0 }
0x1660   :  { %v9500_v50 = vpack.c.bf16 %v9483_v28, %v9479_v61  ;;  %v9485_v23 = vpop.f32.mrb[39].mxu0  ;;  %v10238_v61 = vsel %vm6418_vm2, %v16868_v14, 0  ;;  %v10442_v14 = vpop.permute.xlu0 %10441 }
0x1661   :  { %v9501_v25 = vpack.c.bf16 %v9485_v23, %v9481_v7  ;;  %9925 = vmatpush1.bf16.msra.mxu1 %v19331_v31  ;;  %10306 = vmatpush1.bf16.msra.mxu0 %v16829_v2 }
0x1662   :  { %9926 = vmatprep.subr.bf16.mxu1 %v19333_v56  ;;  %10307 = vmatprep.subr.bf16.mxu0 %v17391_v34 }
0x1663   :  { %14928 = vmatprep.mubr.msk.bf16.mxu1 %vm1407_vm12, %v9501_v25  ;;  %14931 = vmatprep.mubr.msk.bf16.mxu0 %vm1407_vm12, %v9501_v25 }
0x1664   :  { %9796 = vmatmul.mubr.bf16.gmra.mrb[136].mxu1 %v9500_v50  ;;  %9857 = vmatmul.mubr.bf16.gmra.mrb[60].mxu0 %v9500_v50 }
0x1665   :  { %9927 = vmatpush1.bf16.msra.mxu1 %v19337_v8  ;;  %v9489_v37 = vpop.f32.mrb[40].mxu0  ;;  %10308 = vmatpush1.bf16.msra.mxu0 %v16833_v5  ;;  %v16819_v8 = vld [vmem:[#allocation4 + $0x1f8] sm:$0xff]  }
0x1666   :  { %v9491_v35 = vpop.f32.mrb[41].mxu0  ;;  %10240 = vmatprep.subr.bf16.mxu1 %v16824_v18  ;;  %10309 = vmatprep.subr.bf16.mxu0 %v17391_v34 }
0x1667   :  { %v9493_v31 = vpop.f32.mrb[42].mxu0 }
0x1668   :  { %v9502_v56 = vpack.c.bf16 %v9493_v31, %v9489_v37  ;;  %v9495_v48 = vpop.f32.mrb[43].mxu0 }
0x1669   :  { %v9503_v47 = vpack.c.bf16 %v9495_v48, %v9491_v35  ;;  %10310 = vmatpush1.bf16.msra.mxu0 %v16837_v42 }
0x166a   :  { %10311 = vmatprep.subr.bf16.mxu0 %v17391_v34 }
0x166b   :  { %14929 = vmatprep.mubr.msk.bf16.mxu1 %vm1407_vm12, %v9503_v47  ;;  %14932 = vmatprep.mubr.msk.bf16.mxu0 %vm1407_vm12, %v9503_v47 }
0x166c   :  { %9806 = vmatmul.mubr.bf16.gmra.mrb[140].mxu1 %v9502_v56  ;;  %9865 = vmatmul.mubr.bf16.gmra.mrb[64].mxu0 %v9502_v56 }
0x166d   :  { %9954 = vmatprep.mubr.bf16.mxu1 %v17391_v34  ;;  %10312 = vmatpush1.bf16.msra.mxu0 %v16841_v33 }
0x166e   :  { %10313 = vmatprep.subr.bf16.mxu0 %v17391_v34 }
0x1671   :  { %10314 = vmatpush1.bf16.msra.mxu0 %v16845_v13  ;;  %v10379_v13 = vld [vmem:[#allocation6 + $0xf] sm:$0x7] }
0x1672   :  { %10315 = vmatprep.subr.bf16.mxu0 %v17391_v34 }
0x1674   :  { %14936 = vmatmul.mubr.msk.bf16.vlgmr.msra.gmra.mrb[156].mxu1 %vm200_vm1, %v16819_v8 }
0x1675   :  { %9964 = vmatprep.mubr.bf16.mxu1 %v17391_v34  ;;  %10241 = vmatpush1.bf16.msra.mxu1 %v16822_v36 }
0x1676   :  { %10242 = vmatprep.subr.bf16.mxu1 %v16828_v24  ;;  %10316 = vmatpush1.bf16.msra.mxu0 %v16849_v49 }
0x1677   :  { %10317 = vmatprep.subr.bf16.mxu0 %v17391_v34 }
0x1679   :  { %10243 = vmatpush1.bf16.msra.mxu1 %v16826_v59 }
0x167a   :  { %10244 = vmatprep.subr.bf16.mxu1 %v16832_v63  ;;  %10318 = vmatpush1.bf16.msra.mxu0 %v16853_v53  ;;  %v19578_v53 = vrot.slane %v10379_v13, %v3080_v54  ;;  %v10447_v54 = vpop.permute.xlu1 %10446 }
0x167b   :  { %10319 = vmatprep.subr.bf16.mxu0 %v17391_v34 }
0x167c   :  { %14937 = vmatmul.mubr.msk.bf16.gmra.mrb[160].mxu1 %vm200_vm1, %v16820_v9 }
0x167d   :  { %9974 = vmatprep.mubr.bf16.mxu1 %v17391_v34  ;;  %10245 = vmatpush1.bf16.msra.mxu1 %v16830_v3 }
0x167e   :  { %10246 = vmatprep.subr.bf16.mxu1 %v16836_v29  ;;  %10320 = vmatpush1.bf16.msra.mxu0 %v16857_v55 }
0x167f   :  { %10321 = vmatprep.subr.bf16.mxu0 %v17391_v34 }
0x1681   :  { %10247 = vmatpush1.bf16.msra.mxu1 %v16834_v22 }
0x1682   :  { %10248 = vmatprep.subr.bf16.mxu1 %v16840_v43  ;;  %10322 = vmatpush1.bf16.msra.mxu0 %v16861_v10 }
0x1683   :  { %10323 = vmatprep.subr.bf16.mxu0 %v17391_v34 }
0x1684   :  { %14938 = vmatmul.mubr.msk.bf16.gmra.mrb[164].mxu1 %vm200_vm1, %v16821_v32 }
0x1685   :  { %10249 = vmatpush1.bf16.msra.mxu1 %v16838_v51 }
0x1686   :  { %10250 = vmatprep.subr.bf16.mxu1 %v16844_v21  ;;  %10324 = vmatpush1.bf16.msra.mxu0 %v16865_v17 }
0x1687   :  { %10325 = vmatprep.subr.bf16.mxu0 %v17391_v34 }
0x1689   :  { %10251 = vmatpush1.bf16.msra.mxu1 %v16842_v20 }
0x168a   :  { %10252 = vmatprep.subr.bf16.mxu1 %v16848_v58  ;;  %10326 = vmatpush1.bf16.msra.mxu0 %v10238_v61  ;;  %v19571_v58 = vrot.slane %v10379_v13, %v17814_v60 }
0x168d   :  { %10253 = vmatpush1.bf16.msra.mxu1 %v16846_v27 }
0x168e   :  { %10254 = vmatprep.subr.bf16.mxu1 %v16852_v39 }
0x1691   :  { %10255 = vmatpush1.bf16.msra.mxu1 %v16850_v52  ;;  %v19574_v52 = vrot.slane %v10379_v13, %v17817_v4 }
0x1692   :  { %10256 = vmatprep.subr.bf16.mxu1 %v16856_v26 }
0x1695   :  { %10257 = vmatpush1.bf16.msra.mxu1 %v16854_v44 }
0x1696   :  { %10258 = vmatprep.subr.bf16.mxu1 %v16860_v41 }
0x1699   :  { %10259 = vmatpush1.bf16.msra.mxu1 %v16858_v38 }
0x169a   :  { %10260 = vmatprep.subr.bf16.mxu1 %v16864_v40 }
0x169d   :  { %10261 = vmatpush1.bf16.msra.mxu1 %v16862_v62 }
0x169e   :  { %14975 = vmatprep.subr.msk.bf16.mxu1 %vm6418_vm2, %v14973_v12  ;;  %vm20694_vm2 = vcmask 195584  }
0x169f   :  { %vm20696_vm6 = vmmov %vm20694_vm2 }
0x16a1   :  { %10263 = vmatpush1.bf16.msra.mxu1 %v10232_v15 }
0x16a2   :  { %15621 = vmatprep.subr.bf16.mxu1 %v17389_v0 }
0x172f   :  { %v9850_v2 = vpop.f32.mrb[44].mxu0 }
0x1730   :  { %v9875_v7 = vadd.f32 %v9850_v2, %v19498_v1  ;;  %v9852_v28 = vpop.f32.mrb[45].mxu0 }
0x1731   :  { %v9853_v50 = vpop.f32.mrb[46].mxu0 }
0x1732   :  { %v9878_v23 = vadd.f32 %v9853_v50, %v19501_v6  ;;  %v9855_v25 = vpop.f32.mrb[47].mxu0 }
0x1737   :  { %v9858_v5 = vpop.f32.mrb[60].mxu0 }
0x1738   :  { %v19550_v18 = vadd.f32 %v9858_v5, %v19504_v30  ;;  %v9860_v37 = vpop.f32.mrb[61].mxu0 }
0x1739   :  { %v9861_v42 = vpop.f32.mrb[62].mxu0 }
0x173a   :  { %v19553_v35 = vadd.f32 %v9861_v42, %v19507_v11  ;;  %v9863_v31 = vpop.f32.mrb[63].mxu0 }
0x173f   :  { %v9866_v56 = vpop.f32.mrb[64].mxu0 }
0x1740   :  { %v19556_v48 = vadd.f32 %v9866_v56, %v19510_v46  ;;  %v9868_v1 = vpop.f32.mrb[65].mxu0 }
0x1741   :  { %v9869_v47 = vpop.f32.mrb[66].mxu0 }
0x1742   :  { %v19559_v8 = vadd.f32 %v9869_v47, %v19513_v16  ;;  %v9871_v6 = vpop.f32.mrb[67].mxu0 }
0x1747   :  { %v9956_v36 = vpop.f32.mrb[156].mxu1 }
0x1748   :  { %v9958_v24 = vpop.f32.mrb[157].mxu1 }
0x1749   :  { %v9960_v30 = vpop.f32.mrb[158].mxu1 }
0x174a   :  { %v9985_v59 = vpack.c.bf16 %v9960_v30, %v9956_v36  ;;  %v9962_v63 = vpop.f32.mrb[159].mxu1 }
0x174b   :  { %v9986_v9 = vpack.c.bf16 %v9962_v63, %v9958_v24 }
0x174d   :  { %14976 = vmatprep.mubr.msk.bf16.mxu1 %vm1407_vm12, %v9986_v9  ;;  %14979 = vmatprep.mubr.msk.bf16.mxu0 %vm1407_vm12, %v9986_v9 }
0x174e   :  { %10273 = vmatmul.mubr.bf16.vlgmr.msra.gmra.mrb[132].mxu1 %v9985_v59  ;;  %10336 = vmatmul.mubr.bf16.vlgmr.msra.gmra.mrb[68].mxu0 %v9985_v59 }
0x174f   :  { %v9966_v11 = vpop.f32.mrb[160].mxu1 }
0x1750   :  { %v9968_v46 = vpop.f32.mrb[161].mxu1 }
0x1751   :  { %v9970_v3 = vpop.f32.mrb[162].mxu1 }
0x1752   :  { %v9987_v29 = vpack.c.bf16 %v9970_v3, %v9966_v11  ;;  %v9972_v22 = vpop.f32.mrb[163].mxu1  ;;  %v10452_v11 = vpop.permute.xlu0 %10451 }
0x1753   :  { %v9988_v16 = vpack.c.bf16 %v9972_v22, %v9968_v46 }
0x1755   :  { %14977 = vmatprep.mubr.msk.bf16.mxu1 %vm1407_vm12, %v9988_v16  ;;  %14980 = vmatprep.mubr.msk.bf16.mxu0 %vm1407_vm12, %v9988_v16 }
0x1756   :  { %10283 = vmatmul.mubr.bf16.gmra.mrb[136].mxu1 %v9987_v29  ;;  %10344 = vmatmul.mubr.bf16.gmra.mrb[72].mxu0 %v9987_v29 }
0x1757   :  { %v9976_v43 = vpop.f32.mrb[164].mxu1 }
0x1758   :  { %v9978_v32 = vpop.f32.mrb[165].mxu1 }
0x1759   :  { %v9980_v51 = vpop.f32.mrb[166].mxu1 }
0x175a   :  { %v9989_v33 = vpack.c.bf16 %v9980_v51, %v9976_v43  ;;  %v9982_v20 = vpop.f32.mrb[167].mxu1  ;;  %v10457_v51 = vpop.permute.xlu1 %10456 }
0x175b   :  { %v9990_v21 = vpack.c.bf16 %v9982_v20, %v9978_v32 }
0x175d   :  { %14978 = vmatprep.mubr.msk.bf16.mxu1 %vm1407_vm12, %v9990_v21  ;;  %14981 = vmatprep.mubr.msk.bf16.mxu0 %vm1407_vm12, %v9990_v21 }
0x175e   :  { %10293 = vmatmul.mubr.bf16.gmra.mrb[140].mxu1 %v9989_v33  ;;  %10352 = vmatmul.mubr.bf16.gmra.mrb[76].mxu0 %v9989_v33 }
0x175f   :  { %10885 = vmatprep.mubr.bf16.mxu0 %v17391_v34  ;;  %15627 = vmatprep.mubr.msk.bf16.mxu1 %vm17390_vm0, %v17389_v0 }
0x1821   :  { %v10274_v27 = vpop.f32.mrb[132].mxu1  ;;  %v10337_v49 = vpop.f32.mrb[68].mxu0 }
0x1822   :  { %v10362_v39 = vadd.f32 %v10337_v49, %v9875_v7  ;;  %v10276_v26 = vpop.f32.mrb[133].mxu1  ;;  %v10339_v44 = vpop.f32.mrb[69].mxu0  ;;  %v10396_v41 = vadd.f32 %v19571_v58, %v10274_v27 }
0x1823   :  { %v10278_v55 = vpop.f32.mrb[134].mxu1  ;;  %v10340_v38 = vpop.f32.mrb[70].mxu0  ;;  %v10397_v17 = vadd.f32 %v19574_v52, %v10276_v26 }
0x1824   :  { %v10365_v10 = vadd.f32 %v10340_v38, %v9878_v23  ;;  %v10280_v40 = vpop.f32.mrb[135].mxu1  ;;  %v10342_v62 = vpop.f32.mrb[71].mxu0  ;;  %v10399_v45 = vadd.f32 %v19571_v58, %v10278_v55  ;;  %v10398_v19 = vadd.f32 %v19578_v53, %v10362_v39  ;;  %v19586_v15 = vmax.f32 %v10396_v41, 0.0 }
0x1825   :  { %v10400_v12 = vadd.f32 %v19574_v52, %v10280_v40  ;;  %v19588_v61 = vmax.f32 %v10397_v17, 0.0 }
0x1826   :  { %v10401_v57 = vadd.f32 %v19578_v53, %v10365_v10  ;;  %v19590_v2 = vmax.f32 %v10399_v45, 0.0  ;;  %v19594_v23 = vmax.f32 %v10398_v19, 0.0  ;;  %v10469_v1 = vmul.f32 %v10442_v14, %v19586_v15 }
0x1827   :  { %v19592_v7 = vmax.f32 %v10400_v12, 0.0  ;;  %v10470_v30 = vmul.f32 %v10442_v14, %v19588_v61 }
0x1828   :  { %v19596_v25 = vmax.f32 %v10401_v57, 0.0  ;;  %v10472_v59 = vmul.f32 %v10447_v54, %v19590_v2  ;;  %v10471_v46 = vmul.f32 %v10442_v14, %v19594_v23  ;;  %v10526_v33 = vmul.f32 %v10469_v1, %v19586_v15 }
0x1829   :  { %v10284_v28 = vpop.f32.mrb[136].mxu1  ;;  %v10345_v50 = vpop.f32.mrb[72].mxu0  ;;  %v10473_v63 = vmul.f32 %v10447_v54, %v19592_v7  ;;  %v10527_v21 = vmul.f32 %v10470_v30, %v19588_v61 }
0x182a   :  { %v10286_v5 = vpop.f32.mrb[137].mxu1  ;;  %v10347_v37 = vpop.f32.mrb[73].mxu0  ;;  %v10402_v42 = vadd.f32 %v19571_v58, %v10284_v28  ;;  %v10368_v47 = vadd.f32 %v10345_v50, %v19550_v18  ;;  %v10474_v3 = vmul.f32 %v10447_v54, %v19596_v25  ;;  %v10529_v13 = vmul.f32 %v10472_v59, %v19590_v2 }
0x182b   :  { %v10288_v31 = vpop.f32.mrb[138].mxu1  ;;  %v10348_v56 = vpop.f32.mrb[74].mxu0  ;;  %v10403_v6 = vadd.f32 %v19574_v52, %v10286_v5  ;;  %v10530_v27 = vmul.f32 %v10473_v63, %v19592_v7  ;;  %v10509_v44 = vsel %vm3198_vm15, %v10471_v46, 0.0  ;;  %v10528_v57 = vmul.f32 %v10471_v46, %v19594_v23 }
0x182c   :  { %v10290_v36 = vpop.f32.mrb[139].mxu1  ;;  %v10350_v24 = vpop.f32.mrb[75].mxu0  ;;  %v19605_v9 = vmax.f32 %v10402_v42, 0.0  ;;  %v10405_v18 = vadd.f32 %v19571_v58, %v10288_v31  ;;  %v10404_v16 = vadd.f32 %v19578_v53, %v10368_v47  ;;  %v10371_v43 = vadd.f32 %v10348_v56, %v19553_v35 }
0x182d   :  { %v19609_v29 = vmax.f32 %v10403_v6, 0.0  ;;  %v10406_v32 = vadd.f32 %v19574_v52, %v10290_v36  ;;  %v10487_v35 = vadd.f32 %v10472_v59, %v10469_v1  ;;  %v10510_v55 = vsel %vm3198_vm15, %v10474_v3, 0.0  ;;  %v10462_v24 = vpop.permute.xlu0 %10461 }
0x182e   :  { %v10475_v22 = vmul.f32 %v10452_v11, %v19605_v9  ;;  %v19617_v20 = vmax.f32 %v10405_v18, 0.0  ;;  %v19628_v62 = vmax.f32 %v10404_v16, 0.0  ;;  %v10407_v17 = vadd.f32 %v19578_v53, %v10371_v43 }
0x182f   :  { %v10476_v49 = vmul.f32 %v10452_v11, %v19609_v29  ;;  %v19625_v38 = vmax.f32 %v10406_v32, 0.0  ;;  %v10498_v54 = vadd.f32 %v10473_v63, %v10470_v30  ;;  %v10544_v37 = vadd.f32 %v10529_v13, %v10526_v33 }
0x1830   :  { %v10532_v40 = vmul.f32 %v10475_v22, %v19605_v9  ;;  %v10488_v14 = vadd.f32 %v10487_v35, %v10475_v22  ;;  %v10478_v28 = vmul.f32 %v10457_v51, %v19617_v20  ;;  %v10531_v42 = vmul.f32 %v10474_v3, %v19596_v25  ;;  %v10467_v35 = vpop.permute.xlu1 %10466 }
0x1831   :  { %v10294_v39 = vpop.f32.mrb[140].mxu1  ;;  %v10353_v26 = vpop.f32.mrb[76].mxu0  ;;  %v10555_v31 = vadd.f32 %v10530_v27, %v10527_v21  ;;  %v10533_v56 = vmul.f32 %v10476_v49, %v19609_v29  ;;  %v10511_v1 = vadd.f32 %v10510_v55, %v10509_v44  ;;  %v10479_v47 = vmul.f32 %v10457_v51, %v19625_v38 }
0x1832   :  { %v10296_v41 = vpop.f32.mrb[141].mxu1  ;;  %v10355_v10 = vpop.f32.mrb[77].mxu0  ;;  %v10408_v45 = vadd.f32 %v19571_v58, %v10294_v39  ;;  %v10374_v36 = vadd.f32 %v10353_v26, %v19556_v48  ;;  %v10545_v30 = vadd.f32 %v10544_v37, %v10532_v40  ;;  %v10477_v59 = vmul.f32 %v10452_v11, %v19628_v62 }
0x1833   :  { %v10298_v12 = vpop.f32.mrb[142].mxu1  ;;  %v10356_v19 = vpop.f32.mrb[78].mxu0  ;;  %v10499_v63 = vadd.f32 %v10498_v54, %v10476_v49  ;;  %v19641_v46 = vmax.f32 %v10407_v17, 0.0  ;;  %v10489_v18 = vadd.f32 %v10488_v14, %v10478_v28  ;;  %v10535_v3 = vmul.f32 %v10478_v28, %v19617_v20 }
0x1834   :  { %v10300_v50 = vpop.f32.mrb[143].mxu1  ;;  %v10358_v5 = vpop.f32.mrb[79].mxu0  ;;  %v19637_v6 = vmax.f32 %v10408_v45, 0.0  ;;  %v10410_v16 = vadd.f32 %v19578_v53, %v10374_v36  ;;  %v10556_v43 = vadd.f32 %v10555_v31, %v10533_v56  ;;  %v10409_v32 = vadd.f32 %v19574_v52, %v10296_v41 }
0x1835   :  { %v10411_v33 = vadd.f32 %v19571_v58, %v10298_v12  ;;  %v10377_v48 = vadd.f32 %v10356_v19, %v19559_v8  ;;  %v10536_v21 = vmul.f32 %v10479_v47, %v19625_v38  ;;  %v10412_v44 = vadd.f32 %v19574_v52, %v10300_v50 }
0x1836   :  { %v10481_v22 = vmul.f32 %v10462_v24, %v19637_v6  ;;  %v19651_v27 = vmax.f32 %v10410_v16, 0.0  ;;  %v19653_v49 = vmax.f32 %v10409_v32, 0.0  ;;  %v10567_v58 = vsel %vm3198_vm15, %v10531_v42, 0.0 }
0x1837   :  { %v19655_v39 = vmax.f32 %v10411_v33, 0.0  ;;  %v10413_v26 = vadd.f32 %v19578_v53, %v10377_v48  ;;  %v10512_v8 = vsel %vm3198_vm15, %v10477_v59, 0.0  ;;  %v10546_v55 = vadd.f32 %v10545_v30, %v10535_v3 }
0x1838   :  { %v10490_v11 = vadd.f32 %v10489_v18, %v10481_v22  ;;  %v10538_v13 = vmul.f32 %v10481_v22, %v19637_v6  ;;  %v10480_v41 = vmul.f32 %v10457_v51, %v19641_v46  ;;  %v10500_v10 = vadd.f32 %v10499_v63, %v10479_v47 }
0x1839   :  { %v10482_v40 = vmul.f32 %v10462_v24, %v19653_v49  ;;  %v10484_v17 = vmul.f32 %v10467_v35, %v19655_v39  ;;  %v19664_v45 = vmax.f32 %v10412_v44, 0.0  ;;  %v10534_v12 = vmul.f32 %v10477_v59, %v19628_v62 }
0x183a   :  { %v10557_v53 = vadd.f32 %v10556_v43, %v10536_v21  ;;  %v10547_v19 = vadd.f32 %v10546_v55, %v10538_v13  ;;  %v10483_v52 = vmul.f32 %v10462_v24, %v19651_v27  ;;  %v19669_v50 = vmax.f32 %v10413_v26, 0.0 }
0x183b   :  { %v10501_v54 = vadd.f32 %v10500_v10, %v10482_v40  ;;  %v10539_v14 = vmul.f32 %v10482_v40, %v19653_v49  ;;  %v10491_v28 = vadd.f32 %v10490_v11, %v10484_v17  ;;  %v10566_v51 = vsel %vm3198_vm15, %v10528_v57, 0.0 }
0x183c   :  { %v10513_v5 = vadd.f32 %v10512_v8, %v10511_v1  ;;  %v10541_v37 = vmul.f32 %v10484_v17, %v19655_v39  ;;  %v10485_v42 = vmul.f32 %v10467_v35, %v19664_v45  ;;  %v10568_v31 = vadd.f32 %v10567_v58, %v10566_v51 }
0x183d   :  { %v10514_v56 = vsel %vm3198_vm15, %v10480_v41, 0.0  ;;  %v10558_v47 = vadd.f32 %v10557_v53, %v10539_v14  ;;  %v10492_v36 = vrot.slane %v10491_v28, 4  ;;  %v10569_v24 = vsel %vm3198_vm15, %v10534_v12, 0.0 }
0x183e   :  { %v10537_v30 = vmul.f32 %v10480_v41, %v19641_v46  ;;  %v10548_v59 = vadd.f32 %v10547_v19, %v10541_v37  ;;  %v10502_v63 = vadd.f32 %v10501_v54, %v10485_v42  ;;  %v10516_v18 = vsel %vm3198_vm15, %v10483_v52, 0.0 }
0x183f   :  { %v10493_v3 = vadd.f32 %v10492_v36, %v10491_v28  ;;  %v10486_v57 = vmul.f32 %v10467_v35, %v19669_v50  ;;  %v10542_v1 = vmul.f32 %v10485_v42, %v19664_v45  ;;  %v10515_v22 = vadd.f32 %v10514_v56, %v10513_v5 }
0x1840   :  { %v10540_v16 = vmul.f32 %v10483_v52, %v19651_v27  ;;  %v10549_v43 = vrot.slane %v10548_v59, 4  ;;  %v10503_v32 = vrot.slane %v10502_v63, 4  ;;  %v10570_v33 = vadd.f32 %v10569_v24, %v10568_v31 }
0x1841   :  { %v10559_v48 = vadd.f32 %v10558_v47, %v10542_v1  ;;  %v10494_v21 = vrot.slane %v10493_v3, 2  ;;  %v10571_v11 = vsel %vm3198_vm15, %v10537_v30, 0.0  ;;  %v10517_v13 = vadd.f32 %v10516_v18, %v10515_v22 }
0x1842   :  { %v10550_v26 = vadd.f32 %v10549_v43, %v10548_v59  ;;  %v10504_v44 = vadd.f32 %v10503_v32, %v10502_v63  ;;  %v10518_v58 = vsel %vm3198_vm15, %v10486_v57, 0.0  ;;  %v10573_v35 = vsel %vm3198_vm15, %v10540_v16, 0.0 }
0x1843   :  { %v10560_v8 = vrot.slane %v10559_v48, 4  ;;  %v10495_v55 = vadd.f32 %v10494_v21, %v10493_v3  ;;  %v10543_v41 = vmul.f32 %v10486_v57, %v19669_v50  ;;  %v10572_v17 = vadd.f32 %v10571_v11, %v10570_v33 }
0x1844   :  { %v10505_v10 = vrot.slane %v10504_v44, 2  ;;  %v10551_v40 = vrot.slane %v10550_v26, 2  ;;  %v10519_v53 = vadd.f32 %v10518_v58, %v10517_v13 }
0x1845   :  { %v10496_v12 = vrot.slane %v10495_v55, 1  ;;  %v10574_v52 = vadd.f32 %v10573_v35, %v10572_v17  ;;  %v10561_v54 = vadd.f32 %v10560_v8, %v10559_v48  ;;  %v10575_v51 = vsel %vm3198_vm15, %v10543_v41, 0.0 }
0x1846   :  { %v10506_v19 = vadd.f32 %v10505_v10, %v10504_v44  ;;  %v10552_v28 = vadd.f32 %v10551_v40, %v10550_v26  ;;  %v10520_v37 = vrot.slane %v10519_v53, 4 }
0x1847   :  { %v10497_v14 = vadd.f32 %v10496_v12, %v10495_v55  ;;  %v10576_v42 = vadd.f32 %v10575_v51, %v10574_v52  ;;  %v10562_v47 = vrot.slane %v10561_v54, 2 }
0x1848   :  { %v10507_v5 = vrot.slane %v10506_v19, 1  ;;  %v10553_v56 = vrot.slane %v10552_v28, 1  ;;  %v10521_v59 = vadd.f32 %v10520_v37, %v10519_v53 }
0x1849   :  { %10602 = vrot.lane.b32.xlu1 %v10497_v14, %s17378_s25  ;;  %10584 = vrot.lane.b32.xlu0 %v10497_v14, %s17393_s3  ;;  %v10577_v36 = vrot.slane %v10576_v42, 4  ;;  %v10563_v30 = vadd.f32 %v10562_v47, %v10561_v54 }
0x184a   :  { %v10508_v31 = vadd.f32 %v10507_v5, %v10506_v19  ;;  %v10554_v24 = vadd.f32 %v10553_v56, %v10552_v28  ;;  %v10522_v18 = vrot.slane %v10521_v59, 2 }
0x184b   :  { %v10564_v63 = vrot.slane %v10563_v30, 1  ;;  %v10578_v3 = vadd.f32 %v10577_v36, %v10576_v42 }
0x184c   :  { %v10523_v1 = vadd.f32 %v10522_v18, %v10521_v59 }
0x184d   :  { %10634 = vrot.lane.b32.xlu1 %v10508_v31, %s17409_s21  ;;  %10593 = vrot.lane.b32.xlu0 %v10497_v14, %s17384_s1  ;;  %v10565_v57 = vadd.f32 %v10564_v63, %v10563_v30  ;;  %v10579_v22 = vrot.slane %v10578_v3, 2 }
0x184e   :  { %v10524_v16 = vrot.slane %v10523_v1, 1 }
0x184f   :  { %v10580_v43 = vadd.f32 %v10579_v22, %v10578_v3 }
0x1850   :  { %v10525_v32 = vadd.f32 %v10524_v16, %v10523_v1 }
0x1851   :  { %10589 = vrot.lane.b32.xlu1 %v10554_v24, %s17393_s3  ;;  %10604 = vrot.lane.b32.xlu0 %v10508_v31, %s17378_s25  ;;  %v10581_v33 = vrot.slane %v10580_v43, 1 }
0x1853   :  { %v10582_v48 = vadd.f32 %v10581_v33, %v10580_v43 }
0x1855   :  { %10597 = vrot.lane.b32.xlu1 %v10554_v24, %s17384_s1  ;;  %10617 = vrot.lane.b32.xlu0 %v10508_v31, %s17397_s11 }
0x1859   :  { %10612 = vrot.lane.b32.xlu1 %v10565_v57, %s17378_s25  ;;  %10625 = vrot.lane.b32.xlu0 %v10508_v31, %s17399_s9 }
0x185d   :  { %10621 = vrot.lane.b32.xlu1 %v10565_v57, %s17397_s11  ;;  %10610 = vrot.lane.b32.xlu0 %v10554_v24, %s17378_s25 }
0x1861   :  { %10629 = vrot.lane.b32.xlu1 %v10565_v57, %s17399_s9  ;;  %10636 = vrot.lane.b32.xlu0 %v10525_v32, %s17409_s21 }
0x1865   :  { %10644 = vrot.lane.b32.xlu1 %v10582_v48, %s17409_s21  ;;  %10642 = vrot.lane.b32.xlu0 %v10565_v57, %s17409_s21 }
0x1869   :  { %10653 = vrot.lane.b32.xlu1 %v10582_v48, %s17410_s24  ;;  %10649 = vrot.lane.b32.xlu0 %v10525_v32, %s17410_s24 }
0x186d   :  { %10661 = vrot.lane.b32.xlu1 %v10582_v48, %s17373_s23  ;;  %10657 = vrot.lane.b32.xlu0 %v10525_v32, %s17373_s23 }
0x18bb   :  { %v10603_v21 = vpop.permute.xlu1 %10602  ;;  %v10585_v11 = vpop.permute.xlu0 %10584 }
0x18bc   :  { %v10587_v53 = vadd.f32 %v10585_v11, %v10497_v14 }
0x18bf   :  { %v10635_v13 = vpop.permute.xlu1 %10634  ;;  %v10594_v26 = vpop.permute.xlu0 %10593 }
0x18c0   :  { %v10596_v28 = vadd.f32 %v10594_v26, %v10587_v53  ;;  %v12590_v53 = vld [vmem:[#allocation2 + $0x138] sm:$0xff] }
0x18c3   :  { %v10590_v44 = vpop.permute.xlu1 %10589  ;;  %v10605_v58 = vpop.permute.xlu0 %10604 }
0x18c4   :  { %v10592_v10 = vadd.f32 %v10590_v44, %v10554_v24  ;;  %v10606_v52 = vsel %vm1300_vm5, %v10603_v21, %v10605_v58 }
0x18c5   :  { %v10608_v37 = vadd.f32 %v10606_v52, %v10596_v28  ;;  %v12592_v52 = vld [vmem:[#allocation2 + $0x148] sm:$0xff] }
0x18c7   :  { %v10598_v8 = vpop.permute.xlu1 %10597  ;;  %v10618_v55 = vpop.permute.xlu0 %10617 }
0x18c8   :  { %v10600_v40 = vadd.f32 %v10598_v8, %v10592_v10  ;;  %v10620_v47 = vadd.f32 %v10618_v55, %v10608_v37 }
0x18cb   :  { %v10613_v35 = vpop.permute.xlu1 %10612  ;;  %v10626_v41 = vpop.permute.xlu0 %10625 }
0x18cc   :  { %v10628_v59 = vadd.f32 %v10626_v41, %v10620_v47  ;;  %v14983_v41 = vld [vmem:[%s20655_s5 + $0x5] sm:$0x1] }
0x18cf   :  { %v10622_v17 = vpop.permute.xlu1 %10621  ;;  %v10611_v12 = vpop.permute.xlu0 %10610 }
0x18d0   :  { %v10614_v19 = vsel %vm1300_vm5, %v10611_v12, %v10613_v35  ;;  %v12587_v12 = vld [vmem:[#allocation2 + $0x120] sm:$0xff] }
0x18d1   :  { %v10616_v54 = vadd.f32 %v10614_v19, %v10600_v40  ;;  %v12589_v19 = vld [vmem:[#allocation2 + $0x130] sm:$0xff] }
0x18d3   :  { %v10630_v51 = vpop.permute.xlu1 %10629  ;;  %v10637_v5 = vpop.permute.xlu0 %10636  ;;  %v10624_v42 = vadd.f32 %v10622_v17, %v10616_v54  ;;  %v12588_v17 = vld [vmem:[#allocation2 + $0x128] sm:$0xff]  ;;  %v12591_v54 = vld [vmem:[#allocation2 + $0x140] sm:$0xff] }
0x18d4   :  { %v10638_v30 = vsel %vm3328_vm13, %v10635_v13, %v10637_v5  ;;  %v14982_v13 = vld [vmem:[%s20654_s4 + $0x5] sm:$0x1] }
0x18d5   :  { %v10632_v36 = vadd.f32 %v10630_v51, %v10624_v42  ;;  %v10640_v3 = vadd.f32 %v10638_v30, %v10628_v59 }
0x18d7   :  { %v10645_v31 = vpop.permute.xlu1 %10644  ;;  %v10643_v56 = vpop.permute.xlu0 %10642 }
0x18d8   :  { %v10646_v24 = vsel %vm3328_vm13, %v10643_v56, %v10645_v31 }
0x18d9   :  { %v10648_v14 = vadd.f32 %v10646_v24, %v10632_v36 }
0x18db   :  { %v10654_v63 = vpop.permute.xlu1 %10653  ;;  %v10650_v18 = vpop.permute.xlu0 %10649 }
0x18dc   :  { %v10656_v57 = vadd.f32 %v10654_v63, %v10648_v14  ;;  %v10652_v1 = vadd.f32 %v10650_v18, %v10640_v3 }
0x18df   :  { %v10662_v22 = vpop.permute.xlu1 %10661  ;;  %v10658_v16 = vpop.permute.xlu0 %10657 }
0x18e0   :  { %v10664_v43 = vadd.f32 %v10662_v22, %v10656_v57  ;;  %v10660_v32 = vadd.f32 %v10658_v16, %v10652_v1 }
0x18e2   :  { %v10665_v33 = vmul.f32 0.0061728396, %v10660_v32  ;;  %v10666_v48 = vmul.f32 0.0061728396, %v10664_v43 }
0x18e4   :  { %v10667_v21 = vmul.f32 %v10665_v33, %v10665_v33 }
0x18e6   :  { %v10668_v11 = vsub.f32 %v10666_v48, %v10667_v21 }
0x18e8   :  { %v10669_v26 = vmax.f32 %v10668_v11, 0.0 }
0x18ea   :  { %v10672_v44 = vadd.f32 1e-05, %v10669_v26 }
0x18ec   :  { %17160 = vrsqrt.f32 %v10672_v44 }
0x18f6   :  { %v17161_v58 = vpop.eup %17160 }
0x18f7   :  { %v10674_v8 = vmul.f32 %v17161_v58, %v14982_v13 }
0x18f9   :  { %v10683_v55 = vrot.slane %v10674_v8, %v17814_v60  ;;  %v10677_v35 = vmul.f32 %v10674_v8, %v10665_v33 }
0x18fb   :  { %10693 = vrot.lane.b32.xlu1 %v10683_v55, %s17403_s16  ;;  %10690 = vrot.lane.b32.xlu0 %v10683_v55, %s17402_s2  ;;  %v10678_v10 = vsub.f32 %v14983_v41, %v10677_v35 }
0x18fd   :  { %v10720_v40 = vrot.slane %v10678_v10, %v17814_v60 }
0x18ff   :  { %10696 = vrot.lane.b32.xlu1 %v10683_v55, %s17407_s19  ;;  %10684 = vrot.lane.b32.xlu0 %v10683_v55, %s17400_s12 }
0x1903   :  { %10699 = vrot.lane.b32.xlu1 %v10683_v55, %s17411_s27  ;;  %10687 = vrot.lane.b32.xlu0 %v10683_v55, %s17405_s15 }
0x1907   :  { %10730 = vrot.lane.b32.xlu1 %v10720_v40, %s17403_s16  ;;  %10727 = vrot.lane.b32.xlu0 %v10720_v40, %s17402_s2 }
0x190b   :  { %10733 = vrot.lane.b32.xlu1 %v10720_v40, %s17407_s19  ;;  %10721 = vrot.lane.b32.xlu0 %v10720_v40, %s17400_s12 }
0x190f   :  { %10736 = vrot.lane.b32.xlu1 %v10720_v40, %s17411_s27  ;;  %10724 = vrot.lane.b32.xlu0 %v10720_v40, %s17405_s15  ;;  %s20716_s27 = smov 28  }
0x1913   :  { %10705 = vrot.lane.b32.xlu1 %v10683_v55, %s17373_s23  ;;  %10702 = vrot.lane.b32.xlu0 %v10683_v55, %s20693_s20 }
0x1917   :  { %10742 = vrot.lane.b32.xlu1 %v10720_v40, %s17373_s23  ;;  %10739 = vrot.lane.b32.xlu0 %v10720_v40, %s20693_s20  ;;  %s20715_s23 = smov 108  }
0x191b   :  { %12600 = vperm.xlu1 %15993, %v12588_v17   ;;  %12595 = vperm.xlu0 %15992, %v12587_v12  }
0x191f   :  { %12610 = vperm.xlu1 %15993, %v12590_v53   ;;  %12605 = vperm.xlu0 %15992, %v12589_v19  }
0x1923   :  { %12620 = vperm.xlu1 %15993, %v12592_v52   ;;  %12615 = vperm.xlu0 %15992, %v12591_v54  }
0x196d   :  { %v10694_v28 = vpop.permute.xlu1 %10693  ;;  %v10691_v51 = vpop.permute.xlu0 %10690 }
0x196e   :  { %v10711_v56 = vsel %vm1405_vm10, %v10691_v51, %v10694_v28 }
0x1971   :  { %v10697_v5 = vpop.permute.xlu1 %10696  ;;  %v10685_v37 = vpop.permute.xlu0 %10684 }
0x1972   :  { %v10708_v47 = vsel %vm1393_vm7, %v10674_v8, %v10685_v37  ;;  %v10712_v36 = vsel %vm425_vm3, %v10711_v56, %v10697_v5 }
0x1975   :  { %v10700_v42 = vpop.permute.xlu1 %10699  ;;  %v10688_v31 = vpop.permute.xlu0 %10687 }
0x1976   :  { %v10709_v24 = vsel %vm1397_vm11, %v10708_v47, %v10688_v31  ;;  %v10713_v14 = vsel %vm3404_vm8, %v10712_v36, %v10700_v42 }
0x1977   :  { %v10710_v63 = vsel %vm1401_vm14, %v10709_v24, %v10691_v51  ;;  %v10760_v18 = vrot.slane %v10713_v14, %v17814_v60 }
0x1978   :  { %v10756_v1 = vrot.slane %v10710_v63, %v17814_v60 }
0x1979   :  { %v10731_v30 = vpop.permute.xlu1 %10730  ;;  %v10728_v59 = vpop.permute.xlu0 %10727  ;;  %v10766_v48 = vmul.f32 %v10760_v18, %v19588_v61  ;;  %v10769_v21 = vmul.f32 %v10760_v18, %v19592_v7  ;;  %v10772_v44 = vmul.f32 %v10760_v18, %v19609_v29  ;;  %v10775_v13 = vmul.f32 %v10760_v18, %v19625_v38 }
0x197a   :  { %v10748_v22 = vsel %vm1405_vm10, %v10728_v59, %v10731_v30  ;;  %v10765_v55 = vmul.f32 %v10756_v1, %v19586_v15  ;;  %v10768_v35 = vmul.f32 %v10756_v1, %v19590_v2  ;;  %v10771_v7 = vmul.f32 %v10756_v1, %v19605_v9 }
0x197b   :  { %v10774_v41 = vmul.f32 %v10756_v1, %v19617_v20  ;;  %v10781_v2 = vmul.f32 %v10760_v18, %v19664_v45  ;;  %v10777_v45 = vmul.f32 %v10756_v1, %v19637_v6  ;;  %v10780_v36 = vmul.f32 %v10756_v1, %v19655_v39 }
0x197d   :  { %v10734_v3 = vpop.permute.xlu1 %10733  ;;  %v10722_v57 = vpop.permute.xlu0 %10721 }
0x197e   :  { %v10749_v16 = vsel %vm425_vm3, %v10748_v22, %v10734_v3  ;;  %v10745_v43 = vsel %vm1393_vm7, %v10678_v10, %v10722_v57  ;;  %v10778_v10 = vmul.f32 %v10760_v18, %v19653_v49 }
0x1981   :  { %v10737_v32 = vpop.permute.xlu1 %10736  ;;  %v10725_v33 = vpop.permute.xlu0 %10724 }
0x1982   :  { %v10750_v11 = vsel %vm3404_vm8, %v10749_v16, %v10737_v32  ;;  %v10746_v26 = vsel %vm1397_vm11, %v10745_v43, %v10725_v33  ;;  %vm20697_vm8 = vmmov %vm20695_vm4  ;;  %v16869_v33 = vld [vmem:[#allocation4 + $0x210] sm:$0xff]  }
0x1983   :  { %v10790_v58 = vrot.slane %v10750_v11, %v17814_v60  ;;  %v10747_v8 = vsel %vm1401_vm14, %v10746_v26, %v10728_v59  ;;  %v16878_v11 = vld [vmem:[#allocation15 + $0x16c] ss:$8 sps:$4 sm:$0xff]  }
0x1984   :  { %v10786_v61 = vrot.slane %v10747_v8, %v17814_v60  ;;  %v16871_v26 = vld [vmem:[#allocation4 + $0x220] sm:$0xff]   ;;  %v16879_v8 = vld [vmem:[#allocation15 + $0x178] ss:$8 sps:$4 sm:$0xff]  }
0x1985   :  { %v10706_v40 = vpop.permute.xlu1 %10705  ;;  %v10703_v29 = vpop.permute.xlu0 %10702  ;;  %v10796_v17 = vadd.f32 %v10790_v58, %v10766_v48  ;;  %v10799_v38 = vadd.f32 %v10790_v58, %v10769_v21  ;;  %v10802_v12 = vadd.f32 %v10790_v58, %v10772_v44  ;;  %v10805_v53 = vadd.f32 %v10790_v58, %v10775_v13  ;;  %v16872_v44 = vld [vmem:[#allocation4 + $0x228] sm:$0xff]  }
0x1986   :  { %v10714_v19 = vsel %vm20694_vm2, %v10700_v42, %v10703_v29  ;;  %v10795_v52 = vadd.f32 %v10786_v61, %v10765_v55  ;;  %v10798_v15 = vadd.f32 %v10786_v61, %v10768_v35  ;;  %v10801_v9 = vadd.f32 %v10786_v61, %v10771_v7  ;;  %v16876_v13 = vld [vmem:[#allocation15 + $0x168] ss:$8 sps:$4 sm:$0xff]   ;;  %v16884_v55 = vld [vmem:[#allocation15 + $0x18c] ss:$8 sps:$4 sm:$0xff]   ;;  %v16873_v35 = vld [vmem:[#allocation4 + $0x230] sm:$0xff]  }
0x1987   :  { %v10715_v54 = vsel %vm20695_vm4, %v10714_v19, %v10706_v40  ;;  %v19762_v28 = vpack.c.bf16 %v10799_v38, %v10796_v17  ;;  %v10804_v20 = vadd.f32 %v10786_v61, %v10774_v41  ;;  %v19768_v31 = vpack.c.bf16 %v10805_v53, %v10802_v12  ;;  %v16887_v7 = vld [vmem:[#allocation15 + $0x19c] ss:$8 sps:$4 sm:$0xff]   ;;  %v16885_v41 = vld [vmem:[#allocation15 + $0x198] ss:$8 sps:$4 sm:$0xff]   ;;  %v16890_v40 = vld [vmem:[#allocation15 + $0x1ac] ss:$8 sps:$4 sm:$0xff]  }
0x1988   :  { %v10764_v49 = vrot.slane %v10715_v54, %v17814_v60  ;;  %v19765_v51 = vpack.c.bf16 %v10798_v15, %v10795_v52  ;;  %v10808_v42 = vadd.f32 %v10790_v58, %v10778_v10  ;;  %v10811_v56 = vadd.f32 %v10790_v58, %v10781_v2  ;;  %v16881_v58 = vld [vmem:[#allocation15 + $0x17c] ss:$8 sps:$4 sm:$0xff]   ;;  %v16888_v29 = vld [vmem:[#allocation15 + $0x1a8] ss:$8 sps:$4 sm:$0xff]   ;;  %v16891_v38 = vld [vmem:[#allocation15 + $0x1b8] ss:$8 sps:$4 sm:$0xff]  }
0x1989   :  { %v10743_v5 = vpop.permute.xlu1 %10742  ;;  %10853 = vmatprep.subr.bf16.mxu0 %v19762_v28  ;;  %v10740_v37 = vpop.permute.xlu0 %10739  ;;  %v19776_v30 = vpack.c.bf16 %v10804_v20, %v10801_v9  ;;  %v10807_v59 = vadd.f32 %v10786_v61, %v10777_v45  ;;  %v10810_v63 = vadd.f32 %v10786_v61, %v10780_v36  ;;  %v16882_v61 = vld [vmem:[#allocation15 + $0x188] ss:$8 sps:$4 sm:$0xff]   ;;  %v16874_v10 = vld [vmem:[#allocation4 + $0x238] sm:$0xff]   ;;  %v16896_v12 = vld [vmem:[#allocation15 + $0x1cc] ss:$8 sps:$4 sm:$0xff]  }
0x198a   :  { %v10751_v47 = vsel %vm20696_vm6, %v10737_v32, %v10740_v37  ;;  %10854 = vmatpush1.bf16.msra.mxu0 %v19765_v51  ;;  %v10767_v18 = vmul.f32 %v10764_v49, %v19594_v23  ;;  %v10770_v6 = vmul.f32 %v10764_v49, %v19596_v25  ;;  %v19781_v3 = vpack.c.bf16 %v10811_v56, %v10808_v42  ;;  %v16893_v17 = vld [vmem:[#allocation15 + $0x1bc] ss:$8 sps:$4 sm:$0xff]   ;;  %v16894_v53 = vld [vmem:[#allocation15 + $0x1c8] ss:$8 sps:$4 sm:$0xff]   ;;  %v16897_v52 = vld [vmem:[#allocation15 + $0x1d8] ss:$8 sps:$4 sm:$0xff]  }
0x198b   :  { %v10752_v24 = vsel %vm20697_vm8, %v10751_v47, %v10743_v5  ;;  %10855 = vmatprep.subr.bf16.mxu0 %v19768_v31  ;;  %v10773_v1 = vmul.f32 %v10764_v49, %v19628_v62  ;;  %v10776_v22 = vmul.f32 %v10764_v49, %v19641_v46  ;;  %v19787_v16 = vpack.c.bf16 %v10810_v63, %v10807_v59  ;;  %v16899_v19 = vld [vmem:[#allocation15 + $0x1dc] ss:$8 sps:$4 sm:$0xff]   ;;  %v16875_v15 = vld [vmem:[#allocation4 + $0x240] sm:$0xff]   ;;  %v16906_v20 = vld [vmem:[#allocation4 + $0x248] sm:$0xff]  }
0x198c   :  { %v10794_v14 = vrot.slane %v10752_v24, %v17814_v60  ;;  %v10779_v25 = vmul.f32 %v10764_v49, %v19651_v27  ;;  %v10782_v48 = vmul.f32 %v10764_v49, %v19669_v50  ;;  %v16870_v50 = vld [vmem:[#allocation4 + $0x218] sm:$0xff]   ;;  %v16902_v2 = vld [vmem:[#allocation15 + $0x1ec] ss:$8 sps:$4 sm:$0xff]   ;;  %v16900_v54 = vld [vmem:[#allocation15 + $0x1e8] ss:$8 sps:$4 sm:$0xff]  }
0x198d   :  { %v16905_v9 = vld [vmem:[#allocation15 + $0x1fc] ss:$8 sps:$4 sm:$0xff]   ;;  %v16909_v49 = vld [vmem:[#allocation15 + $0x20c] ss:$8 sps:$4 sm:$0xff]   ;;  %v16910_v5 = vld [vmem:[#allocation15 + $0x218] ss:$8 sps:$4 sm:$0xff]  }
0x198e   :  { %10856 = vmatpush1.bf16.msra.mxu0 %v19776_v30  ;;  %v10797_v57 = vadd.f32 %v10794_v14, %v10767_v18  ;;  %v10800_v39 = vadd.f32 %v10794_v14, %v10770_v6  ;;  %v10803_v32 = vadd.f32 %v10794_v14, %v10773_v1  ;;  %v10806_v23 = vadd.f32 %v10794_v14, %v10776_v22  ;;  %v16912_v37 = vld [vmem:[#allocation15 + $0x21c] ss:$8 sps:$4 sm:$0xff]   ;;  %v16916_v42 = vld [vmem:[#allocation15 + $0x22c] ss:$8 sps:$4 sm:$0xff]   ;;  %v16914_v56 = vld [vmem:[#allocation15 + $0x228] ss:$8 sps:$4 sm:$0xff]  }
0x198f   :  { %10857 = vmatprep.subr.bf16.mxu0 %v19781_v3  ;;  %v10809_v46 = vadd.f32 %v10794_v14, %v10779_v25  ;;  %v10812_v21 = vadd.f32 %v10794_v14, %v10782_v48  ;;  %v16917_v45 = vld [vmem:[#allocation15 + $0x238] ss:$8 sps:$4 sm:$0xff]   ;;  %v16919_v47 = vld [vmem:[#allocation15 + $0x23c] ss:$8 sps:$4 sm:$0xff]   ;;  %v16922_v36 = vld [vmem:[#allocation15 + $0x24c] ss:$8 sps:$4 sm:$0xff]  }
0x1990   :  { %v19789_v43 = vpack.c.bf16 %v10800_v39, %v10797_v57  ;;  %v19797_v62 = vpack.c.bf16 %v10806_v23, %v10803_v32  ;;  %v16920_v24 = vld [vmem:[#allocation15 + $0x248] ss:$8 sps:$4 sm:$0xff]   ;;  %v16925_v59 = vld [vmem:[#allocation15 + $0x25c] ss:$8 sps:$4 sm:$0xff]   ;;  %v16928_v14 = vld [vmem:[#allocation15 + $0x26c] ss:$8 sps:$4 sm:$0xff]  }
0x1991   :  { %v19804_v27 = vpack.c.bf16 %v10812_v21, %v10809_v46 }
0x1992   :  { %10858 = vmatpush1.bf16.msra.mxu0 %v19787_v16  ;;  %15622 = vmatpush3.bf16.msra.mxu1 %v19789_v43 }
0x1993   :  { %11058 = vmatprep.subr.bf16.mxu0 %v19762_v28  ;;  %15623 = vmatprep.subr.bf16.mxu1 %v17389_v0 }
0x1995   :  { %14987 = vmatmul.mubr.msk.bf16.vlgmr.msra.gmra.mrb[80].mxu0 %vm200_vm1, %v16869_v33 }
0x1996   :  { %15624 = vmatpush3.bf16.msra.mxu1 %v19797_v62  ;;  %11059 = vmatpush1.bf16.msra.mxu0 %v19765_v51 }
0x1997   :  { %11060 = vmatprep.subr.bf16.mxu0 %v19768_v31  ;;  %15625 = vmatprep.subr.bf16.mxu1 %v17389_v0 }
0x1998   :  { %10895 = vmatprep.mubr.bf16.mxu0 %v17391_v34 }
0x199a   :  { %15626 = vmatpush3.bf16.msra.mxu1 %v19804_v27  ;;  %11061 = vmatpush1.bf16.msra.mxu0 %v19776_v30 }
0x199b   :  { %11062 = vmatprep.subr.bf16.mxu0 %v19781_v3  ;;  %15639 = vmatprep.subr.bf16.mxu1 %v17389_v0 }
0x199d   :  { %14988 = vmatmul.mubr.msk.bf16.gmra.mrb[84].mxu0 %vm200_vm1, %v16870_v50  ;;  %15628 = vmatmul.mubr.msk.bf16.vlgmr.msra.gmra.mrb[168].mxu1 %vm200_vm1, %v16869_v33 }
0x199e   :  { %11063 = vmatpush1.bf16.msra.mxu0 %v19787_v16  ;;  %15640 = vmatpush3.bf16.msra.mxu1 %v19789_v43 }
0x199f   :  { %15641 = vmatprep.subr.bf16.mxu1 %v17389_v0  ;;  %10905 = vmatprep.mubr.bf16.mxu0 %v17391_v34 }
0x19a0   :  { %15631 = vmatprep.mubr.msk.bf16.mxu1 %vm17390_vm0, %v17389_v0  ;;  %11473 = vmatprep.subr.bf16.mxu0 %v16878_v11 }
0x19a2   :  { %15642 = vmatpush3.bf16.msra.mxu1 %v19797_v62 }
0x19a3   :  { %15643 = vmatprep.subr.bf16.mxu1 %v17389_v0 }
0x19a5   :  { %14989 = vmatmul.mubr.msk.bf16.gmra.mrb[88].mxu0 %vm200_vm1, %v16871_v26  ;;  %15632 = vmatmul.mubr.msk.bf16.gmra.mrb[172].mxu1 %vm200_vm1, %v16870_v50 }
0x19a6   :  { %15644 = vmatpush3.bf16.msra.mxu1 %v19804_v27  ;;  %15635 = vmatprep.mubr.msk.bf16.mxu1 %vm17390_vm0, %v17389_v0 }
0x19a7   :  { %11996 = vmatprep.subr.bf16.mxu1 %v19762_v28  ;;  %11090 = vmatprep.mubr.bf16.mxu0 %v17391_v34  ;;  %v16903_v28 = vld [vmem:[#allocation15 + $0x1f8] ss:$8 sps:$4 sm:$0xff]  }
0x19ad   :  { %15636 = vmatmul.mubr.msk.bf16.gmra.mrb[176].mxu1 %vm200_vm1, %v16871_v26  ;;  %14996 = vmatmul.mubr.msk.bf16.vlgmr.msra.gmra.mrb[92].mxu0 %vm200_vm1, %v16872_v44 }
0x19ae   :  { %11100 = vmatprep.mubr.bf16.mxu0 %v17391_v34  ;;  %15645 = vmatprep.mubr.msk.bf16.mxu1 %vm17390_vm0, %v17389_v0 }
0x19af   :  { %11474 = vmatpush1.bf16.msra.mxu0 %v16876_v13 }
0x19b0   :  { %11475 = vmatprep.subr.bf16.mxu0 %v16881_v58 }
0x19b3   :  { %11476 = vmatpush1.bf16.msra.mxu0 %v16879_v8 }
0x19b4   :  { %11477 = vmatprep.subr.bf16.mxu0 %v16884_v55 }
0x19b5   :  { %14997 = vmatmul.mubr.msk.bf16.gmra.mrb[96].mxu0 %vm200_vm1, %v16873_v35  ;;  %15646 = vmatmul.mubr.msk.bf16.vlgmr.msra.gmra.mrb[180].mxu1 %vm200_vm1, %v16872_v44 }
0x19b6   :  { %11997 = vmatpush1.bf16.msra.mxu1 %v19765_v51  ;;  %11110 = vmatprep.mubr.bf16.mxu0 %v17391_v34  ;;  %v16907_v51 = vld [vmem:[#allocation15 + $0x208] ss:$8 sps:$4 sm:$0xff]  }
0x19b7   :  { %11998 = vmatprep.subr.bf16.mxu1 %v19768_v31  ;;  %15649 = vmatprep.mubr.msk.bf16.mxu1 %vm17390_vm0, %v17389_v0  ;;  %v16913_v31 = vld [vmem:[#allocation4 + $0x250] sm:$0xff]  }
0x19b8   :  { %11478 = vmatpush1.bf16.msra.mxu0 %v16882_v61 }
0x19b9   :  { %11479 = vmatprep.subr.bf16.mxu0 %v16887_v7 }
0x19ba   :  { %11999 = vmatpush1.bf16.msra.mxu1 %v19776_v30  ;;  %v16923_v30 = vld [vmem:[#allocation15 + $0x258] ss:$8 sps:$4 sm:$0xff]  }
0x19bb   :  { %12000 = vmatprep.subr.bf16.mxu1 %v19781_v3 }
0x19bc   :  { %11480 = vmatpush1.bf16.msra.mxu0 %v16885_v41 }
0x19bd   :  { %14998 = vmatmul.mubr.msk.bf16.gmra.mrb[100].mxu0 %vm200_vm1, %v16874_v10  ;;  %15650 = vmatmul.mubr.msk.bf16.gmra.mrb[184].mxu1 %vm200_vm1, %v16873_v35 }
0x19be   :  { %12001 = vmatpush1.bf16.msra.mxu1 %v19787_v16  ;;  %15653 = vmatprep.mubr.msk.bf16.mxu1 %vm17390_vm0, %v17389_v0 }
0x19bf   :  { %15657 = vmatprep.subr.bf16.mxu1 %v17389_v0  ;;  %11481 = vmatprep.subr.bf16.mxu0 %v16890_v40 }
0x19c0   :  { %11482 = vmatpush1.bf16.msra.mxu0 %v16888_v29 }
0x19c1   :  { %11483 = vmatprep.subr.bf16.mxu0 %v16893_v17 }
0x19c4   :  { %11484 = vmatpush1.bf16.msra.mxu0 %v16891_v38 }
0x19c5   :  { %15654 = vmatmul.mubr.msk.bf16.gmra.mrb[188].mxu1 %vm200_vm1, %v16874_v10  ;;  %11485 = vmatprep.subr.bf16.mxu0 %v16896_v12 }
0x19c6   :  { %12028 = vmatprep.mubr.bf16.mxu1 %v17391_v34 }
0x19c8   :  { %11486 = vmatpush1.bf16.msra.mxu0 %v16894_v53 }
0x19c9   :  { %11487 = vmatprep.subr.bf16.mxu0 %v16899_v19  ;;  %v16926_v19 = vld [vmem:[#allocation15 + $0x268] ss:$8 sps:$4 sm:$0xff]  }
0x19cc   :  { %11488 = vmatpush1.bf16.msra.mxu0 %v16897_v52  ;;  %v16931_v52 = vld [vmem:[#allocation15 + $0x27c] ss:$8 sps:$4 sm:$0xff]  }
0x19cd   :  { %15105 = vmatmul.mubr.msk.bf16.vlgmr.msra.gmra.mrb[192].mxu1 %vm200_vm1, %v16875_v15  ;;  %11489 = vmatprep.subr.bf16.mxu0 %v16902_v2  ;;  %v16929_v2 = vld [vmem:[#allocation15 + $0x278] ss:$8 sps:$4 sm:$0xff]  }
0x19ce   :  { %15658 = vmatpush3.bf16.msra.mxu1 %v19789_v43  ;;  %12038 = vmatprep.mubr.bf16.mxu1 %v17391_v34 }
0x19cf   :  { %15659 = vmatprep.subr.bf16.mxu1 %v17389_v0 }
0x19d0   :  { %11490 = vmatpush1.bf16.msra.mxu0 %v16900_v54 }
0x19d1   :  { %11491 = vmatprep.subr.bf16.mxu0 %v16905_v9  ;;  %v16934_v9 = vld [vmem:[#allocation15 + $0x28c] ss:$8 sps:$4 sm:$0xff]  }
0x19d2   :  { %15660 = vmatpush3.bf16.msra.mxu1 %v19797_v62 }
0x19d3   :  { %15661 = vmatprep.subr.bf16.mxu1 %v17389_v0 }
0x19d4   :  { %11492 = vmatpush1.bf16.msra.mxu0 %v16903_v28 }
0x19d5   :  { %15106 = vmatmul.mubr.msk.bf16.gmra.mrb[196].mxu1 %vm200_vm1, %v16906_v20  ;;  %11493 = vmatprep.subr.bf16.mxu0 %v16909_v49 }
0x19d6   :  { %15662 = vmatpush3.bf16.msra.mxu1 %v19804_v27  ;;  %12048 = vmatprep.mubr.bf16.mxu1 %v17391_v34 }
0x19d8   :  { %11494 = vmatpush1.bf16.msra.mxu0 %v16907_v51 }
0x19d9   :  { %11495 = vmatprep.subr.bf16.mxu0 %v16912_v37 }
0x19dc   :  { %11496 = vmatpush1.bf16.msra.mxu0 %v16910_v5 }
0x19dd   :  { %15107 = vmatmul.mubr.msk.bf16.gmra.mrb[200].mxu1 %vm200_vm1, %v16913_v31  ;;  %11497 = vmatprep.subr.bf16.mxu0 %v16916_v42 }
0x19de   :  { %15663 = vmatprep.mubr.msk.bf16.mxu1 %vm17390_vm0, %v17389_v0 }
0x19e0   :  { %11498 = vmatpush1.bf16.msra.mxu0 %v16914_v56 }
0x19e1   :  { %11499 = vmatprep.subr.bf16.mxu0 %v16919_v47  ;;  %v16937_v47 = vld [vmem:[#allocation15 + $0x29c] ss:$8 sps:$4 sm:$0xff]  }
0x19e4   :  { %11500 = vmatpush1.bf16.msra.mxu0 %v16917_v45  ;;  %v16932_v45 = vld [vmem:[#allocation15 + $0x288] ss:$8 sps:$4 sm:$0xff]  }
0x19e5   :  { %15664 = vmatmul.mubr.msk.bf16.vlgmr.msra.gmra.mrb[204].mxu1 %vm200_vm1, %v16875_v15  ;;  %11501 = vmatprep.subr.bf16.mxu0 %v16922_v36 }
0x19e6   :  { %15667 = vmatprep.mubr.msk.bf16.mxu1 %vm17390_vm0, %v17389_v0 }
0x19e8   :  { %11502 = vmatpush1.bf16.msra.mxu0 %v16920_v24  ;;  %v16935_v24 = vld [vmem:[#allocation15 + $0x298] ss:$8 sps:$4 sm:$0xff]  }
0x19e9   :  { %11503 = vmatprep.subr.bf16.mxu0 %v16925_v59 }
0x19ec   :  { %11504 = vmatpush1.bf16.msra.mxu0 %v16923_v30 }
0x19ed   :  { %15668 = vmatmul.mubr.msk.bf16.gmra.mrb[208].mxu1 %vm200_vm1, %v16906_v20  ;;  %11536 = vmatprep.subr.bf16.mxu0 %v16928_v14  ;;  %v16940_v14 = vld [vmem:[#allocation15 + $0x2ac] ss:$8 sps:$4 sm:$0xff]  }
0x19ee   :  { %15671 = vmatprep.mubr.msk.bf16.mxu1 %vm17390_vm0, %v17389_v0  ;;  %vm20698_vm0 = vcmask 1043456  }
0x19ef   :  { %vm20699_vm13 = vmmov %vm20698_vm0 }
0x19f0   :  { %vm20700_vm2 = vmmov %vm20698_vm0 }
0x19f1   :  { %vm20701_vm4 = vmmov %vm20698_vm0 }
0x19f2   :  { %vm20702_vm6 = vmmov %vm20698_vm0 }
0x19f3   :  { %vm20703_vm8 = vmmov %vm20698_vm0 }
0x19f5   :  { %15672 = vmatmul.mubr.msk.bf16.gmra.mrb[212].mxu1 %vm200_vm1, %v16913_v31 }
0x19f6   :  { %13006 = vmatprep.mubr.bf16.mxu1 %v17391_v34 }
0x1a68   :  { %v19870_v63 = vpop.f32.mrb[80].mxu0 }
0x1a69   :  { %v19872_v18 = vpop.f32.mrb[81].mxu0 }
0x1a6a   :  { %v19874_v6 = vpop.f32.mrb[82].mxu0 }
0x1a6b   :  { %v10973_v3 = vpack.c.bf16 %v19874_v6, %v19870_v63  ;;  %v19878_v57 = vpop.f32.mrb[83].mxu0  ;;  %v17003_v63 = vld [vmem:[#allocation15 + $0x130] ss:$8 sps:$4 sm:$0xff]   ;;  %v17008_v6 = vld [vmem:[#allocation15 + $0x144] ss:$8 sps:$4 sm:$0xff]  }
0x1a6c   :  { %v10974_v39 = vpack.c.bf16 %v19878_v57, %v19872_v18  ;;  %v16967_v57 = vld [vmem:[#allocation15 + $0x70] ss:$8 sps:$4 sm:$0xff]  }
0x1a70   :  { %v19882_v0 = vpop.f32.mrb[84].mxu0  ;;  %v19884_v1 = vpop.f32.mrb[168].mxu1 }
0x1a71   :  { %v19886_v22 = vpop.f32.mrb[85].mxu0  ;;  %v15629_v16 = vpop.f32.mrb[169].mxu1 }
0x1a72   :  { %v19888_v43 = vpop.f32.mrb[86].mxu0  ;;  %v19890_v32 = vpop.f32.mrb[170].mxu1 }
0x1a73   :  { %v10976_v23 = vpack.c.bf16 %v19888_v43, %v19882_v0  ;;  %v19894_v33 = vpop.f32.mrb[87].mxu0  ;;  %v10975_v25 = vpack.c.bf16 %v19890_v32, %v19884_v1  ;;  %v15630_v48 = vpop.f32.mrb[171].mxu1  ;;  %v17009_v0 = vld [vmem:[#allocation15 + $0x150] ss:$8 sps:$4 sm:$0xff]   ;;  %v17028_v1 = vld [vmem:[#allocation15 + $0x314] ss:$8 sps:$4 sm:$0xff]  }
0x1a74   :  { %v10977_v62 = vpack.c.bf16 %v19894_v33, %v19886_v22  ;;  %v17011_v22 = vld [vmem:[#allocation15 + $0x154] ss:$8 sps:$4 sm:$0xff]   ;;  %v11026_v33 = vld [vmem:[#allocation15 + $0x160] sm:$0xff]  ;;  %v17026_v32 = vld [vmem:[#allocation15 + $0x310] ss:$8 sps:$4 sm:$0xff]  }
0x1a75   :  { %v15097_v43 = vcombine.high %v11026_v33, %v11026_v33 }
0x1a78   :  { %v19900_v46 = vpop.f32.mrb[88].mxu0  ;;  %v19902_v21 = vpop.f32.mrb[172].mxu1 }
0x1a79   :  { %v19904_v27 = vpop.f32.mrb[89].mxu0  ;;  %v15633_v50 = vpop.f32.mrb[173].mxu1 }
0x1a7a   :  { %v19906_v11 = vpop.f32.mrb[90].mxu0  ;;  %v19908_v26 = vpop.f32.mrb[174].mxu1 }
0x1a7b   :  { %v10979_v44 = vpack.c.bf16 %v19906_v11, %v19900_v46  ;;  %v19912_v13 = vpop.f32.mrb[91].mxu0  ;;  %v10978_v58 = vpack.c.bf16 %v19908_v26, %v19902_v21  ;;  %v15634_v8 = vpop.f32.mrb[175].mxu1  ;;  %v17017_v46 = vld [vmem:[#allocation15 + $0x2e0] ss:$8 sps:$4 sm:$0xff]   ;;  %v17022_v11 = vld [vmem:[#allocation15 + $0x2f4] ss:$8 sps:$4 sm:$0xff]  }
0x1a7c   :  { %v10980_v55 = vpack.c.bf16 %v19912_v13, %v19904_v27  ;;  %v17016_v27 = vld [vmem:[#allocation15 + $0x2d4] ss:$8 sps:$4 sm:$0xff]   ;;  %v17014_v13 = vld [vmem:[#allocation15 + $0x2d0] ss:$8 sps:$4 sm:$0xff]  }
0x1a7d   :  { %v17034_v21 = vld [vmem:[#allocation15 + $0x334] ss:$8 sps:$4 sm:$0xff]   ;;  %v17032_v26 = vld [vmem:[#allocation15 + $0x330] ss:$8 sps:$4 sm:$0xff]  }
0x1a80   :  { %v11092_v35 = vpop.f32.mrb[92].mxu0  ;;  %v19918_v61 = vpop.f32.mrb[176].mxu1 }
0x1a81   :  { %v11094_v7 = vpop.f32.mrb[93].mxu0  ;;  %v15637_v41 = vpop.f32.mrb[177].mxu1 }
0x1a82   :  { %v11096_v10 = vpop.f32.mrb[94].mxu0  ;;  %v19920_v40 = vpop.f32.mrb[178].mxu1 }
0x1a83   :  { %v11178_v29 = vpack.c.bf16 %v11096_v10, %v11092_v35  ;;  %v11098_v17 = vpop.f32.mrb[95].mxu0  ;;  %v10981_v38 = vpack.c.bf16 %v19920_v40, %v19918_v61  ;;  %v15638_v12 = vpop.f32.mrb[179].mxu1  ;;  %v17038_v61 = vld [vmem:[#allocation15 + $0x350] ss:$8 sps:$4 sm:$0xff]   ;;  %v17043_v40 = vld [vmem:[#allocation15 + $0x364] ss:$8 sps:$4 sm:$0xff]  }
0x1a84   :  { %v11179_v53 = vpack.c.bf16 %v11098_v17, %v11094_v7  ;;  %v16943_v17 = vld [vmem:[#allocation15 + $0x2bc] ss:$8 sps:$4 sm:$0xff]   ;;  %v11232_v12 = vld [vmem:[#allocation15 + $0x2c8] sm:$0xff] }
0x1a86   :  { %11505 = vmatprep.mubr.bf16.mxu0 %v11179_v53  ;;  %v16941_v53 = vld [vmem:[#allocation15 + $0x2b8] ss:$8 sps:$4 sm:$0xff]  }
0x1a87   :  { %11506 = vmatmul.mubr.bf16.vlgmr.msra.gmra.mrb[104].mxu0 %v11178_v29  ;;  %v16938_v29 = vld [vmem:[#allocation15 + $0x2a8] ss:$8 sps:$4 sm:$0xff]  }
0x1a88   :  { %11537 = vmatpush1.bf16.msra.mxu0 %v16926_v19  ;;  %v11102_v15 = vpop.f32.mrb[96].mxu0  ;;  %v11155_v54 = vpop.f32.mrb[180].mxu1 }
0x1a89   :  { %v11104_v28 = vpop.f32.mrb[97].mxu0  ;;  %11538 = vmatprep.subr.bf16.mxu0 %v16931_v52  ;;  %v15647_v20 = vpop.f32.mrb[181].mxu1  ;;  %v15047_v52 = vcombine.high %v11232_v12, %v11232_v12 }
0x1a8a   :  { %v11106_v49 = vpop.f32.mrb[98].mxu0  ;;  %v11158_v51 = vpop.f32.mrb[182].mxu1 }
0x1a8b   :  { %v11181_v5 = vpack.c.bf16 %v11106_v49, %v11102_v15  ;;  %v11108_v37 = vpop.f32.mrb[99].mxu0  ;;  %v11180_v31 = vpack.c.bf16 %v11158_v51, %v11155_v54  ;;  %v15648_v42 = vpop.f32.mrb[183].mxu1  ;;  %v15046_v15 = vcombine.low %v11232_v12, %v11232_v12  ;;  %v16948_v49 = vld [vmem:[#allocation15 + $0x4] ss:$8 sps:$4 sm:$0xff]   ;;  %v16946_v51 = vld [vmem:[#allocation15] ss:$8 sps:$4 sm:$0xff]  }
0x1a8c   :  { %v11182_v56 = vpack.c.bf16 %v11108_v37, %v11104_v28  ;;  %11539 = vmatpush1.bf16.msra.mxu0 %v16929_v2  ;;  %v16949_v37 = vld [vmem:[#allocation15 + $0x10] ss:$8 sps:$4 sm:$0xff]   ;;  %v16954_v42 = vld [vmem:[#allocation15 + $0x24] ss:$8 sps:$4 sm:$0xff]  }
0x1a8d   :  { %11540 = vmatprep.subr.bf16.mxu0 %v16934_v9  ;;  %v11468_v20 = vsel %vm20699_vm13, %v15046_v15, 0  ;;  %v16978_v15 = vld [vmem:[#allocation15 + $0xa4] ss:$8 sps:$4 sm:$0xff]  }
0x1a8e   :  { %11515 = vmatprep.mubr.bf16.mxu0 %v11182_v56  ;;  %v16952_v56 = vld [vmem:[#allocation15 + $0x20] ss:$8 sps:$4 sm:$0xff]  }
0x1a8f   :  { %11516 = vmatmul.mubr.bf16.gmra.mrb[108].mxu0 %v11181_v5  ;;  %v16951_v5 = vld [vmem:[#allocation15 + $0x14] ss:$8 sps:$4 sm:$0xff]  }
0x1a90   :  { %11541 = vmatpush1.bf16.msra.mxu0 %v16932_v45  ;;  %v11112_v36 = vpop.f32.mrb[100].mxu0  ;;  %v11163_v30 = vpop.f32.mrb[184].mxu1  ;;  %v16957_v45 = vld [vmem:[#allocation15 + $0x34] ss:$8 sps:$4 sm:$0xff]  }
0x1a91   :  { %v11114_v59 = vpop.f32.mrb[101].mxu0  ;;  %11542 = vmatprep.subr.bf16.mxu0 %v16937_v47  ;;  %v15651_v16 = vpop.f32.mrb[185].mxu1  ;;  %v16955_v47 = vld [vmem:[#allocation15 + $0x30] ss:$8 sps:$4 sm:$0xff]  }
0x1a92   :  { %v11116_v48 = vpop.f32.mrb[102].mxu0  ;;  %v11166_v50 = vpop.f32.mrb[186].mxu1 }
0x1a93   :  { %v11184_v8 = vpack.c.bf16 %v11116_v48, %v11112_v36  ;;  %v11118_v35 = vpop.f32.mrb[103].mxu0  ;;  %v11183_v7 = vpack.c.bf16 %v11166_v50, %v11163_v30  ;;  %v15652_v41 = vpop.f32.mrb[187].mxu1  ;;  %v16960_v36 = vld [vmem:[#allocation15 + $0x44] ss:$8 sps:$4 sm:$0xff]   ;;  %v16961_v30 = vld [vmem:[#allocation15 + $0x50] ss:$8 sps:$4 sm:$0xff]  }
0x1a94   :  { %v11185_v10 = vpack.c.bf16 %v11118_v35, %v11114_v59  ;;  %11543 = vmatpush1.bf16.msra.mxu0 %v16935_v24  ;;  %v16963_v24 = vld [vmem:[#allocation15 + $0x54] ss:$8 sps:$4 sm:$0xff]   ;;  %v16970_v41 = vld [vmem:[#allocation15 + $0x80] ss:$8 sps:$4 sm:$0xff]  }
0x1a95   :  { %11544 = vmatprep.subr.bf16.mxu0 %v16940_v14  ;;  %v16966_v14 = vld [vmem:[#allocation15 + $0x64] ss:$8 sps:$4 sm:$0xff]  }
0x1a96   :  { %11525 = vmatprep.mubr.bf16.mxu0 %v11185_v10  ;;  %v16975_v10 = vld [vmem:[#allocation15 + $0x94] ss:$8 sps:$4 sm:$0xff]  }
0x1a97   :  { %11526 = vmatmul.mubr.bf16.gmra.mrb[112].mxu0 %v11184_v8  ;;  %v16964_v8 = vld [vmem:[#allocation15 + $0x60] ss:$8 sps:$4 sm:$0xff]  }
0x1a98   :  { %11545 = vmatpush1.bf16.msra.mxu0 %v16938_v29  ;;  %11568 = vmatprep.mubr.bf16.mxu0 %v17391_v34  ;;  %v11171_v19 = vpop.f32.mrb[188].mxu1 }
0x1a99   :  { %11546 = vmatprep.subr.bf16.mxu0 %v16943_v17  ;;  %v15655_v2 = vpop.f32.mrb[189].mxu1 }
0x1a9a   :  { %v11174_v54 = vpop.f32.mrb[190].mxu1 }
0x1a9b   :  { %v11186_v28 = vpack.c.bf16 %v11174_v54, %v11171_v19  ;;  %v15656_v9 = vpop.f32.mrb[191].mxu1  ;;  %v16976_v54 = vld [vmem:[#allocation15 + $0xa0] ss:$8 sps:$4 sm:$0xff]  }
0x1a9c   :  { %11547 = vmatpush1.bf16.msra.mxu0 %v16941_v53  ;;  %v16973_v53 = vld [vmem:[#allocation15 + $0x90] ss:$8 sps:$4 sm:$0xff]  }
0x1a9d   :  { %15048 = vmatprep.subr.msk.bf16.mxu0 %vm20698_vm0, %v15047_v52 }
0x1aa0   :  { %11549 = vmatpush1.bf16.msra.mxu0 %v11468_v20  ;;  %v19935_v59 = vpop.f32.mrb[192].mxu1 }
0x1aa1   :  { %11839 = vmatprep.subr.bf16.mxu0 %v16948_v49  ;;  %v19937_v16 = vpop.f32.mrb[193].mxu1 }
0x1aa2   :  { %v19939_v48 = vpop.f32.mrb[194].mxu1 }
0x1aa3   :  { %15049 = vmatmul.mubr.msk.bf16.vlgmr.msra.gmra.mrb[104].mxu0 %vm3198_vm15, %v11180_v31  ;;  %v16958_v31 = vld [vmem:[#allocation15 + $0x40] ss:$8 sps:$4 sm:$0xff]   ;;  %v12116_v50 = vpack.c.bf16 %v19939_v48, %v19935_v59  ;;  %v19943_v35 = vpop.f32.mrb[195].mxu1  ;;  %v17076_v59 = vld [vmem:[#allocation15 + $0x414] ss:$8 sps:$4 sm:$0xff]  }
0x1aa4   :  { %11840 = vmatpush1.bf16.msra.mxu0 %v16946_v51  ;;  %11578 = vmatprep.mubr.bf16.mxu0 %v17391_v34  ;;  %v12117_v18 = vpack.c.bf16 %v19943_v35, %v19937_v16  ;;  %v16979_v51 = vld [vmem:[#allocation15 + $0xb0] ss:$8 sps:$4 sm:$0xff]   ;;  %v17049_v35 = vld [vmem:[#allocation15 + $0x384] ss:$8 sps:$4 sm:$0xff]  }
0x1aa5   :  { %11841 = vmatprep.subr.bf16.mxu0 %v16951_v5  ;;  %v17044_v16 = vld [vmem:[#allocation15 + $0x370] ss:$8 sps:$4 sm:$0xff]  }
0x1aa6   :  { %v17074_v48 = vld [vmem:[#allocation15 + $0x410] ss:$8 sps:$4 sm:$0xff]  }
0x1aa8   :  { %11842 = vmatpush1.bf16.msra.mxu0 %v16949_v37  ;;  %v19947_v29 = vpop.f32.mrb[196].mxu1 }
0x1aa9   :  { %11843 = vmatprep.subr.bf16.mxu0 %v16954_v42  ;;  %v19949_v17 = vpop.f32.mrb[197].mxu1  ;;  %v16984_v42 = vld [vmem:[#allocation15 + $0xc4] ss:$8 sps:$4 sm:$0xff]  }
0x1aaa   :  { %v19951_v12 = vpop.f32.mrb[198].mxu1 }
0x1aab   :  { %15050 = vmatmul.mubr.msk.bf16.gmra.mrb[108].mxu0 %vm3198_vm15, %v11183_v7  ;;  %v16969_v7 = vld [vmem:[#allocation15 + $0x74] ss:$8 sps:$4 sm:$0xff]   ;;  %v12119_v19 = vpack.c.bf16 %v19951_v12, %v19947_v29  ;;  %v19955_v52 = vpop.f32.mrb[199].mxu1  ;;  %v17077_v29 = vld [vmem:[#allocation15 + $0x420] ss:$8 sps:$4 sm:$0xff]  }
0x1aac   :  { %11844 = vmatpush1.bf16.msra.mxu0 %v16952_v56  ;;  %11588 = vmatprep.mubr.bf16.mxu0 %v17391_v34  ;;  %v12120_v2 = vpack.c.bf16 %v19955_v52, %v19949_v17  ;;  %v12170_v17 = vld [vmem:[#allocation15 + $0x430] sm:$0xff] }
0x1aad   :  { %11845 = vmatprep.subr.bf16.mxu0 %v16957_v45  ;;  %v16982_v45 = vld [vmem:[#allocation15 + $0xc0] ss:$8 sps:$4 sm:$0xff]   ;;  %v15156_v12 = vcombine.high %v12170_v17, %v12170_v17 }
0x1ab0   :  { %11846 = vmatpush1.bf16.msra.mxu0 %v16955_v47  ;;  %v19959_v9 = vpop.f32.mrb[200].mxu1  ;;  %v16987_v47 = vld [vmem:[#allocation15 + $0xd4] ss:$8 sps:$4 sm:$0xff]  }
0x1ab1   :  { %11847 = vmatprep.subr.bf16.mxu0 %v16960_v36  ;;  %v19961_v20 = vpop.f32.mrb[201].mxu1 }
0x1ab2   :  { %v19963_v49 = vpop.f32.mrb[202].mxu1 }
0x1ab3   :  { %15051 = vmatmul.mubr.msk.bf16.gmra.mrb[112].mxu0 %vm3198_vm15, %v11186_v28  ;;  %v16981_v28 = vld [vmem:[#allocation15 + $0xb4] ss:$8 sps:$4 sm:$0xff]   ;;  %v12122_v5 = vpack.c.bf16 %v19963_v49, %v19959_v9  ;;  %v19967_v37 = vpop.f32.mrb[203].mxu1 }
0x1ab4   :  { %11848 = vmatpush1.bf16.msra.mxu0 %v16958_v31  ;;  %11871 = vmatprep.mubr.bf16.mxu0 %v10974_v39  ;;  %v16972_v39 = vld [vmem:[#allocation15 + $0x84] ss:$8 sps:$4 sm:$0xff]   ;;  %v12123_v56 = vpack.c.bf16 %v19967_v37, %v19961_v20 }
0x1ab5   :  { %11849 = vmatprep.subr.bf16.mxu0 %v16963_v24  ;;  %v16985_v24 = vld [vmem:[#allocation15 + $0xd0] ss:$8 sps:$4 sm:$0xff]  }
0x1ab8   :  { %11850 = vmatpush1.bf16.msra.mxu0 %v16961_v30  ;;  %v19971_v36 = vpop.f32.mrb[204].mxu1 }
0x1ab9   :  { %11851 = vmatprep.subr.bf16.mxu0 %v16966_v14  ;;  %v15665_v31 = vpop.f32.mrb[205].mxu1  ;;  %v16990_v14 = vld [vmem:[#allocation15 + $0xe4] ss:$8 sps:$4 sm:$0xff]  }
0x1aba   :  { %v19973_v30 = vpop.f32.mrb[206].mxu1 }
0x1abc   :  { %11852 = vmatpush1.bf16.msra.mxu0 %v16964_v8  ;;  %v12118_v8 = vpack.c.bf16 %v19973_v30, %v19971_v36 }
0x1abd   :  { %11853 = vmatprep.subr.bf16.mxu0 %v16969_v7  ;;  %v15666_v7 = vpop.f32.mrb[207].mxu1 }
0x1ac0   :  { %11854 = vmatpush1.bf16.msra.mxu0 %v16967_v57  ;;  %v16988_v57 = vld [vmem:[#allocation15 + $0xe0] ss:$8 sps:$4 sm:$0xff]  }
0x1ac1   :  { %11855 = vmatprep.subr.bf16.mxu0 %v16972_v39  ;;  %v16993_v39 = vld [vmem:[#allocation15 + $0xf4] ss:$8 sps:$4 sm:$0xff]  }
0x1ac4   :  { %11856 = vmatpush1.bf16.msra.mxu0 %v16970_v41  ;;  %v19977_v41 = vpop.f32.mrb[208].mxu1 }
0x1ac5   :  { %11857 = vmatprep.subr.bf16.mxu0 %v16975_v10  ;;  %v15669_v10 = vpop.f32.mrb[209].mxu1 }
0x1ac6   :  { %v17000_v10 = vld [vmem:[#allocation15 + $0x120] ss:$8 sps:$4 sm:$0xff]  }
0x1ac8   :  { %11858 = vmatpush1.bf16.msra.mxu0 %v16973_v53  ;;  %v19979_v53 = vpop.f32.mrb[210].mxu1 }
0x1ac9   :  { %11859 = vmatprep.subr.bf16.mxu0 %v16978_v15  ;;  %v16991_v15 = vld [vmem:[#allocation15 + $0xf0] ss:$8 sps:$4 sm:$0xff]  }
0x1acc   :  { %11860 = vmatpush1.bf16.msra.mxu0 %v16976_v54  ;;  %v12121_v54 = vpack.c.bf16 %v19979_v53, %v19977_v41  ;;  %v12596_v53 = vpop.permute.xlu0 %12595 }
0x1acd   :  { %11861 = vmatprep.subr.bf16.mxu0 %v16981_v28  ;;  %v15670_v28 = vpop.f32.mrb[211].mxu1 }
0x1ace   :  { %v17025_v28 = vld [vmem:[#allocation15 + $0x304] ss:$8 sps:$4 sm:$0xff]  }
0x1ad0   :  { %11862 = vmatpush1.bf16.msra.mxu0 %v16979_v51  ;;  %v16996_v51 = vld [vmem:[#allocation15 + $0x104] ss:$8 sps:$4 sm:$0xff]  }
0x1ad1   :  { %11863 = vmatprep.subr.bf16.mxu0 %v16984_v42  ;;  %v16994_v42 = vld [vmem:[#allocation15 + $0x100] ss:$8 sps:$4 sm:$0xff]  }
0x1ad4   :  { %11864 = vmatpush1.bf16.msra.mxu0 %v16982_v45  ;;  %v16999_v45 = vld [vmem:[#allocation15 + $0x114] ss:$8 sps:$4 sm:$0xff]  }
0x1ad5   :  { %11865 = vmatprep.subr.bf16.mxu0 %v16987_v47  ;;  %v19983_v47 = vpop.f32.mrb[212].mxu1 }
0x1ad6   :  { %v15673_v31 = vpop.f32.mrb[213].mxu1 }
0x1ad7   :  { %v17040_v31 = vld [vmem:[#allocation15 + $0x354] ss:$8 sps:$4 sm:$0xff]  }
0x1ad8   :  { %11866 = vmatpush1.bf16.msra.mxu0 %v16985_v24  ;;  %v19988_v24 = vpop.f32.mrb[214].mxu1 }
0x1ad9   :  { %11867 = vmatprep.subr.bf16.mxu0 %v16990_v14  ;;  %v16997_v14 = vld [vmem:[#allocation15 + $0x110] ss:$8 sps:$4 sm:$0xff]   ;;  %v12124_v7 = vpack.c.bf16 %v19988_v24, %v19983_v47  ;;  %v12601_v24 = vpop.permute.xlu1 %12600 }
0x1adc   :  { %11868 = vmatpush1.bf16.msra.mxu0 %v16988_v57  ;;  %v15674_v57 = vpop.f32.mrb[215].mxu1 }
0x1add   :  { %11869 = vmatprep.subr.bf16.mxu0 %v16993_v39  ;;  %v17002_v39 = vld [vmem:[#allocation15 + $0x124] ss:$8 sps:$4 sm:$0xff]   ;;  %v17052_v57 = vld [vmem:[#allocation15 + $0x394] ss:$8 sps:$4 sm:$0xff]  }
0x1ae0   :  { %11870 = vmatpush1.bf16.msra.mxu0 %v16991_v15  ;;  %v17005_v15 = vld [vmem:[#allocation15 + $0x134] ss:$8 sps:$4 sm:$0xff]  }
0x1ae1   :  { %11902 = vmatprep.subr.bf16.mxu0 %v16996_v51  ;;  %v17023_v51 = vld [vmem:[#allocation15 + $0x300] ss:$8 sps:$4 sm:$0xff]  }
0x1ae3   :  { %11872 = vmatmul.mubr.bf16.vlgmr.msra.gmra.mrb[104].mxu0 %v10973_v3  ;;  %v17006_v3 = vld [vmem:[#allocation15 + $0x140] ss:$8 sps:$4 sm:$0xff]  }
0x1ae4   :  { %11881 = vmatprep.mubr.bf16.mxu0 %v10977_v62  ;;  %11903 = vmatpush1.bf16.msra.mxu0 %v16994_v42  ;;  %v17029_v42 = vld [vmem:[#allocation15 + $0x320] ss:$8 sps:$4 sm:$0xff]  }
0x1ae5   :  { %11904 = vmatprep.subr.bf16.mxu0 %v16999_v45  ;;  %v17035_v45 = vld [vmem:[#allocation15 + $0x340] ss:$8 sps:$4 sm:$0xff]  }
0x1ae8   :  { %11905 = vmatpush1.bf16.msra.mxu0 %v16997_v14  ;;  %v17046_v14 = vld [vmem:[#allocation15 + $0x374] ss:$8 sps:$4 sm:$0xff]  }
0x1ae9   :  { %11906 = vmatprep.subr.bf16.mxu0 %v17002_v39  ;;  %v17050_v39 = vld [vmem:[#allocation15 + $0x390] ss:$8 sps:$4 sm:$0xff]  }
0x1aeb   :  { %11882 = vmatmul.mubr.bf16.gmra.mrb[108].mxu0 %v10976_v23  ;;  %v15096_v23 = vcombine.low %v11026_v33, %v11026_v33  ;;  %v17064_v33 = vld [vmem:[#allocation15 + $0x3d4] ss:$8 sps:$4 sm:$0xff]  }
0x1aec   :  { %11891 = vmatprep.mubr.bf16.mxu0 %v10980_v55  ;;  %11907 = vmatpush1.bf16.msra.mxu0 %v17000_v10  ;;  %v17019_v55 = vld [vmem:[#allocation15 + $0x2e4] ss:$8 sps:$4 sm:$0xff]  }
0x1aed   :  { %11908 = vmatprep.subr.bf16.mxu0 %v17005_v15  ;;  %v11834_v62 = vsel %vm20701_vm4, %v15096_v23, 0  ;;  %v17055_v10 = vld [vmem:[#allocation15 + $0x3a4] ss:$8 sps:$4 sm:$0xff]   ;;  %v17053_v15 = vld [vmem:[#allocation15 + $0x3a0] ss:$8 sps:$4 sm:$0xff]  }
0x1aee   :  { %v17065_v23 = vld [vmem:[#allocation15 + $0x3e0] ss:$8 sps:$4 sm:$0xff]  }
0x1af0   :  { %11909 = vmatpush1.bf16.msra.mxu0 %v17003_v63  ;;  %v17058_v63 = vld [vmem:[#allocation15 + $0x3b4] ss:$8 sps:$4 sm:$0xff]  }
0x1af1   :  { %11910 = vmatprep.subr.bf16.mxu0 %v17008_v6  ;;  %v17056_v6 = vld [vmem:[#allocation15 + $0x3b0] ss:$8 sps:$4 sm:$0xff]  }
0x1af3   :  { %11892 = vmatmul.mubr.bf16.gmra.mrb[112].mxu0 %v10979_v44  ;;  %v17020_v44 = vld [vmem:[#allocation15 + $0x2f0] ss:$8 sps:$4 sm:$0xff]  }
0x1af4   :  { %11911 = vmatpush1.bf16.msra.mxu0 %v17006_v3  ;;  %11934 = vmatprep.mubr.bf16.mxu0 %v17391_v34  ;;  %v17061_v3 = vld [vmem:[#allocation15 + $0x3c4] ss:$8 sps:$4 sm:$0xff]  }
0x1af5   :  { %11912 = vmatprep.subr.bf16.mxu0 %v17011_v22  ;;  %v17059_v22 = vld [vmem:[#allocation15 + $0x3c0] ss:$8 sps:$4 sm:$0xff]  }
0x1af8   :  { %11913 = vmatpush1.bf16.msra.mxu0 %v17009_v0  ;;  %v17062_v0 = vld [vmem:[#allocation15 + $0x3d0] ss:$8 sps:$4 sm:$0xff]  }
0x1af9   :  { %15098 = vmatprep.subr.msk.bf16.mxu0 %vm20700_vm2, %v15097_v43  ;;  %v17067_v43 = vld [vmem:[#allocation15 + $0x3e4] ss:$8 sps:$4 sm:$0xff]  }
0x1afc   :  { %11915 = vmatpush1.bf16.msra.mxu0 %v11834_v62  ;;  %v17070_v62 = vld [vmem:[#allocation15 + $0x3f4] ss:$8 sps:$4 sm:$0xff]  }
0x1afd   :  { %12411 = vmatprep.subr.bf16.mxu0 %v17016_v27  ;;  %v17068_v27 = vld [vmem:[#allocation15 + $0x3f0] ss:$8 sps:$4 sm:$0xff]  }
0x1aff   :  { %15099 = vmatmul.mubr.msk.bf16.vlgmr.msra.gmra.mrb[104].mxu0 %vm3198_vm15, %v10975_v25  ;;  %v17031_v25 = vld [vmem:[#allocation15 + $0x324] ss:$8 sps:$4 sm:$0xff]  }
0x1b00   :  { %12412 = vmatpush1.bf16.msra.mxu0 %v17014_v13  ;;  %11944 = vmatprep.mubr.bf16.mxu0 %v17391_v34  ;;  %v17073_v13 = vld [vmem:[#allocation15 + $0x404] ss:$8 sps:$4 sm:$0xff]  }
0x1b01   :  { %12413 = vmatprep.subr.bf16.mxu0 %v17019_v55  ;;  %v17071_v55 = vld [vmem:[#allocation15 + $0x400] ss:$8 sps:$4 sm:$0xff]  }
0x1b04   :  { %12414 = vmatpush1.bf16.msra.mxu0 %v17017_v46 }
0x1b05   :  { %12415 = vmatprep.subr.bf16.mxu0 %v17022_v11 }
0x1b07   :  { %15100 = vmatmul.mubr.msk.bf16.gmra.mrb[108].mxu0 %vm3198_vm15, %v10978_v58  ;;  %v17037_v58 = vld [vmem:[#allocation15 + $0x344] ss:$8 sps:$4 sm:$0xff]  }
0x1b08   :  { %12416 = vmatpush1.bf16.msra.mxu0 %v17020_v44  ;;  %11954 = vmatprep.mubr.bf16.mxu0 %v17391_v34 }
0x1b09   :  { %12417 = vmatprep.subr.bf16.mxu0 %v17025_v28 }
0x1b0c   :  { %12418 = vmatpush1.bf16.msra.mxu0 %v17023_v51 }
0x1b0d   :  { %12419 = vmatprep.subr.bf16.mxu0 %v17028_v1 }
0x1b0f   :  { %15101 = vmatmul.mubr.msk.bf16.gmra.mrb[112].mxu0 %vm3198_vm15, %v10981_v38  ;;  %v17041_v38 = vld [vmem:[#allocation15 + $0x360] ss:$8 sps:$4 sm:$0xff]  }
0x1b10   :  { %12420 = vmatpush1.bf16.msra.mxu0 %v17026_v32  ;;  %12443 = vmatprep.mubr.bf16.mxu0 %v12117_v18  ;;  %v17047_v18 = vld [vmem:[#allocation15 + $0x380] ss:$8 sps:$4 sm:$0xff]  }
0x1b11   :  { %12421 = vmatprep.subr.bf16.mxu0 %v17031_v25 }
0x1b14   :  { %12422 = vmatpush1.bf16.msra.mxu0 %v17029_v42 }
0x1b15   :  { %12423 = vmatprep.subr.bf16.mxu0 %v17034_v21 }
0x1b18   :  { %12424 = vmatpush1.bf16.msra.mxu0 %v17032_v26  ;;  %v12606_v26 = vpop.permute.xlu0 %12605 }
0x1b19   :  { %12425 = vmatprep.subr.bf16.mxu0 %v17037_v58 }
0x1b1c   :  { %12426 = vmatpush1.bf16.msra.mxu0 %v17035_v45 }
0x1b1d   :  { %12427 = vmatprep.subr.bf16.mxu0 %v17040_v31 }
0x1b20   :  { %12428 = vmatpush1.bf16.msra.mxu0 %v17038_v61 }
0x1b21   :  { %12429 = vmatprep.subr.bf16.mxu0 %v17043_v40 }
0x1b24   :  { %12430 = vmatpush1.bf16.msra.mxu0 %v17041_v38 }
0x1b25   :  { %12431 = vmatprep.subr.bf16.mxu0 %v17046_v14 }
0x1b28   :  { %12432 = vmatpush1.bf16.msra.mxu0 %v17044_v16  ;;  %v12611_v16 = vpop.permute.xlu1 %12610 }
0x1b29   :  { %12433 = vmatprep.subr.bf16.mxu0 %v17049_v35 }
0x1b2c   :  { %12434 = vmatpush1.bf16.msra.mxu0 %v17047_v18 }
0x1b2d   :  { %12435 = vmatprep.subr.bf16.mxu0 %v17052_v57 }
0x1b30   :  { %12436 = vmatpush1.bf16.msra.mxu0 %v17050_v39 }
0x1b31   :  { %12437 = vmatprep.subr.bf16.mxu0 %v17055_v10 }
0x1b34   :  { %12438 = vmatpush1.bf16.msra.mxu0 %v17053_v15 }
0x1b35   :  { %12439 = vmatprep.subr.bf16.mxu0 %v17058_v63 }
0x1b38   :  { %12440 = vmatpush1.bf16.msra.mxu0 %v17056_v6 }
0x1b39   :  { %12441 = vmatprep.subr.bf16.mxu0 %v17061_v3 }
0x1b3c   :  { %12442 = vmatpush1.bf16.msra.mxu0 %v17059_v22 }
0x1b3d   :  { %12474 = vmatprep.subr.bf16.mxu0 %v17064_v33 }
0x1b3f   :  { %12444 = vmatmul.mubr.bf16.vlgmr.msra.gmra.mrb[104].mxu0 %v12116_v50  ;;  %v17079_v50 = vld [vmem:[#allocation15 + $0x424] ss:$8 sps:$4 sm:$0xff]  }
0x1b40   :  { %12475 = vmatpush1.bf16.msra.mxu0 %v17062_v0  ;;  %12453 = vmatprep.mubr.bf16.mxu0 %v12120_v2  ;;  %v12550_v2 = vld [vmem:[#allocation6 + $0x12] sm:$0x7] }
0x1b41   :  { %12476 = vmatprep.subr.bf16.mxu0 %v17067_v43  ;;  %v12555_v9 = vrot.slane %v12550_v2, %v17814_v60  ;;  %v12559_v49 = vrot.slane %v12550_v2, %v17817_v4 }
0x1b44   :  { %12477 = vmatpush1.bf16.msra.mxu0 %v17065_v23 }
0x1b45   :  { %12478 = vmatprep.subr.bf16.mxu0 %v17070_v62 }
0x1b47   :  { %12454 = vmatmul.mubr.bf16.gmra.mrb[108].mxu0 %v12119_v19  ;;  %v15155_v19 = vcombine.low %v12170_v17, %v12170_v17 }
0x1b48   :  { %12479 = vmatpush1.bf16.msra.mxu0 %v17068_v27  ;;  %12463 = vmatprep.mubr.bf16.mxu0 %v12123_v56 }
0x1b49   :  { %12480 = vmatprep.subr.bf16.mxu0 %v17073_v13  ;;  %v12406_v52 = vsel %vm20703_vm8, %v15155_v19, 0  ;;  %v12616_v19 = vpop.permute.xlu0 %12615 }
0x1b4c   :  { %12481 = vmatpush1.bf16.msra.mxu0 %v17071_v55 }
0x1b4d   :  { %12482 = vmatprep.subr.bf16.mxu0 %v17076_v59 }
0x1b4f   :  { %12464 = vmatmul.mubr.bf16.gmra.mrb[112].mxu0 %v12122_v5 }
0x1b50   :  { %12483 = vmatpush1.bf16.msra.mxu0 %v17074_v48  ;;  %12506 = vmatprep.mubr.bf16.mxu0 %v17391_v34 }
0x1b51   :  { %12484 = vmatprep.subr.bf16.mxu0 %v17079_v50 }
0x1b54   :  { %12485 = vmatpush1.bf16.msra.mxu0 %v17077_v29 }
0x1b55   :  { %15157 = vmatprep.subr.msk.bf16.mxu0 %vm20702_vm6, %v15156_v12 }
0x1b58   :  { %12487 = vmatpush1.bf16.msra.mxu0 %v12406_v52 }
0x1b5b   :  { %15158 = vmatmul.mubr.msk.bf16.vlgmr.msra.gmra.mrb[104].mxu0 %vm3198_vm15, %v12118_v8 }
0x1b5c   :  { %12516 = vmatprep.mubr.bf16.mxu0 %v17391_v34 }
0x1b63   :  { %15159 = vmatmul.mubr.msk.bf16.gmra.mrb[108].mxu0 %vm3198_vm15, %v12121_v54 }
0x1b64   :  { %12526 = vmatprep.mubr.bf16.mxu0 %v17391_v34 }
0x1b6b   :  { %15160 = vmatmul.mubr.msk.bf16.gmra.mrb[112].mxu0 %vm3198_vm15, %v12124_v7  ;;  %vm20704_vm15 = vcmask 752640  }
0x1b6c   :  { %13854 = vmatprep.mubr.bf16.mxu0 %v17391_v34  ;;  %vm20705_vm0 = vmmov %vm20704_vm15 }
0x1b6d   :  { %vm20706_vm13 = vmmov %vm20705_vm0 }
0x1b6e   :  { %vm20707_vm2 = vmmov %vm20705_vm0 }
0x1b6f   :  { %vm20708_vm4 = vmmov %vm20705_vm0 }
0x1b70   :  { %vm20709_vm6 = vmmov %vm20705_vm0 }
0x1b71   :  { %vm20710_vm8 = vmmov %vm20705_vm0 }
0x1c2e   :  { %v12508_v20 = vpop.f32.mrb[104].mxu0 }
0x1c2f   :  { %v12510_v5 = vpop.f32.mrb[105].mxu0  ;;  %v12562_v56 = vadd.f32 %v12555_v9, %v12508_v20 }
0x1c30   :  { %v12512_v37 = vpop.f32.mrb[106].mxu0  ;;  %v12563_v8 = vadd.f32 %v12559_v49, %v12510_v5 }
0x1c31   :  { %v12564_v36 = vadd.f32 %v12555_v9, %v12512_v37  ;;  %v12514_v30 = vpop.f32.mrb[107].mxu0  ;;  %v20061_v47 = vmax.f32 %v12562_v56, 0.0 }
0x1c32   :  { %v12565_v54 = vadd.f32 %v12559_v49, %v12514_v30  ;;  %v20063_v7 = vmax.f32 %v12563_v8, 0.0  ;;  %v12621_v30 = vpop.permute.xlu1 %12620 }
0x1c33   :  { %v20059_v41 = vmax.f32 %v12564_v36, 0.0  ;;  %v12623_v32 = vmul.f32 %v12596_v53, %v20061_v47 }
0x1c34   :  { %v20066_v28 = vmax.f32 %v12565_v54, 0.0  ;;  %v12624_v58 = vmul.f32 %v12596_v53, %v20063_v7 }
0x1c35   :  { %v12625_v11 = vmul.f32 %v12601_v24, %v20059_v41  ;;  %v12663_v35 = vmul.f32 %v12623_v32, %v20061_v47 }
0x1c36   :  { %v12518_v46 = vpop.f32.mrb[108].mxu0  ;;  %v12626_v14 = vmul.f32 %v12601_v24, %v20066_v28  ;;  %v12646_v63 = vsel %vm20704_vm15, %v12624_v58, 0.0  ;;  %v12664_v33 = vmul.f32 %v12624_v58, %v20063_v7  ;;  %vm20711_vm15 = vmmov %vm20705_vm0 }
0x1c37   :  { %v12566_v44 = vadd.f32 %v12555_v9, %v12518_v46  ;;  %v12520_v4 = vpop.f32.mrb[109].mxu0  ;;  %v12665_v31 = vmul.f32 %v12625_v11, %v20059_v41  ;;  %v12635_v39 = vadd.f32 %v12625_v11, %v12623_v32 }
0x1c38   :  { %v12567_v51 = vadd.f32 %v12559_v49, %v12520_v4  ;;  %v12522_v1 = vpop.f32.mrb[110].mxu0  ;;  %v12647_v0 = vsel %vm20705_vm0, %v12626_v14, 0.0  ;;  %v12666_v27 = vmul.f32 %v12626_v14, %v20066_v28 }
0x1c39   :  { %v20069_v25 = vmax.f32 %v12566_v44, 0.0  ;;  %v12568_v42 = vadd.f32 %v12555_v9, %v12522_v1  ;;  %v12524_v21 = vpop.f32.mrb[111].mxu0  ;;  %v12675_v6 = vadd.f32 %v12665_v31, %v12663_v35  ;;  %v12648_v52 = vadd.f32 %v12647_v0, %v12646_v63 }
0x1c3a   :  { %v20072_v45 = vmax.f32 %v12567_v51, 0.0  ;;  %v12569_v38 = vadd.f32 %v12559_v49, %v12524_v21  ;;  %v12687_v8 = vsel %vm20707_vm2, %v12666_v27, 0.0  ;;  %v12686_v44 = vsel %vm20708_vm4, %v12664_v33, 0.0  ;;  %vm20713_vm2 = vmmov %vm20705_vm0 }
0x1c3b   :  { %v12627_v61 = vmul.f32 %v12606_v26, %v20069_v25  ;;  %v20076_v40 = vmax.f32 %v12568_v42, 0.0  ;;  %v12688_v32 = vadd.f32 %v12687_v8, %v12686_v44  ;;  %vm20714_vm4 = vmmov %vm20705_vm0 }
0x1c3c   :  { %v12628_v57 = vmul.f32 %v12606_v26, %v20072_v45  ;;  %v20084_v3 = vmax.f32 %v12569_v38, 0.0 }
0x1c3d   :  { %v12667_v18 = vmul.f32 %v12627_v61, %v20069_v25  ;;  %v12629_v10 = vmul.f32 %v12611_v16, %v20076_v40  ;;  %v12636_v43 = vadd.f32 %v12635_v39, %v12627_v61 }
0x1c3e   :  { %v12528_v15 = vpop.f32.mrb[112].mxu0  ;;  %v12649_v55 = vsel %vm20706_vm13, %v12628_v57, 0.0  ;;  %v12668_v2 = vmul.f32 %v12628_v57, %v20072_v45  ;;  %v12630_v20 = vmul.f32 %v12611_v16, %v20084_v3  ;;  %vm20712_vm13 = vmmov %vm20705_vm0 }
0x1c3f   :  { %v12530_v22 = vpop.f32.mrb[113].mxu0  ;;  %v12570_v23 = vadd.f32 %v12555_v9, %v12528_v15  ;;  %v12676_v13 = vadd.f32 %v12675_v6, %v12667_v18  ;;  %v12669_v50 = vmul.f32 %v12629_v10, %v20076_v40  ;;  %v12637_v37 = vadd.f32 %v12636_v43, %v12629_v10 }
0x1c40   :  { %v12532_v62 = vpop.f32.mrb[114].mxu0  ;;  %v12571_v59 = vadd.f32 %v12559_v49, %v12530_v22  ;;  %v12650_v53 = vadd.f32 %v12649_v55, %v12648_v52  ;;  %v12689_v4 = vsel %vm20709_vm6, %v12668_v2, 0.0  ;;  %v12651_v51 = vsel %vm20710_vm8, %v12630_v20, 0.0 }
0x1c41   :  { %v12534_v48 = vpop.f32.mrb[115].mxu0  ;;  %v20091_v17 = vmax.f32 %v12570_v23, 0.0  ;;  %v12572_v29 = vadd.f32 %v12555_v9, %v12532_v62  ;;  %v12677_v54 = vadd.f32 %v12676_v13, %v12669_v50  ;;  %v12670_v1 = vmul.f32 %v12630_v20, %v20084_v3 }
0x1c42   :  { %v12573_v12 = vadd.f32 %v12559_v49, %v12534_v48  ;;  %v20095_v5 = vmax.f32 %v12571_v59, 0.0  ;;  %v12690_v38 = vadd.f32 %v12689_v4, %v12688_v32  ;;  %v12652_v14 = vadd.f32 %v12651_v51, %v12650_v53 }
0x1c43   :  { %v12631_v56 = vmul.f32 %v12616_v19, %v20091_v17  ;;  %v20098_v36 = vmax.f32 %v12572_v29, 0.0  ;;  %v12691_v18 = vsel %vm20705_vm0, %v12670_v1, 0.0  ;;  %vm20724_vm6 = vcmask 97280  }
0x1c44   :  { %v12632_v9 = vmul.f32 %v12616_v19, %v20095_v5  ;;  %v20102_v49 = vmax.f32 %v12573_v12, 0.0  ;;  %v12692_v22 = vadd.f32 %v12691_v18, %v12690_v38  ;;  %vm20725_vm8 = vcmask 818176   ;;  %vm20727_vm0 = vmmov %vm20724_vm6 }
0x1c45   :  { %v12638_v24 = vadd.f32 %v12637_v37, %v12631_v56  ;;  %v12671_v46 = vmul.f32 %v12631_v56, %v20091_v17  ;;  %v12633_v11 = vmul.f32 %v12621_v30, %v20098_v36 }
0x1c46   :  { %v12653_v58 = vsel %vm20711_vm15, %v12632_v9, 0.0  ;;  %v12672_v31 = vmul.f32 %v12632_v9, %v20095_v5  ;;  %v12634_v61 = vmul.f32 %v12621_v30, %v20102_v49 }
0x1c47   :  { %v12678_v42 = vadd.f32 %v12677_v54, %v12671_v46  ;;  %v12639_v21 = vadd.f32 %v12638_v24, %v12633_v11  ;;  %v12673_v26 = vmul.f32 %v12633_v11, %v20098_v36  ;;  %v12654_v57 = vadd.f32 %v12653_v58, %v12652_v14 }
0x1c48   :  { %v12693_v15 = vsel %vm20712_vm13, %v12672_v31, 0.0  ;;  %v12655_v63 = vsel %vm20713_vm2, %v12634_v61, 0.0  ;;  %v12674_v6 = vmul.f32 %v12634_v61, %v20102_v49  ;;  %vm20728_vm13 = vmmov %vm20725_vm8 }
0x1c49   :  { %v12640_v16 = vrot.slane %v12639_v21, 4  ;;  %v12679_v35 = vadd.f32 %v12678_v42, %v12673_v26  ;;  %v12694_v43 = vadd.f32 %v12693_v15, %v12692_v22  ;;  %v12656_v27 = vadd.f32 %v12655_v63, %v12654_v57 }
0x1c4a   :  { %v12695_v13 = vsel %vm20714_vm4, %v12674_v6, 0.0  ;;  %vm20735_vm4 = vmmov %vm20713_vm2 }
0x1c4b   :  { %v12641_v39 = vadd.f32 %v12640_v16, %v12639_v21  ;;  %v12680_v10 = vrot.slane %v12679_v35, 4  ;;  %v12657_v29 = vrot.slane %v12656_v27, 4  ;;  %v12696_v12 = vadd.f32 %v12695_v13, %v12694_v43 }
0x1c4d   :  { %v12642_v33 = vrot.slane %v12641_v39, 2  ;;  %v12681_v0 = vadd.f32 %v12680_v10, %v12679_v35  ;;  %v12658_v52 = vadd.f32 %v12657_v29, %v12656_v27  ;;  %v12697_v2 = vrot.slane %v12696_v12, 4 }
0x1c4f   :  { %v12643_v23 = vadd.f32 %v12642_v33, %v12641_v39  ;;  %v12682_v62 = vrot.slane %v12681_v0, 2  ;;  %v12659_v20 = vrot.slane %v12658_v52, 2  ;;  %v12698_v37 = vadd.f32 %v12697_v2, %v12696_v12 }
0x1c51   :  { %v12644_v55 = vrot.slane %v12643_v23, 1  ;;  %v12683_v59 = vadd.f32 %v12682_v62, %v12681_v0  ;;  %v12660_v56 = vadd.f32 %v12659_v20, %v12658_v52  ;;  %v12699_v30 = vrot.slane %v12698_v37, 2 }
0x1c53   :  { %v12645_v48 = vadd.f32 %v12644_v55, %v12643_v23  ;;  %v12684_v50 = vrot.slane %v12683_v59, 1  ;;  %v12700_v8 = vadd.f32 %v12699_v30, %v12698_v37  ;;  %v12661_v53 = vrot.slane %v12660_v56, 1 }
0x1c55   :  { %12746 = vrot.lane.b32.xlu1 %v12645_v48, %s17378_s25  ;;  %12704 = vrot.lane.b32.xlu0 %v12645_v48, %s20715_s23  ;;  %v12685_v19 = vadd.f32 %v12684_v50, %v12683_v59  ;;  %v12662_v9 = vadd.f32 %v12661_v53, %v12660_v56  ;;  %v12701_v54 = vrot.slane %v12700_v8, 1 }
0x1c57   :  { %v12702_v24 = vadd.f32 %v12701_v54, %v12700_v8 }
0x1c59   :  { %12709 = vrot.lane.b32.xlu1 %v12685_v19, %s20715_s23  ;;  %12713 = vrot.lane.b32.xlu0 %v12645_v48, %s17393_s3 }
0x1c5d   :  { %12717 = vrot.lane.b32.xlu1 %v12685_v19, %s17393_s3  ;;  %12721 = vrot.lane.b32.xlu0 %v12645_v48, %s17394_s28  ;;  %s20717_s3 = smov 116  }
0x1c61   :  { %12725 = vrot.lane.b32.xlu1 %v12685_v19, %s17394_s28  ;;  %12729 = vrot.lane.b32.xlu0 %v12645_v48, %s17384_s1 }
0x1c65   :  { %12733 = vrot.lane.b32.xlu1 %v12685_v19, %s17384_s1  ;;  %12737 = vrot.lane.b32.xlu0 %v12645_v48, %s20716_s27  ;;  %s20718_s1 = smov 76  }
0x1c69   :  { %12741 = vrot.lane.b32.xlu1 %v12685_v19, %s20716_s27  ;;  %12748 = vrot.lane.b32.xlu0 %v12662_v9, %s17378_s25 }
0x1c6d   :  { %12756 = vrot.lane.b32.xlu1 %v12702_v24, %s17378_s25  ;;  %12754 = vrot.lane.b32.xlu0 %v12685_v19, %s17378_s25 }
0x1c71   :  { %12765 = vrot.lane.b32.xlu1 %v12702_v24, %s20717_s3  ;;  %12761 = vrot.lane.b32.xlu0 %v12662_v9, %s20717_s3 }
0x1c75   :  { %12773 = vrot.lane.b32.xlu1 %v12702_v24, %s17397_s11  ;;  %12769 = vrot.lane.b32.xlu0 %v12662_v9, %s17397_s11  ;;  %s20719_s11 = smov 20  }
0x1c79   :  { %12781 = vrot.lane.b32.xlu1 %v12702_v24, %s20718_s1  ;;  %12777 = vrot.lane.b32.xlu0 %v12662_v9, %s20718_s1 }
0x1c7d   :  { %12789 = vrot.lane.b32.xlu1 %v12702_v24, %s17399_s9  ;;  %12785 = vrot.lane.b32.xlu0 %v12662_v9, %s17399_s9  ;;  %s20720_s9 = smov 12  }
0x1cc7   :  { %v12747_v46 = vpop.permute.xlu1 %12746  ;;  %v12705_v11 = vpop.permute.xlu0 %12704 }
0x1cc8   :  { %v12707_v38 = vadd.f32 %v12705_v11, %v12645_v48 }
0x1ccb   :  { %v12710_v44 = vpop.permute.xlu1 %12709  ;;  %v12714_v4 = vpop.permute.xlu0 %12713 }
0x1ccc   :  { %v12712_v61 = vadd.f32 %v12710_v44, %v12685_v19  ;;  %v12716_v18 = vadd.f32 %v12714_v4, %v12707_v38 }
0x1ccf   :  { %v12718_v51 = vpop.permute.xlu1 %12717  ;;  %v12722_v1 = vpop.permute.xlu0 %12721 }
0x1cd0   :  { %v12720_v14 = vadd.f32 %v12718_v51, %v12712_v61  ;;  %v12724_v39 = vadd.f32 %v12722_v1, %v12716_v18  ;;  %v15162_v1 = vld [vmem:[%s20655_s5 + $0x6] sm:$0x1] }
0x1cd3   :  { %v12726_v32 = vpop.permute.xlu1 %12725  ;;  %v12730_v42 = vpop.permute.xlu0 %12729 }
0x1cd4   :  { %v12728_v57 = vadd.f32 %v12726_v32, %v12720_v14  ;;  %v12732_v22 = vadd.f32 %v12730_v42, %v12724_v39 }
0x1cd7   :  { %v12734_v21 = vpop.permute.xlu1 %12733  ;;  %v12738_v26 = vpop.permute.xlu0 %12737 }
0x1cd8   :  { %v12736_v10 = vadd.f32 %v12734_v21, %v12728_v57  ;;  %v12740_v43 = vadd.f32 %v12738_v26, %v12732_v22 }
0x1cdb   :  { %v12742_v58 = vpop.permute.xlu1 %12741  ;;  %v12749_v31 = vpop.permute.xlu0 %12748 }
0x1cdc   :  { %v12744_v33 = vadd.f32 %v12742_v58, %v12736_v10  ;;  %v12750_v0 = vsel %vm1300_vm5, %v12747_v46, %v12749_v31  ;;  %v15161_v46 = vld [vmem:[%s20654_s4 + $0x6] sm:$0x1]  ;;  %s20721_s4 = smov 52  }
0x1cdd   :  { %v12752_v13 = vadd.f32 %v12750_v0, %v12740_v43 }
0x1cdf   :  { %v12757_v16 = vpop.permute.xlu1 %12756  ;;  %v12755_v35 = vpop.permute.xlu0 %12754 }
0x1ce0   :  { %v12758_v15 = vsel %vm1300_vm5, %v12755_v35, %v12757_v16  ;;  %vm20723_vm5 = vcmask 162816  }
0x1ce1   :  { %v12760_v23 = vadd.f32 %v12758_v15, %v12744_v33  ;;  %vm20726_vm15 = vmmov %vm20723_vm5 }
0x1ce3   :  { %v12766_v63 = vpop.permute.xlu1 %12765  ;;  %v12762_v6 = vpop.permute.xlu0 %12761 }
0x1ce4   :  { %v12768_v55 = vadd.f32 %v12766_v63, %v12760_v23  ;;  %v12764_v59 = vadd.f32 %v12762_v6, %v12752_v13 }
0x1ce7   :  { %v12774_v62 = vpop.permute.xlu1 %12773  ;;  %v12770_v27 = vpop.permute.xlu0 %12769 }
0x1ce8   :  { %v12776_v29 = vadd.f32 %v12774_v62, %v12768_v55  ;;  %v12772_v12 = vadd.f32 %v12770_v27, %v12764_v59 }
0x1ceb   :  { %v12782_v48 = vpop.permute.xlu1 %12781  ;;  %v12778_v50 = vpop.permute.xlu0 %12777 }
0x1cec   :  { %v12784_v19 = vadd.f32 %v12782_v48, %v12776_v29  ;;  %v12780_v52 = vadd.f32 %v12778_v50, %v12772_v12 }
0x1cef   :  { %v12790_v2 = vpop.permute.xlu1 %12789  ;;  %v12786_v20 = vpop.permute.xlu0 %12785 }
0x1cf0   :  { %v12792_v37 = vadd.f32 %v12790_v2, %v12784_v19  ;;  %v12788_v56 = vadd.f32 %v12786_v20, %v12780_v52 }
0x1cf2   :  { %v12793_v30 = vmul.f32 0.004132231, %v12788_v56  ;;  %v12794_v8 = vmul.f32 0.004132231, %v12792_v37 }
0x1cf4   :  { %v12795_v53 = vmul.f32 %v12793_v30, %v12793_v30 }
0x1cf6   :  { %v12796_v9 = vsub.f32 %v12794_v8, %v12795_v53 }
0x1cf8   :  { %v12797_v54 = vmax.f32 %v12796_v9, 0.0 }
0x1cfa   :  { %v12800_v24 = vadd.f32 1e-05, %v12797_v54 }
0x1cfc   :  { %17162 = vrsqrt.f32 %v12800_v24 }
0x1d06   :  { %v17163_v11 = vpop.eup %17162 }
0x1d07   :  { %v12802_v44 = vmul.f32 %v17163_v11, %v15161_v46 }
0x1d09   :  { %v12811_v4 = vrot.slane %v12802_v44, %v17814_v60  ;;  %v12805_v51 = vmul.f32 %v12802_v44, %v12793_v30 }
0x1d0b   :  { %12815 = vrot.lane.b32.xlu1 %v12811_v4, %s17400_s12  ;;  %12812 = vrot.lane.b32.xlu0 %v12811_v4, %s20719_s11  ;;  %v12806_v32 = vsub.f32 %v15162_v1, %v12805_v51 }
0x1d0d   :  { %v12856_v42 = vrot.slane %v12806_v32, %v17814_v60 }
0x1d0f   :  { %12830 = vrot.lane.b32.xlu1 %v12811_v4, %s20720_s9  ;;  %12827 = vrot.lane.b32.xlu0 %v12811_v4, %s17402_s2 }
0x1d13   :  { %12833 = vrot.lane.b32.xlu1 %v12811_v4, %s17403_s16  ;;  %12818 = vrot.lane.b32.xlu0 %v12811_v4, %s17404_s17 }
0x1d17   :  { %12821 = vrot.lane.b32.xlu1 %v12811_v4, %s17405_s15  ;;  %12836 = vrot.lane.b32.xlu0 %v12811_v4, %s20721_s4 }
0x1d1b   :  { %12839 = vrot.lane.b32.xlu1 %v12811_v4, %s17407_s19  ;;  %12824 = vrot.lane.b32.xlu0 %v12811_v4, %s20722_s18 }
0x1d1f   :  { %12860 = vrot.lane.b32.xlu1 %v12856_v42, %s17400_s12  ;;  %12857 = vrot.lane.b32.xlu0 %v12856_v42, %s20719_s11 }
0x1d23   :  { %12875 = vrot.lane.b32.xlu1 %v12856_v42, %s20720_s9  ;;  %12872 = vrot.lane.b32.xlu0 %v12856_v42, %s17402_s2 }
0x1d27   :  { %12878 = vrot.lane.b32.xlu1 %v12856_v42, %s17403_s16  ;;  %12863 = vrot.lane.b32.xlu0 %v12856_v42, %s17404_s17 }
0x1d2b   :  { %12881 = vrot.lane.b32.xlu1 %v12856_v42, %s20721_s4  ;;  %12866 = vrot.lane.b32.xlu0 %v12856_v42, %s17405_s15 }
0x1d2f   :  { %12884 = vrot.lane.b32.xlu1 %v12856_v42, %s17407_s19  ;;  %12869 = vrot.lane.b32.xlu0 %v12856_v42, %s20722_s18 }
0x1d7d   :  { %v12816_v21 = vpop.permute.xlu1 %12815  ;;  %v12813_v26 = vpop.permute.xlu0 %12812 }
0x1d7e   :  { %v12842_v10 = vsel %vm20723_vm5, %v12802_v44, %v12813_v26  ;;  %vm20737_vm5 = vmmov %vm20713_vm2 }
0x1d7f   :  { %v12843_v6 = vsel %vm1393_vm7, %v12842_v10, %v12816_v21 }
0x1d81   :  { %v12831_v58 = vpop.permute.xlu1 %12830  ;;  %v12828_v31 = vpop.permute.xlu0 %12827 }
0x1d82   :  { %v12848_v22 = vsel %vm20724_vm6, %v12828_v31, %v12831_v58  ;;  %vm20738_vm6 = vmmov %vm20713_vm2 }
0x1d85   :  { %v12834_v61 = vpop.permute.xlu1 %12833  ;;  %v12819_v38 = vpop.permute.xlu0 %12818 }
0x1d86   :  { %v12844_v33 = vsel %vm1395_vm9, %v12843_v6, %v12819_v38  ;;  %v12849_v0 = vsel %vm1405_vm10, %v12848_v22, %v12834_v61  ;;  %v17085_v6 = vld [vmem:[#allocation4 + $0x270] sm:$0xff]  }
0x1d87   :  { %v17088_v22 = vld [vmem:[%s20663_s13 + $0x70] sm:$0xff]  }
0x1d89   :  { %v12822_v14 = vpop.permute.xlu1 %12821  ;;  %v12837_v16 = vpop.permute.xlu0 %12836 }
0x1d8a   :  { %v12845_v43 = vsel %vm1397_vm11, %v12844_v33, %v12822_v14  ;;  %v12850_v27 = vsel %vm1407_vm12, %v12849_v0, %v12837_v16  ;;  %v17089_v33 = vld [vmem:[%s20663_s13 + $0x78] sm:$0xff]  }
0x1d8b   :  { %v17086_v0 = vld [vmem:[#allocation4 + $0x278] sm:$0xff]  }
0x1d8d   :  { %v12840_v35 = vpop.permute.xlu1 %12839  ;;  %v12825_v18 = vpop.permute.xlu0 %12824 }
0x1d8e   :  { %v12846_v13 = vsel %vm20725_vm8, %v12845_v43, %v12825_v18  ;;  %v12851_v55 = vsel %vm425_vm3, %v12850_v27, %v12840_v35  ;;  %v17090_v43 = vld [vmem:[%s20663_s13 + $0x80] sm:$0xff]   ;;  %v17092_v27 = vld [vmem:[%s20663_s13 + $0x90] sm:$0xff]   ;;  %vm20739_vm8 = vmmov %vm20713_vm2 }
0x1d8f   :  { %v12847_v48 = vsel %vm1401_vm14, %v12846_v13, %v12828_v31  ;;  %v12904_v12 = vrot.slane %v12851_v55, %v17814_v60  ;;  %v17093_v13 = vld [vmem:[%s20663_s13 + $0x98] sm:$0xff]   ;;  %v17094_v55 = vld [vmem:[%s20663_s13 + $0xa0] sm:$0xff]  }
0x1d90   :  { %v12900_v2 = vrot.slane %v12847_v48, %v17814_v60  ;;  %v17096_v48 = vld [vmem:[%s20663_s13 + $0xb0] sm:$0xff]  }
0x1d91   :  { %v12861_v57 = vpop.permute.xlu1 %12860  ;;  %v12858_v39 = vpop.permute.xlu0 %12857  ;;  %v12906_v24 = vmul.f32 %v12904_v12, %v20063_v7  ;;  %v12908_v46 = vmul.f32 %v12904_v12, %v20066_v28  ;;  %v12910_v4 = vmul.f32 %v12904_v12, %v20072_v45  ;;  %v12912_v51 = vmul.f32 %v12904_v12, %v20084_v3 }
0x1d92   :  { %v12887_v59 = vsel %vm20726_vm15, %v12806_v32, %v12858_v39  ;;  %v12905_v32 = vmul.f32 %v12900_v2, %v20061_v47  ;;  %v12907_v42 = vmul.f32 %v12900_v2, %v20059_v41  ;;  %v12909_v61 = vmul.f32 %v12900_v2, %v20069_v25  ;;  %vm20740_vm15 = vmmov %vm20713_vm2 }
0x1d93   :  { %v12888_v52 = vsel %vm1393_vm7, %v12887_v59, %v12861_v57  ;;  %v12911_v38 = vmul.f32 %v12900_v2, %v20076_v40  ;;  %v12914_v45 = vmul.f32 %v12904_v12, %v20095_v5  ;;  %v12916_v3 = vmul.f32 %v12904_v12, %v20102_v49  ;;  %v17095_v59 = vld [vmem:[%s20663_s13 + $0xa8] sm:$0xff]  }
0x1d94   :  { %v12913_v40 = vmul.f32 %v12900_v2, %v20091_v17  ;;  %v12915_v5 = vmul.f32 %v12900_v2, %v20098_v36  ;;  %v17082_v36 = vld [vmem:[#allocation4 + $0x258] sm:$0xff]   ;;  %v17099_v12 = vld [vmem:[%s20663_s13 + $0xc8] sm:$0xff]   ;;  %vm20729_vm7 = vcmask 1045504  }
0x1d95   :  { %v12876_v15 = vpop.permute.xlu1 %12875  ;;  %v12873_v63 = vpop.permute.xlu0 %12872 }
0x1d96   :  { %v12893_v19 = vsel %vm20727_vm0, %v12873_v63, %v12876_v15  ;;  %v17083_v15 = vld [vmem:[#allocation4 + $0x260] sm:$0xff]  }
0x1d99   :  { %v12879_v23 = vpop.permute.xlu1 %12878  ;;  %v12864_v62 = vpop.permute.xlu0 %12863 }
0x1d9a   :  { %v12894_v20 = vsel %vm1405_vm10, %v12893_v19, %v12879_v23  ;;  %v12889_v37 = vsel %vm1395_vm9, %v12888_v52, %v12864_v62  ;;  %v17091_v23 = vld [vmem:[%s20663_s13 + $0x88] sm:$0xff]   ;;  %v17087_v62 = vld [vmem:[#allocation4 + $0x280] sm:$0xff]   ;;  %v17100_v19 = vld [vmem:[%s20663_s13 + $0xd0] sm:$0xff]  }
0x1d9b   :  { %v17101_v52 = vld [vmem:[%s20663_s13 + $0xd8] sm:$0x3f]   ;;  %vm20730_vm9 = vmmov %vm20713_vm2 }
0x1d9c   :  { %v13293_v2 = vsel %vm20729_vm7, %v17101_v52, 0  ;;  %vm20731_vm10 = vmmov %vm20713_vm2  ;;  %v17125_v52 = vld [vmem:[%s20663_s13 + $0xf8] sm:$0xff]  }
0x1d9d   :  { %v12882_v50 = vpop.permute.xlu1 %12881  ;;  %v12867_v29 = vpop.permute.xlu0 %12866 }
0x1d9e   :  { %v12895_v56 = vsel %vm1407_vm12, %v12894_v20, %v12882_v50  ;;  %v12890_v30 = vsel %vm1397_vm11, %v12889_v37, %v12867_v29  ;;  %v17097_v50 = vld [vmem:[%s20663_s13 + $0xb8] sm:$0xff]   ;;  %v17098_v29 = vld [vmem:[%s20663_s13 + $0xc0] sm:$0xff]   ;;  %vm20732_vm11 = vmmov %vm20713_vm2 }
0x1d9f   :  { %v17119_v20 = vld [vmem:[#allocation4 + $0x2a0] sm:$0xff]   ;;  %vm20733_vm12 = vmmov %vm20713_vm2 }
0x1da1   :  { %v12885_v8 = vpop.permute.xlu1 %12884  ;;  %v12870_v53 = vpop.permute.xlu0 %12869 }
0x1da2   :  { %v12896_v9 = vsel %vm425_vm3, %v12895_v56, %v12885_v8  ;;  %v12891_v54 = vsel %vm20728_vm13, %v12890_v30, %v12870_v53  ;;  %vm20742_vm13 = vmmov %vm20713_vm2 }
0x1da3   :  { %v12924_v11 = vrot.slane %v12896_v9, %v17814_v60  ;;  %v12892_v44 = vsel %vm1401_vm14, %v12891_v54, %v12873_v63  ;;  %v17084_v63 = vld [vmem:[#allocation4 + $0x268] sm:$0xff]   ;;  %vm20734_vm14 = vmmov %vm20729_vm7 }
0x1da4   :  { %v12920_v1 = vrot.slane %v12892_v44, %v17814_v60  ;;  %v17120_v54 = vld [vmem:[#allocation4 + $0x2a8] sm:$0xff]  }
0x1da5   :  { %v12926_v21 = vadd.f32 %v12924_v11, %v12906_v24  ;;  %v12928_v26 = vadd.f32 %v12924_v11, %v12908_v46  ;;  %v12930_v58 = vadd.f32 %v12924_v11, %v12910_v4  ;;  %v12932_v7 = vadd.f32 %v12924_v11, %v12912_v51 }
0x1da6   :  { %v12925_v31 = vadd.f32 %v12920_v1, %v12905_v32  ;;  %v12927_v28 = vadd.f32 %v12920_v1, %v12907_v42  ;;  %v12929_v47 = vadd.f32 %v12920_v1, %v12909_v61  ;;  %v12931_v41 = vadd.f32 %v12920_v1, %v12911_v38 }
0x1da7   :  { %v20203_v14 = vpack.c.bf16 %v12928_v26, %v12926_v21  ;;  %v20211_v35 = vpack.c.bf16 %v12932_v7, %v12930_v58  ;;  %v12934_v18 = vadd.f32 %v12924_v11, %v12914_v45  ;;  %v12936_v25 = vadd.f32 %v12924_v11, %v12916_v3 }
0x1da8   :  { %v20207_v16 = vpack.c.bf16 %v12927_v28, %v12925_v31  ;;  %v20219_v49 = vpack.c.bf16 %v12931_v41, %v12929_v47  ;;  %v12933_v57 = vadd.f32 %v12920_v1, %v12913_v40  ;;  %v12935_v39 = vadd.f32 %v12920_v1, %v12915_v5  ;;  %v17121_v1 = vld [vmem:[#allocation4 + $0x2b0] sm:$0xff]   ;;  %v17102_v47 = vld [vmem:[%s20663_s13] sm:$0xff]  }
0x1da9   :  { %12974 = vmatprep.subr.bf16.mxu1 %v20203_v14  ;;  %13822 = vmatprep.subr.bf16.mxu0 %v20203_v14  ;;  %v20221_v10 = vpack.c.bf16 %v12936_v25, %v12934_v18  ;;  %v17103_v18 = vld [vmem:[%s20663_s13 + $0x8] sm:$0xff]  }
0x1daa   :  { %12975 = vmatpush1.bf16.msra.mxu1 %v20207_v16  ;;  %13823 = vmatpush1.bf16.msra.mxu0 %v20207_v16  ;;  %v20227_v17 = vpack.c.bf16 %v12935_v39, %v12933_v57 }
0x1dab   :  { %12976 = vmatprep.subr.bf16.mxu1 %v20211_v35  ;;  %13824 = vmatprep.subr.bf16.mxu0 %v20211_v35 }
0x1dae   :  { %12977 = vmatpush1.bf16.msra.mxu1 %v20219_v49  ;;  %13825 = vmatpush1.bf16.msra.mxu0 %v20219_v49 }
0x1daf   :  { %12978 = vmatprep.subr.bf16.mxu1 %v20221_v10  ;;  %13826 = vmatprep.subr.bf16.mxu0 %v20221_v10 }
0x1db2   :  { %12979 = vmatpush1.bf16.msra.mxu1 %v20227_v17  ;;  %13827 = vmatpush1.bf16.msra.mxu0 %v20227_v17 }
0x1db3   :  { %13102 = vmatprep.subr.bf16.mxu1 %v20203_v14 }
0x1db5   :  { %15166 = vmatmul.mubr.msk.bf16.vlgmr.msra.gmra.mrb[216].mxu1 %vm200_vm1, %v17082_v36  ;;  %15291 = vmatmul.mubr.msk.bf16.vlgmr.msra.gmra.mrb[116].mxu0 %vm200_vm1, %v17119_v20  ;;  %v17104_v36 = vld [vmem:[%s20663_s13 + $0x10] sm:$0xff]   ;;  %v17127_v20 = vld [vmem:[%s20663_s13 + $0x108] sm:$0xff]  }
0x1db6   :  { %13103 = vmatpush1.bf16.msra.mxu1 %v20207_v16  ;;  %13016 = vmatprep.mubr.bf16.mxu1 %v17391_v34 }
0x1db7   :  { %13104 = vmatprep.subr.bf16.mxu1 %v20211_v35  ;;  %13864 = vmatprep.mubr.bf16.mxu0 %v17391_v34 }
0x1dba   :  { %13105 = vmatpush1.bf16.msra.mxu1 %v20219_v49 }
0x1dbb   :  { %13106 = vmatprep.subr.bf16.mxu1 %v20221_v10 }
0x1dbd   :  { %15167 = vmatmul.mubr.msk.bf16.gmra.mrb[220].mxu1 %vm200_vm1, %v17083_v15  ;;  %15292 = vmatmul.mubr.msk.bf16.gmra.mrb[120].mxu0 %vm200_vm1, %v17120_v54  ;;  %v17134_v54 = vld [vmem:[%s20663_s13 + $0x140] sm:$0xff]  }
0x1dbe   :  { %13107 = vmatpush1.bf16.msra.mxu1 %v20227_v17  ;;  %13026 = vmatprep.mubr.bf16.mxu1 %v17391_v34 }
0x1dbf   :  { %13295 = vmatprep.subr.bf16.mxu1 %v17391_v34  ;;  %13874 = vmatprep.mubr.bf16.mxu0 %v17391_v34 }
0x1dc5   :  { %15168 = vmatmul.mubr.msk.bf16.gmra.mrb[224].mxu1 %vm200_vm1, %v17084_v63  ;;  %15293 = vmatmul.mubr.msk.bf16.gmra.mrb[124].mxu0 %vm200_vm1, %v17121_v1  ;;  %v17105_v63 = vld [vmem:[%s20663_s13 + $0x18] sm:$0xff]  }
0x1dc6   :  { %13134 = vmatprep.mubr.bf16.mxu1 %v17391_v34 }
0x1dcd   :  { %15172 = vmatmul.mubr.msk.bf16.vlgmr.msra.gmra.mrb[228].mxu1 %vm200_vm1, %v17085_v6 }
0x1dce   :  { %13144 = vmatprep.mubr.bf16.mxu1 %v17391_v34  ;;  %13296 = vmatpush1.bf16.msra.mxu1 %v17088_v22 }
0x1dcf   :  { %13297 = vmatprep.subr.bf16.mxu1 %v17391_v34 }
0x1dd2   :  { %13298 = vmatpush1.bf16.msra.mxu1 %v17089_v33 }
0x1dd3   :  { %13299 = vmatprep.subr.bf16.mxu1 %v17391_v34 }
0x1dd5   :  { %15173 = vmatmul.mubr.msk.bf16.gmra.mrb[232].mxu1 %vm200_vm1, %v17086_v0 }
0x1dd6   :  { %13154 = vmatprep.mubr.bf16.mxu1 %v17391_v34  ;;  %13300 = vmatpush1.bf16.msra.mxu1 %v17090_v43 }
0x1dd7   :  { %13301 = vmatprep.subr.bf16.mxu1 %v17391_v34 }
0x1dda   :  { %13302 = vmatpush1.bf16.msra.mxu1 %v17091_v23  ;;  %v17106_v23 = vld [vmem:[%s20663_s13 + $0x20] sm:$0xff]  }
0x1ddb   :  { %13303 = vmatprep.subr.bf16.mxu1 %v17391_v34 }
0x1ddd   :  { %15174 = vmatmul.mubr.msk.bf16.gmra.mrb[236].mxu1 %vm200_vm1, %v17087_v62  ;;  %v17107_v62 = vld [vmem:[%s20663_s13 + $0x28] sm:$0xff]  }
0x1dde   :  { %13304 = vmatpush1.bf16.msra.mxu1 %v17092_v27  ;;  %v17108_v27 = vld [vmem:[%s20663_s13 + $0x30] sm:$0xff]  }
0x1ddf   :  { %13305 = vmatprep.subr.bf16.mxu1 %v17391_v34 }
0x1de2   :  { %13306 = vmatpush1.bf16.msra.mxu1 %v17093_v13  ;;  %v17109_v13 = vld [vmem:[%s20663_s13 + $0x38] sm:$0xff]  }
0x1de3   :  { %13307 = vmatprep.subr.bf16.mxu1 %v17391_v34 }
0x1de6   :  { %13308 = vmatpush1.bf16.msra.mxu1 %v17094_v55  ;;  %v17110_v55 = vld [vmem:[%s20663_s13 + $0x40] sm:$0xff]  }
0x1de7   :  { %13309 = vmatprep.subr.bf16.mxu1 %v17391_v34 }
0x1dea   :  { %13310 = vmatpush1.bf16.msra.mxu1 %v17095_v59  ;;  %v17111_v59 = vld [vmem:[%s20663_s13 + $0x48] sm:$0xff]  }
0x1deb   :  { %13311 = vmatprep.subr.bf16.mxu1 %v17391_v34 }
0x1dee   :  { %13312 = vmatpush1.bf16.msra.mxu1 %v17096_v48  ;;  %v17112_v48 = vld [vmem:[%s20663_s13 + $0x50] sm:$0xff]  }
0x1def   :  { %13313 = vmatprep.subr.bf16.mxu1 %v17391_v34 }
0x1df2   :  { %13314 = vmatpush1.bf16.msra.mxu1 %v17097_v50  ;;  %v17113_v50 = vld [vmem:[%s20663_s13 + $0x58] sm:$0xff]  }
0x1df3   :  { %13315 = vmatprep.subr.bf16.mxu1 %v17391_v34 }
0x1df6   :  { %13316 = vmatpush1.bf16.msra.mxu1 %v17098_v29  ;;  %v17114_v29 = vld [vmem:[%s20663_s13 + $0x60] sm:$0xff]  }
0x1df7   :  { %13317 = vmatprep.subr.bf16.mxu1 %v17391_v34 }
0x1dfa   :  { %13318 = vmatpush1.bf16.msra.mxu1 %v17099_v12  ;;  %v17115_v12 = vld [vmem:[%s20663_s13 + $0x68] sm:$0x3f]  }
0x1dfb   :  { %13319 = vmatprep.subr.bf16.mxu1 %v17391_v34 }
0x1dfe   :  { %13320 = vmatpush1.bf16.msra.mxu1 %v17100_v19  ;;  %v13445_v19 = vsel %vm20734_vm14, %v17115_v12, 0 }
0x1dff   :  { %13321 = vmatprep.subr.bf16.mxu1 %v17391_v34 }
0x1e02   :  { %13322 = vmatpush1.bf16.msra.mxu1 %v13293_v2  ;;  %v17126_v2 = vld [vmem:[%s20663_s13 + $0x100] sm:$0xff]  }
0x1e03   :  { %13447 = vmatprep.subr.bf16.mxu1 %v17391_v34 }
0x1e88   :  { %v20306_v37 = vpop.f32.mrb[216].mxu1  ;;  %v20491_v1 = vpop.f32.mrb[116].mxu0 }
0x1e89   :  { %v20308_v56 = vpop.f32.mrb[217].mxu1 }
0x1e8a   :  { %v20311_v30 = vpop.f32.mrb[218].mxu1 }
0x1e8b   :  { %v13037_v8 = vpack.c.bf16 %v20311_v30, %v20306_v37  ;;  %v13014_v53 = vpop.f32.mrb[219].mxu1  ;;  %v17128_v37 = vld [vmem:[%s20663_s13 + $0x110] sm:$0xff]   ;;  %v17130_v30 = vld [vmem:[%s20663_s13 + $0x120] sm:$0xff]  }
0x1e8c   :  { %v13038_v9 = vpack.c.bf16 %v13014_v53, %v20308_v56  ;;  %v17129_v56 = vld [vmem:[%s20663_s13 + $0x118] sm:$0xff]   ;;  %v17132_v53 = vld [vmem:[%s20663_s13 + $0x130] sm:$0xff]  }
0x1e90   :  { %v20317_v24 = vpop.f32.mrb[220].mxu1 }
0x1e91   :  { %v20319_v46 = vpop.f32.mrb[221].mxu1 }
0x1e92   :  { %v20322_v11 = vpop.f32.mrb[222].mxu1 }
0x1e93   :  { %v13039_v44 = vpack.c.bf16 %v20322_v11, %v20317_v24  ;;  %v20327_v4 = vpop.f32.mrb[223].mxu1  ;;  %v17135_v24 = vld [vmem:[%s20663_s13 + $0x148] sm:$0x3f]  }
0x1e94   :  { %v13040_v51 = vpack.c.bf16 %v20327_v4, %v20319_v46 }
0x1e98   :  { %v20331_v32 = vpop.f32.mrb[224].mxu1 }
0x1e99   :  { %v20333_v42 = vpop.f32.mrb[225].mxu1 }
0x1e9a   :  { %v20336_v21 = vpop.f32.mrb[226].mxu1 }
0x1e9b   :  { %v13041_v26 = vpack.c.bf16 %v20336_v21, %v20331_v32  ;;  %v20340_v58 = vpop.f32.mrb[227].mxu1  ;;  %v20493_v32 = vpop.f32.mrb[117].mxu0 }
0x1e9c   :  { %v13042_v7 = vpack.c.bf16 %v20340_v58, %v20333_v42  ;;  %v20495_v42 = vpop.f32.mrb[118].mxu0 }
0x1e9d   :  { %v20499_v58 = vpop.f32.mrb[119].mxu0 }
0x1ea0   :  { %v13136_v31 = vpop.f32.mrb[228].mxu1 }
0x1ea1   :  { %v13138_v28 = vpop.f32.mrb[229].mxu1 }
0x1ea2   :  { %v13140_v61 = vpop.f32.mrb[230].mxu1 }
0x1ea3   :  { %v13165_v38 = vpack.c.bf16 %v13140_v61, %v13136_v31  ;;  %v13142_v45 = vpop.f32.mrb[231].mxu1  ;;  %v13886_v31 = vpack.c.bf16 %v20499_v58, %v20493_v32  ;;  %v17144_v32 = vld [vmem:[%s20663_s13 + $0x190] sm:$0xff]   ;;  %v17145_v58 = vld [vmem:[%s20663_s13 + $0x198] sm:$0xff]  }
0x1ea4   :  { %v13166_v3 = vpack.c.bf16 %v13142_v45, %v13138_v28 }
0x1ea6   :  { %15217 = vmatprep.mubr.msk.bf16.mxu1 %vm20730_vm9, %v13166_v3 }
0x1ea7   :  { %13328 = vmatmul.mubr.bf16.vlgmr.msra.gmra.mrb[240].mxu1 %v13165_v38  ;;  %v20503_v38 = vpop.f32.mrb[120].mxu0 }
0x1ea8   :  { %13448 = vmatpush1.bf16.msra.mxu1 %v17102_v47  ;;  %v13146_v41 = vpop.f32.mrb[232].mxu1  ;;  %v20505_v45 = vpop.f32.mrb[121].mxu0 }
0x1ea9   :  { %v13148_v25 = vpop.f32.mrb[233].mxu1  ;;  %13449 = vmatprep.subr.bf16.mxu1 %v17391_v34  ;;  %v20507_v3 = vpop.f32.mrb[122].mxu0 }
0x1eaa   :  { %v13150_v40 = vpop.f32.mrb[234].mxu1 }
0x1eab   :  { %v13167_v5 = vpack.c.bf16 %v13150_v40, %v13146_v41  ;;  %v13152_v57 = vpop.f32.mrb[235].mxu1  ;;  %v13887_v41 = vpack.c.bf16 %v20507_v3, %v20503_v38 }
0x1eac   :  { %v13168_v39 = vpack.c.bf16 %v13152_v57, %v13148_v25  ;;  %13450 = vmatpush1.bf16.msra.mxu1 %v17103_v18  ;;  %v20511_v18 = vpop.f32.mrb[123].mxu0 }
0x1ead   :  { %13451 = vmatprep.subr.bf16.mxu1 %v17391_v34  ;;  %v13888_v40 = vpack.c.bf16 %v20511_v18, %v20505_v45 }
0x1eae   :  { %15218 = vmatprep.mubr.msk.bf16.mxu1 %vm20731_vm10, %v13168_v39  ;;  %v20515_v39 = vpop.f32.mrb[124].mxu0 }
0x1eaf   :  { %13336 = vmatmul.mubr.bf16.gmra.mrb[244].mxu1 %v13167_v5 }
0x1eb0   :  { %13452 = vmatpush1.bf16.msra.mxu1 %v17104_v36  ;;  %v13156_v15 = vpop.f32.mrb[236].mxu1  ;;  %v20517_v36 = vpop.f32.mrb[125].mxu0 }
0x1eb1   :  { %v13158_v6 = vpop.f32.mrb[237].mxu1  ;;  %13453 = vmatprep.subr.bf16.mxu1 %v17391_v34 }
0x1eb2   :  { %v13160_v22 = vpop.f32.mrb[238].mxu1 }
0x1eb3   :  { %v13169_v33 = vpack.c.bf16 %v13160_v22, %v13156_v15  ;;  %v13162_v0 = vpop.f32.mrb[239].mxu1  ;;  %v20519_v15 = vpop.f32.mrb[126].mxu0 }
0x1eb4   :  { %v13170_v43 = vpack.c.bf16 %v13162_v0, %v13158_v6  ;;  %13454 = vmatpush1.bf16.msra.mxu1 %v17105_v63  ;;  %v13889_v63 = vpack.c.bf16 %v20519_v15, %v20515_v39  ;;  %v20523_v6 = vpop.f32.mrb[127].mxu0 }
0x1eb5   :  { %13455 = vmatprep.subr.bf16.mxu1 %v17391_v34  ;;  %v13890_v22 = vpack.c.bf16 %v20523_v6, %v20517_v36 }
0x1eb6   :  { %15219 = vmatprep.mubr.msk.bf16.mxu1 %vm20732_vm11, %v13170_v43 }
0x1eb7   :  { %13344 = vmatmul.mubr.bf16.gmra.mrb[248].mxu1 %v13169_v33 }
0x1eb8   :  { %13456 = vmatpush1.bf16.msra.mxu1 %v17106_v23  ;;  %15234 = vmatprep.mubr.msk.bf16.mxu1 %vm20733_vm12, %v13038_v9  ;;  %v17133_v9 = vld [vmem:[%s20663_s13 + $0x138] sm:$0xff]  }
0x1eb9   :  { %13457 = vmatprep.subr.bf16.mxu1 %v17391_v34 }
0x1ebc   :  { %13458 = vmatpush1.bf16.msra.mxu1 %v17107_v62 }
0x1ebd   :  { %13459 = vmatprep.subr.bf16.mxu1 %v17391_v34 }
0x1ec0   :  { %13460 = vmatpush1.bf16.msra.mxu1 %v17108_v27 }
0x1ec1   :  { %13461 = vmatprep.subr.bf16.mxu1 %v17391_v34 }
0x1ec4   :  { %13462 = vmatpush1.bf16.msra.mxu1 %v17109_v13 }
0x1ec5   :  { %13463 = vmatprep.subr.bf16.mxu1 %v17391_v34 }
0x1ec8   :  { %13464 = vmatpush1.bf16.msra.mxu1 %v17110_v55 }
0x1ec9   :  { %13465 = vmatprep.subr.bf16.mxu1 %v17391_v34 }
0x1ecc   :  { %13466 = vmatpush1.bf16.msra.mxu1 %v17111_v59 }
0x1ecd   :  { %13467 = vmatprep.subr.bf16.mxu1 %v17391_v34 }
0x1ed0   :  { %13468 = vmatpush1.bf16.msra.mxu1 %v17112_v48 }
0x1ed1   :  { %13469 = vmatprep.subr.bf16.mxu1 %v17391_v34 }
0x1ed4   :  { %13470 = vmatpush1.bf16.msra.mxu1 %v17113_v50 }
0x1ed5   :  { %13471 = vmatprep.subr.bf16.mxu1 %v17391_v34 }
0x1ed8   :  { %13472 = vmatpush1.bf16.msra.mxu1 %v17114_v29 }
0x1ed9   :  { %13473 = vmatprep.subr.bf16.mxu1 %v17391_v34 }
0x1edc   :  { %13474 = vmatpush1.bf16.msra.mxu1 %v13445_v19 }
0x1edd   :  { %13535 = vmatprep.subr.bf16.mxu1 %v20203_v14  ;;  %v17116_v14 = vld [vmem:[#allocation4 + $0x288] sm:$0xff]  }
0x1edf   :  { %13480 = vmatmul.mubr.bf16.vlgmr.msra.gmra.mrb[252].mxu1 %v13037_v8  ;;  %v17131_v8 = vld [vmem:[%s20663_s13 + $0x128] sm:$0xff]  }
0x1ee0   :  { %15235 = vmatprep.mubr.msk.bf16.mxu1 %vm20713_vm2, %v13040_v51  ;;  %13536 = vmatpush1.bf16.msra.mxu1 %v20207_v16  ;;  %v17117_v16 = vld [vmem:[#allocation4 + $0x290] sm:$0xff]  }
0x1ee1   :  { %13537 = vmatprep.subr.bf16.mxu1 %v20211_v35  ;;  %v17122_v35 = vld [vmem:[%s20663_s13 + $0xe0] sm:$0xff]  }
0x1ee4   :  { %13538 = vmatpush1.bf16.msra.mxu1 %v20219_v49  ;;  %v17123_v49 = vld [vmem:[%s20663_s13 + $0xe8] sm:$0xff]  }
0x1ee5   :  { %13539 = vmatprep.subr.bf16.mxu1 %v20221_v10  ;;  %v17118_v10 = vld [vmem:[#allocation4 + $0x298] sm:$0xff]  }
0x1ee7   :  { %13488 = vmatmul.mubr.bf16.gmra.mrb[0].mxu1 %v13039_v44 }
0x1ee8   :  { %15236 = vmatprep.mubr.msk.bf16.mxu1 %vm20735_vm4, %v13042_v7  ;;  %13540 = vmatpush1.bf16.msra.mxu1 %v20227_v17  ;;  %v17124_v17 = vld [vmem:[%s20663_s13 + $0xf0] sm:$0xff]  }
0x1ee9   :  { %13728 = vmatprep.subr.bf16.mxu1 %v17391_v34 }
0x1eef   :  { %13496 = vmatmul.mubr.bf16.gmra.mrb[4].mxu1 %v13041_v26  ;;  %v13885_v26 = vpack.c.bf16 %v20495_v42, %v20491_v1 }
0x1ef0   :  { %13567 = vmatprep.mubr.bf16.mxu1 %v17391_v34 }
0x1ef7   :  { %15240 = vmatmul.mubr.msk.bf16.vlgmr.msra.gmra.mrb[8].mxu1 %vm200_vm1, %v17116_v14 }
0x1ef8   :  { %13577 = vmatprep.mubr.bf16.mxu1 %v17391_v34  ;;  %13729 = vmatpush1.bf16.msra.mxu1 %v17122_v35 }
0x1ef9   :  { %13730 = vmatprep.subr.bf16.mxu1 %v17391_v34 }
0x1efc   :  { %13731 = vmatpush1.bf16.msra.mxu1 %v17123_v49 }
0x1efd   :  { %13732 = vmatprep.subr.bf16.mxu1 %v17391_v34 }
0x1eff   :  { %15241 = vmatmul.mubr.msk.bf16.gmra.mrb[12].mxu1 %vm200_vm1, %v17117_v16 }
0x1f00   :  { %13587 = vmatprep.mubr.bf16.mxu1 %v17391_v34  ;;  %13733 = vmatpush1.bf16.msra.mxu1 %v17124_v17 }
0x1f01   :  { %13734 = vmatprep.subr.bf16.mxu1 %v17391_v34 }
0x1f04   :  { %13735 = vmatpush1.bf16.msra.mxu1 %v17125_v52 }
0x1f05   :  { %13736 = vmatprep.subr.bf16.mxu1 %v17391_v34 }
0x1f07   :  { %15242 = vmatmul.mubr.msk.bf16.gmra.mrb[16].mxu1 %vm200_vm1, %v17118_v10  ;;  %vm20736_vm1 = vmmov %vm20729_vm7 }
0x1f08   :  { %13737 = vmatpush1.bf16.msra.mxu1 %v17126_v2  ;;  %v13726_v46 = vsel %vm20736_vm1, %v17135_v24, 0  ;;  %vm20741_vm0 = vmmov %vm20736_vm1 }
0x1f09   :  { %13738 = vmatprep.subr.bf16.mxu1 %v17391_v34  ;;  %vm20743_vm7 = vmmov %vm20713_vm2 }
0x1f0c   :  { %13739 = vmatpush1.bf16.msra.mxu1 %v17127_v20 }
0x1f0d   :  { %13740 = vmatprep.subr.bf16.mxu1 %v17391_v34 }
0x1f10   :  { %13741 = vmatpush1.bf16.msra.mxu1 %v17128_v37 }
0x1f11   :  { %13742 = vmatprep.subr.bf16.mxu1 %v17391_v34 }
0x1f14   :  { %13743 = vmatpush1.bf16.msra.mxu1 %v17129_v56  ;;  %v17136_v56 = vld [vmem:[%s20663_s13 + $0x150] sm:$0xff]  }
0x1f15   :  { %13744 = vmatprep.subr.bf16.mxu1 %v17391_v34 }
0x1f18   :  { %13745 = vmatpush1.bf16.msra.mxu1 %v17130_v30 }
0x1f19   :  { %13746 = vmatprep.subr.bf16.mxu1 %v17391_v34 }
0x1f1c   :  { %13747 = vmatpush1.bf16.msra.mxu1 %v17131_v8  ;;  %v17137_v8 = vld [vmem:[%s20663_s13 + $0x158] sm:$0xff]  }
0x1f1d   :  { %13748 = vmatprep.subr.bf16.mxu1 %v17391_v34 }
0x1f20   :  { %13749 = vmatpush1.bf16.msra.mxu1 %v17132_v53 }
0x1f21   :  { %13750 = vmatprep.subr.bf16.mxu1 %v17391_v34 }
0x1f24   :  { %13751 = vmatpush1.bf16.msra.mxu1 %v17133_v9 }
0x1f25   :  { %13752 = vmatprep.subr.bf16.mxu1 %v17391_v34 }
0x1f28   :  { %13753 = vmatpush1.bf16.msra.mxu1 %v17134_v54 }
0x1f29   :  { %13754 = vmatprep.subr.bf16.mxu1 %v17391_v34 }
0x1f2c   :  { %13755 = vmatpush1.bf16.msra.mxu1 %v13726_v46 }
0x1f2d   :  { %14015 = vmatprep.subr.bf16.mxu1 %v17391_v34 }
0x1f7a   :  { %v13329_v11 = vpop.f32.mrb[240].mxu1 }
0x1f7b   :  { %v13331_v44 = vpop.f32.mrb[241].mxu1 }
0x1f7c   :  { %v13332_v4 = vpop.f32.mrb[242].mxu1 }
0x1f7d   :  { %v13334_v51 = vpop.f32.mrb[243].mxu1 }
0x1f82   :  { %v13337_v21 = vpop.f32.mrb[244].mxu1 }
0x1f83   :  { %v13339_v7 = vpop.f32.mrb[245].mxu1 }
0x1f84   :  { %v13340_v28 = vpop.f32.mrb[246].mxu1 }
0x1f85   :  { %v13342_v61 = vpop.f32.mrb[247].mxu1 }
0x1f8a   :  { %v13345_v47 = vpop.f32.mrb[248].mxu1 }
0x1f8b   :  { %v13347_v25 = vpop.f32.mrb[249].mxu1 }
0x1f8c   :  { %v13348_v5 = vpop.f32.mrb[250].mxu1  ;;  %v17141_v25 = vld [vmem:[%s20663_s13 + $0x178] sm:$0xff]  }
0x1f8d   :  { %v13350_v57 = vpop.f32.mrb[251].mxu1 }
0x1f8e   :  { %v17143_v57 = vld [vmem:[%s20663_s13 + $0x188] sm:$0xff]  }
0x1fb2   :  { %v13481_v33 = vpop.f32.mrb[252].mxu1 }
0x1fb3   :  { %v20527_v0 = vadd.f32 %v13481_v33, %v13329_v11  ;;  %v13483_v43 = vpop.f32.mrb[253].mxu1  ;;  %v17138_v11 = vld [vmem:[%s20663_s13 + $0x160] sm:$0xff]   ;;  %v17147_v33 = vld [vmem:[%s20663_s13 + $0x1a8] sm:$0xff]  }
0x1fb4   :  { %v13484_v23 = vpop.f32.mrb[254].mxu1  ;;  %v17148_v43 = vld [vmem:[%s20663_s13 + $0x1b0] sm:$0xff]  }
0x1fb5   :  { %v20529_v62 = vadd.f32 %v13484_v23, %v13332_v4  ;;  %v13486_v27 = vpop.f32.mrb[255].mxu1  ;;  %v17139_v4 = vld [vmem:[%s20663_s13 + $0x168] sm:$0xff]   ;;  %v17149_v23 = vld [vmem:[%s20663_s13 + $0x1b8] sm:$0x3f]  }
0x1fb6   :  { %v14013_v27 = vsel %vm20741_vm0, %v17149_v23, 0 }
0x1fba   :  { %v13489_v13 = vpop.f32.mrb[0].mxu1 }
0x1fbb   :  { %v20531_v55 = vadd.f32 %v13489_v13, %v13337_v21  ;;  %v13491_v59 = vpop.f32.mrb[1].mxu1 }
0x1fbc   :  { %v13492_v48 = vpop.f32.mrb[2].mxu1  ;;  %v14079_v59 = vld [vmem:[#allocation6 + $0x15] sm:$0x7] }
0x1fbd   :  { %v20533_v50 = vadd.f32 %v13492_v48, %v13340_v28  ;;  %v13494_v29 = vpop.f32.mrb[3].mxu1 }
0x1fc2   :  { %v13497_v12 = vpop.f32.mrb[4].mxu1 }
0x1fc3   :  { %v20535_v19 = vadd.f32 %v13497_v12, %v13345_v47  ;;  %v13499_v14 = vpop.f32.mrb[5].mxu1  ;;  %v17140_v47 = vld [vmem:[%s20663_s13 + $0x170] sm:$0xff]  }
0x1fc4   :  { %v13500_v16 = vpop.f32.mrb[6].mxu1 }
0x1fc5   :  { %v20537_v35 = vadd.f32 %v13500_v16, %v13348_v5  ;;  %v13502_v49 = vpop.f32.mrb[7].mxu1  ;;  %v17142_v5 = vld [vmem:[%s20663_s13 + $0x180] sm:$0xff]  }
0x1fca   :  { %v13569_v10 = vpop.f32.mrb[8].mxu1 }
0x1fcb   :  { %v13571_v17 = vpop.f32.mrb[9].mxu1 }
0x1fcc   :  { %v13573_v52 = vpop.f32.mrb[10].mxu1 }
0x1fcd   :  { %v13598_v2 = vpack.c.bf16 %v13573_v52, %v13569_v10  ;;  %v13575_v20 = vpop.f32.mrb[11].mxu1 }
0x1fce   :  { %v13599_v37 = vpack.c.bf16 %v13575_v20, %v13571_v17 }
0x1fd0   :  { %15285 = vmatprep.mubr.msk.bf16.mxu1 %vm20737_vm5, %v13599_v37 }
0x1fd1   :  { %13761 = vmatmul.mubr.bf16.vlgmr.msra.gmra.mrb[20].mxu1 %v13598_v2 }
0x1fd2   :  { %14016 = vmatpush1.bf16.msra.mxu1 %v17136_v56  ;;  %v13579_v30 = vpop.f32.mrb[12].mxu1 }
0x1fd3   :  { %v13581_v53 = vpop.f32.mrb[13].mxu1  ;;  %14017 = vmatprep.subr.bf16.mxu1 %v17391_v34 }
0x1fd4   :  { %v13583_v9 = vpop.f32.mrb[14].mxu1 }
0x1fd5   :  { %v13600_v54 = vpack.c.bf16 %v13583_v9, %v13579_v30  ;;  %v13585_v24 = vpop.f32.mrb[15].mxu1 }
0x1fd6   :  { %v13601_v46 = vpack.c.bf16 %v13585_v24, %v13581_v53  ;;  %14018 = vmatpush1.bf16.msra.mxu1 %v17137_v8 }
0x1fd7   :  { %14019 = vmatprep.subr.bf16.mxu1 %v17391_v34 }
0x1fd8   :  { %15286 = vmatprep.mubr.msk.bf16.mxu1 %vm20738_vm6, %v13601_v46 }
0x1fd9   :  { %13769 = vmatmul.mubr.bf16.gmra.mrb[24].mxu1 %v13600_v54 }
0x1fda   :  { %14020 = vmatpush1.bf16.msra.mxu1 %v17138_v11  ;;  %v13589_v44 = vpop.f32.mrb[16].mxu1 }
0x1fdb   :  { %v13591_v51 = vpop.f32.mrb[17].mxu1  ;;  %14021 = vmatprep.subr.bf16.mxu1 %v17391_v34 }
0x1fdc   :  { %v13593_v21 = vpop.f32.mrb[18].mxu1 }
0x1fdd   :  { %v13602_v7 = vpack.c.bf16 %v13593_v21, %v13589_v44  ;;  %v13595_v28 = vpop.f32.mrb[19].mxu1 }
0x1fde   :  { %v13603_v61 = vpack.c.bf16 %v13595_v28, %v13591_v51  ;;  %14022 = vmatpush1.bf16.msra.mxu1 %v17139_v4 }
0x1fdf   :  { %14023 = vmatprep.subr.bf16.mxu1 %v17391_v34 }
0x1fe0   :  { %15287 = vmatprep.mubr.msk.bf16.mxu1 %vm20739_vm8, %v13603_v61 }
0x1fe1   :  { %13777 = vmatmul.mubr.bf16.gmra.mrb[28].mxu1 %v13602_v7 }
0x1fe2   :  { %14024 = vmatpush1.bf16.msra.mxu1 %v17140_v47  ;;  %15336 = vmatprep.mubr.msk.bf16.mxu1 %vm20740_vm15, %v13886_v31  ;;  %v17146_v31 = vld [vmem:[%s20663_s13 + $0x1a0] sm:$0xff]  }
0x1fe3   :  { %14025 = vmatprep.subr.bf16.mxu1 %v17391_v34 }
0x1fe6   :  { %14026 = vmatpush1.bf16.msra.mxu1 %v17141_v25 }
0x1fe7   :  { %14027 = vmatprep.subr.bf16.mxu1 %v17391_v34 }
0x1fea   :  { %14028 = vmatpush1.bf16.msra.mxu1 %v17142_v5 }
0x1feb   :  { %14029 = vmatprep.subr.bf16.mxu1 %v17391_v34 }
0x1fee   :  { %14030 = vmatpush1.bf16.msra.mxu1 %v17143_v57 }
0x1fef   :  { %14031 = vmatprep.subr.bf16.mxu1 %v17391_v34 }
0x1ff2   :  { %14032 = vmatpush1.bf16.msra.mxu1 %v17144_v32 }
0x1ff3   :  { %14033 = vmatprep.subr.bf16.mxu1 %v17391_v34 }
0x1ff6   :  { %14034 = vmatpush1.bf16.msra.mxu1 %v17145_v58 }
0x1ff7   :  { %14035 = vmatprep.subr.bf16.mxu1 %v17391_v34 }
0x1ffa   :  { %14036 = vmatpush1.bf16.msra.mxu1 %v17146_v31 }
0x1ffb   :  { %14037 = vmatprep.subr.bf16.mxu1 %v17391_v34 }
0x1ffe   :  { %14038 = vmatpush1.bf16.msra.mxu1 %v17147_v33 }
0x1fff   :  { %14039 = vmatprep.subr.bf16.mxu1 %v17391_v34 }
0x2002   :  { %14040 = vmatpush1.bf16.msra.mxu1 %v17148_v43 }
0x2003   :  { %14041 = vmatprep.subr.bf16.mxu1 %v17391_v34 }
0x2006   :  { %14042 = vmatpush1.bf16.msra.mxu1 %v14013_v27 }
0x2009   :  { %14048 = vmatmul.mubr.bf16.vlgmr.msra.gmra.mrb[32].mxu1 %v13885_v26 }
0x200a   :  { %15337 = vmatprep.mubr.msk.bf16.mxu1 %vm20742_vm13, %v13888_v40 }
0x2011   :  { %14056 = vmatmul.mubr.bf16.gmra.mrb[36].mxu1 %v13887_v41 }
0x2012   :  { %15338 = vmatprep.mubr.msk.bf16.mxu1 %vm20743_vm7, %v13890_v22 }
0x2019   :  { %14064 = vmatmul.mubr.bf16.gmra.mrb[40].mxu1 %v13889_v63 }
0x20a4   :  { %v13762_v34 = vpop.f32.mrb[20].mxu1 }
0x20a5   :  { %v13785_v1 = vadd.f32 %v13762_v34, %v20527_v0  ;;  %v13764_v42 = vpop.f32.mrb[21].mxu1 }
0x20a6   :  { %v13765_v26 = vpop.f32.mrb[22].mxu1 }
0x20a7   :  { %v13786_v45 = vadd.f32 %v13765_v26, %v20529_v62  ;;  %v13767_v18 = vpop.f32.mrb[23].mxu1  ;;  %v14084_v62 = vrot.slane %v14079_v59, %v17814_v60 }
0x20ac   :  { %v13770_v40 = vpop.f32.mrb[24].mxu1 }
0x20ad   :  { %v13787_v38 = vadd.f32 %v13770_v40, %v20531_v55  ;;  %v13772_v3 = vpop.f32.mrb[25].mxu1 }
0x20ae   :  { %v13773_v41 = vpop.f32.mrb[26].mxu1 }
0x20af   :  { %v13788_v36 = vadd.f32 %v13773_v41, %v20533_v50  ;;  %v13775_v6 = vpop.f32.mrb[27].mxu1 }
0x20b4   :  { %v13778_v22 = vpop.f32.mrb[28].mxu1 }
0x20b5   :  { %v13789_v39 = vadd.f32 %v13778_v22, %v20535_v19  ;;  %v13780_v15 = vpop.f32.mrb[29].mxu1 }
0x20b6   :  { %v13781_v63 = vpop.f32.mrb[30].mxu1 }
0x20b7   :  { %v13790_v0 = vadd.f32 %v13781_v63, %v20537_v35  ;;  %v13783_v13 = vpop.f32.mrb[31].mxu1 }
0x20dc   :  { %v14049_v48 = vpop.f32.mrb[32].mxu1 }
0x20dd   :  { %v14072_v29 = vadd.f32 %v14049_v48, %v13785_v1  ;;  %v14051_v12 = vpop.f32.mrb[33].mxu1 }
0x20de   :  { %v14052_v55 = vpop.f32.mrb[34].mxu1 }
0x20df   :  { %v14086_v14 = vadd.f32 %v14084_v62, %v14072_v29  ;;  %v14073_v16 = vadd.f32 %v14052_v55, %v13786_v45  ;;  %v14054_v49 = vpop.f32.mrb[35].mxu1 }
0x20e1   :  { %14092 = vst.msk [vmem:[%s20664_s14] sm:$0xff] %vm425_vm3, %v14086_v14  ;;  %v14087_v50 = vadd.f32 %v14084_v62, %v14073_v16 }
0x20e3   :  { %14093 = vst.msk [vmem:[%s20664_s14 + $0x8] sm:$0xff] %vm425_vm3, %v14087_v50 }
0x20e4   :  { %v14057_v19 = vpop.f32.mrb[36].mxu1 }
0x20e5   :  { %v14074_v60 = vadd.f32 %v14057_v19, %v13787_v38  ;;  %v14059_v35 = vpop.f32.mrb[37].mxu1 }
0x20e6   :  { %v14060_v10 = vpop.f32.mrb[38].mxu1 }
0x20e7   :  { %v14088_v17 = vadd.f32 %v14084_v62, %v14074_v60  ;;  %v14075_v52 = vadd.f32 %v14060_v10, %v13788_v36  ;;  %v14062_v2 = vpop.f32.mrb[39].mxu1 }
0x20e9   :  { %14094 = vst.msk [vmem:[%s20664_s14 + $0x10] sm:$0xff] %vm425_vm3, %v14088_v17  ;;  %v14089_v20 = vadd.f32 %v14084_v62, %v14075_v52 }
0x20eb   :  { %14095 = vst.msk [vmem:[%s20664_s14 + $0x18] sm:$0xff] %vm425_vm3, %v14089_v20 }
0x20ec   :  { %v14065_v37 = vpop.f32.mrb[40].mxu1 }
0x20ed   :  { %v14076_v56 = vadd.f32 %v14065_v37, %v13789_v39  ;;  %v14067_v30 = vpop.f32.mrb[41].mxu1 }
0x20ee   :  { %v14068_v8 = vpop.f32.mrb[42].mxu1 }
0x20ef   :  { %v14090_v53 = vadd.f32 %v14084_v62, %v14076_v56  ;;  %v14077_v9 = vadd.f32 %v14068_v8, %v13790_v0  ;;  %v14070_v54 = vpop.f32.mrb[43].mxu1 }
0x20f1   :  { %14096 = vst.msk [vmem:[%s20664_s14 + $0x20] sm:$0xff] %vm425_vm3, %v14090_v53  ;;  %v14091_v24 = vadd.f32 %v14084_v62, %v14077_v9 }
0x20f3   :  { %14097 = vst.msk [vmem:[%s20664_s14 + $0x28] sm:$0xff] %vm425_vm3, %v14091_v24 }
0x20f4   :  { %14102 = vsyncpa [#allocation3], 1 }
0x20f5   :  { %14103 = vsyncpa [#allocation5], 1 }
0x20f6   :  { %14104 = vsyncpa [#allocation8], 1 }
0x20f7   :  { %14105 = vsyncpa [#allocation11], 1 }
0x20f8   :  { %14106 = vsyncpa [#allocation14], 1 }

</bundles_post_ra>
